<compile_context>
chip_gen: v6e
topology: v6e:2x2x1
jax: 0.10.0
libtpu: 0.0.40
codegen_flags: <defaults>
</compile_context>

<pallas_src>
import math

import jax
import jax.numpy as jnp
from jax.experimental import pallas as pl
from jax.experimental.pallas import tpu as pltpu

# Keep both the in-kernel MXU matmuls and the pure-JAX reference at full f32
# precision so the correctness check is apples-to-apples.
jax.config.update("jax_default_matmul_precision", "highest")

# ---- model hyperparameters (small, lane/sublane aligned) ----
SEQ = 8            # sequence length       (== sublane width)
BATCH = 2          # batch size
D_MODEL = 128      # d_model               (== lane width -> dense stores)
NHEAD = 4          # nhead
HEAD_DIM = D_MODEL // NHEAD
D_FF = 256         # dim_feedforward (kept small; PyTorch default is 2048)
NUM_LAYERS = 2     # num_layers
SCALE = 1.0 / math.sqrt(HEAD_DIM)
LN_EPS = 1e-5
ROWS = BATCH * SEQ  # all 16 rows handled in one kernel invocation


def _layer_norm(x, gamma, beta):
    """LayerNorm over the feature dim, PyTorch semantics (biased variance)."""
    mean = jnp.mean(x, axis=-1, keepdims=True)
    xc = x - mean
    var = jnp.mean(xc * xc, axis=-1, keepdims=True)
    return xc * jax.lax.rsqrt(var + LN_EPS) * gamma + beta


def csca_kernel(x_ref, wqkv_ref, bqkv_ref, wo_ref, bo_ref,
                w1_ref, b1_ref, w2_ref, b2_ref,
                g1_ref, be1_ref, g2_ref, be2_ref, o_ref):
    """All NUM_LAYERS encoder layers fused; x stays resident in VMEM."""
    x = x_ref[...]                                              # (B*S, D)

    for layer in range(NUM_LAYERS):                             # unrolled
        # ---- dense QKV projection: one (B*S, D) @ (D, 3D) matmul.
        # 1/sqrt(head_dim) is pre-folded into the Q columns by the wrapper.
        qkv = jnp.dot(x, wqkv_ref[layer],
                      preferred_element_type=jnp.float32) + bqkv_ref[layer]

        # ---- split into per-(batch, head) tiles: (B*H, S, Dh)
        def split_heads(col0):
            return jnp.stack(
                [qkv[b * SEQ:(b + 1) * SEQ,
                     col0 + h * HEAD_DIM: col0 + (h + 1) * HEAD_DIM]
                 for b in range(BATCH) for h in range(NHEAD)], axis=0)

        qh = split_heads(0)
        kh = split_heads(D_MODEL)
        vh = split_heads(2 * D_MODEL)

        scores = jnp.einsum("hqf,hkf->hqk", qh, kh,
                            preferred_element_type=jnp.float32)   # (B*H,S,S)
        m = jnp.max(scores, axis=-1, keepdims=True)
        p = jnp.exp(scores - m)
        probs = p * pl.reciprocal(jnp.sum(p, axis=-1, keepdims=True),
                                  approx=True)
        ctx = jnp.einsum("hqk,hkf->hqf", probs, vh,
                         preferred_element_type=jnp.float32)      # (B*H,S,Dh)

        # ---- repack heads along lanes -> (B*S, D), then one dense out-proj.
        ctx_packed = jnp.concatenate(
            [jnp.concatenate([ctx[b * NHEAD + h] for h in range(NHEAD)],
                             axis=-1)
             for b in range(BATCH)], axis=0)                      # (B*S, D)
        attn = jnp.dot(ctx_packed, wo_ref[layer],
                       preferred_element_type=jnp.float32) + bo_ref[layer]

        # ---- residual + LayerNorm1 (dropout = identity in eval mode)
        y = _layer_norm(x + attn, g1_ref[layer], be1_ref[layer])

        # ---- feed-forward: Linear -> ReLU -> Linear
        h = jnp.dot(y, w1_ref[layer],
                    preferred_element_type=jnp.float32) + b1_ref[layer]
        h = jnp.maximum(h, 0.0)
        ff = jnp.dot(h, w2_ref[layer],
                     preferred_element_type=jnp.float32) + b2_ref[layer]

        # ---- residual + LayerNorm2
        x = _layer_norm(y + ff, g2_ref[layer], be2_ref[layer])

    o_ref[...] = x.astype(o_ref.dtype)


def _cost_estimate():
    per_layer_flops = (
        2 * ROWS * D_MODEL * 3 * D_MODEL                      # QKV proj
        + 2 * 2 * BATCH * NHEAD * SEQ * SEQ * HEAD_DIM        # scores + ctx
        + 2 * ROWS * D_MODEL * D_MODEL                        # out proj
        + 2 * 2 * ROWS * D_MODEL * D_FF                       # FFN
    )
    per_layer_trans = BATCH * NHEAD * SEQ * SEQ + 2 * ROWS    # exp + rsqrt
    weight_bytes = NUM_LAYERS * 4 * (
        D_MODEL * 3 * D_MODEL + D_MODEL * D_MODEL
        + 2 * D_MODEL * D_FF + 8 * D_MODEL + 2 * D_FF)
    io_bytes = 2 * ROWS * D_MODEL * 4
    return pl.CostEstimate(flops=NUM_LAYERS * per_layer_flops,
                           transcendentals=NUM_LAYERS * per_layer_trans,
                           bytes_accessed=weight_bytes + io_bytes)


def csca_pallas(x_sbd, p):
    """CSCA forward. x_sbd: (S, B, D) (PyTorch batch_first=False layout)."""
    S, B, D = x_sbd.shape
    x2d = jnp.transpose(x_sbd, (1, 0, 2)).reshape(B * S, D)   # row = b*S + s
    vmem = lambda: pl.BlockSpec(memory_space=pltpu.MemorySpace.VMEM)
    out2d = pl.pallas_call(
        csca_kernel,
        out_shape=jax.ShapeDtypeStruct((B * S, D), jnp.float32),
        in_specs=[vmem() for _ in range(13)],
        out_specs=vmem(),
        cost_estimate=_cost_estimate(),
    )(x2d, p["wqkv"], p["bqkv"], p["wo"], p["bo"],
      p["w1"], p["b1"], p["w2"], p["b2"],
      p["g1"], p["be1"], p["g2"], p["be2"])
    return out2d.reshape(B, S, D).transpose(1, 0, 2)           # (S, B, D)


def prepare_params(raw_layers):
    """Rearrange raw PyTorch-shaped params once; stack across layers."""
    D = D_MODEL

    def prep(rp):
        # fold 1/sqrt(head_dim) into the Q projection columns
        scale_cols = jnp.concatenate(
            [jnp.full((D,), SCALE, jnp.float32), jnp.ones((2 * D,), jnp.float32)])
        wqkv = rp["in_proj_weight"].T * scale_cols[None, :]     # (D, 3D)
        bqkv = (rp["in_proj_bias"] * scale_cols).reshape(1, 3 * D)
        return {
            "wqkv": wqkv,
            "bqkv": bqkv,
            "wo": rp["out_proj_weight"].T,                      # (D, D)
            "bo": rp["out_proj_bias"].reshape(1, D),
            "w1": rp["lin1_weight"].T,                          # (D, DFF)
            "b1": rp["lin1_bias"].reshape(1, D_FF),
            "w2": rp["lin2_weight"].T,                          # (DFF, D)
            "b2": rp["lin2_bias"].reshape(1, D),
            "g1": rp["ln1_g"].reshape(1, D),
            "be1": rp["ln1_b"].reshape(1, D),
            "g2": rp["ln2_g"].reshape(1, D),
            "be2": rp["ln2_b"].reshape(1, D),
        }

    per_layer = [prep(rp) for rp in raw_layers]
    return {k: jnp.stack([lp[k] for lp in per_layer], axis=0)
            for k in per_layer[0]}


# ------------------------- pure-JAX reference -------------------------

def _ref_layer(x, rp):
    """x: (B, S, D); PyTorch TransformerEncoderLayer (eval) semantics."""
    B, S, D = x.shape
    w_in, b_in = rp["in_proj_weight"], rp["in_proj_bias"]
    q = x @ w_in[:D].T + b_in[:D]
    k = x @ w_in[D:2 * D].T + b_in[D:2 * D]
    v = x @ w_in[2 * D:].T + b_in[2 * D:]

    def heads(t):
        return t.reshape(B, S, NHEAD, HEAD_DIM).transpose(0, 2, 1, 3)

    qh, kh, vh = heads(q), heads(k), heads(v)
    scores = jnp.einsum("bhqf,bhkf->bhqk", qh, kh) * SCALE
    probs = jax.nn.softmax(scores, axis=-1)
    ctx = jnp.einsum("bhqk,bhkf->bhqf", probs, vh)
    ctx = ctx.transpose(0, 2, 1, 3).reshape(B, S, D)
    attn = ctx @ rp["out_proj_weight"].T + rp["out_proj_bias"]

    y = _layer_norm(x + attn, rp["ln1_g"], rp["ln1_b"])
    h = jnp.maximum(y @ rp["lin1_weight"].T + rp["lin1_bias"], 0.0)
    ff = h @ rp["lin2_weight"].T + rp["lin2_bias"]
    return _layer_norm(y + ff, rp["ln2_g"], rp["ln2_b"])


def csca_reference(x_sbd, raw_layers):
    x = jnp.transpose(x_sbd, (1, 0, 2))
    for rp in raw_layers:
        x = _ref_layer(x, rp)
    return jnp.transpose(x, (1, 0, 2))


def make_layer_params(key):
    ks = jax.random.split(key, 12)
    D, DFF = D_MODEL, D_FF
    return {
        "in_proj_weight": 0.05 * jax.random.normal(ks[0], (3 * D, D), jnp.float32),
        "in_proj_bias":   0.02 * jax.random.normal(ks[1], (3 * D,), jnp.float32),
        "out_proj_weight": 0.05 * jax.random.normal(ks[2], (D, D), jnp.float32),
        "out_proj_bias":  0.02 * jax.random.normal(ks[3], (D,), jnp.float32),
        "lin1_weight":    0.05 * jax.random.normal(ks[4], (DFF, D), jnp.float32),
        "lin1_bias":      0.02 * jax.random.normal(ks[5], (DFF,), jnp.float32),
        "lin2_weight":    0.05 * jax.random.normal(ks[6], (D, DFF), jnp.float32),
        "lin2_bias":      0.02 * jax.random.normal(ks[7], (D,), jnp.float32),
        "ln1_g": 1.0 + 0.1 * jax.random.normal(ks[8], (D,), jnp.float32),
        "ln1_b": 0.05 * jax.random.normal(ks[9], (D,), jnp.float32),
        "ln2_g": 1.0 + 0.1 * jax.random.normal(ks[10], (D,), jnp.float32),
        "ln2_b": 0.05 * jax.random.normal(ks[11], (D,), jnp.float32),
    }


if __name__ == "__main__":
    key = jax.random.PRNGKey(0)
    kx, *layer_keys = jax.random.split(key, NUM_LAYERS + 1)

    # (seq, batch, d_model) — PyTorch batch_first=False input layout
    x = jax.random.normal(kx, (SEQ, BATCH, D_MODEL), dtype=jnp.float32)
    raw_layers = [make_layer_params(k) for k in layer_keys]

    # Weight rearrangement done once (hoisted out of the forward path).
    params = prepare_params(raw_layers)
    csca_jit = jax.jit(csca_pallas)

    out = csca_jit(x, params)
    out = jax.block_until_ready(out)

    ref = csca_reference(x, raw_layers)
    assert out.shape == (SEQ, BATCH, D_MODEL)
    # Tolerance slightly relaxed vs 1e-3 because the softmax denominator uses
    # the EUP approximate reciprocal (pl.reciprocal(..., approx=True)).
    max_diff = float(jnp.max(jnp.abs(out - ref)))
    assert jnp.allclose(out, ref, atol=2e-3, rtol=2e-3), max_diff

    print("KERNEL_OK")
</pallas_src>

<mosaic_0001>
module attributes {stable_mosaic.version = 11 : i64} {
  func.func @csca_kernel(%arg0: memref<16x128xf32, #tpu.memory_space<vmem>>, %arg1: memref<2x128x384xf32, #tpu.memory_space<vmem>>, %arg2: memref<2x1x384xf32, #tpu.memory_space<vmem>>, %arg3: memref<2x128x128xf32, #tpu.memory_space<vmem>>, %arg4: memref<2x1x128xf32, #tpu.memory_space<vmem>>, %arg5: memref<2x128x256xf32, #tpu.memory_space<vmem>>, %arg6: memref<2x1x256xf32, #tpu.memory_space<vmem>>, %arg7: memref<2x256x128xf32, #tpu.memory_space<vmem>>, %arg8: memref<2x1x128xf32, #tpu.memory_space<vmem>>, %arg9: memref<2x1x128xf32, #tpu.memory_space<vmem>>, %arg10: memref<2x1x128xf32, #tpu.memory_space<vmem>>, %arg11: memref<2x1x128xf32, #tpu.memory_space<vmem>>, %arg12: memref<2x1x128xf32, #tpu.memory_space<vmem>>, %arg13: memref<16x128xf32, #tpu.memory_space<vmem>>) attributes {dimension_semantics = [], scalar_prefetch = 0 : i64, scratch_operands = 0 : i64, tpu.core_type = #tpu.core_type<tc>} {
    %c0 = arith.constant 0 : index
    %c0_0 = arith.constant 0 : index
    %0 = vector.load %arg0[%c0, %c0_0] : memref<16x128xf32, #tpu.memory_space<vmem>>, vector<16x128xf32>
    %c0_1 = arith.constant 0 : index
    %c0_2 = arith.constant 0 : index
    %c0_3 = arith.constant 0 : index
    %1 = vector.load %arg1[%c0_1, %c0_2, %c0_3] : memref<2x128x384xf32, #tpu.memory_space<vmem>>, vector<1x128x384xf32>
    %2 = vector.shape_cast %1 : vector<1x128x384xf32> to vector<128x384xf32>
    %cst = arith.constant dense<0.000000e+00> : vector<16x384xf32>
    %3 = tpu.matmul %0, %2, %cst {dimension_numbers = #tpu.dot_dimension_numbers<[1], [0], [0], [1], [0, 0, 1, 1], [], []>, precision = #tpu.contract_precision<fp32>} : vector<16x128xf32>, vector<128x384xf32>, vector<16x384xf32> -> vector<16x384xf32>
    %c0_4 = arith.constant 0 : index
    %c0_5 = arith.constant 0 : index
    %c0_6 = arith.constant 0 : index
    %4 = vector.load %arg2[%c0_4, %c0_5, %c0_6] : memref<2x1x384xf32, #tpu.memory_space<vmem>>, vector<1x1x384xf32>
    %5 = vector.shape_cast %4 : vector<1x1x384xf32> to vector<1x384xf32>
    %6 = vector.broadcast %5 : vector<1x384xf32> to vector<16x384xf32>
    %7 = arith.addf %3, %6 : vector<16x384xf32>
    %8 = vector.extract_strided_slice %7 {offsets = [0, 0], sizes = [8, 32], strides = [1, 1]} : vector<16x384xf32> to vector<8x32xf32>
    %9 = vector.extract_strided_slice %7 {offsets = [0, 32], sizes = [8, 32], strides = [1, 1]} : vector<16x384xf32> to vector<8x32xf32>
    %10 = vector.extract_strided_slice %7 {offsets = [0, 64], sizes = [8, 32], strides = [1, 1]} : vector<16x384xf32> to vector<8x32xf32>
    %11 = vector.extract_strided_slice %7 {offsets = [0, 96], sizes = [8, 32], strides = [1, 1]} : vector<16x384xf32> to vector<8x32xf32>
    %12 = vector.extract_strided_slice %7 {offsets = [8, 0], sizes = [8, 32], strides = [1, 1]} : vector<16x384xf32> to vector<8x32xf32>
    %13 = vector.extract_strided_slice %7 {offsets = [8, 32], sizes = [8, 32], strides = [1, 1]} : vector<16x384xf32> to vector<8x32xf32>
    %14 = vector.extract_strided_slice %7 {offsets = [8, 64], sizes = [8, 32], strides = [1, 1]} : vector<16x384xf32> to vector<8x32xf32>
    %15 = vector.extract_strided_slice %7 {offsets = [8, 96], sizes = [8, 32], strides = [1, 1]} : vector<16x384xf32> to vector<8x32xf32>
    %16 = vector.shape_cast %8 : vector<8x32xf32> to vector<1x8x32xf32>
    %17 = vector.shape_cast %9 : vector<8x32xf32> to vector<1x8x32xf32>
    %18 = vector.shape_cast %10 : vector<8x32xf32> to vector<1x8x32xf32>
    %19 = vector.shape_cast %11 : vector<8x32xf32> to vector<1x8x32xf32>
    %20 = vector.shape_cast %12 : vector<8x32xf32> to vector<1x8x32xf32>
    %21 = vector.shape_cast %13 : vector<8x32xf32> to vector<1x8x32xf32>
    %22 = vector.shape_cast %14 : vector<8x32xf32> to vector<1x8x32xf32>
    %23 = vector.shape_cast %15 : vector<8x32xf32> to vector<1x8x32xf32>
    %24 = tpu.concatenate %16, %17, %18, %19, %20, %21, %22, %23 in 0 : vector<1x8x32xf32>, vector<1x8x32xf32>, vector<1x8x32xf32>, vector<1x8x32xf32>, vector<1x8x32xf32>, vector<1x8x32xf32>, vector<1x8x32xf32>, vector<1x8x32xf32> -> vector<8x8x32xf32>
    %25 = vector.extract_strided_slice %7 {offsets = [0, 128], sizes = [8, 32], strides = [1, 1]} : vector<16x384xf32> to vector<8x32xf32>
    %26 = vector.extract_strided_slice %7 {offsets = [0, 160], sizes = [8, 32], strides = [1, 1]} : vector<16x384xf32> to vector<8x32xf32>
    %27 = vector.extract_strided_slice %7 {offsets = [0, 192], sizes = [8, 32], strides = [1, 1]} : vector<16x384xf32> to vector<8x32xf32>
    %28 = vector.extract_strided_slice %7 {offsets = [0, 224], sizes = [8, 32], strides = [1, 1]} : vector<16x384xf32> to vector<8x32xf32>
    %29 = vector.extract_strided_slice %7 {offsets = [8, 128], sizes = [8, 32], strides = [1, 1]} : vector<16x384xf32> to vector<8x32xf32>
    %30 = vector.extract_strided_slice %7 {offsets = [8, 160], sizes = [8, 32], strides = [1, 1]} : vector<16x384xf32> to vector<8x32xf32>
    %31 = vector.extract_strided_slice %7 {offsets = [8, 192], sizes = [8, 32], strides = [1, 1]} : vector<16x384xf32> to vector<8x32xf32>
    %32 = vector.extract_strided_slice %7 {offsets = [8, 224], sizes = [8, 32], strides = [1, 1]} : vector<16x384xf32> to vector<8x32xf32>
    %33 = vector.shape_cast %25 : vector<8x32xf32> to vector<1x8x32xf32>
    %34 = vector.shape_cast %26 : vector<8x32xf32> to vector<1x8x32xf32>
    %35 = vector.shape_cast %27 : vector<8x32xf32> to vector<1x8x32xf32>
    %36 = vector.shape_cast %28 : vector<8x32xf32> to vector<1x8x32xf32>
    %37 = vector.shape_cast %29 : vector<8x32xf32> to vector<1x8x32xf32>
    %38 = vector.shape_cast %30 : vector<8x32xf32> to vector<1x8x32xf32>
    %39 = vector.shape_cast %31 : vector<8x32xf32> to vector<1x8x32xf32>
    %40 = vector.shape_cast %32 : vector<8x32xf32> to vector<1x8x32xf32>
    %41 = tpu.concatenate %33, %34, %35, %36, %37, %38, %39, %40 in 0 : vector<1x8x32xf32>, vector<1x8x32xf32>, vector<1x8x32xf32>, vector<1x8x32xf32>, vector<1x8x32xf32>, vector<1x8x32xf32>, vector<1x8x32xf32>, vector<1x8x32xf32> -> vector<8x8x32xf32>
    %42 = vector.extract_strided_slice %7 {offsets = [0, 256], sizes = [8, 32], strides = [1, 1]} : vector<16x384xf32> to vector<8x32xf32>
    %43 = vector.extract_strided_slice %7 {offsets = [0, 288], sizes = [8, 32], strides = [1, 1]} : vector<16x384xf32> to vector<8x32xf32>
    %44 = vector.extract_strided_slice %7 {offsets = [0, 320], sizes = [8, 32], strides = [1, 1]} : vector<16x384xf32> to vector<8x32xf32>
    %45 = vector.extract_strided_slice %7 {offsets = [0, 352], sizes = [8, 32], strides = [1, 1]} : vector<16x384xf32> to vector<8x32xf32>
    %46 = vector.extract_strided_slice %7 {offsets = [8, 256], sizes = [8, 32], strides = [1, 1]} : vector<16x384xf32> to vector<8x32xf32>
    %47 = vector.extract_strided_slice %7 {offsets = [8, 288], sizes = [8, 32], strides = [1, 1]} : vector<16x384xf32> to vector<8x32xf32>
    %48 = vector.extract_strided_slice %7 {offsets = [8, 320], sizes = [8, 32], strides = [1, 1]} : vector<16x384xf32> to vector<8x32xf32>
    %49 = vector.extract_strided_slice %7 {offsets = [8, 352], sizes = [8, 32], strides = [1, 1]} : vector<16x384xf32> to vector<8x32xf32>
    %50 = vector.shape_cast %42 : vector<8x32xf32> to vector<1x8x32xf32>
    %51 = vector.shape_cast %43 : vector<8x32xf32> to vector<1x8x32xf32>
    %52 = vector.shape_cast %44 : vector<8x32xf32> to vector<1x8x32xf32>
    %53 = vector.shape_cast %45 : vector<8x32xf32> to vector<1x8x32xf32>
    %54 = vector.shape_cast %46 : vector<8x32xf32> to vector<1x8x32xf32>
    %55 = vector.shape_cast %47 : vector<8x32xf32> to vector<1x8x32xf32>
    %56 = vector.shape_cast %48 : vector<8x32xf32> to vector<1x8x32xf32>
    %57 = vector.shape_cast %49 : vector<8x32xf32> to vector<1x8x32xf32>
    %58 = tpu.concatenate %50, %51, %52, %53, %54, %55, %56, %57 in 0 : vector<1x8x32xf32>, vector<1x8x32xf32>, vector<1x8x32xf32>, vector<1x8x32xf32>, vector<1x8x32xf32>, vector<1x8x32xf32>, vector<1x8x32xf32>, vector<1x8x32xf32> -> vector<8x8x32xf32>
    "tpu.trace_start"() <{level = 10 : i32, message = "hqf,hkf->hqk"}> : () -> ()
    %cst_7 = arith.constant dense<0.000000e+00> : vector<8x8x8xf32>
    %59 = tpu.matmul %24, %41, %cst_7 {dimension_numbers = #tpu.dot_dimension_numbers<[2], [2], [1], [1], [0, 0, 0, 1, 1, 1], [0], [0]>, precision = #tpu.contract_precision<fp32>} : vector<8x8x32xf32>, vector<8x8x32xf32>, vector<8x8x8xf32> -> vector<8x8x8xf32>
    "tpu.trace_stop"() : () -> ()
    %cst_8 = arith.constant dense<0xFF800000> : vector<8x8xf32>
    %60 = vector.multi_reduction <maximumf>, %59, %cst_8 [2] : vector<8x8x8xf32> to vector<8x8xf32>
    %61 = vector.shape_cast %60 : vector<8x8xf32> to vector<8x8x1xf32>
    %62 = vector.broadcast %61 : vector<8x8x1xf32> to vector<8x8x8xf32>
    %63 = arith.subf %59, %62 : vector<8x8x8xf32>
    %64 = math.exp %63 : vector<8x8x8xf32>
    %cst_9 = arith.constant dense<0.000000e+00> : vector<8x8xf32>
    %65 = vector.multi_reduction <add>, %64, %cst_9 [2] : vector<8x8x8xf32> to vector<8x8xf32>
    %66 = vector.shape_cast %65 : vector<8x8xf32> to vector<8x8x1xf32>
    %67 = tpu.reciprocal %66 {approx = true} : vector<8x8x1xf32> -> vector<8x8x1xf32>
    %68 = vector.broadcast %67 : vector<8x8x1xf32> to vector<8x8x8xf32>
    %69 = arith.mulf %64, %68 : vector<8x8x8xf32>
    "tpu.trace_start"() <{level = 10 : i32, message = "hqk,hkf->hqf"}> : () -> ()
    %cst_10 = arith.constant dense<0.000000e+00> : vector<8x8x32xf32>
    %70 = tpu.matmul %69, %58, %cst_10 {dimension_numbers = #tpu.dot_dimension_numbers<[2], [1], [1], [2], [0, 0, 0, 1, 1, 2], [0], [0]>, precision = #tpu.contract_precision<fp32>} : vector<8x8x8xf32>, vector<8x8x32xf32>, vector<8x8x32xf32> -> vector<8x8x32xf32>
    "tpu.trace_stop"() : () -> ()
    %71 = vector.extract_strided_slice %70 {offsets = [0, 0, 0], sizes = [1, 8, 32], strides = [1, 1, 1]} : vector<8x8x32xf32> to vector<1x8x32xf32>
    %72 = vector.shape_cast %71 : vector<1x8x32xf32> to vector<8x32xf32>
    %73 = vector.extract_strided_slice %70 {offsets = [1, 0, 0], sizes = [1, 8, 32], strides = [1, 1, 1]} : vector<8x8x32xf32> to vector<1x8x32xf32>
    %74 = vector.shape_cast %73 : vector<1x8x32xf32> to vector<8x32xf32>
    %75 = vector.extract_strided_slice %70 {offsets = [2, 0, 0], sizes = [1, 8, 32], strides = [1, 1, 1]} : vector<8x8x32xf32> to vector<1x8x32xf32>
    %76 = vector.shape_cast %75 : vector<1x8x32xf32> to vector<8x32xf32>
    %77 = vector.extract_strided_slice %70 {offsets = [3, 0, 0], sizes = [1, 8, 32], strides = [1, 1, 1]} : vector<8x8x32xf32> to vector<1x8x32xf32>
    %78 = vector.shape_cast %77 : vector<1x8x32xf32> to vector<8x32xf32>
    %79 = tpu.concatenate %72, %74, %76, %78 in 1 : vector<8x32xf32>, vector<8x32xf32>, vector<8x32xf32>, vector<8x32xf32> -> vector<8x128xf32>
    %80 = vector.extract_strided_slice %70 {offsets = [4, 0, 0], sizes = [1, 8, 32], strides = [1, 1, 1]} : vector<8x8x32xf32> to vector<1x8x32xf32>
    %81 = vector.shape_cast %80 : vector<1x8x32xf32> to vector<8x32xf32>
    %82 = vector.extract_strided_slice %70 {offsets = [5, 0, 0], sizes = [1, 8, 32], strides = [1, 1, 1]} : vector<8x8x32xf32> to vector<1x8x32xf32>
    %83 = vector.shape_cast %82 : vector<1x8x32xf32> to vector<8x32xf32>
    %84 = vector.extract_strided_slice %70 {offsets = [6, 0, 0], sizes = [1, 8, 32], strides = [1, 1, 1]} : vector<8x8x32xf32> to vector<1x8x32xf32>
    %85 = vector.shape_cast %84 : vector<1x8x32xf32> to vector<8x32xf32>
    %86 = vector.extract_strided_slice %70 {offsets = [7, 0, 0], sizes = [1, 8, 32], strides = [1, 1, 1]} : vector<8x8x32xf32> to vector<1x8x32xf32>
    %87 = vector.shape_cast %86 : vector<1x8x32xf32> to vector<8x32xf32>
    %88 = tpu.concatenate %81, %83, %85, %87 in 1 : vector<8x32xf32>, vector<8x32xf32>, vector<8x32xf32>, vector<8x32xf32> -> vector<8x128xf32>
    %89 = tpu.concatenate %79, %88 in 0 : vector<8x128xf32>, vector<8x128xf32> -> vector<16x128xf32>
    %c0_11 = arith.constant 0 : index
    %c0_12 = arith.constant 0 : index
    %c0_13 = arith.constant 0 : index
    %90 = vector.load %arg3[%c0_11, %c0_12, %c0_13] : memref<2x128x128xf32, #tpu.memory_space<vmem>>, vector<1x128x128xf32>
    %91 = vector.shape_cast %90 : vector<1x128x128xf32> to vector<128x128xf32>
    %cst_14 = arith.constant dense<0.000000e+00> : vector<16x128xf32>
    %92 = tpu.matmul %89, %91, %cst_14 {dimension_numbers = #tpu.dot_dimension_numbers<[1], [0], [0], [1], [0, 0, 1, 1], [], []>, precision = #tpu.contract_precision<fp32>} : vector<16x128xf32>, vector<128x128xf32>, vector<16x128xf32> -> vector<16x128xf32>
    %c0_15 = arith.constant 0 : index
    %c0_16 = arith.constant 0 : index
    %c0_17 = arith.constant 0 : index
    %93 = vector.load %arg4[%c0_15, %c0_16, %c0_17] : memref<2x1x128xf32, #tpu.memory_space<vmem>>, vector<1x1x128xf32>
    %94 = vector.shape_cast %93 : vector<1x1x128xf32> to vector<1x128xf32>
    %95 = vector.broadcast %94 : vector<1x128xf32> to vector<16x128xf32>
    %96 = arith.addf %92, %95 : vector<16x128xf32>
    %97 = arith.addf %0, %96 : vector<16x128xf32>
    %c0_18 = arith.constant 0 : index
    %c0_19 = arith.constant 0 : index
    %c0_20 = arith.constant 0 : index
    %98 = vector.load %arg9[%c0_18, %c0_19, %c0_20] : memref<2x1x128xf32, #tpu.memory_space<vmem>>, vector<1x1x128xf32>
    %99 = vector.shape_cast %98 : vector<1x1x128xf32> to vector<1x128xf32>
    %c0_21 = arith.constant 0 : index
    %c0_22 = arith.constant 0 : index
    %c0_23 = arith.constant 0 : index
    %100 = vector.load %arg10[%c0_21, %c0_22, %c0_23] : memref<2x1x128xf32, #tpu.memory_space<vmem>>, vector<1x1x128xf32>
    %101 = vector.shape_cast %100 : vector<1x1x128xf32> to vector<1x128xf32>
    %cst_24 = arith.constant dense<0.000000e+00> : vector<16xf32>
    %102 = vector.multi_reduction <add>, %97, %cst_24 [1] : vector<16x128xf32> to vector<16xf32>
    %103 = vector.shape_cast %102 : vector<16xf32> to vector<16x1xf32>
    %cst_25 = arith.constant 1.280000e+02 : f32
    %104 = vector.broadcast %cst_25 : f32 to vector<16x1xf32>
    %105 = arith.divf %103, %104 : vector<16x1xf32>
    %106 = vector.broadcast %105 : vector<16x1xf32> to vector<16x128xf32>
    %107 = arith.subf %97, %106 : vector<16x128xf32>
    %108 = arith.mulf %107, %107 : vector<16x128xf32>
    %cst_26 = arith.constant dense<0.000000e+00> : vector<16xf32>
    %109 = vector.multi_reduction <add>, %108, %cst_26 [1] : vector<16x128xf32> to vector<16xf32>
    %110 = vector.shape_cast %109 : vector<16xf32> to vector<16x1xf32>
    %cst_27 = arith.constant 1.280000e+02 : f32
    %111 = vector.broadcast %cst_27 : f32 to vector<16x1xf32>
    %112 = arith.divf %110, %111 : vector<16x1xf32>
    %cst_28 = arith.constant 9.99999974E-6 : f32
    %113 = vector.broadcast %cst_28 : f32 to vector<16x1xf32>
    %114 = arith.addf %112, %113 : vector<16x1xf32>
    %115 = math.rsqrt %114 : vector<16x1xf32>
    %116 = vector.broadcast %115 : vector<16x1xf32> to vector<16x128xf32>
    %117 = arith.mulf %107, %116 : vector<16x128xf32>
    %118 = vector.broadcast %99 : vector<1x128xf32> to vector<16x128xf32>
    %119 = arith.mulf %117, %118 : vector<16x128xf32>
    %120 = vector.broadcast %101 : vector<1x128xf32> to vector<16x128xf32>
    %121 = arith.addf %119, %120 : vector<16x128xf32>
    %c0_29 = arith.constant 0 : index
    %c0_30 = arith.constant 0 : index
    %c0_31 = arith.constant 0 : index
    %122 = vector.load %arg5[%c0_29, %c0_30, %c0_31] : memref<2x128x256xf32, #tpu.memory_space<vmem>>, vector<1x128x256xf32>
    %123 = vector.shape_cast %122 : vector<1x128x256xf32> to vector<128x256xf32>
    %cst_32 = arith.constant dense<0.000000e+00> : vector<16x256xf32>
    %124 = tpu.matmul %121, %123, %cst_32 {dimension_numbers = #tpu.dot_dimension_numbers<[1], [0], [0], [1], [0, 0, 1, 1], [], []>, precision = #tpu.contract_precision<fp32>} : vector<16x128xf32>, vector<128x256xf32>, vector<16x256xf32> -> vector<16x256xf32>
    %c0_33 = arith.constant 0 : index
    %c0_34 = arith.constant 0 : index
    %c0_35 = arith.constant 0 : index
    %125 = vector.load %arg6[%c0_33, %c0_34, %c0_35] : memref<2x1x256xf32, #tpu.memory_space<vmem>>, vector<1x1x256xf32>
    %126 = vector.shape_cast %125 : vector<1x1x256xf32> to vector<1x256xf32>
    %127 = vector.broadcast %126 : vector<1x256xf32> to vector<16x256xf32>
    %128 = arith.addf %124, %127 : vector<16x256xf32>
    %cst_36 = arith.constant 0.000000e+00 : f32
    %129 = vector.broadcast %cst_36 : f32 to vector<16x256xf32>
    %130 = arith.maximumf %128, %129 : vector<16x256xf32>
    %c0_37 = arith.constant 0 : index
    %c0_38 = arith.constant 0 : index
    %c0_39 = arith.constant 0 : index
    %131 = vector.load %arg7[%c0_37, %c0_38, %c0_39] : memref<2x256x128xf32, #tpu.memory_space<vmem>>, vector<1x256x128xf32>
    %132 = vector.shape_cast %131 : vector<1x256x128xf32> to vector<256x128xf32>
    %cst_40 = arith.constant dense<0.000000e+00> : vector<16x128xf32>
    %133 = tpu.matmul %130, %132, %cst_40 {dimension_numbers = #tpu.dot_dimension_numbers<[1], [0], [0], [1], [0, 0, 1, 1], [], []>, precision = #tpu.contract_precision<fp32>} : vector<16x256xf32>, vector<256x128xf32>, vector<16x128xf32> -> vector<16x128xf32>
    %c0_41 = arith.constant 0 : index
    %c0_42 = arith.constant 0 : index
    %c0_43 = arith.constant 0 : index
    %134 = vector.load %arg8[%c0_41, %c0_42, %c0_43] : memref<2x1x128xf32, #tpu.memory_space<vmem>>, vector<1x1x128xf32>
    %135 = vector.shape_cast %134 : vector<1x1x128xf32> to vector<1x128xf32>
    %136 = vector.broadcast %135 : vector<1x128xf32> to vector<16x128xf32>
    %137 = arith.addf %133, %136 : vector<16x128xf32>
    %138 = arith.addf %121, %137 : vector<16x128xf32>
    %c0_44 = arith.constant 0 : index
    %c0_45 = arith.constant 0 : index
    %c0_46 = arith.constant 0 : index
    %139 = vector.load %arg11[%c0_44, %c0_45, %c0_46] : memref<2x1x128xf32, #tpu.memory_space<vmem>>, vector<1x1x128xf32>
    %140 = vector.shape_cast %139 : vector<1x1x128xf32> to vector<1x128xf32>
    %c0_47 = arith.constant 0 : index
    %c0_48 = arith.constant 0 : index
    %c0_49 = arith.constant 0 : index
    %141 = vector.load %arg12[%c0_47, %c0_48, %c0_49] : memref<2x1x128xf32, #tpu.memory_space<vmem>>, vector<1x1x128xf32>
    %142 = vector.shape_cast %141 : vector<1x1x128xf32> to vector<1x128xf32>
    %cst_50 = arith.constant dense<0.000000e+00> : vector<16xf32>
    %143 = vector.multi_reduction <add>, %138, %cst_50 [1] : vector<16x128xf32> to vector<16xf32>
    %144 = vector.shape_cast %143 : vector<16xf32> to vector<16x1xf32>
    %cst_51 = arith.constant 1.280000e+02 : f32
    %145 = vector.broadcast %cst_51 : f32 to vector<16x1xf32>
    %146 = arith.divf %144, %145 : vector<16x1xf32>
    %147 = vector.broadcast %146 : vector<16x1xf32> to vector<16x128xf32>
    %148 = arith.subf %138, %147 : vector<16x128xf32>
    %149 = arith.mulf %148, %148 : vector<16x128xf32>
    %cst_52 = arith.constant dense<0.000000e+00> : vector<16xf32>
    %150 = vector.multi_reduction <add>, %149, %cst_52 [1] : vector<16x128xf32> to vector<16xf32>
    %151 = vector.shape_cast %150 : vector<16xf32> to vector<16x1xf32>
    %cst_53 = arith.constant 1.280000e+02 : f32
    %152 = vector.broadcast %cst_53 : f32 to vector<16x1xf32>
    %153 = arith.divf %151, %152 : vector<16x1xf32>
    %cst_54 = arith.constant 9.99999974E-6 : f32
    %154 = vector.broadcast %cst_54 : f32 to vector<16x1xf32>
    %155 = arith.addf %153, %154 : vector<16x1xf32>
    %156 = math.rsqrt %155 : vector<16x1xf32>
    %157 = vector.broadcast %156 : vector<16x1xf32> to vector<16x128xf32>
    %158 = arith.mulf %148, %157 : vector<16x128xf32>
    %159 = vector.broadcast %140 : vector<1x128xf32> to vector<16x128xf32>
    %160 = arith.mulf %158, %159 : vector<16x128xf32>
    %161 = vector.broadcast %142 : vector<1x128xf32> to vector<16x128xf32>
    %162 = arith.addf %160, %161 : vector<16x128xf32>
    %c1 = arith.constant 1 : index
    %c0_55 = arith.constant 0 : index
    %c0_56 = arith.constant 0 : index
    %163 = vector.load %arg1[%c1, %c0_55, %c0_56] : memref<2x128x384xf32, #tpu.memory_space<vmem>>, vector<1x128x384xf32>
    %164 = vector.shape_cast %163 : vector<1x128x384xf32> to vector<128x384xf32>
    %cst_57 = arith.constant dense<0.000000e+00> : vector<16x384xf32>
    %165 = tpu.matmul %162, %164, %cst_57 {dimension_numbers = #tpu.dot_dimension_numbers<[1], [0], [0], [1], [0, 0, 1, 1], [], []>, precision = #tpu.contract_precision<fp32>} : vector<16x128xf32>, vector<128x384xf32>, vector<16x384xf32> -> vector<16x384xf32>
    %c1_58 = arith.constant 1 : index
    %c0_59 = arith.constant 0 : index
    %c0_60 = arith.constant 0 : index
    %166 = vector.load %arg2[%c1_58, %c0_59, %c0_60] : memref<2x1x384xf32, #tpu.memory_space<vmem>>, vector<1x1x384xf32>
    %167 = vector.shape_cast %166 : vector<1x1x384xf32> to vector<1x384xf32>
    %168 = vector.broadcast %167 : vector<1x384xf32> to vector<16x384xf32>
    %169 = arith.addf %165, %168 : vector<16x384xf32>
    %170 = vector.extract_strided_slice %169 {offsets = [0, 0], sizes = [8, 32], strides = [1, 1]} : vector<16x384xf32> to vector<8x32xf32>
    %171 = vector.extract_strided_slice %169 {offsets = [0, 32], sizes = [8, 32], strides = [1, 1]} : vector<16x384xf32> to vector<8x32xf32>
    %172 = vector.extract_strided_slice %169 {offsets = [0, 64], sizes = [8, 32], strides = [1, 1]} : vector<16x384xf32> to vector<8x32xf32>
    %173 = vector.extract_strided_slice %169 {offsets = [0, 96], sizes = [8, 32], strides = [1, 1]} : vector<16x384xf32> to vector<8x32xf32>
    %174 = vector.extract_strided_slice %169 {offsets = [8, 0], sizes = [8, 32], strides = [1, 1]} : vector<16x384xf32> to vector<8x32xf32>
    %175 = vector.extract_strided_slice %169 {offsets = [8, 32], sizes = [8, 32], strides = [1, 1]} : vector<16x384xf32> to vector<8x32xf32>
    %176 = vector.extract_strided_slice %169 {offsets = [8, 64], sizes = [8, 32], strides = [1, 1]} : vector<16x384xf32> to vector<8x32xf32>
    %177 = vector.extract_strided_slice %169 {offsets = [8, 96], sizes = [8, 32], strides = [1, 1]} : vector<16x384xf32> to vector<8x32xf32>
    %178 = vector.shape_cast %170 : vector<8x32xf32> to vector<1x8x32xf32>
    %179 = vector.shape_cast %171 : vector<8x32xf32> to vector<1x8x32xf32>
    %180 = vector.shape_cast %172 : vector<8x32xf32> to vector<1x8x32xf32>
    %181 = vector.shape_cast %173 : vector<8x32xf32> to vector<1x8x32xf32>
    %182 = vector.shape_cast %174 : vector<8x32xf32> to vector<1x8x32xf32>
    %183 = vector.shape_cast %175 : vector<8x32xf32> to vector<1x8x32xf32>
    %184 = vector.shape_cast %176 : vector<8x32xf32> to vector<1x8x32xf32>
    %185 = vector.shape_cast %177 : vector<8x32xf32> to vector<1x8x32xf32>
    %186 = tpu.concatenate %178, %179, %180, %181, %182, %183, %184, %185 in 0 : vector<1x8x32xf32>, vector<1x8x32xf32>, vector<1x8x32xf32>, vector<1x8x32xf32>, vector<1x8x32xf32>, vector<1x8x32xf32>, vector<1x8x32xf32>, vector<1x8x32xf32> -> vector<8x8x32xf32>
    %187 = vector.extract_strided_slice %169 {offsets = [0, 128], sizes = [8, 32], strides = [1, 1]} : vector<16x384xf32> to vector<8x32xf32>
    %188 = vector.extract_strided_slice %169 {offsets = [0, 160], sizes = [8, 32], strides = [1, 1]} : vector<16x384xf32> to vector<8x32xf32>
    %189 = vector.extract_strided_slice %169 {offsets = [0, 192], sizes = [8, 32], strides = [1, 1]} : vector<16x384xf32> to vector<8x32xf32>
    %190 = vector.extract_strided_slice %169 {offsets = [0, 224], sizes = [8, 32], strides = [1, 1]} : vector<16x384xf32> to vector<8x32xf32>
    %191 = vector.extract_strided_slice %169 {offsets = [8, 128], sizes = [8, 32], strides = [1, 1]} : vector<16x384xf32> to vector<8x32xf32>
    %192 = vector.extract_strided_slice %169 {offsets = [8, 160], sizes = [8, 32], strides = [1, 1]} : vector<16x384xf32> to vector<8x32xf32>
    %193 = vector.extract_strided_slice %169 {offsets = [8, 192], sizes = [8, 32], strides = [1, 1]} : vector<16x384xf32> to vector<8x32xf32>
    %194 = vector.extract_strided_slice %169 {offsets = [8, 224], sizes = [8, 32], strides = [1, 1]} : vector<16x384xf32> to vector<8x32xf32>
    %195 = vector.shape_cast %187 : vector<8x32xf32> to vector<1x8x32xf32>
    %196 = vector.shape_cast %188 : vector<8x32xf32> to vector<1x8x32xf32>
    %197 = vector.shape_cast %189 : vector<8x32xf32> to vector<1x8x32xf32>
    %198 = vector.shape_cast %190 : vector<8x32xf32> to vector<1x8x32xf32>
    %199 = vector.shape_cast %191 : vector<8x32xf32> to vector<1x8x32xf32>
    %200 = vector.shape_cast %192 : vector<8x32xf32> to vector<1x8x32xf32>
    %201 = vector.shape_cast %193 : vector<8x32xf32> to vector<1x8x32xf32>
    %202 = vector.shape_cast %194 : vector<8x32xf32> to vector<1x8x32xf32>
    %203 = tpu.concatenate %195, %196, %197, %198, %199, %200, %201, %202 in 0 : vector<1x8x32xf32>, vector<1x8x32xf32>, vector<1x8x32xf32>, vector<1x8x32xf32>, vector<1x8x32xf32>, vector<1x8x32xf32>, vector<1x8x32xf32>, vector<1x8x32xf32> -> vector<8x8x32xf32>
    %204 = vector.extract_strided_slice %169 {offsets = [0, 256], sizes = [8, 32], strides = [1, 1]} : vector<16x384xf32> to vector<8x32xf32>
    %205 = vector.extract_strided_slice %169 {offsets = [0, 288], sizes = [8, 32], strides = [1, 1]} : vector<16x384xf32> to vector<8x32xf32>
    %206 = vector.extract_strided_slice %169 {offsets = [0, 320], sizes = [8, 32], strides = [1, 1]} : vector<16x384xf32> to vector<8x32xf32>
    %207 = vector.extract_strided_slice %169 {offsets = [0, 352], sizes = [8, 32], strides = [1, 1]} : vector<16x384xf32> to vector<8x32xf32>
    %208 = vector.extract_strided_slice %169 {offsets = [8, 256], sizes = [8, 32], strides = [1, 1]} : vector<16x384xf32> to vector<8x32xf32>
    %209 = vector.extract_strided_slice %169 {offsets = [8, 288], sizes = [8, 32], strides = [1, 1]} : vector<16x384xf32> to vector<8x32xf32>
    %210 = vector.extract_strided_slice %169 {offsets = [8, 320], sizes = [8, 32], strides = [1, 1]} : vector<16x384xf32> to vector<8x32xf32>
    %211 = vector.extract_strided_slice %169 {offsets = [8, 352], sizes = [8, 32], strides = [1, 1]} : vector<16x384xf32> to vector<8x32xf32>
    %212 = vector.shape_cast %204 : vector<8x32xf32> to vector<1x8x32xf32>
    %213 = vector.shape_cast %205 : vector<8x32xf32> to vector<1x8x32xf32>
    %214 = vector.shape_cast %206 : vector<8x32xf32> to vector<1x8x32xf32>
    %215 = vector.shape_cast %207 : vector<8x32xf32> to vector<1x8x32xf32>
    %216 = vector.shape_cast %208 : vector<8x32xf32> to vector<1x8x32xf32>
    %217 = vector.shape_cast %209 : vector<8x32xf32> to vector<1x8x32xf32>
    %218 = vector.shape_cast %210 : vector<8x32xf32> to vector<1x8x32xf32>
    %219 = vector.shape_cast %211 : vector<8x32xf32> to vector<1x8x32xf32>
    %220 = tpu.concatenate %212, %213, %214, %215, %216, %217, %218, %219 in 0 : vector<1x8x32xf32>, vector<1x8x32xf32>, vector<1x8x32xf32>, vector<1x8x32xf32>, vector<1x8x32xf32>, vector<1x8x32xf32>, vector<1x8x32xf32>, vector<1x8x32xf32> -> vector<8x8x32xf32>
    "tpu.trace_start"() <{level = 10 : i32, message = "hqf,hkf->hqk"}> : () -> ()
    %cst_61 = arith.constant dense<0.000000e+00> : vector<8x8x8xf32>
    %221 = tpu.matmul %186, %203, %cst_61 {dimension_numbers = #tpu.dot_dimension_numbers<[2], [2], [1], [1], [0, 0, 0, 1, 1, 1], [0], [0]>, precision = #tpu.contract_precision<fp32>} : vector<8x8x32xf32>, vector<8x8x32xf32>, vector<8x8x8xf32> -> vector<8x8x8xf32>
    "tpu.trace_stop"() : () -> ()
    %cst_62 = arith.constant dense<0xFF800000> : vector<8x8xf32>
    %222 = vector.multi_reduction <maximumf>, %221, %cst_62 [2] : vector<8x8x8xf32> to vector<8x8xf32>
    %223 = vector.shape_cast %222 : vector<8x8xf32> to vector<8x8x1xf32>
    %224 = vector.broadcast %223 : vector<8x8x1xf32> to vector<8x8x8xf32>
    %225 = arith.subf %221, %224 : vector<8x8x8xf32>
    %226 = math.exp %225 : vector<8x8x8xf32>
    %cst_63 = arith.constant dense<0.000000e+00> : vector<8x8xf32>
    %227 = vector.multi_reduction <add>, %226, %cst_63 [2] : vector<8x8x8xf32> to vector<8x8xf32>
    %228 = vector.shape_cast %227 : vector<8x8xf32> to vector<8x8x1xf32>
    %229 = tpu.reciprocal %228 {approx = true} : vector<8x8x1xf32> -> vector<8x8x1xf32>
    %230 = vector.broadcast %229 : vector<8x8x1xf32> to vector<8x8x8xf32>
    %231 = arith.mulf %226, %230 : vector<8x8x8xf32>
    "tpu.trace_start"() <{level = 10 : i32, message = "hqk,hkf->hqf"}> : () -> ()
    %cst_64 = arith.constant dense<0.000000e+00> : vector<8x8x32xf32>
    %232 = tpu.matmul %231, %220, %cst_64 {dimension_numbers = #tpu.dot_dimension_numbers<[2], [1], [1], [2], [0, 0, 0, 1, 1, 2], [0], [0]>, precision = #tpu.contract_precision<fp32>} : vector<8x8x8xf32>, vector<8x8x32xf32>, vector<8x8x32xf32> -> vector<8x8x32xf32>
    "tpu.trace_stop"() : () -> ()
    %233 = vector.extract_strided_slice %232 {offsets = [0, 0, 0], sizes = [1, 8, 32], strides = [1, 1, 1]} : vector<8x8x32xf32> to vector<1x8x32xf32>
    %234 = vector.shape_cast %233 : vector<1x8x32xf32> to vector<8x32xf32>
    %235 = vector.extract_strided_slice %232 {offsets = [1, 0, 0], sizes = [1, 8, 32], strides = [1, 1, 1]} : vector<8x8x32xf32> to vector<1x8x32xf32>
    %236 = vector.shape_cast %235 : vector<1x8x32xf32> to vector<8x32xf32>
    %237 = vector.extract_strided_slice %232 {offsets = [2, 0, 0], sizes = [1, 8, 32], strides = [1, 1, 1]} : vector<8x8x32xf32> to vector<1x8x32xf32>
    %238 = vector.shape_cast %237 : vector<1x8x32xf32> to vector<8x32xf32>
    %239 = vector.extract_strided_slice %232 {offsets = [3, 0, 0], sizes = [1, 8, 32], strides = [1, 1, 1]} : vector<8x8x32xf32> to vector<1x8x32xf32>
    %240 = vector.shape_cast %239 : vector<1x8x32xf32> to vector<8x32xf32>
    %241 = tpu.concatenate %234, %236, %238, %240 in 1 : vector<8x32xf32>, vector<8x32xf32>, vector<8x32xf32>, vector<8x32xf32> -> vector<8x128xf32>
    %242 = vector.extract_strided_slice %232 {offsets = [4, 0, 0], sizes = [1, 8, 32], strides = [1, 1, 1]} : vector<8x8x32xf32> to vector<1x8x32xf32>
    %243 = vector.shape_cast %242 : vector<1x8x32xf32> to vector<8x32xf32>
    %244 = vector.extract_strided_slice %232 {offsets = [5, 0, 0], sizes = [1, 8, 32], strides = [1, 1, 1]} : vector<8x8x32xf32> to vector<1x8x32xf32>
    %245 = vector.shape_cast %244 : vector<1x8x32xf32> to vector<8x32xf32>
    %246 = vector.extract_strided_slice %232 {offsets = [6, 0, 0], sizes = [1, 8, 32], strides = [1, 1, 1]} : vector<8x8x32xf32> to vector<1x8x32xf32>
    %247 = vector.shape_cast %246 : vector<1x8x32xf32> to vector<8x32xf32>
    %248 = vector.extract_strided_slice %232 {offsets = [7, 0, 0], sizes = [1, 8, 32], strides = [1, 1, 1]} : vector<8x8x32xf32> to vector<1x8x32xf32>
    %249 = vector.shape_cast %248 : vector<1x8x32xf32> to vector<8x32xf32>
    %250 = tpu.concatenate %243, %245, %247, %249 in 1 : vector<8x32xf32>, vector<8x32xf32>, vector<8x32xf32>, vector<8x32xf32> -> vector<8x128xf32>
    %251 = tpu.concatenate %241, %250 in 0 : vector<8x128xf32>, vector<8x128xf32> -> vector<16x128xf32>
    %c1_65 = arith.constant 1 : index
    %c0_66 = arith.constant 0 : index
    %c0_67 = arith.constant 0 : index
    %252 = vector.load %arg3[%c1_65, %c0_66, %c0_67] : memref<2x128x128xf32, #tpu.memory_space<vmem>>, vector<1x128x128xf32>
    %253 = vector.shape_cast %252 : vector<1x128x128xf32> to vector<128x128xf32>
    %cst_68 = arith.constant dense<0.000000e+00> : vector<16x128xf32>
    %254 = tpu.matmul %251, %253, %cst_68 {dimension_numbers = #tpu.dot_dimension_numbers<[1], [0], [0], [1], [0, 0, 1, 1], [], []>, precision = #tpu.contract_precision<fp32>} : vector<16x128xf32>, vector<128x128xf32>, vector<16x128xf32> -> vector<16x128xf32>
    %c1_69 = arith.constant 1 : index
    %c0_70 = arith.constant 0 : index
    %c0_71 = arith.constant 0 : index
    %255 = vector.load %arg4[%c1_69, %c0_70, %c0_71] : memref<2x1x128xf32, #tpu.memory_space<vmem>>, vector<1x1x128xf32>
    %256 = vector.shape_cast %255 : vector<1x1x128xf32> to vector<1x128xf32>
    %257 = vector.broadcast %256 : vector<1x128xf32> to vector<16x128xf32>
    %258 = arith.addf %254, %257 : vector<16x128xf32>
    %259 = arith.addf %162, %258 : vector<16x128xf32>
    %c1_72 = arith.constant 1 : index
    %c0_73 = arith.constant 0 : index
    %c0_74 = arith.constant 0 : index
    %260 = vector.load %arg9[%c1_72, %c0_73, %c0_74] : memref<2x1x128xf32, #tpu.memory_space<vmem>>, vector<1x1x128xf32>
    %261 = vector.shape_cast %260 : vector<1x1x128xf32> to vector<1x128xf32>
    %c1_75 = arith.constant 1 : index
    %c0_76 = arith.constant 0 : index
    %c0_77 = arith.constant 0 : index
    %262 = vector.load %arg10[%c1_75, %c0_76, %c0_77] : memref<2x1x128xf32, #tpu.memory_space<vmem>>, vector<1x1x128xf32>
    %263 = vector.shape_cast %262 : vector<1x1x128xf32> to vector<1x128xf32>
    %cst_78 = arith.constant dense<0.000000e+00> : vector<16xf32>
    %264 = vector.multi_reduction <add>, %259, %cst_78 [1] : vector<16x128xf32> to vector<16xf32>
    %265 = vector.shape_cast %264 : vector<16xf32> to vector<16x1xf32>
    %cst_79 = arith.constant 1.280000e+02 : f32
    %266 = vector.broadcast %cst_79 : f32 to vector<16x1xf32>
    %267 = arith.divf %265, %266 : vector<16x1xf32>
    %268 = vector.broadcast %267 : vector<16x1xf32> to vector<16x128xf32>
    %269 = arith.subf %259, %268 : vector<16x128xf32>
    %270 = arith.mulf %269, %269 : vector<16x128xf32>
    %cst_80 = arith.constant dense<0.000000e+00> : vector<16xf32>
    %271 = vector.multi_reduction <add>, %270, %cst_80 [1] : vector<16x128xf32> to vector<16xf32>
    %272 = vector.shape_cast %271 : vector<16xf32> to vector<16x1xf32>
    %cst_81 = arith.constant 1.280000e+02 : f32
    %273 = vector.broadcast %cst_81 : f32 to vector<16x1xf32>
    %274 = arith.divf %272, %273 : vector<16x1xf32>
    %cst_82 = arith.constant 9.99999974E-6 : f32
    %275 = vector.broadcast %cst_82 : f32 to vector<16x1xf32>
    %276 = arith.addf %274, %275 : vector<16x1xf32>
    %277 = math.rsqrt %276 : vector<16x1xf32>
    %278 = vector.broadcast %277 : vector<16x1xf32> to vector<16x128xf32>
    %279 = arith.mulf %269, %278 : vector<16x128xf32>
    %280 = vector.broadcast %261 : vector<1x128xf32> to vector<16x128xf32>
    %281 = arith.mulf %279, %280 : vector<16x128xf32>
    %282 = vector.broadcast %263 : vector<1x128xf32> to vector<16x128xf32>
    %283 = arith.addf %281, %282 : vector<16x128xf32>
    %c1_83 = arith.constant 1 : index
    %c0_84 = arith.constant 0 : index
    %c0_85 = arith.constant 0 : index
    %284 = vector.load %arg5[%c1_83, %c0_84, %c0_85] : memref<2x128x256xf32, #tpu.memory_space<vmem>>, vector<1x128x256xf32>
    %285 = vector.shape_cast %284 : vector<1x128x256xf32> to vector<128x256xf32>
    %cst_86 = arith.constant dense<0.000000e+00> : vector<16x256xf32>
    %286 = tpu.matmul %283, %285, %cst_86 {dimension_numbers = #tpu.dot_dimension_numbers<[1], [0], [0], [1], [0, 0, 1, 1], [], []>, precision = #tpu.contract_precision<fp32>} : vector<16x128xf32>, vector<128x256xf32>, vector<16x256xf32> -> vector<16x256xf32>
    %c1_87 = arith.constant 1 : index
    %c0_88 = arith.constant 0 : index
    %c0_89 = arith.constant 0 : index
    %287 = vector.load %arg6[%c1_87, %c0_88, %c0_89] : memref<2x1x256xf32, #tpu.memory_space<vmem>>, vector<1x1x256xf32>
    %288 = vector.shape_cast %287 : vector<1x1x256xf32> to vector<1x256xf32>
    %289 = vector.broadcast %288 : vector<1x256xf32> to vector<16x256xf32>
    %290 = arith.addf %286, %289 : vector<16x256xf32>
    %cst_90 = arith.constant 0.000000e+00 : f32
    %291 = vector.broadcast %cst_90 : f32 to vector<16x256xf32>
    %292 = arith.maximumf %290, %291 : vector<16x256xf32>
    %c1_91 = arith.constant 1 : index
    %c0_92 = arith.constant 0 : index
    %c0_93 = arith.constant 0 : index
    %293 = vector.load %arg7[%c1_91, %c0_92, %c0_93] : memref<2x256x128xf32, #tpu.memory_space<vmem>>, vector<1x256x128xf32>
    %294 = vector.shape_cast %293 : vector<1x256x128xf32> to vector<256x128xf32>
    %cst_94 = arith.constant dense<0.000000e+00> : vector<16x128xf32>
    %295 = tpu.matmul %292, %294, %cst_94 {dimension_numbers = #tpu.dot_dimension_numbers<[1], [0], [0], [1], [0, 0, 1, 1], [], []>, precision = #tpu.contract_precision<fp32>} : vector<16x256xf32>, vector<256x128xf32>, vector<16x128xf32> -> vector<16x128xf32>
    %c1_95 = arith.constant 1 : index
    %c0_96 = arith.constant 0 : index
    %c0_97 = arith.constant 0 : index
    %296 = vector.load %arg8[%c1_95, %c0_96, %c0_97] : memref<2x1x128xf32, #tpu.memory_space<vmem>>, vector<1x1x128xf32>
    %297 = vector.shape_cast %296 : vector<1x1x128xf32> to vector<1x128xf32>
    %298 = vector.broadcast %297 : vector<1x128xf32> to vector<16x128xf32>
    %299 = arith.addf %295, %298 : vector<16x128xf32>
    %300 = arith.addf %283, %299 : vector<16x128xf32>
    %c1_98 = arith.constant 1 : index
    %c0_99 = arith.constant 0 : index
    %c0_100 = arith.constant 0 : index
    %301 = vector.load %arg11[%c1_98, %c0_99, %c0_100] : memref<2x1x128xf32, #tpu.memory_space<vmem>>, vector<1x1x128xf32>
    %302 = vector.shape_cast %301 : vector<1x1x128xf32> to vector<1x128xf32>
    %c1_101 = arith.constant 1 : index
    %c0_102 = arith.constant 0 : index
    %c0_103 = arith.constant 0 : index
    %303 = vector.load %arg12[%c1_101, %c0_102, %c0_103] : memref<2x1x128xf32, #tpu.memory_space<vmem>>, vector<1x1x128xf32>
    %304 = vector.shape_cast %303 : vector<1x1x128xf32> to vector<1x128xf32>
    %cst_104 = arith.constant dense<0.000000e+00> : vector<16xf32>
    %305 = vector.multi_reduction <add>, %300, %cst_104 [1] : vector<16x128xf32> to vector<16xf32>
    %306 = vector.shape_cast %305 : vector<16xf32> to vector<16x1xf32>
    %cst_105 = arith.constant 1.280000e+02 : f32
    %307 = vector.broadcast %cst_105 : f32 to vector<16x1xf32>
    %308 = arith.divf %306, %307 : vector<16x1xf32>
    %309 = vector.broadcast %308 : vector<16x1xf32> to vector<16x128xf32>
    %310 = arith.subf %300, %309 : vector<16x128xf32>
    %311 = arith.mulf %310, %310 : vector<16x128xf32>
    %cst_106 = arith.constant dense<0.000000e+00> : vector<16xf32>
    %312 = vector.multi_reduction <add>, %311, %cst_106 [1] : vector<16x128xf32> to vector<16xf32>
    %313 = vector.shape_cast %312 : vector<16xf32> to vector<16x1xf32>
    %cst_107 = arith.constant 1.280000e+02 : f32
    %314 = vector.broadcast %cst_107 : f32 to vector<16x1xf32>
    %315 = arith.divf %313, %314 : vector<16x1xf32>
    %cst_108 = arith.constant 9.99999974E-6 : f32
    %316 = vector.broadcast %cst_108 : f32 to vector<16x1xf32>
    %317 = arith.addf %315, %316 : vector<16x1xf32>
    %318 = math.rsqrt %317 : vector<16x1xf32>
    %319 = vector.broadcast %318 : vector<16x1xf32> to vector<16x128xf32>
    %320 = arith.mulf %310, %319 : vector<16x128xf32>
    %321 = vector.broadcast %302 : vector<1x128xf32> to vector<16x128xf32>
    %322 = arith.mulf %320, %321 : vector<16x128xf32>
    %323 = vector.broadcast %304 : vector<1x128xf32> to vector<16x128xf32>
    %324 = arith.addf %322, %323 : vector<16x128xf32>
    %c0_109 = arith.constant 0 : index
    %c0_110 = arith.constant 0 : index
    %325 = vector.load %arg13[%c0_109, %c0_110] : memref<16x128xf32, #tpu.memory_space<vmem>>, vector<16x128xf32>
    tpu.vector_store %arg13[%c0_109, %c0_110], %324 {strides = array<i32>} : memref<16x128xf32, #tpu.memory_space<vmem>>, vector<16x128xf32>,
    return
  }
}

</mosaic_0001>

<bundles_post_ra>
// kernel: csca_pallas.1
= control target key start
LH: loop header
LB: loop body
LE: loop exit
PB: predicated region body
PF: predicated region fallthrough
CT: control target
= control target key end

     0   :  { %18 = vsyncpa [#allocation3], 0  ;;  %s32953_s0 = inlined_call_operand.vmem [shape: f32[16,128], index: 0, kind: input, shape index: {}]   ;;  %s32954_s1 = inlined_call_operand.hbm [shape: f32[2,128,384], index: 1, kind: input, shape index: {}]   ;;  %s32955_s2 = inlined_call_operand.vmem [shape: f32[2,1,384], index: 2, kind: input, shape index: {}]   ;;  %s32956_s3 = inlined_call_operand.hbm [shape: f32[2,128,128], index: 3, kind: input, shape index: {}]   ;;  %s32957_s4 = inlined_call_operand.vmem [shape: f32[2,1,128], index: 4, kind: input, shape index: {}]   ;;  %s32958_s5 = inlined_call_operand.hbm [shape: f32[2,128,256], index: 5, kind: input, shape index: {}]   ;;  %s32959_s6 = inlined_call_operand.vmem [shape: f32[2,1,256], index: 6, kind: input, shape index: {}]   ;;  %s32960_s7 = inlined_call_operand.hbm [shape: f32[2,256,128], index: 7, kind: input, shape index: {}]   ;;  %s32961_s8 = inlined_call_operand.vmem [shape: f32[2,1,128], index: 8, kind: input, shape index: {}]   ;;  %s32962_s9 = inlined_call_operand.vmem [shape: f32[2,1,128], index: 9, kind: input, shape index: {}]   ;;  %s32963_s10 = inlined_call_operand.vmem [shape: f32[2,1,128], index: 10, kind: input, shape index: {}]   ;;  %s32964_s11 = inlined_call_operand.vmem [shape: f32[2,1,128], index: 11, kind: input, shape index: {}]   ;;  %s32965_s12 = inlined_call_operand.vmem [shape: f32[2,1,128], index: 12, kind: input, shape index: {}]   ;;  %s32966_s13 = inlined_call_operand.vmem [shape: f32[16,128], index: 13, kind: output, shape index: {}]  }
   0x1   :  { %19 = vsyncpa [#allocation5], 0 }
   0x2   :  { %20 = vsyncpa [#allocation8], 0  ;;  %s26824_s25 = smov [#allocation4]  }
   0x3   :  { %s42_s26 = sshll.u32 %s26824_s25, 4  ;;  %s43_s26 = int_to_ptr.vmem [resolvable:$true] %s42_s26 }
   0x4   :  { %s26746_s27 = scalar_lea.vmem %s43_s26, 4096  ;;  %p26751_p1 = scmp.lt.s32.totalorder %s43_s26, %s43_s26 }
   0x5   :  { %p26747_p0 = scmp.ne.s32.totalorder %s43_s26, %s26746_s27  ;;  %p26752_p2 = scmp.lt.s32.totalorder %s26746_s27, %s26746_s27 }
   0x7   :  { %p26753_p3 = por %p26752_p2, %p26751_p1 }
   0x9   :  { %p26754_p4 = pnand %p26753_p3, %p26747_p0 }
   0xb   :  { %26757 = shalt.err (!%p26754_p4)
}
   0xc   :  { %s26825_s28 = smov 128   ;;  %s26826_s29 = smov 8  }
   0xd   :  { %48 = dma.hbm_to_vmem [thread:$0]  %s32956_s3, 4096, %s43_s26, [#allocation5], %s26825_s28, %s26825_s28, %s26826_s29  }
   0xe   :  { %s26827_s15 = smov [#allocation2]  }
   0xf   :  { %s28_s16 = sshll.u32 %s26827_s15, 4  ;;  %s29_s16 = int_to_ptr.vmem [resolvable:$true] %s28_s16 }
  0x10   :  { %s26766_s17 = scalar_lea.vmem %s29_s16, 12288  ;;  %p26771_p6 = scmp.lt.s32.totalorder %s29_s16, %s29_s16 }
  0x11   :  { %p26767_p5 = scmp.ne.s32.totalorder %s29_s16, %s26766_s17  ;;  %p26772_p7 = scmp.lt.s32.totalorder %s26766_s17, %s26766_s17 }
  0x13   :  { %p26773_p8 = por %p26772_p7, %p26771_p6 }
  0x15   :  { %p26774_p9 = pnand %p26773_p8, %p26767_p5 }
  0x17   :  { %26777 = shalt.err (!%p26774_p9)
}
  0x18   :  { %s26828_s18 = smov 384   ;;  %s26829_s19 = smov 24  }
  0x19   :  { %34 = dma.hbm_to_vmem [thread:$0]  %s32954_s1, 12288, %s29_s16, [#allocation3], %s26828_s18, %s26828_s18, %s26829_s19  }
  0x1a   :  { %s26830_s22 = smov [#allocation6]  }
  0x1b   :  { %s56_s23 = sshll.u32 %s26830_s22, 4  ;;  %s57_s23 = int_to_ptr.vmem [resolvable:$true] %s56_s23 }
  0x1c   :  { %s26786_s3 = scalar_lea.vmem %s57_s23, 8192  ;;  %p26791_p11 = scmp.lt.s32.totalorder %s57_s23, %s57_s23 }
  0x1d   :  { %p26787_p10 = scmp.ne.s32.totalorder %s57_s23, %s26786_s3  ;;  %p26792_p12 = scmp.lt.s32.totalorder %s26786_s3, %s26786_s3 }
  0x1f   :  { %p26793_p13 = por %p26792_p12, %p26791_p11 }
  0x21   :  { %p26794_p0 = pnand %p26793_p13, %p26787_p10 }
  0x23   :  { %26797 = shalt.err (!%p26794_p0)
}
  0x24   :  { %s26831_s24 = smov 256   ;;  %s26832_s25 = smov 16  }
  0x25   :  { %62 = dma.hbm_to_vmem [thread:$0]  %s32958_s5, 8192, %s57_s23, [#allocation5], %s26831_s24, %s26831_s24, %s26832_s25  }
  0x26   :  { %s26833_s30 = smov [#allocation7]  }
  0x27   :  { %s70_s14 = sshll.u32 %s26833_s30, 4  ;;  %s71_s14 = int_to_ptr.vmem [resolvable:$true] %s70_s14 }
  0x28   :  { %s26806_s1 = scalar_lea.vmem %s71_s14, 8192  ;;  %p26811_p2 = scmp.lt.s32.totalorder %s71_s14, %s71_s14 }
  0x29   :  { %p26807_p1 = scmp.ne.s32.totalorder %s71_s14, %s26806_s1  ;;  %p26812_p3 = scmp.lt.s32.totalorder %s26806_s1, %s26806_s1 }
  0x2b   :  { %p26813_p4 = por %p26812_p3, %p26811_p2 }
  0x2d   :  { %p26814_p5 = pnand %p26813_p4, %p26807_p1 }
  0x2f   :  { %26817 = shalt.err (!%p26814_p5)
}
  0x30   :  { %76 = dma.hbm_to_vmem [thread:$0]  %s32960_s7, 8192, %s71_s14, [#allocation8], %s26825_s28, %s26825_s28, %s26826_s29  }
  0x31   :  { %26818 = dma.done.wait [#allocation3], 12288  }
  0x32   :  { %26819 = vsyncadd [#allocation3], 4294955008 }
  0x33   :  { %26820 = dma.done.wait [#allocation5], 12288  }
  0x34   :  { %26821 = vsyncadd [#allocation5], 4294955008 }
  0x35   :  { %26822 = dma.done.wait [#allocation8], 8192  }
  0x36   :  { %26823 = vsyncadd [#allocation8], 4294959104  ;;  %v32981_v0 = vmov 0.0   ;;  %v147_v1 = vld [vmem:[#allocation2 + $0x170] sm:$0xff]  ;;  %v146_v2 = vld [vmem:[#allocation2 + $0x168] sm:$0xff]  ;;  %vm26835_vm0 = vmmov 0  }
  0x37   :  { %262 = vmatprep.mubr.f32.mxu0 %v32981_v0  ;;  %509 = vmatprep.mubr.f32.mxu1 %v32981_v0  ;;  %v144_v3 = vld [vmem:[#allocation2 + $0x158] sm:$0xff]  ;;  %v26929_v4 = vand.u32 4294901760, %v147_v1  ;;  %v26931_v5 = vand.u32 4294901760, %v146_v2  ;;  %v143_v7 = vld [vmem:[#allocation2 + $0x150] sm:$0xff]  ;;  %v141_v8 = vld [vmem:[#allocation2 + $0x140] sm:$0xff]  ;;  %vm1802_vm1 = vcmask 261120  }
  0x38   :  { %v26933_v6 = vand.u32 4294901760, %v144_v3  ;;  %v140_v9 = vld [vmem:[#allocation2 + $0x138] sm:$0xff]  ;;  %v26935_v10 = vand.u32 4294901760, %v143_v7  ;;  %v26937_v11 = vand.u32 4294901760, %v141_v8  ;;  %v138_v13 = vld [vmem:[#allocation2 + $0x128] sm:$0xff]  ;;  %v137_v14 = vld [vmem:[#allocation2 + $0x120] sm:$0xff] }
  0x39   :  { %v26939_v12 = vand.u32 4294901760, %v140_v9  ;;  %v135_v15 = vld [vmem:[#allocation2 + $0x110] sm:$0xff]  ;;  %167 = vmatprep.subr.mxu0 %v26929_v4  ;;  %v26942_v16 = vand.u32 4294901760, %v138_v13  ;;  %v26944_v17 = vand.u32 4294901760, %v137_v14  ;;  %v26949_v19 = vsub.f32 %v147_v1, %v26929_v4  ;;  %v26951_v20 = vld [vmem:[#allocation2 + $0x108] sm:$0xff]  ;;  %v26953_v21 = vld [vmem:[#allocation2 + $0xf8] sm:$0xff] }
  0x3a   :  { %v26946_v18 = vand.u32 4294901760, %v135_v15  ;;  %v26955_v22 = vld [vmem:[#allocation2 + $0xf0] sm:$0xff]  ;;  %169 = vmatpush1.msra.mxu0 %v26931_v5  ;;  %v26959_v23 = vand.u32 4294901760, %v26951_v20  ;;  %v26962_v24 = vsub.f32 %v146_v2, %v26931_v5  ;;  %v26965_v25 = vand.u32 4294901760, %v26953_v21  ;;  %v26970_v27 = vld [vmem:[#allocation2 + $0xe0] sm:$0xff]  ;;  %v26972_v28 = vld [vmem:[#allocation2 + $0xd8] sm:$0xff] }
  0x3b   :  { %v26968_v26 = vsub.f32 %v144_v3, %v26933_v6  ;;  %v26974_v29 = vld [vmem:[#allocation2 + $0xc8] sm:$0xff]  ;;  %171 = vmatprep.subr.mxu0 %v26933_v6  ;;  %v32979_v30 = vand.u32 4294901760, %v26949_v19  ;;  %v26979_v31 = vand.u32 4294901760, %v26955_v22  ;;  %v26982_v32 = vsub.f32 %v143_v7, %v26935_v10  ;;  %v26996_v38 = vld [vmem:[#allocation2 + $0xc0] sm:$0xff]  ;;  %v27020_v47 = vld [vmem:[#allocation2 + $0xb0] sm:$0xff]  ;;  %s26836_s19 = smov 64  }
  0x3c   :  { %v26985_v33 = vand.u32 4294901760, %v26970_v27  ;;  %173 = vmatpush1.msra.mxu0 %v26935_v10  ;;  %v32978_v34 = vand.u32 4294901760, %v26962_v24  ;;  %v26991_v36 = vsub.f32 %v141_v8, %v26937_v11  ;;  %v26994_v37 = vand.u32 4294901760, %v26972_v28  ;;  %v27030_v52 = vld [vmem:[#allocation2 + $0xa8] sm:$0xff]  ;;  %v27037_v57 = vld [vmem:[#allocation2 + $0x98] sm:$0xff]  ;;  %v27049_v62 = vld [vmem:[#allocation2 + $0x90] sm:$0xff] }
  0x3d   :  { %v32976_v35 = vand.u32 4294901760, %v26968_v26  ;;  %175 = vmatprep.subr.mxu0 %v26937_v11  ;;  %v288_v39 = vsub.f32 %v26949_v19, %v32979_v30  ;;  %v32974_v40 = vand.u32 4294901760, %v26982_v32  ;;  %v27004_v41 = vsub.f32 %v140_v9, %v26939_v12  ;;  %v27061_v7 = vld [vmem:[#allocation2 + $0x80] sm:$0xff]  ;;  %s26837_s20 = smov 96   ;;  %s26838_s21 = smov 32  }
  0x3e   :  { %33492 = vst [vmem:[#allocation12_spill] sm:$0xff] %v26985_v33  ;;  %33493 = vst [vmem:[#allocation13_spill] sm:$0xff] %v26994_v37  ;;  %v27007_v42 = vand.u32 4294901760, %v26974_v29  ;;  %177 = vmatpush1.msra.mxu0 %v26939_v12  ;;  %v294_v43 = vsub.f32 %v26962_v24, %v32978_v34  ;;  %v32973_v45 = vand.u32 4294901760, %v26991_v36  ;;  %v27018_v46 = vsub.f32 %v138_v13, %v26942_v16  ;;  %v27162_v34 = vld [vmem:[#allocation2 + $0x30] sm:$0xff] }
  0x3f   :  { %v300_v44 = vsub.f32 %v26968_v26, %v32976_v35  ;;  %179 = vmatprep.subr.mxu0 %v26942_v16  ;;  %v289_v48 = vand.u32 4294901760, %v288_v39  ;;  %v306_v49 = vsub.f32 %v26982_v32, %v32974_v40  ;;  %v32971_v50 = vand.u32 4294901760, %v27004_v41  ;;  %v27152_v35 = vld [vmem:[#allocation2 + $0x38] sm:$0xff] }
  0x40   :  { %33494 = vst [vmem:[#allocation14_spill] sm:$0xff] %v27007_v42  ;;  %v27028_v51 = vand.u32 4294901760, %v26996_v38  ;;  %181 = vmatpush1.msra.mxu0 %v26944_v17  ;;  %v295_v53 = vand.u32 4294901760, %v294_v43  ;;  %v312_v55 = vsub.f32 %v26991_v36, %v32973_v45  ;;  %v32969_v56 = vand.u32 4294901760, %v27018_v46  ;;  %v27139_v45 = vld [vmem:[#allocation2 + $0x48] sm:$0xff] }
  0x41   :  { %v301_v54 = vand.u32 4294901760, %v300_v44  ;;  %183 = vmatprep.subr.mxu0 %v26946_v18  ;;  %290 = vmatprep.subr.mxu1 %v289_v48  ;;  %v307_v58 = vand.u32 4294901760, %v306_v49  ;;  %v318_v59 = vsub.f32 %v27004_v41, %v32971_v50  ;;  %v27044_v60 = vsub.f32 %v137_v14, %v26944_v17 }
  0x42   :  { %33495 = vst [vmem:[#allocation15_spill] sm:$0xff] %v27028_v51  ;;  %v27047_v61 = vand.u32 4294901760, %v27020_v47  ;;  %185 = vmatpush1.msra.mxu0 %v26959_v23  ;;  %296 = vmatpush1.msra.mxu1 %v295_v53  ;;  %v313_v63 = vand.u32 4294901760, %v312_v55  ;;  %v324_v1 = vsub.f32 %v27018_v46, %v32969_v56  ;;  %v27056_v2 = vsub.f32 %v135_v15, %v26946_v18  ;;  %v27072_v15 = vld [vmem:[#allocation2 + $0x78] sm:$0xff] }
  0x43   :  { %v27059_v3 = vand.u32 4294901760, %v27030_v52  ;;  %187 = vmatprep.subr.mxu0 %v26965_v25  ;;  %302 = vmatprep.subr.mxu1 %v301_v54  ;;  %v319_v8 = vand.u32 4294901760, %v318_v59  ;;  %v32968_v9 = vand.u32 4294901760, %v27044_v60  ;;  %v27067_v13 = vsub.f32 %v26951_v20, %v26959_v23 }
  0x44   :  { %33496 = vst [vmem:[#allocation16_spill] sm:$0xff] %v27047_v61  ;;  %v27070_v14 = vand.u32 4294901760, %v27037_v57  ;;  %189 = vmatpush1.msra.mxu0 %v26979_v31  ;;  %308 = vmatpush1.msra.mxu1 %v307_v58  ;;  %v325_v39 = vand.u32 4294901760, %v324_v1  ;;  %v32967_v43 = vand.u32 4294901760, %v27056_v2  ;;  %v27078_v44 = vsub.f32 %v26953_v21, %v26965_v25  ;;  %v27095_v21 = vld [vmem:[#allocation2 + $0x68] sm:$0xff] }
  0x45   :  { %33497 = vst [vmem:[#allocation17_spill] sm:$0xff] %v27059_v3  ;;  %v27081_v48 = vand.u32 4294901760, %v27049_v62  ;;  %191 = vmatprep.subr.mxu0 %v26985_v33  ;;  %314 = vmatprep.subr.mxu1 %v313_v63  ;;  %v330_v20 = vsub.f32 %v27044_v60, %v32968_v9  ;;  %v32970_v49 = vand.u32 4294901760, %v27067_v13  ;;  %v27090_v53 = vsub.f32 %v26955_v22, %v26979_v31  ;;  %v27118_v9 = vld [vmem:[#allocation2 + $0x60] sm:$0xff] }
  0x46   :  { %33498 = vst [vmem:[#allocation18_spill] sm:$0xff] %v27070_v14  ;;  %v27093_v54 = vand.u32 4294901760, %v27061_v7  ;;  %193 = vmatpush1.msra.mxu0 %v26994_v37  ;;  %320 = vmatpush1.msra.mxu1 %v319_v8  ;;  %v336_v55 = vsub.f32 %v27056_v2, %v32967_v43  ;;  %v32972_v58 = vand.u32 4294901760, %v27078_v44  ;;  %v27104_v59 = vsub.f32 %v26970_v27, %v26985_v33 }
  0x47   :  { %33499 = vst [vmem:[#allocation19_spill] sm:$0xff] %v27081_v48  ;;  %v27107_v22 = vand.u32 4294901760, %v27072_v15  ;;  %195 = vmatprep.subr.mxu0 %v27007_v42  ;;  %326 = vmatprep.subr.mxu1 %v325_v39  ;;  %v331_v63 = vand.u32 4294901760, %v330_v20  ;;  %v342_v1 = vsub.f32 %v27067_v13, %v32970_v49  ;;  %v32975_v8 = vand.u32 4294901760, %v27090_v53  ;;  %v27128_v49 = vld [vmem:[#allocation2 + $0x50] sm:$0xff] }
  0x48   :  { %33500 = vst [vmem:[#allocation20_spill] sm:$0xff] %v27093_v54  ;;  %v27116_v43 = vsub.f32 %v26972_v28, %v26994_v37  ;;  %197 = vmatpush1.msra.mxu0 %v27028_v51  ;;  %v337_v27 = vand.u32 4294901760, %v336_v55  ;;  %v348_v39 = vsub.f32 %v27078_v44, %v32972_v58  ;;  %v32977_v20 = vand.u32 4294901760, %v27104_v59 }
  0x49   :  { %33501 = vst [vmem:[#allocation21_spill] sm:$0xff] %v27107_v22  ;;  %v27126_v56 = vand.u32 4294901760, %v27095_v21  ;;  %332 = vmatpush1.msra.mxu1 %v331_v63  ;;  %199 = vmatprep.subr.mxu0 %v27047_v61  ;;  %v343_v28 = vand.u32 4294901760, %v342_v1  ;;  %v354_v50 = vsub.f32 %v27090_v53, %v32975_v8  ;;  %v27137_v58 = vsub.f32 %v26974_v29, %v27007_v42 }
  0x4a   :  { %v32980_v55 = vand.u32 4294901760, %v27116_v43  ;;  %338 = vmatprep.subr.mxu1 %v337_v27  ;;  %201 = vmatpush1.msra.mxu0 %v27059_v3  ;;  %v349_v40 = vand.u32 4294901760, %v348_v39  ;;  %v360_v63 = vsub.f32 %v27104_v59, %v32977_v20  ;;  %v27146_v1 = vand.u32 4294901760, %v27118_v9 }
  0x4b   :  { %33502 = vst [vmem:[#allocation22_spill] sm:$0xff] %v27126_v56  ;;  %v27150_v8 = vsub.f32 %v26996_v38, %v27028_v51  ;;  %344 = vmatpush1.msra.mxu1 %v343_v28  ;;  %203 = vmatprep.subr.mxu0 %v27070_v14  ;;  %v355_v29 = vand.u32 4294901760, %v354_v50  ;;  %v32985_v39 = vand.u32 4294901760, %v27137_v58  ;;  %v27160_v20 = vand.u32 4294901760, %v27128_v49 }
  0x4c   :  { %v366_v27 = vsub.f32 %v27116_v43, %v32980_v55  ;;  %350 = vmatprep.subr.mxu1 %v349_v40  ;;  %205 = vmatpush1.msra.mxu0 %v27081_v48  ;;  %v361_v38 = vand.u32 4294901760, %v360_v63  ;;  %v27168_v50 = vsub.f32 %v27020_v47, %v27047_v61  ;;  %v27171_v30 = vand.u32 4294901760, %v27139_v45  ;;  %v27173_v55 = vld [vmem:[#allocation2 + $0x20] sm:$0xff] }
  0x4d   :  { %33503 = vst [vmem:[#allocation23_spill] sm:$0xff] %v27160_v20  ;;  %v32988_v28 = vand.u32 4294901760, %v27150_v8  ;;  %356 = vmatpush1.msra.mxu1 %v355_v29  ;;  %207 = vmatprep.subr.mxu0 %v27093_v54  ;;  %v372_v40 = vsub.f32 %v27137_v58, %v32985_v39  ;;  %v27181_v63 = vsub.f32 %v27030_v52, %v27059_v3  ;;  %v27184_v47 = vand.u32 4294901760, %v27152_v35  ;;  %v27198_v52 = vld [vmem:[#allocation2 + $0x18] sm:$0xff] }
  0x4e   :  { %33504 = vst [vmem:[#allocation24_spill] sm:$0xff] %v27171_v30  ;;  %v367_v0 = vand.u32 4294901760, %v366_v27  ;;  %362 = vmatprep.subr.mxu1 %v361_v38  ;;  %209 = vmatpush1.msra.mxu0 %v27107_v22  ;;  %v27193_v61 = vsub.f32 %v27037_v57, %v27070_v14  ;;  %v27196_v39 = vand.u32 4294901760, %v27162_v34  ;;  %v27207_v27 = vand.u32 4294901760, %v27173_v55  ;;  %v27209_v57 = vld [vmem:[#allocation2 + $0x8] sm:$0xff] }
  0x4f   :  { %33505 = vst [vmem:[#allocation25_spill] sm:$0xff] %v27184_v47  ;;  %v378_v29 = vsub.f32 %v27150_v8, %v32988_v28  ;;  %211 = vmatprep.subr.mxu0 %v27126_v56  ;;  %v373_v38 = vand.u32 4294901760, %v372_v40  ;;  %v27204_v28 = vsub.f32 %v27049_v62, %v27081_v48  ;;  %v33508_v51 = vand.u32 4294901760, %v27168_v50  ;;  %v27232_v40 = vld [vmem:[#allocation2] sm:$0xff] }
  0x50   :  { %33506 = vst [vmem:[#allocation26_spill] sm:$0xff] %v27196_v39  ;;  %368 = vmatpush1.msra.mxu1 %v367_v0  ;;  %33507 = vst [vmem:[#allocation27_spill] sm:$0xff] %v27207_v27  ;;  %213 = vmatpush1.msra.mxu0 %v27146_v1  ;;  %v27218_v3 = vsub.f32 %v27061_v7, %v27093_v54  ;;  %v33510_v62 = vand.u32 4294901760, %v27181_v63  ;;  %v27240_v42 = vand.u32 4294901760, %v27209_v57  ;;  %vm5403_vm2 = vcmask 64512  }
  0x51   :  { %v379_v14 = vand.u32 4294901760, %v378_v29  ;;  %v384_v0 = vsub.f32 %v27168_v50, %v33508_v51  ;;  %374 = vmatprep.subr.mxu1 %v373_v38  ;;  %215 = vmatprep.subr.mxu0 %v27160_v20  ;;  %v27226_v29 = vand.u32 4294901760, %v27198_v52  ;;  %v27230_v51 = vsub.f32 %v27072_v15, %v27107_v22 }
  0x52   :  { %33509 = vst [vmem:[#allocation28_spill] sm:$0xff] %v27218_v3  ;;  %v390_v48 = vsub.f32 %v27181_v63, %v33510_v62  ;;  %217 = vmatpush1.msra.mxu0 %v27171_v30  ;;  %v33511_v38 = vand.u32 4294901760, %v27193_v61  ;;  %v33512_v15 = vand.u32 4294901760, %v27204_v28  ;;  %vm9097_vm3 = vcmask 523264  }
  0x53   :  { %380 = vmatpush1.msra.mxu1 %v379_v14  ;;  %v385_v7 = vand.u32 4294901760, %v384_v0  ;;  %219 = vmatprep.subr.mxu0 %v27184_v47  ;;  %v27249_v0 = vsub.f32 %v27095_v21, %v27126_v56  ;;  %v27263_v14 = vsub.f32 %v27118_v9, %v27146_v1  ;;  %vm9099_vm4 = vcmask 785408  }
  0x54   :  { %v396_v54 = vsub.f32 %v27193_v61, %v33511_v38  ;;  %v391_v37 = vand.u32 4294901760, %v390_v48  ;;  %v402_v22 = vsub.f32 %v27204_v28, %v33512_v15  ;;  %v99_v38 = vld [vmem:[%s32953_s0] sm:$0xff]  ;;  %221 = vmatpush1.msra.mxu0 %v27196_v39  ;;  %v33513_v48 = vand.u32 4294901760, %v27218_v3 }
  0x55   :  { %386 = vmatprep.subr.mxu1 %v385_v7  ;;  %v27259_v15 = vand.u32 4294901760, %v27232_v40  ;;  %223 = vmatprep.subr.mxu0 %v27207_v27  ;;  %v33514_v7 = vand.u32 4294901760, %v27230_v51  ;;  %v33009_v56 = vand.u32 4294901760, %v27249_v0  ;;  %v33012_v9 = vand.u32 4294901760, %v27263_v14 }
  0x56   :  { %v397_v62 = vand.u32 4294901760, %v396_v54  ;;  %v408_v33 = vsub.f32 %v27218_v3, %v33513_v48  ;;  %392 = vmatpush1.msra.mxu1 %v391_v37  ;;  %v403_v21 = vand.u32 4294901760, %v402_v22  ;;  %v27272_v48 = vsub.f32 %v27128_v49, %v27160_v20  ;;  %225 = vmatpush1.msra.mxu0 %v27226_v29 }
  0x57   :  { %v414_v54 = vsub.f32 %v27230_v51, %v33514_v7  ;;  %v27276_v37 = vand.u32 4294901760, %v99_v38  ;;  %v27280_v22 = vsub.f32 %v27139_v45, %v27171_v30  ;;  %227 = vmatprep.subr.mxu0 %v27240_v42  ;;  %v420_v49 = vsub.f32 %v27249_v0, %v33009_v56 }
  0x58   :  { %398 = vmatprep.subr.mxu1 %v397_v62  ;;  %v409_v3 = vand.u32 4294901760, %v408_v33  ;;  %v27289_v62 = vsub.f32 %v27152_v35, %v27184_v47  ;;  %229 = vmatpush1.msra.mxu0 %v27259_v15  ;;  %v426_v45 = vsub.f32 %v27263_v14, %v33012_v9  ;;  %v27301_v56 = vsub.f32 %v27162_v34, %v27196_v39 }
  0x59   :  { %33515 = vst [vmem:[#allocation29_spill] sm:$0xff] %v27276_v37  ;;  %404 = vmatpush1.msra.mxu1 %v403_v21  ;;  %v415_v7 = vand.u32 4294901760, %v414_v54  ;;  %v27296_v21 = vsub.f32 %v99_v38, %v27276_v37  ;;  %v421_v33 = vand.u32 4294901760, %v420_v49  ;;  %v33517_v35 = vand.u32 4294901760, %v27272_v48  ;;  %526 = vmatprep.subr.mxu0 %v26949_v19 }
  0x5a   :  { %410 = vmatprep.subr.mxu1 %v409_v3  ;;  %v33019_v47 = vand.u32 4294901760, %v27289_v62  ;;  %v27310_v38 = vsub.f32 %v27173_v55, %v27207_v27  ;;  %v427_v9 = vand.u32 4294901760, %v426_v45  ;;  %v33519_v34 = vand.u32 4294901760, %v27280_v22 }
  0x5b   :  { %33516 = vst [vmem:[#allocation30_spill] sm:$0xff] %v27296_v21  ;;  %416 = vmatpush1.msra.mxu1 %v415_v7  ;;  %v432_v3 = vsub.f32 %v27272_v48, %v33517_v35  ;;  %v27313_v54 = vand.u32 4294901760, %v27296_v21  ;;  %v33020_v49 = vand.u32 4294901760, %v27301_v56  ;;  %v27325_v55 = vsub.f32 %v27198_v52, %v27226_v29 }
  0x5c   :  { %v438_v7 = vsub.f32 %v27280_v22, %v33519_v34  ;;  %422 = vmatprep.subr.mxu1 %v421_v33  ;;  %v444_v39 = vsub.f32 %v27289_v62, %v33019_v47  ;;  %v33026_v30 = vand.u32 4294901760, %v27310_v38  ;;  %v27342_v47 = vsub.f32 %v27232_v40, %v27259_v15 }
  0x5d   :  { %33518 = vst [vmem:[#allocation31_spill] sm:$0xff] %v27313_v54  ;;  %v433_v35 = vand.u32 4294901760, %v432_v3  ;;  %33520 = vst [vmem:[#allocation32_spill] sm:$0xff] %v27325_v55  ;;  %428 = vmatpush1.msra.mxu1 %v427_v9  ;;  %v266_v45 = vsub.f32 %v27296_v21, %v27313_v54  ;;  %v450_v33 = vsub.f32 %v27301_v56, %v33020_v49  ;;  %v33025_v9 = vand.u32 4294901760, %v27325_v55 }
  0x5e   :  { %v439_v27 = vand.u32 4294901760, %v438_v7  ;;  %v27334_v3 = vsub.f32 %v27209_v57, %v27240_v42  ;;  %v445_v34 = vand.u32 4294901760, %v444_v39  ;;  %v456_v52 = vsub.f32 %v27310_v38, %v33026_v30  ;;  %33521 = vst [vmem:[#allocation33_spill] sm:$0xff] %v27342_v47 }
  0x5f   :  { %434 = vmatprep.subr.mxu1 %v433_v35  ;;  %v27344_v7 = vand.u32 4294901760, %v266_v45  ;;  %v451_v49 = vand.u32 4294901760, %v450_v33  ;;  %v462_v39 = vsub.f32 %v27325_v55, %v33025_v9  ;;  %v33023_v35 = vand.u32 4294901760, %v27342_v47  ;;  %v33530_v9 = vld [vmem:[#allocation17_spill] sm:$0xff] }
  0x60   :  { %440 = vmatpush1.msra.mxu1 %v439_v27  ;;  %v33024_v54 = vand.u32 4294901760, %v27334_v3  ;;  %v457_v57 = vand.u32 4294901760, %v456_v52  ;;  %v100_v52 = vld [vmem:[%s32953_s0 + $0x8] sm:$0xff] }
  0x61   :  { %33522 = vst [vmem:[#allocation34_spill] sm:$0xff] %v27344_v7  ;;  %446 = vmatprep.subr.mxu1 %v445_v34  ;;  %268 = vmatmul.mubr.f32.vlgmr.msra.gmra.mxu0 %v27344_v7  ;;  %v463_v27 = vand.u32 4294901760, %v462_v39  ;;  %v474_v45 = vsub.f32 %v27342_v47, %v33023_v35  ;;  %v33523_v34 = vmov 0.0   ;;  %v33528_v35 = vld [vmem:[#allocation15_spill] sm:$0xff]  ;;  %v33532_v7 = vld [vmem:[#allocation18_spill] sm:$0xff] }
  0x62   :  { %452 = vmatpush1.msra.mxu1 %v451_v49  ;;  %v468_v40 = vsub.f32 %v27334_v3, %v33024_v54  ;;  %529 = vmatpush1.msra.mxu0 %v26962_v24  ;;  %v33529_v54 = vld [vmem:[#allocation16_spill] sm:$0xff] }
  0x63   :  { %458 = vmatprep.subr.mxu1 %v457_v57  ;;  %532 = vmatprep.subr.mxu0 %v26968_v26  ;;  %v475_v49 = vand.u32 4294901760, %v474_v45  ;;  %v27373_v57 = vand.u32 4294901760, %v100_v52  ;;  %v33525_v45 = vld [vmem:[#allocation28_spill] sm:$0xff] }
  0x64   :  { %v469_v33 = vand.u32 4294901760, %v468_v40  ;;  %273 = vmatprep.mubr.f32.mxu0 %v33523_v34  ;;  %535 = vmatpush1.msra.mxu0 %v26982_v32 }
  0x65   :  { %464 = vmatpush1.msra.mxu1 %v463_v27  ;;  %538 = vmatprep.subr.mxu0 %v26991_v36  ;;  %v27384_v39 = vsub.f32 %v100_v52, %v27373_v57  ;;  %v33524_v27 = vld [vmem:[#allocation12_spill] sm:$0xff]  ;;  %v33527_v52 = vld [vmem:[#allocation14_spill] sm:$0xff] }
  0x66   :  { %470 = vmatprep.subr.mxu1 %v469_v33  ;;  %541 = vmatpush1.msra.mxu0 %v27004_v41  ;;  %v33526_v33 = vld [vmem:[#allocation13_spill] sm:$0xff] }
  0x67   :  { %476 = vmatpush1.msra.mxu1 %v475_v49  ;;  %544 = vmatprep.subr.mxu0 %v27018_v46  ;;  %v27395_v40 = vand.u32 4294901760, %v27384_v39 }
  0x68   :  { %511 = vmatmul.mubr.f32.vlgmr.msra.gmra.mxu1 %v27276_v37  ;;  %547 = vmatpush1.msra.mxu0 %v27044_v60  ;;  %v33533_v37 = vld [vmem:[#allocation19_spill] sm:$0xff] }
  0x69   :  { %670 = vmatprep.subr.mxu1 %v26929_v4  ;;  %550 = vmatprep.subr.mxu0 %v27056_v2  ;;  %v277_v49 = vsub.f32 %v27384_v39, %v27395_v40 }
  0x6a   :  { %672 = vmatpush1.msra.mxu1 %v26931_v5  ;;  %553 = vmatpush1.msra.mxu0 %v27067_v13 }
  0x6b   :  { %674 = vmatprep.subr.mxu1 %v26933_v6  ;;  %556 = vmatprep.subr.mxu0 %v27078_v44  ;;  %v27415_v30 = vand.u32 4294901760, %v277_v49  ;;  %v33535_v49 = vld [vmem:[#allocation21_spill] sm:$0xff] }
  0x6c   :  { %676 = vmatpush1.msra.mxu1 %v26935_v10  ;;  %559 = vmatpush1.msra.mxu0 %v27090_v53 }
  0x6d   :  { %678 = vmatprep.subr.mxu1 %v26937_v11  ;;  %562 = vmatprep.subr.mxu0 %v27104_v59  ;;  %33531 = vst [vmem:[#allocation12_spill] sm:$0xff] %v27415_v30 }
  0x6e   :  { %680 = vmatpush1.msra.mxu1 %v26939_v12  ;;  %565 = vmatpush1.msra.mxu0 %v27116_v43 }
  0x6f   :  { %682 = vmatprep.subr.mxu1 %v26942_v16  ;;  %568 = vmatprep.subr.mxu0 %v27137_v58 }
  0x70   :  { %684 = vmatpush1.msra.mxu1 %v26944_v17  ;;  %571 = vmatpush1.msra.mxu0 %v27150_v8 }
  0x71   :  { %686 = vmatprep.subr.mxu1 %v26946_v18  ;;  %574 = vmatprep.subr.mxu0 %v27168_v50 }
  0x72   :  { %688 = vmatpush1.msra.mxu1 %v26959_v23  ;;  %577 = vmatpush1.msra.mxu0 %v27181_v63 }
  0x73   :  { %690 = vmatprep.subr.mxu1 %v26965_v25  ;;  %580 = vmatprep.subr.mxu0 %v27193_v61 }
  0x74   :  { %692 = vmatpush1.msra.mxu1 %v26979_v31  ;;  %583 = vmatpush1.msra.mxu0 %v27204_v28 }
  0x75   :  { %694 = vmatprep.subr.mxu1 %v33524_v27  ;;  %586 = vmatprep.subr.mxu0 %v33525_v45 }
  0x76   :  { %696 = vmatpush1.msra.mxu1 %v33526_v33  ;;  %589 = vmatpush1.msra.mxu0 %v27230_v51 }
  0x77   :  { %698 = vmatprep.subr.mxu1 %v33527_v52  ;;  %592 = vmatprep.subr.mxu0 %v27249_v0 }
  0x78   :  { %700 = vmatpush1.msra.mxu1 %v33528_v35  ;;  %595 = vmatpush1.msra.mxu0 %v27263_v14  ;;  %v33534_v35 = vld [vmem:[#allocation20_spill] sm:$0xff] }
  0x79   :  { %702 = vmatprep.subr.mxu1 %v33529_v54  ;;  %598 = vmatprep.subr.mxu0 %v27272_v48 }
  0x7a   :  { %704 = vmatpush1.msra.mxu1 %v33530_v9  ;;  %601 = vmatpush1.msra.mxu0 %v27280_v22  ;;  %v33536_v9 = vld [vmem:[#allocation22_spill] sm:$0xff] }
  0x7b   :  { %706 = vmatprep.subr.mxu1 %v33532_v7  ;;  %604 = vmatprep.subr.mxu0 %v27289_v62 }
  0x7c   :  { %708 = vmatpush1.msra.mxu1 %v33533_v37  ;;  %607 = vmatpush1.msra.mxu0 %v27301_v56 }
  0x7d   :  { %710 = vmatprep.subr.mxu1 %v33534_v35  ;;  %279 = vmatmul.mubr.f32.gmra.mxu0 %v27415_v30  ;;  %v33537_v30 = vand.u32 4294901760, %v26949_v19  ;;  %v33544_v19 = vld [vmem:[#allocation27_spill] sm:$0xff] }
  0x7e   :  { %610 = vmatprep.subr.mxu0 %v27310_v38  ;;  %712 = vmatpush1.msra.mxu1 %v33535_v49  ;;  %v33539_v49 = vand.u32 4294901760, %v26962_v24  ;;  %v33545_v24 = vand.u32 4294901760, %v26991_v36  ;;  %v33549_v36 = vld [vmem:[#allocation31_spill] sm:$0xff] }
  0x7f   :  { %613 = vmatpush1.msra.mxu0 %v27325_v55  ;;  %714 = vmatprep.subr.mxu1 %v33536_v9  ;;  %v33538_v55 = vld [vmem:[#allocation24_spill] sm:$0xff]  ;;  %v33540_v9 = vld [vmem:[#allocation25_spill] sm:$0xff] }
  0x80   :  { %616 = vmatprep.subr.mxu0 %v27334_v3  ;;  %652 = vmatprep.mubr.f32.mxu0 %v33523_v34 }
  0x81   :  { %619 = vmatpush1.msra.mxu0 %v27342_v47  ;;  %716 = vmatpush1.msra.mxu1 %v27146_v1  ;;  %v33541_v47 = vand.u32 4294901760, %v26968_v26  ;;  %v33546_v26 = vand.u32 4294901760, %v27004_v41  ;;  %v33551_v41 = vand.u32 4294901760, %v27067_v13  ;;  %v33561_v13 = vand.u32 4294901760, %v27204_v28  ;;  %v33569_v28 = vld [vmem:[#allocation17_spill] sm:$0xff] }
  0x82   :  { %655 = vmatmul.mubr.f32.vlgmr.msra.gmra.mxu0 %v27296_v21  ;;  %718 = vmatprep.subr.mxu1 %v27160_v20  ;;  %v33542_v21 = vld [vmem:[#allocation26_spill] sm:$0xff]  ;;  %v33543_v20 = vand.u32 4294901760, %v26982_v32  ;;  %v33548_v32 = vand.u32 4294901760, %v27044_v60  ;;  %v33553_v60 = vand.u32 4294901760, %v27090_v53 }
  0x83   :  { %787 = vmatprep.subr.mxu0 %v33537_v30  ;;  %720 = vmatpush1.msra.mxu1 %v33538_v55  ;;  %v33547_v30 = vand.u32 4294901760, %v27018_v46  ;;  %v33552_v46 = vand.u32 4294901760, %v27078_v44  ;;  %v33566_v44 = vld [vmem:[#allocation15_spill] sm:$0xff] }
  0x84   :  { %791 = vmatpush1.msra.mxu0 %v33539_v49  ;;  %516 = vmatprep.mubr.f32.mxu1 %v33523_v34 }
  0x85   :  { %722 = vmatprep.subr.mxu1 %v33540_v9  ;;  %795 = vmatprep.subr.mxu0 %v33541_v47  ;;  %v33570_v47 = vand.u32 4294901760, %v27289_v62  ;;  %v133_v62 = vld [vmem:[#allocation2 + $0x100] sm:$0xff] }
  0x86   :  { %518 = vmatmul.mubr.f32.gmra.mxu1 %v27373_v57  ;;  %799 = vmatpush1.msra.mxu0 %v33543_v20  ;;  %v33550_v20 = vand.u32 4294901760, %v27056_v2  ;;  %v33554_v2 = vand.u32 4294901760, %v27104_v59  ;;  %v139_v59 = vld [vmem:[#allocation2 + $0x130] sm:$0xff] }
  0x87   :  { %724 = vmatpush1.msra.mxu1 %v33542_v21  ;;  %660 = vmatprep.mubr.f32.mxu0 %v33523_v34 }
  0x88   :  { %726 = vmatprep.subr.mxu1 %v33544_v19  ;;  %803 = vmatprep.subr.mxu0 %v33545_v24 }
  0x89   :  { %663 = vmatmul.mubr.f32.gmra.mxu0 %v27384_v39  ;;  %728 = vmatpush1.msra.mxu1 %v27226_v29 }
  0x8a   :  { %807 = vmatpush1.msra.mxu0 %v33546_v26  ;;  %730 = vmatprep.subr.mxu1 %v27240_v42 }
  0x8b   :  { %811 = vmatprep.subr.mxu0 %v33547_v30  ;;  %732 = vmatpush1.msra.mxu1 %v27259_v15  ;;  %v27565_v30 = vand.u32 4294901760, %v133_v62 }
  0x8c   :  { %765 = vmatprep.mubr.f32.mxu1 %v33523_v34  ;;  %815 = vmatpush1.msra.mxu0 %v33548_v32  ;;  %v127_v32 = vld [vmem:[#allocation2 + $0xd0] sm:$0xff] }
  0x8d   :  { %769 = vmatmul.mubr.f32.vlgmr.msra.gmra.mxu1 %v33549_v36  ;;  %819 = vmatprep.subr.mxu0 %v33550_v20 }
  0x8e   :  { %960 = vmatprep.subr.mxu1 %v26929_v4  ;;  %823 = vmatpush1.msra.mxu0 %v33551_v41  ;;  %v33555_v4 = vand.u32 4294901760, %v27116_v43  ;;  %v33563_v43 = vand.u32 4294901760, %v27230_v51  ;;  %v136_v51 = vld [vmem:[#allocation2 + $0x118] sm:$0xff] }
  0x8f   :  { %962 = vmatpush1.msra.mxu1 %v26931_v5  ;;  %827 = vmatprep.subr.mxu0 %v33552_v46  ;;  %v33556_v5 = vand.u32 4294901760, %v27137_v58  ;;  %v33567_v58 = vand.u32 4294901760, %v27272_v48  ;;  %v27537_v48 = vand.u32 4294901760, %v139_v59  ;;  %v33581_v41 = vld [vmem:[#allocation23_spill] sm:$0xff] }
  0x90   :  { %964 = vmatprep.subr.mxu1 %v26933_v6  ;;  %774 = vmatprep.mubr.f32.mxu1 %v33523_v34  ;;  %v33557_v6 = vand.u32 4294901760, %v27150_v8  ;;  %v33568_v8 = vand.u32 4294901760, %v27280_v22  ;;  %v33572_v22 = vand.u32 4294901760, %v27310_v38  ;;  %v33576_v38 = vand.u32 4294901760, %v27334_v3  ;;  %v33580_v3 = vld [vmem:[#allocation29_spill] sm:$0xff] }
  0x91   :  { %831 = vmatpush1.msra.mxu0 %v33553_v60  ;;  %966 = vmatpush1.msra.mxu1 %v26935_v10  ;;  %v33558_v10 = vand.u32 4294901760, %v27168_v50  ;;  %v27563_v26 = vsub.f32 %v139_v59, %v27537_v48  ;;  %v112_v59 = vld [vmem:[#allocation2 + $0x58] sm:$0xff] }
  0x92   :  { %835 = vmatprep.subr.mxu0 %v33554_v2  ;;  %778 = vmatmul.mubr.f32.gmra.mxu1 %v27395_v40 }
  0x93   :  { %968 = vmatprep.subr.mxu1 %v26937_v11  ;;  %839 = vmatpush1.msra.mxu0 %v33555_v4  ;;  %v33559_v11 = vand.u32 4294901760, %v27181_v63  ;;  %v124_v4 = vld [vmem:[#allocation2 + $0xb8] sm:$0xff] }
  0x94   :  { %970 = vmatpush1.msra.mxu1 %v26939_v12  ;;  %843 = vmatprep.subr.mxu0 %v33556_v5  ;;  %v33560_v12 = vand.u32 4294901760, %v27193_v61  ;;  %v142_v61 = vld [vmem:[#allocation2 + $0x148] sm:$0xff] }
  0x95   :  { %972 = vmatprep.subr.mxu1 %v26942_v16  ;;  %847 = vmatpush1.msra.mxu0 %v33557_v6  ;;  %v148_v16 = vld [vmem:[#allocation2 + $0x178] sm:$0xff]  ;;  %v27526_v63 = vand.u32 4294901760, %v142_v61  ;;  %v27590_v6 = vand.u32 4294901760, %v27563_v26 }
  0x96   :  { %974 = vmatpush1.msra.mxu1 %v26944_v17  ;;  %851 = vmatprep.subr.mxu0 %v33558_v10  ;;  %v33562_v17 = vand.u32 4294901760, %v33525_v45  ;;  %v27551_v45 = vand.u32 4294901760, %v136_v51  ;;  %v27593_v10 = vsub.f32 %v133_v62, %v27565_v30 }
  0x97   :  { %976 = vmatprep.subr.mxu1 %v26946_v18  ;;  %855 = vmatpush1.msra.mxu0 %v33559_v11  ;;  %v145_v18 = vld [vmem:[#allocation2 + $0x160] sm:$0xff] }
  0x98   :  { %978 = vmatpush1.msra.mxu1 %v26959_v23  ;;  %859 = vmatprep.subr.mxu0 %v33560_v12  ;;  %v27507_v23 = vand.u32 4294901760, %v148_v16  ;;  %v27515_v53 = vand.u32 4294901760, %v145_v18  ;;  %v27579_v2 = vsub.f32 %v136_v51, %v27551_v45  ;;  %v121_v11 = vld [vmem:[#allocation2 + $0xa0] sm:$0xff] }
  0x99   :  { %980 = vmatprep.subr.mxu1 %v26965_v25  ;;  %863 = vmatpush1.msra.mxu0 %v33561_v13  ;;  %v33564_v25 = vand.u32 4294901760, %v27249_v0  ;;  %v27607_v13 = vand.u32 4294901760, %v124_v4 }
  0x9a   :  { %982 = vmatpush1.msra.mxu1 %v26979_v31  ;;  %867 = vmatprep.subr.mxu0 %v33562_v17  ;;  %v33565_v31 = vand.u32 4294901760, %v27263_v14  ;;  %v27524_v50 = vsub.f32 %v148_v16, %v27507_v23  ;;  %v33571_v14 = vand.u32 4294901760, %v27301_v56  ;;  %v27535_v0 = vsub.f32 %v145_v18, %v27515_v53  ;;  %v118_v17 = vld [vmem:[#allocation2 + $0x88] sm:$0xff] }
  0x9b   :  { %984 = vmatprep.subr.mxu1 %v33524_v27  ;;  %871 = vmatpush1.msra.mxu0 %v33563_v43  ;;  %v27605_v16 = vand.u32 4294901760, %v27579_v2  ;;  %v1196_v18 = vsub.f32 %v27563_v26, %v27590_v6  ;;  %v27619_v43 = vand.u32 4294901760, %v27593_v10 }
  0x9c   :  { %986 = vmatpush1.msra.mxu1 %v33526_v33  ;;  %875 = vmatprep.subr.mxu0 %v33564_v25  ;;  %v27546_v56 = vand.u32 4294901760, %v27524_v50  ;;  %v130_v33 = vld [vmem:[#allocation2 + $0xe8] sm:$0xff]  ;;  %v27560_v24 = vand.u32 4294901760, %v27535_v0  ;;  %v27621_v25 = vand.u32 4294901760, %v121_v11 }
  0x9d   :  { %988 = vmatprep.subr.mxu1 %v33527_v52  ;;  %879 = vmatpush1.msra.mxu0 %v33565_v31  ;;  %v33577_v52 = vld [vmem:[#allocation22_spill] sm:$0xff]  ;;  %v27569_v20 = vand.u32 4294901760, %v130_v33  ;;  %v1203_v31 = vsub.f32 %v27579_v2, %v27605_v16 }
  0x9e   :  { %990 = vmatpush1.msra.mxu1 %v33566_v44  ;;  %883 = vmatprep.subr.mxu0 %v33567_v58  ;;  %v1175_v46 = vsub.f32 %v27524_v50, %v27546_v56  ;;  %v1182_v5 = vsub.f32 %v27535_v0, %v27560_v24  ;;  %v27632_v44 = vsub.f32 %v124_v4, %v27607_v13  ;;  %v27634_v58 = vand.u32 4294901760, %v118_v17 }
  0x9f   :  { %992 = vmatprep.subr.mxu1 %v33529_v54  ;;  %887 = vmatpush1.msra.mxu0 %v33568_v8  ;;  %v33573_v54 = vld [vmem:[#allocation32_spill] sm:$0xff]  ;;  %v1197_v8 = vand.u32 4294901760, %v1196_v18  ;;  %v1204_v62 = vand.u32 4294901760, %v1203_v31 }
  0xa0   :  { %994 = vmatpush1.msra.mxu1 %v33569_v28  ;;  %891 = vmatprep.subr.mxu0 %v33570_v47  ;;  %v33574_v27 = vand.u32 4294901760, %v33573_v54  ;;  %v1210_v28 = vsub.f32 %v27593_v10, %v27619_v43  ;;  %v27644_v47 = vsub.f32 %v121_v11, %v27621_v25  ;;  %v27653_v54 = vand.u32 4294901760, %v27632_v44 }
  0xa1   :  { %996 = vmatprep.subr.mxu1 %v33532_v7  ;;  %895 = vmatpush1.msra.mxu0 %v33571_v14  ;;  %v33575_v7 = vld [vmem:[#allocation21_spill] sm:$0xff] }
  0xa2   :  { %998 = vmatpush1.msra.mxu1 %v33533_v37  ;;  %899 = vmatprep.subr.mxu0 %v33572_v22  ;;  %v27549_v37 = vsub.f32 %v142_v61, %v27526_v63  ;;  %v115_v61 = vld [vmem:[#allocation2 + $0x70] sm:$0xff]  ;;  %v109_v22 = vld [vmem:[#allocation2 + $0x40] sm:$0xff]  ;;  %v1231_v4 = vsub.f32 %v27632_v44, %v27653_v54 }
  0xa3   :  { %1000 = vmatprep.subr.mxu1 %v33534_v35  ;;  %903 = vmatpush1.msra.mxu0 %v33574_v27  ;;  %v33578_v35 = vld [vmem:[#allocation33_spill] sm:$0xff]  ;;  %v27646_v51 = vand.u32 4294901760, %v115_v61  ;;  %v27656_v27 = vsub.f32 %v118_v17, %v27634_v58 }
  0xa4   :  { %1002 = vmatpush1.msra.mxu1 %v33575_v7  ;;  %907 = vmatprep.subr.mxu0 %v33576_v38  ;;  %v33579_v49 = vand.u32 4294901760, %v33578_v35  ;;  %v27576_v60 = vand.u32 4294901760, %v27549_v37  ;;  %v27658_v7 = vand.u32 4294901760, %v112_v59  ;;  %v106_v38 = vld [vmem:[#allocation2 + $0x28] sm:$0xff]  ;;  %v27665_v35 = vand.u32 4294901760, %v27644_v47 }
  0xa5   :  { %1004 = vmatprep.subr.mxu1 %v33577_v52  ;;  %944 = vmatprep.mubr.f32.mxu0 %v33523_v34  ;;  %v1211_v52 = vand.u32 4294901760, %v1210_v28 }
  0xa6   :  { %911 = vmatpush1.msra.mxu0 %v33579_v49  ;;  %1006 = vmatpush1.msra.mxu1 %v27146_v1  ;;  %v27583_v1 = vand.u32 4294901760, %v127_v32  ;;  %v1189_v12 = vsub.f32 %v27549_v37, %v27576_v60  ;;  %v27668_v49 = vsub.f32 %v115_v61, %v27646_v51  ;;  %v27680_v11 = vsub.f32 %v112_v59, %v27658_v7 }
  0xa7   :  { %946 = vmatmul.mubr.f32.vlgmr.msra.gmra.mxu0 %v33580_v3  ;;  %1008 = vmatprep.subr.mxu1 %v33581_v41  ;;  %v1238_v17 = vsub.f32 %v27644_v47, %v27665_v35 }
  0xa8   :  { %951 = vmatprep.mubr.f32.mxu0 %v33523_v34  ;;  %1010 = vmatpush1.msra.mxu1 %v33538_v55  ;;  %v27598_v55 = vsub.f32 %v130_v33, %v27569_v20  ;;  %v27701_v59 = vand.u32 4294901760, %v27680_v11 }
  0xa9   :  { %1055 = vmatprep.mubr.f32.mxu1 %v33523_v34  ;;  %1012 = vmatprep.subr.mxu1 %v33540_v9  ;;  %v1176_v9 = vand.u32 4294901760, %v1175_v46  ;;  %v103_v46 = vld [vmem:[#allocation2 + $0x10] sm:$0xff]  ;;  %v1239_v28 = vand.u32 4294901760, %v1238_v17 }
  0xaa   :  { %24841 = vmatprep.subr.mxu0 %v27507_v23  ;;  %1014 = vmatpush1.msra.mxu1 %v33542_v21  ;;  %v27612_v21 = vsub.f32 %v127_v32, %v27583_v1  ;;  %v27670_v32 = vand.u32 4294901760, %v109_v22  ;;  %v27694_v61 = vand.u32 4294901760, %v103_v46 }
  0xab   :  { %953 = vmatmul.mubr.f32.gmra.mxu0 %v27373_v57  ;;  %1016 = vmatprep.subr.mxu1 %v33544_v19  ;;  %v1183_v19 = vand.u32 4294901760, %v1182_v5  ;;  %v27677_v5 = vand.u32 4294901760, %v27656_v27 }
  0xac   :  { %24842 = vmatpush3.msra.mxu0 %v27507_v23  ;;  %1018 = vmatpush1.msra.mxu1 %v27226_v29  ;;  %v27626_v29 = vand.u32 4294901760, %v27598_v55  ;;  %v27692_v18 = vsub.f32 %v109_v22, %v27670_v32 }
  0xad   :  { %24843 = vmatprep.subr.mxu0 %v27515_v53  ;;  %1020 = vmatprep.subr.mxu1 %v27240_v42  ;;  %v1190_v42 = vand.u32 4294901760, %v1189_v12  ;;  %v1245_v31 = vsub.f32 %v27656_v27, %v27677_v5 }
  0xae   :  { %24844 = vmatpush3.msra.mxu0 %v27515_v53  ;;  %1022 = vmatpush1.msra.mxu1 %v27259_v15  ;;  %v27638_v15 = vand.u32 4294901760, %v27612_v21  ;;  %v1217_v14 = vsub.f32 %v27598_v55, %v27626_v29  ;;  %v27711_v22 = vand.u32 4294901760, %v27692_v18 }
  0xaf   :  { %24845 = vmatprep.subr.mxu0 %v27526_v63  ;;  %1057 = vmatmul.mubr.f32.vlgmr.msra.gmra.mxu1 %v33580_v3 }
  0xb0   :  { %24876 = vmatprep.subr.mxu1 %v1176_v9  ;;  %1062 = vmatprep.mubr.f32.mxu1 %v33523_v34  ;;  %v1224_v33 = vsub.f32 %v27612_v21, %v27638_v15  ;;  %v1218_v41 = vand.u32 4294901760, %v1217_v14 }
  0xb1   :  { %24877 = vmatpush3.msra.mxu1 %v1176_v9  ;;  %24846 = vmatpush3.msra.mxu0 %v27526_v63  ;;  %v27682_v9 = vand.u32 4294901760, %v106_v38 }
  0xb2   :  { %24878 = vmatprep.subr.mxu1 %v1183_v19  ;;  %24847 = vmatprep.subr.mxu0 %v27537_v48  ;;  %v1225_v12 = vand.u32 4294901760, %v1224_v33  ;;  %v1246_v33 = vand.u32 4294901760, %v1245_v31 }
  0xb3   :  { %24879 = vmatpush3.msra.mxu1 %v1183_v19  ;;  %24848 = vmatpush3.msra.mxu0 %v27537_v48  ;;  %v27689_v19 = vand.u32 4294901760, %v27668_v49 }
  0xb4   :  { %1064 = vmatmul.mubr.f32.gmra.mxu1 %v27373_v57  ;;  %24880 = vmatprep.subr.mxu1 %v1190_v42 }
  0xb5   :  { %24881 = vmatpush3.msra.mxu1 %v1190_v42  ;;  %24849 = vmatprep.subr.mxu0 %v27551_v45  ;;  %v1232_v42 = vand.u32 4294901760, %v1231_v4  ;;  %v1252_v14 = vsub.f32 %v27668_v49, %v27689_v19 }
  0xb6   :  { %24882 = vmatprep.subr.mxu1 %v1197_v8  ;;  %24850 = vmatpush3.msra.mxu0 %v27551_v45 }
  0xb7   :  { %24883 = vmatpush3.msra.mxu1 %v1197_v8  ;;  %24851 = vmatprep.subr.mxu0 %v27565_v30  ;;  %v27704_v8 = vsub.f32 %v106_v38, %v27682_v9  ;;  %v1259_v38 = vsub.f32 %v27680_v11, %v27701_v59 }
  0xb8   :  { %24884 = vmatprep.subr.mxu1 %v1204_v62  ;;  %24852 = vmatpush3.msra.mxu0 %v27565_v30 }
  0xb9   :  { %24885 = vmatpush3.msra.mxu1 %v1204_v62  ;;  %24853 = vmatprep.subr.mxu0 %v27569_v20  ;;  %v27714_v62 = vsub.f32 %v103_v46, %v27694_v61  ;;  %v1266_v46 = vsub.f32 %v27692_v18, %v27711_v22 }
  0xba   :  { %24886 = vmatprep.subr.mxu1 %v1211_v52  ;;  %24854 = vmatpush3.msra.mxu0 %v27569_v20 }
  0xbb   :  { %24887 = vmatpush3.msra.mxu1 %v1211_v52  ;;  %24855 = vmatprep.subr.mxu0 %v27583_v1  ;;  %v27721_v52 = vand.u32 4294901760, %v27704_v8  ;;  %v27728_v4 = vand.u32 4294901760, %v27714_v62 }
  0xbc   :  { %24888 = vmatprep.subr.mxu1 %v1218_v41  ;;  %24856 = vmatpush3.msra.mxu0 %v27583_v1 }
  0xbd   :  { %24889 = vmatpush3.msra.mxu1 %v1218_v41  ;;  %24857 = vmatprep.subr.mxu0 %v27607_v13  ;;  %v1253_v41 = vand.u32 4294901760, %v1252_v14  ;;  %v1273_v17 = vsub.f32 %v27704_v8, %v27721_v52  ;;  %v1280_v31 = vsub.f32 %v27714_v62, %v27728_v4 }
  0xbe   :  { %24890 = vmatprep.subr.mxu1 %v1225_v12  ;;  %24858 = vmatpush3.msra.mxu0 %v27607_v13 }
  0xbf   :  { %24891 = vmatpush3.msra.mxu1 %v1225_v12  ;;  %24859 = vmatprep.subr.mxu0 %v27621_v25  ;;  %v1260_v12 = vand.u32 4294901760, %v1259_v38  ;;  %v1281_v14 = vand.u32 4294901760, %v1280_v31  ;;  %v33583_v38 = vld [vmem:[#allocation12_spill] sm:$0xff] }
  0xc0   :  { %24892 = vmatprep.subr.mxu1 %v1232_v42  ;;  %24860 = vmatpush3.msra.mxu0 %v27621_v25 }
  0xc1   :  { %24893 = vmatpush3.msra.mxu1 %v1232_v42  ;;  %24861 = vmatprep.subr.mxu0 %v27634_v58  ;;  %v1267_v42 = vand.u32 4294901760, %v1266_v46 }
  0xc2   :  { %24894 = vmatprep.subr.mxu1 %v1239_v28  ;;  %24862 = vmatpush3.msra.mxu0 %v27634_v58 }
  0xc3   :  { %24895 = vmatpush3.msra.mxu1 %v1239_v28  ;;  %24863 = vmatprep.subr.mxu0 %v27646_v51  ;;  %v1274_v28 = vand.u32 4294901760, %v1273_v17 }
  0xc4   :  { %24896 = vmatprep.subr.mxu1 %v1246_v33  ;;  %24864 = vmatpush3.msra.mxu0 %v27646_v51 }
  0xc5   :  { %24897 = vmatpush3.msra.mxu1 %v1246_v33  ;;  %24865 = vmatprep.subr.mxu0 %v27658_v7  ;;  %v33582_v33 = vld [vmem:[#allocation34_spill] sm:$0xff] }
  0xc6   :  { %24898 = vmatprep.subr.mxu1 %v1253_v41  ;;  %24866 = vmatpush3.msra.mxu0 %v27658_v7 }
  0xc7   :  { %24899 = vmatpush3.msra.mxu1 %v1253_v41  ;;  %24867 = vmatprep.subr.mxu0 %v27670_v32 }
  0xc8   :  { %24900 = vmatprep.subr.mxu1 %v1260_v12  ;;  %24868 = vmatpush3.msra.mxu0 %v27670_v32 }
  0xc9   :  { %24901 = vmatpush3.msra.mxu1 %v1260_v12  ;;  %24869 = vmatprep.subr.mxu0 %v27682_v9 }
  0xca   :  { %24902 = vmatprep.subr.mxu1 %v1267_v42  ;;  %24870 = vmatpush3.msra.mxu0 %v27682_v9 }
  0xcb   :  { %24903 = vmatpush3.msra.mxu1 %v1267_v42  ;;  %24871 = vmatprep.subr.mxu0 %v27694_v61 }
  0xcc   :  { %24904 = vmatprep.subr.mxu1 %v1274_v28  ;;  %24872 = vmatpush3.msra.mxu0 %v27694_v61 }
  0xcd   :  { %24905 = vmatpush3.msra.mxu1 %v1274_v28  ;;  %24873 = vmatprep.mubr.f32.mxu0 %v33582_v33 }
  0xce   :  { %24906 = vmatprep.subr.mxu1 %v1281_v14  ;;  %24911 = vmatprep.subr.mxu0 %v27524_v50 }
  0xcf   :  { %24874 = vmatmul.mubr.f32.vlgmr.msra.gmra.mxu0 %v33583_v38  ;;  %24907 = vmatpush3.msra.mxu1 %v1281_v14 }
  0xd0   :  { %24912 = vmatpush3.msra.mxu0 %v27524_v50  ;;  %24908 = vmatprep.mubr.f32.mxu1 %v33580_v3  ;;  %v33584_v50 = vld [vmem:[#allocation30_spill] sm:$0xff] }
  0xd1   :  { %24913 = vmatprep.subr.mxu0 %v27535_v0  ;;  %24946 = vmatprep.subr.mxu1 %v27507_v23 }
  0xd2   :  { %24909 = vmatmul.mubr.f32.vlgmr.msra.gmra.mxu1 %v27373_v57  ;;  %24914 = vmatpush3.msra.mxu0 %v27535_v0 }
  0xd3   :  { %24947 = vmatpush3.msra.mxu1 %v27507_v23  ;;  %24915 = vmatprep.subr.mxu0 %v27549_v37 }
  0xd4   :  { %24948 = vmatprep.subr.mxu1 %v27515_v53  ;;  %24916 = vmatpush3.msra.mxu0 %v27549_v37 }
  0xd5   :  { %24949 = vmatpush3.msra.mxu1 %v27515_v53  ;;  %24917 = vmatprep.subr.mxu0 %v27563_v26 }
  0xd6   :  { %24950 = vmatprep.subr.mxu1 %v27526_v63  ;;  %24918 = vmatpush3.msra.mxu0 %v27563_v26 }
  0xd7   :  { %24951 = vmatpush3.msra.mxu1 %v27526_v63  ;;  %24919 = vmatprep.subr.mxu0 %v27579_v2 }
  0xd8   :  { %24952 = vmatprep.subr.mxu1 %v27537_v48  ;;  %24920 = vmatpush3.msra.mxu0 %v27579_v2 }
  0xd9   :  { %24953 = vmatpush3.msra.mxu1 %v27537_v48  ;;  %24921 = vmatprep.subr.mxu0 %v27593_v10 }
  0xda   :  { %24954 = vmatprep.subr.mxu1 %v27551_v45  ;;  %24922 = vmatpush3.msra.mxu0 %v27593_v10 }
  0xdb   :  { %24955 = vmatpush3.msra.mxu1 %v27551_v45  ;;  %24923 = vmatprep.subr.mxu0 %v27598_v55 }
  0xdc   :  { %24956 = vmatprep.subr.mxu1 %v27565_v30  ;;  %24924 = vmatpush3.msra.mxu0 %v27598_v55 }
  0xdd   :  { %24957 = vmatpush3.msra.mxu1 %v27565_v30  ;;  %24925 = vmatprep.subr.mxu0 %v27612_v21 }
  0xde   :  { %24958 = vmatprep.subr.mxu1 %v27569_v20  ;;  %24926 = vmatpush3.msra.mxu0 %v27612_v21 }
  0xdf   :  { %24959 = vmatpush3.msra.mxu1 %v27569_v20  ;;  %24927 = vmatprep.subr.mxu0 %v27632_v44 }
  0xe0   :  { %24960 = vmatprep.subr.mxu1 %v27583_v1  ;;  %24928 = vmatpush3.msra.mxu0 %v27632_v44 }
  0xe1   :  { %24961 = vmatpush3.msra.mxu1 %v27583_v1  ;;  %24929 = vmatprep.subr.mxu0 %v27644_v47 }
  0xe2   :  { %24962 = vmatprep.subr.mxu1 %v27607_v13  ;;  %24930 = vmatpush3.msra.mxu0 %v27644_v47 }
  0xe3   :  { %24963 = vmatpush3.msra.mxu1 %v27607_v13  ;;  %24931 = vmatprep.subr.mxu0 %v27656_v27 }
  0xe4   :  { %24964 = vmatprep.subr.mxu1 %v27621_v25  ;;  %24932 = vmatpush3.msra.mxu0 %v27656_v27 }
  0xe5   :  { %24965 = vmatpush3.msra.mxu1 %v27621_v25  ;;  %24933 = vmatprep.subr.mxu0 %v27668_v49 }
  0xe6   :  { %24966 = vmatprep.subr.mxu1 %v27634_v58  ;;  %24934 = vmatpush3.msra.mxu0 %v27668_v49 }
  0xe7   :  { %24967 = vmatpush3.msra.mxu1 %v27634_v58  ;;  %24935 = vmatprep.subr.mxu0 %v27680_v11 }
  0xe8   :  { %24968 = vmatprep.subr.mxu1 %v27646_v51  ;;  %24936 = vmatpush3.msra.mxu0 %v27680_v11 }
  0xe9   :  { %24969 = vmatpush3.msra.mxu1 %v27646_v51  ;;  %24937 = vmatprep.subr.mxu0 %v27692_v18 }
  0xea   :  { %24970 = vmatprep.subr.mxu1 %v27658_v7  ;;  %24938 = vmatpush3.msra.mxu0 %v27692_v18 }
  0xeb   :  { %24971 = vmatpush3.msra.mxu1 %v27658_v7  ;;  %24939 = vmatprep.subr.mxu0 %v27704_v8 }
  0xec   :  { %24972 = vmatprep.subr.mxu1 %v27670_v32  ;;  %24940 = vmatpush3.msra.mxu0 %v27704_v8 }
  0xed   :  { %24973 = vmatpush3.msra.mxu1 %v27670_v32  ;;  %24941 = vmatprep.subr.mxu0 %v27714_v62 }
  0xee   :  { %24974 = vmatprep.subr.mxu1 %v27682_v9  ;;  %24942 = vmatpush3.msra.mxu0 %v27714_v62 }
  0xef   :  { %24975 = vmatpush3.msra.mxu1 %v27682_v9  ;;  %24943 = vmatprep.mubr.f32.mxu0 %v33584_v50 }
  0xf0   :  { %24976 = vmatprep.subr.mxu1 %v27694_v61  ;;  %24981 = vmatprep.subr.mxu0 %v27546_v56 }
  0xf1   :  { %24944 = vmatmul.mubr.f32.vlgmr.msra.gmra.mxu0 %v27384_v39  ;;  %24977 = vmatpush3.msra.mxu1 %v27694_v61 }
  0xf2   :  { %24982 = vmatpush3.msra.mxu0 %v27546_v56  ;;  %24978 = vmatprep.mubr.f32.mxu1 %v33549_v36 }
  0xf3   :  { %24983 = vmatprep.subr.mxu0 %v27560_v24  ;;  %25016 = vmatprep.subr.mxu1 %v27507_v23 }
  0xf4   :  { %24979 = vmatmul.mubr.f32.vlgmr.msra.gmra.mxu1 %v27395_v40  ;;  %24984 = vmatpush3.msra.mxu0 %v27560_v24 }
  0xf5   :  { %25017 = vmatpush3.msra.mxu1 %v27507_v23  ;;  %24985 = vmatprep.subr.mxu0 %v27576_v60 }
  0xf6   :  { %25018 = vmatprep.subr.mxu1 %v27515_v53  ;;  %24986 = vmatpush3.msra.mxu0 %v27576_v60 }
  0xf7   :  { %25019 = vmatpush3.msra.mxu1 %v27515_v53  ;;  %24987 = vmatprep.subr.mxu0 %v27590_v6  ;;  %v151_v53 = vlaneseq }
  0xf8   :  { %25020 = vmatprep.subr.mxu1 %v27526_v63  ;;  %24988 = vmatpush3.msra.mxu0 %v27590_v6 }
  0xf9   :  { %25021 = vmatpush3.msra.mxu1 %v27526_v63  ;;  %24989 = vmatprep.subr.mxu0 %v27605_v16 }
  0xfa   :  { %25022 = vmatprep.subr.mxu1 %v27537_v48  ;;  %24990 = vmatpush3.msra.mxu0 %v27605_v16 }
  0xfb   :  { %25023 = vmatpush3.msra.mxu1 %v27537_v48  ;;  %24991 = vmatprep.subr.mxu0 %v27619_v43  ;;  %v27891_v48 = vshrl.u32 %v151_v53, 7 }
  0xfc   :  { %25024 = vmatprep.subr.mxu1 %v27551_v45  ;;  %24992 = vmatpush3.msra.mxu0 %v27619_v43 }
  0xfd   :  { %25025 = vmatpush3.msra.mxu1 %v27551_v45  ;;  %24993 = vmatprep.subr.mxu0 %v27626_v29  ;;  %33585 = vst [vmem:[#allocation28_spill] sm:$0xff] %v27891_v48  ;;  %v27894_v37 = vsub.s32 0, %v27891_v48  ;;  %v27899_v45 = vld [vmem:[%s32955_s2] sm:$0x7]  ;;  %v27902_v26 = vsub.s32 1, %v27891_v48  ;;  %v33035_v53 = vsub.s32 2, %v27891_v48 }
  0xfe   :  { %25026 = vmatprep.subr.mxu1 %v27565_v30  ;;  %24994 = vmatpush3.msra.mxu0 %v27626_v29 }
  0xff   :  { %25027 = vmatpush3.msra.mxu1 %v27565_v30  ;;  %24995 = vmatprep.subr.mxu0 %v27638_v15  ;;  %33586 = vst [vmem:[#allocation13_spill] sm:$0xff] %v27894_v37  ;;  %33587 = vst [vmem:[#allocation14_spill] sm:$0xff] %v27902_v26  ;;  %v158_v60 = vrot.slane %v27899_v45, %v27902_v26 }
 0x100   :  { %25028 = vmatprep.subr.mxu1 %v27569_v20  ;;  %24996 = vmatpush3.msra.mxu0 %v27638_v15 }
 0x101   :  { %25029 = vmatpush3.msra.mxu1 %v27569_v20  ;;  %24997 = vmatprep.subr.mxu0 %v27653_v54 }
 0x102   :  { %25030 = vmatprep.subr.mxu1 %v27583_v1  ;;  %24998 = vmatpush3.msra.mxu0 %v27653_v54 }
 0x103   :  { %25031 = vmatpush3.msra.mxu1 %v27583_v1  ;;  %24999 = vmatprep.subr.mxu0 %v27665_v35 }
 0x104   :  { %25032 = vmatprep.subr.mxu1 %v27607_v13  ;;  %25000 = vmatpush3.msra.mxu0 %v27665_v35 }
 0x105   :  { %25033 = vmatpush3.msra.mxu1 %v27607_v13  ;;  %25001 = vmatprep.subr.mxu0 %v27677_v5 }
 0x106   :  { %25034 = vmatprep.subr.mxu1 %v27621_v25  ;;  %25002 = vmatpush3.msra.mxu0 %v27677_v5 }
 0x107   :  { %25035 = vmatpush3.msra.mxu1 %v27621_v25  ;;  %25003 = vmatprep.subr.mxu0 %v27689_v19 }
 0x108   :  { %25036 = vmatprep.subr.mxu1 %v27634_v58  ;;  %25004 = vmatpush3.msra.mxu0 %v27689_v19 }
 0x109   :  { %25037 = vmatpush3.msra.mxu1 %v27634_v58  ;;  %25005 = vmatprep.subr.mxu0 %v27701_v59 }
 0x10a   :  { %25038 = vmatprep.subr.mxu1 %v27646_v51  ;;  %25006 = vmatpush3.msra.mxu0 %v27701_v59 }
 0x10b   :  { %25039 = vmatpush3.msra.mxu1 %v27646_v51  ;;  %25007 = vmatprep.subr.mxu0 %v27711_v22 }
 0x10c   :  { %25040 = vmatprep.subr.mxu1 %v27658_v7  ;;  %25008 = vmatpush3.msra.mxu0 %v27711_v22 }
 0x10d   :  { %25041 = vmatpush3.msra.mxu1 %v27658_v7  ;;  %25009 = vmatprep.subr.mxu0 %v27721_v52 }
 0x10e   :  { %25042 = vmatprep.subr.mxu1 %v27670_v32  ;;  %25010 = vmatpush3.msra.mxu0 %v27721_v52 }
 0x10f   :  { %25043 = vmatpush3.msra.mxu1 %v27670_v32  ;;  %25011 = vmatprep.subr.mxu0 %v27728_v4 }
 0x110   :  { %25044 = vmatprep.subr.mxu1 %v27682_v9  ;;  %25012 = vmatpush3.msra.mxu0 %v27728_v4 }
 0x111   :  { %25013 = vmatprep.mubr.f32.mxu0 %v33580_v3  ;;  %25045 = vmatpush3.msra.mxu1 %v27682_v9 }
 0x112   :  { %25014 = vmatmul.mubr.f32.vlgmr.msra.gmra.mxu0 %v27373_v57  ;;  %25046 = vmatprep.subr.mxu1 %v27694_v61 }
 0x113   :  { %25048 = vmatprep.mubr.f32.mxu1 %v33580_v3  ;;  %25047 = vmatpush3.msra.mxu1 %v27694_v61  ;;  %v154_v3 = vrot.slane %v27899_v45, %v27894_v37 }
 0x114   :  { %25051 = vmatprep.subr.mxu0 %v33523_v34  ;;  %25049 = vmatmul.mubr.f32.vlgmr.msra.gmra.mxu1 %v27373_v57 }
 0x115   :  { %25053 = vmatprep.mubr.msk.f32.mxu0 %vm26835_vm0, %v33523_v34  ;;  %25056 = vmatprep.subr.mxu1 %v33523_v34 }
 0x116   :  { %25058 = vmatprep.mubr.msk.f32.mxu1 %vm26835_vm0, %v33523_v34 }
 0x121   :  { %v269_v39 = vpop.f32.mrf.mxu0 }
 0x122   :  { %v270_v1 = vadd.f32 %v269_v39, %v154_v3 }
 0x123   :  { %v271_v40 = vpop.f32.mrf.mxu0 }
 0x124   :  { %v272_v10 = vadd.f32 %v271_v40, %v158_v60 }
 0x128   :  { %v512_v36 = vpop.f32.mrf.mxu1 }
 0x129   :  { %v513_v16 = vadd.f32 %v512_v36, %v270_v1 }
 0x12a   :  { %v514_v63 = vpop.f32.mrf.mxu1 }
 0x12b   :  { %v515_v43 = vadd.f32 %v514_v63, %v272_v10  ;;  %v27954_v63 = vrot.slane %v27899_v45, %v33035_v53 }
 0x13d   :  { %v280_v23 = vpop.f32.mrf.mxu0 }
 0x13e   :  { %v281_v27 = vadd.f32 %v280_v23, %v154_v3 }
 0x13f   :  { %v282_v0 = vpop.f32.mrf.mxu0 }
 0x140   :  { %v283_v7 = vadd.f32 %v282_v0, %v158_v60 }
 0x142   :  { %v656_v57 = vpop.f32.mrf.mxu0 }
 0x143   :  { %v657_v25 = vadd.f32 %v656_v57, %v513_v16 }
 0x144   :  { %v658_v30 = vpop.f32.mrf.mxu0 }
 0x145   :  { %v659_v29 = vadd.f32 %v658_v30, %v515_v43 }
 0x146   :  { %v519_v56 = vpop.f32.mrf.mxu1 }
 0x147   :  { %v520_v19 = vadd.f32 %v519_v56, %v281_v27 }
 0x148   :  { %v521_v24 = vpop.f32.mrf.mxu1 }
 0x149   :  { %v664_v2 = vpop.f32.mrf.mxu0  ;;  %v522_v18 = vadd.f32 %v521_v24, %v283_v7 }
 0x14a   :  { %v665_v46 = vadd.f32 %v664_v2, %v520_v19 }
 0x14b   :  { %v666_v55 = vpop.f32.mrf.mxu0 }
 0x14c   :  { %v667_v4 = vadd.f32 %v666_v55, %v522_v18 }
 0x14d   :  { %v770_v20 = vpop.f32.mrf.mxu1 }
 0x14e   :  { %v771_v44 = vadd.f32 %v770_v20, %v657_v25 }
 0x14f   :  { %v772_v6 = vpop.f32.mrf.mxu1 }
 0x150   :  { %v773_v47 = vadd.f32 %v772_v6, %v659_v29 }
 0x152   :  { %v779_v13 = vpop.f32.mrf.mxu1 }
 0x153   :  { %v780_v31 = vadd.f32 %v779_v13, %v665_v46 }
 0x154   :  { %v781_v58 = vpop.f32.mrf.mxu1 }
 0x155   :  { %v782_v28 = vadd.f32 %v781_v58, %v667_v4 }
 0x167   :  { %v947_v21 = vpop.f32.mrf.mxu0 }
 0x168   :  { %v948_v51 = vadd.f32 %v947_v21, %v771_v44 }
 0x169   :  { %v949_v15 = vpop.f32.mrf.mxu0 }
 0x16a   :  { %v950_v35 = vadd.f32 %v949_v15, %v773_v47 }
 0x16b   :  { %v954_v59 = vpop.f32.mrf.mxu0 }
 0x16c   :  { %v955_v50 = vadd.f32 %v954_v59, %v780_v31 }
 0x16d   :  { %v956_v12 = vpop.f32.mrf.mxu0 }
 0x16e   :  { %v957_v39 = vadd.f32 %v956_v12, %v782_v28 }
 0x16f   :  { %v1058_v54 = vpop.f32.mrf.mxu1 }
 0x170   :  { %v1059_v49 = vadd.f32 %v1058_v54, %v948_v51 }
 0x171   :  { %v1060_v32 = vpop.f32.mrf.mxu1 }
 0x172   :  { %v1803_v5 = vsel %vm1802_vm1, %v1059_v49, 0  ;;  %v1061_v11 = vadd.f32 %v1060_v32, %v950_v35 }
 0x173   :  { %v1873_v9 = vand.u32 4294901760, %v1803_v5 }
 0x174   :  { %1771 = vrot.lane.b32.xlu1 %v1061_v11, %s26836_s19  ;;  %1769 = vrot.lane.b32.xlu0 %v1061_v11, %s26837_s20  ;;  %v1805_v61 = vsel %vm1802_vm1, %v1061_v11, 0  ;;  %v1065_v62 = vpop.f32.mrf.mxu1 }
 0x175   :  { %v1874_v8 = vsub.f32 %v1803_v5, %v1873_v9  ;;  %v1838_v22 = vand.u32 4294901760, %v1805_v61  ;;  %v27917_v36 = vadd.f32 %v1065_v62, %v955_v50 }
 0x176   :  { %v1067_v14 = vpop.f32.mrf.mxu1 }
 0x177   :  { %25052 = vmatpush3.xpose.msra.mxu0 %v1838_v22  ;;  %v1875_v52 = vand.u32 4294901760, %v1874_v8  ;;  %v1915_v41 = vsub.f32 %v1805_v61, %v1838_v22  ;;  %v27919_v23 = vadd.f32 %v1067_v14, %v957_v39 }
 0x178   :  { %1757 = vrot.lane.b32.xlu1 %v1059_v49, %s26836_s19  ;;  %1755 = vrot.lane.b32.xlu0 %v1059_v49, %s26837_s20 }
 0x179   :  { %25061 = vmatprep.subr.mxu0 %v33523_v34  ;;  %v1876_v17 = vsub.f32 %v1874_v8, %v1875_v52  ;;  %v1916_v42 = vand.u32 4294901760, %v1915_v41  ;;  %v3605_v50 = vsel %vm1802_vm1, %v27919_v23, 0 }
 0x17b   :  { %v1877_v33 = vand.u32 4294901760, %v1876_v17  ;;  %v1917_v38 = vsub.f32 %v1915_v41, %v1916_v42 }
 0x17c   :  { %1759 = vrot.lane.b32.xlu1 %v1059_v49, %s26838_s21  ;;  %1773 = vrot.lane.b32.xlu0 %v1061_v11, %s26838_s21 }
 0x17d   :  { %25054 = vmatmul.mubr.f32.vlgmr.msra.gmra.mxu0 %v1877_v33  ;;  %v1918_v40 = vand.u32 4294901760, %v1917_v38 }
 0x17e   :  { %25062 = vmatpush3.xpose.msra.mxu0 %v1915_v41  ;;  %25063 = vmatprep.mubr.msk.f32.mxu0 %vm26835_vm0, %v33523_v34 }
 0x17f   :  { %25057 = vmatpush3.xpose.msra.mxu1 %v1918_v40  ;;  %25071 = vmatprep.subr.mxu0 %v33523_v34 }
 0x180   :  { %1762 = vrot.lane.b32.xlu1 %v27917_v36, %s26837_s20  ;;  %1776 = vrot.lane.b32.xlu0 %v27919_v23, %s26837_s20 }
 0x181   :  { %25064 = vmatmul.mubr.f32.vlgmr.msra.gmra.mxu0 %v1874_v8  ;;  %25066 = vmatprep.subr.mxu1 %v33523_v34 }
 0x182   :  { %25072 = vmatpush3.xpose.msra.mxu0 %v1916_v42  ;;  %25059 = vmatmul.mubr.f32.vlgmr.msra.gmra.mxu1 %v1873_v9 }
 0x183   :  { %25067 = vmatpush3.xpose.msra.mxu1 %v1838_v22  ;;  %25073 = vmatprep.mubr.msk.f32.mxu0 %vm26835_vm0, %v33523_v34 }
 0x184   :  { %1764 = vrot.lane.b32.xlu1 %v27917_v36, %s26836_s19  ;;  %1778 = vrot.lane.b32.xlu0 %v27919_v23, %s26836_s19 }
 0x185   :  { %25068 = vmatprep.mubr.msk.f32.mxu1 %vm26835_vm0, %v33523_v34  ;;  %25074 = vmatmul.mubr.f32.vlgmr.msra.gmra.mxu0 %v1873_v9 }
 0x186   :  { %25069 = vmatmul.mubr.f32.vlgmr.msra.gmra.mxu1 %v1875_v52  ;;  %25076 = vmatprep.subr.mxu1 %v33523_v34 }
 0x187   :  { %25077 = vmatpush3.xpose.msra.mxu1 %v1838_v22  ;;  %25078 = vmatprep.mubr.msk.f32.mxu1 %vm26835_vm0, %v33523_v34 }
 0x188   :  { %1766 = vrot.lane.b32.xlu1 %v27917_v36, %s26838_s21  ;;  %1780 = vrot.lane.b32.xlu0 %v27919_v23, %s26838_s21  ;;  %v3603_v23 = vsel %vm1802_vm1, %v27917_v36, 0 }
 0x189   :  { %25081 = vmatprep.subr.mxu0 %v33523_v34  ;;  %25086 = vmatprep.subr.mxu1 %v33523_v34 }
 0x18a   :  { %25079 = vmatmul.mubr.f32.vlgmr.msra.gmra.mxu1 %v1873_v9  ;;  %25083 = vmatprep.mubr.msk.f32.mxu0 %vm26835_vm0, %v33523_v34 }
 0x18b   :  { %25088 = vmatprep.mubr.msk.f32.mxu1 %vm26835_vm0, %v33523_v34 }
 0x18f   :  { %v24875_v0 = vpop.f32.mrf.mxu0 }
 0x190   :  { %v1168_v56 = vadd.f32 %v24875_v0, %v27954_v63  ;;  %v28020_v0 = vand.u32 4294901760, %v3605_v50 }
 0x191   :  { %v27957_v30 = vpop.f32.mrf.mxu0 }
 0x192   :  { %v24910_v57 = vpop.f32.mrf.mxu1  ;;  %v28034_v36 = vsub.f32 %v3605_v50, %v28020_v0 }
 0x193   :  { %v1325_v24 = vadd.f32 %v24910_v57, %v1168_v56  ;;  %v28029_v57 = vand.u32 4294901760, %v3603_v23 }
 0x194   :  { %v27959_v3 = vpop.f32.mrf.mxu1 }
 0x1b1   :  { %v24945_v20 = vpop.f32.mrf.mxu0 }
 0x1b2   :  { %v1436_v60 = vadd.f32 %v24945_v20, %v1325_v24 }
 0x1b3   :  { %v27961_v6 = vpop.f32.mrf.mxu0 }
 0x1b4   :  { %v24980_v2 = vpop.f32.mrf.mxu1 }
 0x1b5   :  { %v1533_v1 = vadd.f32 %v24980_v2, %v1436_v60  ;;  %v3674_v2 = vsub.f32 %v3603_v23, %v28029_v57 }
 0x1b6   :  { %v27963_v10 = vpop.f32.mrf.mxu1 }
 0x1d2   :  { %v25015_v55 = vpop.f32.mrf.mxu0 }
 0x1d3   :  { %v1658_v45 = vadd.f32 %v25015_v55, %v1533_v1  ;;  %v3716_v1 = vand.u32 4294901760, %v28034_v36 }
 0x1d4   :  { %v25050_v16 = vpop.f32.mrf.mxu1 }
 0x1d5   :  { %v27965_v13 = vadd.f32 %v25050_v16, %v1658_v45  ;;  %v3675_v16 = vand.u32 4294901760, %v3674_v2 }
 0x1e6   :  { %v1772_v21 = vpop.permute.xlu1 %1771  ;;  %v1770_v43 = vpop.permute.xlu0 %1769 }
 0x1e7   :  { %v2255_v25 = vsel %vm1802_vm1, %v1770_v43, 0  ;;  %v2705_v44 = vsel %vm1802_vm1, %v1772_v21, 0 }
 0x1e8   :  { %v2288_v29 = vand.u32 4294901760, %v2255_v25  ;;  %v27971_v7 = vand.u32 4294901760, %v2705_v44 }
 0x1ea   :  { %v2365_v58 = vsub.f32 %v2255_v25, %v2288_v29  ;;  %v1758_v15 = vpop.permute.xlu1 %1757  ;;  %v1756_v47 = vpop.permute.xlu0 %1755  ;;  %25082 = vmatpush3.xpose.msra.mxu0 %v2288_v29  ;;  %v2815_v19 = vsub.f32 %v2705_v44, %v27971_v7  ;;  %v3717_v25 = vsub.f32 %v28034_v36, %v3716_v1  ;;  %v3676_v44 = vsub.f32 %v3674_v2, %v3675_v16 }
 0x1eb   :  { %v2253_v51 = vsel %vm1802_vm1, %v1756_v47, 0  ;;  %25091 = vmatprep.subr.mxu0 %v33523_v34  ;;  %v2703_v35 = vsel %vm1802_vm1, %v1758_v15, 0 }
 0x1ec   :  { %v2366_v54 = vand.u32 4294901760, %v2365_v58  ;;  %v2323_v27 = vand.u32 4294901760, %v2253_v51  ;;  %v27974_v11 = vand.u32 4294901760, %v2703_v35  ;;  %v2816_v22 = vand.u32 4294901760, %v2815_v19 }
 0x1ed   :  { %v3718_v15 = vand.u32 4294901760, %v3717_v25 }
 0x1ee   :  { %v2367_v49 = vsub.f32 %v2365_v58, %v2366_v54  ;;  %v2324_v32 = vsub.f32 %v2253_v51, %v2323_v27  ;;  %v1774_v61 = vpop.permute.xlu0 %1773  ;;  %v2774_v59 = vsub.f32 %v2703_v35, %v27974_v11  ;;  %v1760_v62 = vpop.permute.xlu1 %1759  ;;  %v2817_v46 = vsub.f32 %v2815_v19, %v2816_v22 }
 0x1ef   :  { %v3155_v52 = vsel %vm1802_vm1, %v1774_v61, 0  ;;  %v3153_v4 = vsel %vm1802_vm1, %v1760_v62, 0 }
 0x1f0   :  { %v2368_v5 = vand.u32 4294901760, %v2367_v49  ;;  %v2325_v9 = vand.u32 4294901760, %v2324_v32  ;;  %v2775_v41 = vand.u32 4294901760, %v2774_v59  ;;  %v27986_v12 = vand.u32 4294901760, %v3155_v52 }
 0x1f1   :  { %v27989_v42 = vand.u32 4294901760, %v3153_v4  ;;  %v2818_v31 = vand.u32 4294901760, %v2817_v46 }
 0x1f2   :  { %v2326_v18 = vsub.f32 %v2324_v32, %v2325_v9  ;;  %25087 = vmatpush3.xpose.msra.mxu1 %v2368_v5  ;;  %v2776_v17 = vsub.f32 %v2774_v59, %v2775_v41  ;;  %v27996_v28 = vsub.f32 %v3155_v52, %v27986_v12  ;;  %v1777_v20 = vpop.permute.xlu0 %1776  ;;  %v1763_v55 = vpop.permute.xlu1 %1762 }
 0x1f3   :  { %25096 = vmatprep.subr.mxu1 %v33523_v34  ;;  %v3224_v33 = vsub.f32 %v3153_v4, %v27989_v42  ;;  %v4055_v45 = vsel %vm1802_vm1, %v1777_v20, 0  ;;  %v4053_v21 = vsel %vm1802_vm1, %v1763_v55, 0 }
 0x1f4   :  { %v2327_v8 = vand.u32 4294901760, %v2326_v18  ;;  %v2777_v14 = vand.u32 4294901760, %v2776_v17  ;;  %v3266_v38 = vand.u32 4294901760, %v27996_v28  ;;  %v28056_v43 = vand.u32 4294901760, %v4055_v45 }
 0x1f5   :  { %25089 = vmatmul.mubr.f32.vlgmr.msra.gmra.mxu1 %v2323_v27  ;;  %v3225_v39 = vand.u32 4294901760, %v3224_v33 }
 0x1f6   :  { %25084 = vmatmul.mubr.f32.vlgmr.msra.gmra.mxu0 %v2327_v8  ;;  %25097 = vmatpush3.xpose.msra.mxu1 %v2288_v29  ;;  %v3267_v40 = vsub.f32 %v27996_v28, %v3266_v38  ;;  %v1779_v47 = vpop.permute.xlu0 %1778 }
 0x1f7   :  { %25092 = vmatpush3.xpose.msra.mxu0 %v2365_v58  ;;  %25098 = vmatprep.mubr.msk.f32.mxu1 %vm26835_vm0, %v33523_v34  ;;  %v3226_v56 = vsub.f32 %v3224_v33, %v3225_v39  ;;  %v28069_v58 = vsub.f32 %v4055_v45, %v28056_v43  ;;  %v4505_v35 = vsel %vm1802_vm1, %v1779_v47, 0 }
 0x1f8   :  { %25093 = vmatprep.mubr.msk.f32.mxu0 %vm26835_vm0, %v33523_v34  ;;  %25101 = vmatprep.subr.mxu0 %v33523_v34  ;;  %v3268_v24 = vand.u32 4294901760, %v3267_v40 }
 0x1f9   :  { %25099 = vmatmul.mubr.f32.vlgmr.msra.gmra.mxu1 %v2325_v9  ;;  %25106 = vmatprep.subr.mxu1 %v33523_v34  ;;  %v3227_v60 = vand.u32 4294901760, %v3226_v56  ;;  %v1158_v9 = vadd.f32 %v27957_v30, %v27954_v63 }
 0x1fa   :  { %25094 = vmatmul.mubr.f32.vlgmr.msra.gmra.mxu0 %v2324_v32  ;;  %25107 = vmatpush3.xpose.msra.mxu1 %v2288_v29  ;;  %v28062_v29 = vand.u32 4294901760, %v4053_v21  ;;  %v1781_v30 = vpop.permute.xlu0 %1780 }
 0x1fb   :  { %25102 = vmatpush3.xpose.msra.mxu0 %v2366_v54  ;;  %25108 = vmatprep.mubr.msk.f32.mxu1 %vm26835_vm0, %v33523_v34  ;;  %v3677_v54 = vand.u32 4294901760, %v3676_v44  ;;  %v1319_v63 = vadd.f32 %v27959_v3, %v1158_v9 }
 0x1fc   :  { %25103 = vmatprep.mubr.msk.f32.mxu0 %vm26835_vm0, %v33523_v34  ;;  %25111 = vmatprep.subr.mxu0 %v33523_v34  ;;  %v28077_v51 = vsub.f32 %v4053_v21, %v28062_v29 }
 0x1fd   :  { %25116 = vmatprep.subr.mxu1 %v33523_v34  ;;  %25109 = vmatmul.mubr.f32.vlgmr.msra.gmra.mxu1 %v2323_v27  ;;  %v1429_v3 = vadd.f32 %v27961_v6, %v1319_v63 }
 0x1fe   :  { %25104 = vmatmul.mubr.f32.vlgmr.msra.gmra.mxu0 %v2323_v27  ;;  %25117 = vmatpush3.xpose.msra.mxu1 %v2818_v31  ;;  %v4166_v27 = vand.u32 4294901760, %v28069_v58  ;;  %v4125_v49 = vand.u32 4294901760, %v28077_v51 }
 0x1ff   :  { %25112 = vmatpush3.xpose.msra.mxu0 %v27971_v7  ;;  %25118 = vmatprep.mubr.msk.f32.mxu1 %vm26835_vm0, %v33523_v34  ;;  %v1525_v17 = vadd.f32 %v27963_v10, %v1429_v3 }
 0x200   :  { %25113 = vmatprep.mubr.msk.f32.mxu0 %vm26835_vm0, %v33523_v34  ;;  %25121 = vmatprep.subr.mxu0 %v33523_v34  ;;  %v4167_v32 = vsub.f32 %v28069_v58, %v4166_v27 }
 0x201   :  { %25126 = vmatprep.subr.mxu1 %v33523_v34  ;;  %25119 = vmatmul.mubr.f32.vlgmr.msra.gmra.mxu1 %v27974_v11 }
 0x202   :  { %25114 = vmatmul.mubr.f32.vlgmr.msra.gmra.mxu0 %v2777_v14  ;;  %25127 = vmatpush3.xpose.msra.mxu1 %v27971_v7  ;;  %v4168_v61 = vand.u32 4294901760, %v4167_v32 }
 0x203   :  { %25122 = vmatpush3.xpose.msra.mxu0 %v2815_v19  ;;  %25128 = vmatprep.mubr.msk.f32.mxu1 %vm26835_vm0, %v33523_v34  ;;  %v4126_v19 = vsub.f32 %v28077_v51, %v4125_v49 }
 0x204   :  { %25123 = vmatprep.mubr.msk.f32.mxu0 %vm26835_vm0, %v33523_v34  ;;  %25131 = vmatprep.subr.mxu0 %v33523_v34 }
 0x205   :  { %25136 = vmatprep.subr.mxu1 %v33523_v34  ;;  %25129 = vmatmul.mubr.f32.vlgmr.msra.gmra.mxu1 %v2775_v41  ;;  %v4127_v8 = vand.u32 4294901760, %v4126_v19  ;;  %v4955_v41 = vsel %vm1802_vm1, %v1781_v30, 0 }
 0x206   :  { %25124 = vmatmul.mubr.f32.vlgmr.msra.gmra.mxu0 %v2774_v59  ;;  %25137 = vmatpush3.xpose.msra.mxu1 %v27971_v7  ;;  %v1765_v7 = vpop.permute.xlu1 %1764 }
 0x207   :  { %25132 = vmatpush3.xpose.msra.mxu0 %v2816_v22  ;;  %25138 = vmatprep.mubr.msk.f32.mxu1 %vm26835_vm0, %v33523_v34  ;;  %v4503_v5 = vsel %vm1802_vm1, %v1765_v7, 0 }
 0x208   :  { %25133 = vmatprep.mubr.msk.f32.mxu0 %vm26835_vm0, %v33523_v34  ;;  %25141 = vmatprep.subr.mxu0 %v33523_v34  ;;  %v28105_v18 = vand.u32 4294901760, %v4503_v5 }
 0x209   :  { %25146 = vmatprep.subr.mxu1 %v33523_v34  ;;  %25139 = vmatmul.mubr.f32.vlgmr.msra.gmra.mxu1 %v27974_v11 }
 0x20a   :  { %25134 = vmatmul.mubr.f32.vlgmr.msra.gmra.mxu0 %v27974_v11  ;;  %25147 = vmatpush3.xpose.msra.mxu1 %v3268_v24  ;;  %v28097_v11 = vand.u32 4294901760, %v4505_v35  ;;  %v4574_v22 = vsub.f32 %v4503_v5, %v28105_v18  ;;  %v1767_v52 = vpop.permute.xlu1 %1766 }
 0x20b   :  { %25142 = vmatpush3.xpose.msra.mxu0 %v27986_v12  ;;  %25148 = vmatprep.mubr.msk.f32.mxu1 %vm26835_vm0, %v33523_v34  ;;  %v4953_v6 = vsel %vm1802_vm1, %v1767_v52, 0 }
 0x20c   :  { %25143 = vmatprep.mubr.msk.f32.mxu0 %vm26835_vm0, %v33523_v34  ;;  %25151 = vmatprep.subr.mxu0 %v33523_v34  ;;  %v28112_v59 = vsub.f32 %v4505_v35, %v28097_v11  ;;  %v4575_v46 = vand.u32 4294901760, %v4574_v22 }
 0x20d   :  { %25156 = vmatprep.subr.mxu1 %v33523_v34  ;;  %25149 = vmatmul.mubr.f32.vlgmr.msra.gmra.mxu1 %v27989_v42 }
 0x20e   :  { %25144 = vmatmul.mubr.f32.vlgmr.msra.gmra.mxu0 %v3227_v60  ;;  %25157 = vmatpush3.xpose.msra.mxu1 %v27986_v12  ;;  %v4616_v62 = vand.u32 4294901760, %v28112_v59  ;;  %v4576_v31 = vsub.f32 %v4574_v22, %v4575_v46 }
 0x20f   :  { %25152 = vmatpush3.xpose.msra.mxu0 %v27996_v28  ;;  %25158 = vmatprep.mubr.msk.f32.mxu1 %vm26835_vm0, %v33523_v34  ;;  %v28146_v28 = vand.u32 4294901760, %v4953_v6 }
 0x210   :  { %25153 = vmatprep.mubr.msk.f32.mxu0 %vm26835_vm0, %v33523_v34  ;;  %25161 = vmatprep.subr.mxu0 %v33523_v34  ;;  %v4617_v4 = vsub.f32 %v28112_v59, %v4616_v62  ;;  %v4577_v50 = vand.u32 4294901760, %v4576_v31 }
 0x211   :  { %25166 = vmatprep.subr.mxu1 %v33523_v34  ;;  %25159 = vmatmul.mubr.f32.vlgmr.msra.gmra.mxu1 %v3225_v39  ;;  %v5024_v39 = vsub.f32 %v4953_v6, %v28146_v28 }
 0x212   :  { %25154 = vmatmul.mubr.f32.vlgmr.msra.gmra.mxu0 %v3224_v33  ;;  %25167 = vmatpush3.xpose.msra.mxu1 %v27986_v12  ;;  %v28139_v12 = vand.u32 4294901760, %v4955_v41  ;;  %v4618_v14 = vand.u32 4294901760, %v4617_v4 }
 0x213   :  { %25162 = vmatpush3.xpose.msra.mxu0 %v3266_v38  ;;  %25168 = vmatprep.mubr.msk.f32.mxu1 %vm26835_vm0, %v33523_v34  ;;  %v1744_v38 = vpop.f32.mrf.mxu1  ;;  %v5025_v23 = vand.u32 4294901760, %v5024_v39 }
 0x214   :  { %25163 = vmatprep.mubr.msk.f32.mxu0 %vm26835_vm0, %v33523_v34  ;;  %25171 = vmatprep.subr.mxu0 %v33523_v34  ;;  %v28153_v33 = vsub.f32 %v4955_v41, %v28139_v12 }
 0x215   :  { %25176 = vmatprep.subr.mxu1 %v33523_v34  ;;  %25169 = vmatmul.mubr.f32.vlgmr.msra.gmra.mxu1 %v27989_v42  ;;  %v5026_v24 = vsub.f32 %v5024_v39, %v5025_v23 }
 0x216   :  { %25164 = vmatmul.mubr.f32.vlgmr.msra.gmra.mxu0 %v27989_v42  ;;  %25177 = vmatpush3.xpose.msra.mxu1 %v3718_v15  ;;  %v1651_v42 = vpop.f32.mrf.mxu0  ;;  %v5066_v40 = vand.u32 4294901760, %v28153_v33 }
 0x217   :  { %25172 = vmatpush3.xpose.msra.mxu0 %v28020_v0  ;;  %25178 = vmatprep.mubr.msk.f32.mxu1 %vm26835_vm0, %v33523_v34  ;;  %v1652_v10 = vadd.f32 %v1651_v42, %v1525_v17  ;;  %v5027_v60 = vand.u32 4294901760, %v5026_v24 }
 0x218   :  { %25173 = vmatprep.mubr.msk.f32.mxu0 %vm26835_vm0, %v33523_v34  ;;  %25181 = vmatprep.subr.mxu0 %v33523_v34  ;;  %v5067_v56 = vsub.f32 %v28153_v33, %v5066_v40 }
 0x219   :  { %25186 = vmatprep.subr.mxu1 %v33523_v34  ;;  %25179 = vmatmul.mubr.f32.vlgmr.msra.gmra.mxu1 %v28029_v57 }
 0x21a   :  { %25174 = vmatmul.mubr.f32.vlgmr.msra.gmra.mxu0 %v3677_v54  ;;  %25187 = vmatpush3.xpose.msra.mxu1 %v28020_v0 }
 0x21b   :  { %25182 = vmatpush3.xpose.msra.mxu0 %v28034_v36  ;;  %25188 = vmatprep.mubr.msk.f32.mxu1 %vm26835_vm0, %v33523_v34  ;;  %v5068_v36 = vand.u32 4294901760, %v5067_v56 }
 0x21c   :  { %25183 = vmatprep.mubr.msk.f32.mxu0 %vm26835_vm0, %v33523_v34  ;;  %25191 = vmatprep.subr.mxu0 %v33523_v34 }
 0x21d   :  { %25196 = vmatprep.subr.mxu1 %v33523_v34  ;;  %25189 = vmatmul.mubr.f32.vlgmr.msra.gmra.mxu1 %v3675_v16 }
 0x21e   :  { %25184 = vmatmul.mubr.f32.vlgmr.msra.gmra.mxu0 %v3674_v2  ;;  %25197 = vmatpush3.xpose.msra.mxu1 %v28020_v0  ;;  %v28166_v0 = vadd.f32 %v1744_v38, %v1652_v10 }
 0x21f   :  { %25192 = vmatpush3.xpose.msra.mxu0 %v3716_v1  ;;  %25198 = vmatprep.mubr.msk.f32.mxu1 %vm26835_vm0, %v33523_v34 }
 0x220   :  { %25193 = vmatprep.mubr.msk.f32.mxu0 %vm26835_vm0, %v33523_v34  ;;  %25201 = vmatprep.subr.mxu0 %v33523_v34 }
 0x221   :  { %25206 = vmatprep.subr.mxu1 %v33523_v34  ;;  %25199 = vmatmul.mubr.f32.vlgmr.msra.gmra.mxu1 %v28029_v57 }
 0x222   :  { %25194 = vmatmul.mubr.f32.vlgmr.msra.gmra.mxu0 %v28029_v57  ;;  %25207 = vmatpush3.xpose.msra.mxu1 %v4168_v61  ;;  %v28181_v57 = vand.u32 4294901760, %v28166_v0 }
 0x223   :  { %25202 = vmatpush3.xpose.msra.mxu0 %v28056_v43  ;;  %25208 = vmatprep.mubr.msk.f32.mxu1 %vm26835_vm0, %v33523_v34 }
 0x224   :  { %25203 = vmatprep.mubr.msk.f32.mxu0 %vm26835_vm0, %v33523_v34  ;;  %25211 = vmatprep.subr.mxu0 %v33523_v34  ;;  %v28192_v20 = vsub.f32 %v28166_v0, %v28181_v57 }
 0x225   :  { %25216 = vmatprep.subr.mxu1 %v33523_v34  ;;  %25209 = vmatmul.mubr.f32.vlgmr.msra.gmra.mxu1 %v28062_v29 }
 0x226   :  { %25204 = vmatmul.mubr.f32.vlgmr.msra.gmra.mxu0 %v4127_v8  ;;  %25217 = vmatpush3.xpose.msra.mxu1 %v28056_v43  ;;  %v5604_v1 = vand.u32 4294901760, %v28192_v20 }
 0x227   :  { %25212 = vmatpush3.xpose.msra.mxu0 %v28069_v58  ;;  %25218 = vmatprep.mubr.msk.f32.mxu1 %vm26835_vm0, %v33523_v34 }
 0x228   :  { %25213 = vmatprep.mubr.msk.f32.mxu0 %vm26835_vm0, %v33523_v34  ;;  %25221 = vmatprep.subr.mxu0 %v33523_v34  ;;  %v5605_v16 = vsub.f32 %v28192_v20, %v5604_v1 }
 0x229   :  { %25226 = vmatprep.subr.mxu1 %v33523_v34  ;;  %25219 = vmatmul.mubr.f32.vlgmr.msra.gmra.mxu1 %v4125_v49 }
 0x22a   :  { %25214 = vmatmul.mubr.f32.vlgmr.msra.gmra.mxu0 %v28077_v51  ;;  %25227 = vmatpush3.xpose.msra.mxu1 %v28056_v43  ;;  %v5606_v15 = vand.u32 4294901760, %v5605_v16 }
 0x22b   :  { %25222 = vmatpush3.xpose.msra.mxu0 %v4166_v27  ;;  %25228 = vmatprep.mubr.msk.f32.mxu1 %vm26835_vm0, %v33523_v34 }
 0x22c   :  { %25223 = vmatprep.mubr.msk.f32.mxu0 %vm26835_vm0, %v33523_v34  ;;  %25231 = vmatprep.subr.mxu0 %v33523_v34 }
 0x22d   :  { %25236 = vmatprep.subr.mxu1 %v33523_v34  ;;  %25229 = vmatmul.mubr.f32.vlgmr.msra.gmra.mxu1 %v28062_v29 }
 0x22e   :  { %25224 = vmatmul.mubr.f32.vlgmr.msra.gmra.mxu0 %v28062_v29  ;;  %25237 = vmatpush3.xpose.msra.mxu1 %v4618_v14 }
 0x22f   :  { %25232 = vmatpush3.xpose.msra.mxu0 %v28097_v11  ;;  %25238 = vmatprep.mubr.msk.f32.mxu1 %vm26835_vm0, %v33523_v34 }
 0x230   :  { %25233 = vmatprep.mubr.msk.f32.mxu0 %vm26835_vm0, %v33523_v34  ;;  %25241 = vmatprep.subr.mxu0 %v33523_v34 }
 0x231   :  { %25246 = vmatprep.subr.mxu1 %v33523_v34  ;;  %25239 = vmatmul.mubr.f32.vlgmr.msra.gmra.mxu1 %v28105_v18 }
 0x232   :  { %25234 = vmatmul.mubr.f32.vlgmr.msra.gmra.mxu0 %v4577_v50  ;;  %25247 = vmatpush3.xpose.msra.mxu1 %v28097_v11 }
 0x233   :  { %25242 = vmatpush3.xpose.msra.mxu0 %v28112_v59  ;;  %25248 = vmatprep.mubr.msk.f32.mxu1 %vm26835_vm0, %v33523_v34 }
 0x234   :  { %25243 = vmatprep.mubr.msk.f32.mxu0 %vm26835_vm0, %v33523_v34  ;;  %25251 = vmatprep.subr.mxu0 %v33523_v34 }
 0x235   :  { %25256 = vmatprep.subr.mxu1 %v33523_v34  ;;  %25249 = vmatmul.mubr.f32.vlgmr.msra.gmra.mxu1 %v4575_v46 }
 0x236   :  { %25244 = vmatmul.mubr.f32.vlgmr.msra.gmra.mxu0 %v4574_v22  ;;  %25257 = vmatpush3.xpose.msra.mxu1 %v28097_v11 }
 0x237   :  { %25252 = vmatpush3.xpose.msra.mxu0 %v4616_v62  ;;  %25258 = vmatprep.mubr.msk.f32.mxu1 %vm26835_vm0, %v33523_v34 }
 0x238   :  { %25253 = vmatprep.mubr.msk.f32.mxu0 %vm26835_vm0, %v33523_v34  ;;  %25261 = vmatprep.subr.mxu0 %v33523_v34 }
 0x239   :  { %25266 = vmatprep.subr.mxu1 %v33523_v34  ;;  %25259 = vmatmul.mubr.f32.vlgmr.msra.gmra.mxu1 %v28105_v18 }
 0x23a   :  { %25254 = vmatmul.mubr.f32.vlgmr.msra.gmra.mxu0 %v28105_v18  ;;  %25267 = vmatpush3.xpose.msra.mxu1 %v5068_v36 }
 0x23b   :  { %25262 = vmatpush3.xpose.msra.mxu0 %v28139_v12  ;;  %25268 = vmatprep.mubr.msk.f32.mxu1 %vm26835_vm0, %v33523_v34 }
 0x23c   :  { %25263 = vmatprep.mubr.msk.f32.mxu0 %vm26835_vm0, %v33523_v34  ;;  %25271 = vmatprep.subr.mxu0 %v33523_v34 }
 0x23d   :  { %v1879_v2 = vpop.f32.mrf.mxu0  ;;  %25276 = vmatprep.subr.mxu1 %v33523_v34  ;;  %25269 = vmatmul.mubr.f32.vlgmr.msra.gmra.mxu1 %v28146_v28 }
 0x23e   :  { %25264 = vmatmul.mubr.f32.vlgmr.msra.gmra.mxu0 %v5027_v60  ;;  %25277 = vmatpush3.xpose.msra.mxu1 %v28139_v12 }
 0x23f   :  { %25272 = vmatpush3.xpose.msra.mxu0 %v28153_v33  ;;  %v25055_v55 = vpop.f32.mrf.mxu0  ;;  %25278 = vmatprep.mubr.msk.f32.mxu1 %vm26835_vm0, %v33523_v34 }
 0x240   :  { %25273 = vmatprep.mubr.msk.f32.mxu0 %vm26835_vm0, %v33523_v34  ;;  %25281 = vmatprep.subr.mxu0 %v33523_v34 }
 0x241   :  { %v2029_v45 = vpop.f32.mrf.mxu0  ;;  %25286 = vmatprep.subr.mxu1 %v33523_v34  ;;  %25279 = vmatmul.mubr.f32.vlgmr.msra.gmra.mxu1 %v5025_v23 }
 0x242   :  { %v1955_v21 = vpop.f32.mrf.mxu1  ;;  %25274 = vmatmul.mubr.f32.vlgmr.msra.gmra.mxu0 %v5024_v39  ;;  %25287 = vmatpush3.xpose.msra.mxu1 %v28139_v12 }
 0x243   :  { %v1956_v43 = vadd.f32 %v1955_v21, %v1879_v2  ;;  %25282 = vmatpush3.xpose.msra.mxu0 %v5066_v40  ;;  %v25065_v25 = vpop.f32.mrf.mxu0  ;;  %25288 = vmatprep.mubr.msk.f32.mxu1 %vm26835_vm0, %v33523_v34 }
 0x244   :  { %v25060_v29 = vpop.f32.mrf.mxu1  ;;  %25283 = vmatprep.mubr.msk.f32.mxu0 %vm26835_vm0, %v33523_v34  ;;  %25291 = vmatprep.subr.mxu0 %v33523_v34 }
 0x245   :  { %v2177_v44 = vpop.f32.mrf.mxu0  ;;  %25296 = vmatprep.subr.mxu1 %v33523_v34  ;;  %v2030_v58 = vadd.f32 %v2029_v45, %v1956_v43  ;;  %25289 = vmatmul.mubr.f32.vlgmr.msra.gmra.mxu1 %v28146_v28 }
 0x246   :  { %v2103_v47 = vpop.f32.mrf.mxu1  ;;  %25284 = vmatmul.mubr.f32.vlgmr.msra.gmra.mxu0 %v28146_v28  ;;  %25297 = vmatpush3.msra.mxu1 %v5606_v15 }
 0x247   :  { %v2104_v51 = vadd.f32 %v2103_v47, %v2030_v58  ;;  %25292 = vmatpush3.msra.mxu0 %v28181_v57  ;;  %v25075_v54 = vpop.f32.mrf.mxu0  ;;  %25298 = vmatprep.mubr.msk.f32.mxu1 %vm26835_vm0, %v33523_v34 }
 0x248   :  { %v25070_v27 = vpop.f32.mrf.mxu1  ;;  %25306 = vmatprep.subr.mxu1 %v33523_v34  ;;  %25293 = vmatprep.mubr.msk.f32.mxu0 %vm26835_vm0, %v33523_v34 }
 0x249   :  { %v2178_v7 = vadd.f32 %v2177_v44, %v2104_v51  ;;  %25301 = vmatprep.subr.mxu0 %v33523_v34 }
 0x24a   :  { %v2249_v35 = vpop.f32.mrf.mxu1 }
 0x24b   :  { %v2250_v49 = vadd.f32 %v2249_v35, %v2178_v7 }
 0x24c   :  { %v25080_v32 = vpop.f32.mrf.mxu1 }
 0x24d   :  { %v5404_v5 = vsel %vm5403_vm2, %v2250_v49, -inf }
 0x24e   :  { %5405 = vmax.xlane.f32.xlu0 %v5404_v5 }
 0x2b5   :  { %v2405_v11 = vpop.f32.mrf.mxu1 }
 0x2b6   :  { %v2329_v9 = vpop.f32.mrf.mxu0 }
 0x2b7   :  { %v25090_v19 = vpop.f32.mrf.mxu1  ;;  %v2406_v61 = vadd.f32 %v2405_v11, %v2329_v9 }
 0x2b8   :  { %v25085_v18 = vpop.f32.mrf.mxu0 }
 0x2b9   :  { %v2553_v59 = vpop.f32.mrf.mxu1 }
 0x2ba   :  { %v2479_v63 = vpop.f32.mrf.mxu0 }
 0x2bb   :  { %v2480_v30 = vadd.f32 %v2479_v63, %v2406_v61  ;;  %v25100_v8 = vpop.f32.mrf.mxu1 }
 0x2bc   :  { %v25095_v22 = vpop.f32.mrf.mxu0 }
 0x2bd   :  { %v2554_v62 = vadd.f32 %v2553_v59, %v2480_v30  ;;  %v2699_v3 = vpop.f32.mrf.mxu1 }
 0x2be   :  { %v2627_v52 = vpop.f32.mrf.mxu0 }
 0x2bf   :  { %v2628_v41 = vadd.f32 %v2627_v52, %v2554_v62  ;;  %v25110_v46 = vpop.f32.mrf.mxu1 }
 0x2c0   :  { %v25105_v4 = vpop.f32.mrf.mxu0 }
 0x2c1   :  { %v28233_v6 = vadd.f32 %v2699_v3, %v2628_v41  ;;  %v2855_v12 = vpop.f32.mrf.mxu1 }
 0x2c2   :  { %v2779_v17 = vpop.f32.mrf.mxu0 }
 0x2c3   :  { %v5407_v42 = vsel %vm5403_vm2, %v28233_v6, -inf  ;;  %v25120_v31 = vpop.f32.mrf.mxu1  ;;  %v2856_v14 = vadd.f32 %v2855_v12, %v2779_v17 }
 0x2c4   :  { %5408 = vmax.xlane.f32.xlu1 %v5407_v42  ;;  %v25115_v28 = vpop.f32.mrf.mxu0 }
 0x2c5   :  { %v3003_v33 = vpop.f32.mrf.mxu1 }
 0x2c6   :  { %v2929_v10 = vpop.f32.mrf.mxu0 }
 0x2c7   :  { %v2930_v38 = vadd.f32 %v2929_v10, %v2856_v14  ;;  %v25130_v50 = vpop.f32.mrf.mxu1 }
 0x2c8   :  { %v25125_v39 = vpop.f32.mrf.mxu0 }
 0x2c9   :  { %v3004_v40 = vadd.f32 %v3003_v33, %v2930_v38  ;;  %v3149_v23 = vpop.f32.mrf.mxu1 }
 0x2ca   :  { %v3077_v56 = vpop.f32.mrf.mxu0 }
 0x2cb   :  { %v3078_v24 = vadd.f32 %v3077_v56, %v3004_v40  ;;  %v25140_v36 = vpop.f32.mrf.mxu1 }
 0x2cc   :  { %v25135_v60 = vpop.f32.mrf.mxu0 }
 0x2cd   :  { %v28237_v2 = vadd.f32 %v3149_v23, %v3078_v24  ;;  %v3305_v55 = vpop.f32.mrf.mxu1 }
 0x2ce   :  { %v3229_v45 = vpop.f32.mrf.mxu0 }
 0x2cf   :  { %v5410_v16 = vsel %vm5403_vm2, %v28237_v2, -inf  ;;  %v25150_v21 = vpop.f32.mrf.mxu1  ;;  %v3306_v25 = vadd.f32 %v3305_v55, %v3229_v45 }
 0x2d0   :  { %5411 = vmax.xlane.f32.xlu0 %v5410_v16  ;;  %v25145_v43 = vpop.f32.mrf.mxu0 }
 0x2d1   :  { %v3453_v29 = vpop.f32.mrf.mxu1 }
 0x2d2   :  { %v3379_v44 = vpop.f32.mrf.mxu0 }
 0x2d3   :  { %v3380_v58 = vadd.f32 %v3379_v44, %v3306_v25  ;;  %v25160_v15 = vpop.f32.mrf.mxu1 }
 0x2d4   :  { %v25155_v47 = vpop.f32.mrf.mxu0 }
 0x2d5   :  { %v3454_v51 = vadd.f32 %v3453_v29, %v3380_v58  ;;  %v3599_v54 = vpop.f32.mrf.mxu1 }
 0x2d6   :  { %v3527_v27 = vpop.f32.mrf.mxu0 }
 0x2d7   :  { %v3528_v7 = vadd.f32 %v3527_v27, %v3454_v51  ;;  %v5406_v35 = vpop.xlane.xlu0 %5405  ;;  %v25170_v32 = vpop.f32.mrf.mxu1 }
 0x2d8   :  { %v5428_v5 = vsub.f32 %v2250_v49, %v5406_v35  ;;  %v25165_v11 = vpop.f32.mrf.mxu0 }
 0x2d9   :  { %v28241_v9 = vadd.f32 %v3599_v54, %v3528_v7  ;;  %v3755_v18 = vpop.f32.mrf.mxu1 }
 0x2da   :  { %v5436_v19 = vmul.f32 1.442695, %v5428_v5  ;;  %v3679_v61 = vpop.f32.mrf.mxu0 }
 0x2db   :  { %v5413_v59 = vsel %vm5403_vm2, %v28241_v9, -inf  ;;  %v25180_v63 = vpop.f32.mrf.mxu1  ;;  %v3756_v8 = vadd.f32 %v3755_v18, %v3679_v61 }
 0x2dc   :  { %26656 = vpow2.f32 %v5436_v19  ;;  %5414 = vmax.xlane.f32.xlu0 %v5413_v59  ;;  %v25175_v30 = vpop.f32.mrf.mxu0 }
 0x2dd   :  { %v3903_v22 = vpop.f32.mrf.mxu1 }
 0x2de   :  { %v3829_v62 = vpop.f32.mrf.mxu0 }
 0x2df   :  { %v3830_v3 = vadd.f32 %v3829_v62, %v3756_v8  ;;  %v25190_v52 = vpop.f32.mrf.mxu1 }
 0x2e0   :  { %v25185_v41 = vpop.f32.mrf.mxu0 }
 0x2e1   :  { %v3904_v49 = vadd.f32 %v3903_v22, %v3830_v3  ;;  %v4049_v46 = vpop.f32.mrf.mxu1 }
 0x2e2   :  { %v3977_v4 = vpop.f32.mrf.mxu0 }
 0x2e3   :  { %v3978_v12 = vadd.f32 %v3977_v4, %v3904_v49  ;;  %v25200_v17 = vpop.f32.mrf.mxu1 }
 0x2e4   :  { %v25195_v42 = vpop.f32.mrf.mxu0 }
 0x2e5   :  { %v28245_v31 = vadd.f32 %v4049_v46, %v3978_v12  ;;  %v4205_v28 = vpop.f32.mrf.mxu1 }
 0x2e6   :  { %v4129_v14 = vpop.f32.mrf.mxu0 }
 0x2e7   :  { %v5416_v33 = vsel %vm5403_vm2, %v28245_v31, -inf  ;;  %v25210_v10 = vpop.f32.mrf.mxu1  ;;  %v4206_v39 = vadd.f32 %v4205_v28, %v4129_v14 }
 0x2e8   :  { %5417 = vmax.xlane.f32.xlu1 %v5416_v33  ;;  %v25205_v38 = vpop.f32.mrf.mxu0 }
 0x2e9   :  { %v28249_v50 = vpop.eup %26656  ;;  %v4353_v40 = vpop.f32.mrf.mxu1 }
 0x2ea   :  { %v4279_v23 = vpop.f32.mrf.mxu0  ;;  %v5452_v56 = vsel %vm5403_vm2, %v28249_v50, 0.0 }
 0x2eb   :  { %v4280_v24 = vadd.f32 %v4279_v23, %v4206_v39  ;;  %v25220_v36 = vpop.f32.mrf.mxu1 }
 0x2ec   :  { %5453 = vadd.xlane.f32.xlu1 %v5452_v56  ;;  %v25215_v60 = vpop.f32.mrf.mxu0 }
 0x2ed   :  { %v4354_v55 = vadd.f32 %v4353_v40, %v4280_v24  ;;  %v4499_v45 = vpop.f32.mrf.mxu1 }
 0x2ee   :  { %v4427_v16 = vpop.f32.mrf.mxu0 }
 0x2ef   :  { %v4428_v21 = vadd.f32 %v4427_v16, %v4354_v55  ;;  %v25230_v43 = vpop.f32.mrf.mxu1 }
 0x2f0   :  { %v25225_v25 = vpop.f32.mrf.mxu0 }
 0x2f1   :  { %v28253_v29 = vadd.f32 %v4499_v45, %v4428_v21  ;;  %v4655_v44 = vpop.f32.mrf.mxu1 }
 0x2f2   :  { %v4579_v58 = vpop.f32.mrf.mxu0 }
 0x2f3   :  { %v5419_v15 = vsel %vm5403_vm2, %v28253_v29, -inf  ;;  %v25240_v47 = vpop.f32.mrf.mxu1  ;;  %v4656_v54 = vadd.f32 %v4655_v44, %v4579_v58 }
 0x2f4   :  { %5420 = vmax.xlane.f32.xlu0 %v5419_v15  ;;  %v25235_v51 = vpop.f32.mrf.mxu0 }
 0x2f5   :  { %v4803_v27 = vpop.f32.mrf.mxu1 }
 0x2f6   :  { %v4729_v7 = vpop.f32.mrf.mxu0 }
 0x2f7   :  { %v4730_v35 = vadd.f32 %v4729_v7, %v4656_v54  ;;  %v25250_v32 = vpop.f32.mrf.mxu1 }
 0x2f8   :  { %v25245_v5 = vpop.f32.mrf.mxu0 }
 0x2f9   :  { %v4804_v11 = vadd.f32 %v4803_v27, %v4730_v35  ;;  %v4949_v19 = vpop.f32.mrf.mxu1 }
 0x2fa   :  { %v4877_v18 = vpop.f32.mrf.mxu0 }
 0x2fb   :  { %v4878_v61 = vadd.f32 %v4877_v18, %v4804_v11  ;;  %v25260_v59 = vpop.f32.mrf.mxu1 }
 0x2fc   :  { %v25255_v63 = vpop.f32.mrf.mxu0 }
 0x2fd   :  { %v28257_v30 = vadd.f32 %v4949_v19, %v4878_v61  ;;  %v5105_v8 = vpop.f32.mrf.mxu1 }
 0x2fe   :  { %v5029_v22 = vpop.f32.mrf.mxu0 }
 0x2ff   :  { %v5422_v62 = vsel %vm5403_vm2, %v28257_v30, -inf  ;;  %v25270_v3 = vpop.f32.mrf.mxu1  ;;  %v5106_v41 = vadd.f32 %v5105_v8, %v5029_v22 }
 0x300   :  { %5423 = vmax.xlane.f32.xlu1 %v5422_v62  ;;  %v25265_v52 = vpop.f32.mrf.mxu0 }
 0x301   :  { %v5253_v49 = vpop.f32.mrf.mxu1 }
 0x302   :  { %v5179_v46 = vpop.f32.mrf.mxu0 }
 0x303   :  { %v5180_v4 = vadd.f32 %v5179_v46, %v5106_v41  ;;  %v25280_v12 = vpop.f32.mrf.mxu1 }
 0x304   :  { %v25275_v17 = vpop.f32.mrf.mxu0 }
 0x305   :  { %v5254_v42 = vadd.f32 %v5253_v49, %v5180_v4  ;;  %v5399_v28 = vpop.f32.mrf.mxu1 }
 0x306   :  { %v5327_v14 = vpop.f32.mrf.mxu0 }
 0x307   :  { %v5328_v33 = vadd.f32 %v5327_v14, %v5254_v42  ;;  %v25290_v10 = vpop.f32.mrf.mxu1 }
 0x308   :  { %v25285_v38 = vpop.f32.mrf.mxu0 }
 0x309   :  { %v28261_v39 = vadd.f32 %v5399_v28, %v5328_v33 }
 0x30b   :  { %v5425_v40 = vsel %vm5403_vm2, %v28261_v39, -inf }
 0x30c   :  { %5426 = vmax.xlane.f32.xlu0 %v5425_v40 }
 0x311   :  { %1783 = vrot.lane.b32.xlu1 %v28166_v0, %s26837_s20 }
 0x322   :  { %1786 = vrot.lane.b32.xlu0 %v28166_v0, %s26836_s19 }
 0x34d   :  { %v5409_v23 = vpop.xlane.xlu1 %5408 }
 0x34e   :  { %v5429_v56 = vsub.f32 %v28233_v6, %v5409_v23 }
 0x350   :  { %v5438_v24 = vmul.f32 1.442695, %v5429_v56 }
 0x352   :  { %26658 = vpow2.f32 %v5438_v24 }
 0x359   :  { %v5412_v36 = vpop.xlane.xlu0 %5411 }
 0x35a   :  { %v5430_v60 = vsub.f32 %v28237_v2, %v5412_v36 }
 0x35c   :  { %v5440_v55 = vmul.f32 1.442695, %v5430_v60 }
 0x35e   :  { %26660 = vpow2.f32 %v5440_v55 }
 0x35f   :  { %v28271_v45 = vpop.eup %26658 }
 0x360   :  { %v5455_v16 = vsel %vm5403_vm2, %v28271_v45, 0.0 }
 0x361   :  { %5456 = vadd.xlane.f32.xlu0 %v5455_v16 }
 0x365   :  { %v5415_v21 = vpop.xlane.xlu0 %5414 }
 0x366   :  { %v5431_v43 = vsub.f32 %v28241_v9, %v5415_v21 }
 0x368   :  { %v5442_v25 = vmul.f32 1.442695, %v5431_v43 }
 0x36a   :  { %26662 = vpow2.f32 %v5442_v25 }
 0x36b   :  { %v28276_v44 = vpop.eup %26660 }
 0x36c   :  { %v5458_v6 = vsel %vm5403_vm2, %v28276_v44, 0.0 }
 0x36d   :  { %5459 = vadd.xlane.f32.xlu1 %v5458_v6 }
 0x371   :  { %v5418_v2 = vpop.xlane.xlu1 %5417 }
 0x372   :  { %v5432_v58 = vsub.f32 %v28245_v31, %v5418_v2 }
 0x374   :  { %v5444_v15 = vmul.f32 1.442695, %v5432_v58 }
 0x375   :  { %v5454_v47 = vpop.xlane.xlu1 %5453 }
 0x376   :  { %26664 = vpow2.f32 %v5444_v15 }
 0x377   :  { %v28281_v51 = vpop.eup %26662  ;;  %26666 = vrcp.f32 %v5454_v47 }
 0x378   :  { %v5461_v9 = vsel %vm5403_vm2, %v28281_v51, 0.0 }
 0x379   :  { %5462 = vadd.xlane.f32.xlu0 %v5461_v9 }
 0x37d   :  { %v5421_v54 = vpop.xlane.xlu0 %5420 }
 0x37e   :  { %v5433_v27 = vsub.f32 %v28253_v29, %v5421_v54 }
 0x380   :  { %v5446_v7 = vmul.f32 1.442695, %v5433_v27 }
 0x382   :  { %26668 = vpow2.f32 %v5446_v7 }
 0x383   :  { %v28286_v35 = vpop.eup %26664 }
 0x384   :  { %v26667_v32 = vpop.eup %26666  ;;  %v5464_v31 = vsel %vm5403_vm2, %v28286_v35, 0.0 }
 0x385   :  { %5465 = vadd.xlane.f32.xlu0 %v5464_v31  ;;  %v5484_v5 = vmul.f32 %v26667_v32, %v28249_v50 }
 0x387   :  { %v5493_v11 = vsel %vm5403_vm2, %v5484_v5, 0 }
 0x388   :  { %v5561_v19 = vand.u32 4294901760, %v5493_v11 }
 0x389   :  { %v5424_v18 = vpop.xlane.xlu1 %5423 }
 0x38a   :  { %v5562_v61 = vsub.f32 %v5493_v11, %v5561_v19  ;;  %25299 = vmatmul.mubr.f32.vlgmr.msra.gmra.mxu1 %v5561_v19 }
 0x38b   :  { %25307 = vmatpush3.msra.mxu1 %v28181_v57  ;;  %25308 = vmatprep.mubr.msk.f32.mxu1 %vm26835_vm0, %v33523_v34 }
 0x38c   :  { %25316 = vmatprep.subr.mxu1 %v33523_v34  ;;  %v5563_v29 = vand.u32 4294901760, %v5562_v61 }
 0x38d   :  { %v1784_v59 = vpop.permute.xlu1 %1783 }
 0x38e   :  { %25309 = vmatmul.mubr.f32.vlgmr.msra.gmra.mxu1 %v5563_v29  ;;  %v28296_v63 = vand.u32 4294901760, %v1784_v59  ;;  %v5564_v8 = vsub.f32 %v5562_v61, %v5563_v29 }
 0x38f   :  { %v28298_v50 = vpop.eup %26668  ;;  %25317 = vmatpush3.msra.mxu1 %v28181_v57  ;;  %25318 = vmatprep.mubr.msk.f32.mxu1 %vm26835_vm0, %v33523_v34 }
 0x390   :  { %v28304_v22 = vsub.f32 %v1784_v59, %v28296_v63  ;;  %v5565_v62 = vand.u32 4294901760, %v5564_v8  ;;  %v5467_v3 = vsel %vm5403_vm2, %v28298_v50, 0.0  ;;  %25326 = vmatprep.subr.mxu1 %v33523_v34 }
 0x391   :  { %5468 = vadd.xlane.f32.xlu1 %v5467_v3 }
 0x392   :  { %v6053_v52 = vand.u32 4294901760, %v28304_v22  ;;  %25294 = vmatmul.mubr.f32.vlgmr.msra.gmra.mxu0 %v5565_v62  ;;  %25319 = vmatmul.mubr.f32.vlgmr.msra.gmra.mxu1 %v5561_v19 }
 0x393   :  { %25302 = vmatpush3.msra.mxu0 %v28192_v20  ;;  %25303 = vmatprep.mubr.msk.f32.mxu0 %vm26835_vm0, %v33523_v34  ;;  %v5434_v20 = vsub.f32 %v28257_v30, %v5424_v18 }
 0x394   :  { %v6054_v57 = vsub.f32 %v28304_v22, %v6053_v52  ;;  %25311 = vmatprep.subr.mxu0 %v33523_v34  ;;  %25328 = vmatprep.mubr.msk.f32.mxu1 %vm26835_vm0, %v33523_v34 }
 0x395   :  { %v5427_v49 = vpop.xlane.xlu0 %5426 }
 0x396   :  { %v6055_v41 = vand.u32 4294901760, %v6054_v57  ;;  %25304 = vmatmul.mubr.f32.vlgmr.msra.gmra.mxu0 %v5562_v61  ;;  %v5435_v46 = vsub.f32 %v28261_v39, %v5427_v49 }
 0x397   :  { %25312 = vmatpush3.msra.mxu0 %v5604_v1  ;;  %25313 = vmatprep.mubr.msk.f32.mxu0 %vm26835_vm0, %v33523_v34  ;;  %v5448_v1 = vmul.f32 1.442695, %v5434_v20 }
 0x398   :  { %25321 = vmatprep.subr.mxu0 %v33523_v34  ;;  %25327 = vmatpush3.msra.mxu1 %v6055_v41  ;;  %v5450_v4 = vmul.f32 1.442695, %v5435_v46 }
 0x399   :  { %25336 = vmatprep.subr.mxu1 %v33523_v34  ;;  %26670 = vpow2.f32 %v5448_v1  ;;  %v1787_v42 = vpop.permute.xlu0 %1786 }
 0x39a   :  { %25314 = vmatmul.mubr.f32.vlgmr.msra.gmra.mxu0 %v5561_v19  ;;  %26672 = vpow2.f32 %v5450_v4  ;;  %v6424_v14 = vand.u32 4294901760, %v1787_v42  ;;  %v28395_v19 = vand.u32 4294901760, %v27965_v13 }
 0x39b   :  { %25322 = vmatpush3.msra.mxu0 %v28296_v63  ;;  %1789 = vrot.lane.b32.xlu0 %v28166_v0, %s26838_s21 }
 0x39c   :  { %25323 = vmatprep.mubr.msk.f32.mxu0 %vm26835_vm0, %v33523_v34  ;;  %25331 = vmatprep.subr.mxu0 %v33523_v34  ;;  %v28347_v38 = vsub.f32 %v1787_v42, %v6424_v14  ;;  %v28404_v8 = vsub.f32 %v27965_v13, %v28395_v19 }
 0x39e   :  { %v6502_v56 = vand.u32 4294901760, %v28347_v38  ;;  %v7400_v57 = vand.u32 4294901760, %v28404_v8 }
 0x3a0   :  { %v6503_v60 = vsub.f32 %v28347_v38, %v6502_v56  ;;  %v7401_v1 = vsub.f32 %v28404_v8, %v7400_v57 }
 0x3a2   :  { %1793 = vrot.lane.b32.xlu1 %v27965_v13, %s26837_s20  ;;  %v6504_v43 = vand.u32 4294901760, %v6503_v60 }
 0x3a6   :  { %v28335_v12 = vpop.eup %26670 }
 0x3a7   :  { %v5470_v0 = vsel %vm5403_vm2, %v28335_v12, 0.0  ;;  %v28339_v17 = vpop.eup %26672 }
 0x3a8   :  { %v5473_v30 = vsel %vm5403_vm2, %v28339_v17, 0.0 }
 0x3ba   :  { %5471 = vadd.xlane.f32.xlu0 %v5470_v0  ;;  %v7402_v0 = vand.u32 4294901760, %v7401_v1 }
 0x3c6   :  { %5474 = vadd.xlane.f32.xlu1 %v5473_v30 }
 0x3d0   :  { %1796 = vrot.lane.b32.xlu0 %v27965_v13, %s26836_s19 }
 0x3d7   :  { %1799 = vrot.lane.b32.xlu1 %v27965_v13, %s26838_s21 }
 0x3ea   :  { %v5457_v28 = vpop.xlane.xlu0 %5456 }
 0x3eb   :  { %26674 = vrcp.f32 %v5457_v28 }
 0x3f6   :  { %v5460_v33 = vpop.xlane.xlu1 %5459 }
 0x3f7   :  { %26676 = vrcp.f32 %v5460_v33 }
 0x3f8   :  { %v26675_v10 = vpop.eup %26674 }
 0x3f9   :  { %v5485_v39 = vmul.f32 %v26675_v10, %v28271_v45 }
 0x3fb   :  { %v5942_v40 = vsel %vm5403_vm2, %v5485_v39, 0 }
 0x3fc   :  { %v6010_v23 = vand.u32 4294901760, %v5942_v40 }
 0x3fe   :  { %v6011_v24 = vsub.f32 %v5942_v40, %v6010_v23  ;;  %25329 = vmatmul.mubr.f32.vlgmr.msra.gmra.mxu1 %v6010_v23 }
 0x3ff   :  { %25337 = vmatpush3.msra.mxu1 %v28296_v63  ;;  %25338 = vmatprep.mubr.msk.f32.mxu1 %vm26835_vm0, %v33523_v34 }
 0x400   :  { %25346 = vmatprep.subr.mxu1 %v33523_v34  ;;  %v6012_v36 = vand.u32 4294901760, %v6011_v24 }
 0x402   :  { %25339 = vmatmul.mubr.f32.vlgmr.msra.gmra.mxu1 %v6012_v36  ;;  %v5463_v55 = vpop.xlane.xlu0 %5462  ;;  %v6013_v45 = vsub.f32 %v6011_v24, %v6012_v36 }
 0x403   :  { %25347 = vmatpush3.msra.mxu1 %v28296_v63  ;;  %26678 = vrcp.f32 %v5463_v55  ;;  %25348 = vmatprep.mubr.msk.f32.mxu1 %vm26835_vm0, %v33523_v34 }
 0x404   :  { %v26677_v16 = vpop.eup %26676  ;;  %25356 = vmatprep.subr.mxu1 %v33523_v34  ;;  %v6014_v21 = vand.u32 4294901760, %v6013_v45 }
 0x405   :  { %v5486_v25 = vmul.f32 %v26677_v16, %v28276_v44 }
 0x406   :  { %25324 = vmatmul.mubr.f32.vlgmr.msra.gmra.mxu0 %v6014_v21  ;;  %25349 = vmatmul.mubr.f32.vlgmr.msra.gmra.mxu1 %v6010_v23 }
 0x407   :  { %25332 = vmatpush3.msra.mxu0 %v28304_v22  ;;  %25357 = vmatpush3.msra.mxu1 %v6504_v43  ;;  %v6391_v6 = vsel %vm5403_vm2, %v5486_v25, 0 }
 0x408   :  { %25333 = vmatprep.mubr.msk.f32.mxu0 %vm26835_vm0, %v33523_v34  ;;  %25341 = vmatprep.subr.mxu0 %v33523_v34  ;;  %v6459_v2 = vand.u32 4294901760, %v6391_v6 }
 0x409   :  { %25358 = vmatprep.mubr.msk.f32.mxu1 %vm26835_vm0, %v33523_v34  ;;  %25366 = vmatprep.subr.mxu1 %v33523_v34 }
 0x40a   :  { %25334 = vmatmul.mubr.f32.vlgmr.msra.gmra.mxu0 %v6011_v24  ;;  %v6460_v44 = vsub.f32 %v6391_v6, %v6459_v2  ;;  %25359 = vmatmul.mubr.f32.vlgmr.msra.gmra.mxu1 %v6459_v2 }
 0x40b   :  { %25342 = vmatpush3.msra.mxu0 %v6053_v52  ;;  %25367 = vmatpush3.msra.mxu1 %v6424_v14 }
 0x40c   :  { %25343 = vmatprep.mubr.msk.f32.mxu0 %vm26835_vm0, %v33523_v34  ;;  %25351 = vmatprep.subr.mxu0 %v33523_v34  ;;  %v6461_v58 = vand.u32 4294901760, %v6460_v44 }
 0x40d   :  { %25368 = vmatprep.mubr.msk.f32.mxu1 %vm26835_vm0, %v33523_v34  ;;  %25376 = vmatprep.subr.mxu1 %v33523_v34 }
 0x40e   :  { %25344 = vmatmul.mubr.f32.vlgmr.msra.gmra.mxu0 %v6010_v23  ;;  %25369 = vmatmul.mubr.f32.vlgmr.msra.gmra.mxu1 %v6461_v58  ;;  %v5466_v15 = vpop.xlane.xlu0 %5465  ;;  %v6462_v47 = vsub.f32 %v6460_v44, %v6461_v58 }
 0x40f   :  { %25352 = vmatpush3.msra.mxu0 %v6424_v14  ;;  %25377 = vmatpush3.msra.mxu1 %v6424_v14  ;;  %26680 = vrcp.f32 %v5466_v15 }
 0x410   :  { %v26679_v9 = vpop.eup %26678  ;;  %25353 = vmatprep.mubr.msk.f32.mxu0 %vm26835_vm0, %v33523_v34  ;;  %25361 = vmatprep.subr.mxu0 %v33523_v34  ;;  %v6463_v54 = vand.u32 4294901760, %v6462_v47 }
 0x411   :  { %v5487_v27 = vmul.f32 %v26679_v9, %v28281_v51  ;;  %25378 = vmatprep.mubr.msk.f32.mxu1 %vm26835_vm0, %v33523_v34  ;;  %25386 = vmatprep.subr.mxu1 %v33523_v34 }
 0x412   :  { %25354 = vmatmul.mubr.f32.vlgmr.msra.gmra.mxu0 %v6463_v54  ;;  %25379 = vmatmul.mubr.f32.vlgmr.msra.gmra.mxu1 %v6459_v2  ;;  %v1790_v7 = vpop.permute.xlu0 %1789 }
 0x413   :  { %25362 = vmatpush3.msra.mxu0 %v28347_v38  ;;  %v6873_v32 = vand.u32 4294901760, %v1790_v7  ;;  %25363 = vmatprep.mubr.msk.f32.mxu0 %vm26835_vm0, %v33523_v34  ;;  %v6840_v31 = vsel %vm5403_vm2, %v5487_v27, 0 }
 0x414   :  { %25371 = vmatprep.subr.mxu0 %v33523_v34  ;;  %25388 = vmatprep.mubr.msk.f32.mxu1 %vm26835_vm0, %v33523_v34  ;;  %v6908_v51 = vand.u32 4294901760, %v6840_v31 }
 0x415   :  { %v6950_v5 = vsub.f32 %v1790_v7, %v6873_v32 }
 0x416   :  { %25364 = vmatmul.mubr.f32.vlgmr.msra.gmra.mxu0 %v6460_v44  ;;  %v6909_v11 = vsub.f32 %v6840_v31, %v6908_v51 }
 0x417   :  { %v6951_v18 = vand.u32 4294901760, %v6950_v5  ;;  %25372 = vmatpush3.msra.mxu0 %v6502_v56  ;;  %25373 = vmatprep.mubr.msk.f32.mxu0 %vm26835_vm0, %v33523_v34 }
 0x418   :  { %25381 = vmatprep.subr.mxu0 %v33523_v34  ;;  %v6910_v61 = vand.u32 4294901760, %v6909_v11 }
 0x419   :  { %v6952_v29 = vsub.f32 %v6950_v5, %v6951_v18 }
 0x41a   :  { %v5469_v59 = vpop.xlane.xlu1 %5468  ;;  %25374 = vmatmul.mubr.f32.vlgmr.msra.gmra.mxu0 %v6459_v2  ;;  %v6911_v63 = vsub.f32 %v6909_v11, %v6910_v61 }
 0x41b   :  { %v6953_v22 = vand.u32 4294901760, %v6952_v29  ;;  %26682 = vrcp.f32 %v5469_v59  ;;  %25382 = vmatpush3.msra.mxu0 %v6873_v32  ;;  %25383 = vmatprep.mubr.msk.f32.mxu0 %vm26835_vm0, %v33523_v34 }
 0x41c   :  { %v26681_v62 = vpop.eup %26680  ;;  %25391 = vmatprep.subr.mxu0 %v33523_v34  ;;  %v6912_v3 = vand.u32 4294901760, %v6911_v63 }
 0x41d   :  { %v5488_v52 = vmul.f32 %v26681_v62, %v28286_v35  ;;  %25387 = vmatpush3.msra.mxu1 %v6953_v22 }
 0x41e   :  { %25384 = vmatmul.mubr.f32.vlgmr.msra.gmra.mxu0 %v6912_v3  ;;  %25389 = vmatmul.mubr.f32.vlgmr.msra.gmra.mxu1 %v6908_v51  ;;  %v1794_v41 = vpop.permute.xlu1 %1793 }
 0x41f   :  { %25392 = vmatpush3.msra.mxu0 %v6950_v5  ;;  %25396 = vmatprep.subr.mxu1 %v33523_v34  ;;  %v7289_v13 = vsel %vm5403_vm2, %v5488_v52, 0  ;;  %v28418_v35 = vand.u32 4294901760, %v1794_v41 }
 0x420   :  { %25397 = vmatpush3.msra.mxu1 %v6873_v32  ;;  %25393 = vmatprep.mubr.msk.f32.mxu0 %vm26835_vm0, %v33523_v34  ;;  %v7357_v20 = vand.u32 4294901760, %v7289_v13 }
 0x421   :  { %25398 = vmatprep.mubr.msk.f32.mxu1 %vm26835_vm0, %v33523_v34  ;;  %25401 = vmatprep.subr.mxu0 %v33523_v34  ;;  %v7848_v4 = vsub.f32 %v1794_v41, %v28418_v35 }
 0x422   :  { %25406 = vmatprep.subr.mxu1 %v33523_v34  ;;  %25394 = vmatmul.mubr.f32.vlgmr.msra.gmra.mxu0 %v6909_v11  ;;  %v7358_v49 = vsub.f32 %v7289_v13, %v7357_v20 }
 0x423   :  { %25399 = vmatmul.mubr.f32.vlgmr.msra.gmra.mxu1 %v6910_v61  ;;  %25402 = vmatpush3.msra.mxu0 %v6951_v18  ;;  %v7849_v33 = vand.u32 4294901760, %v7848_v4 }
 0x424   :  { %25407 = vmatpush3.msra.mxu1 %v6873_v32  ;;  %25403 = vmatprep.mubr.msk.f32.mxu0 %vm26835_vm0, %v33523_v34  ;;  %v7359_v46 = vand.u32 4294901760, %v7358_v49 }
 0x425   :  { %25408 = vmatprep.mubr.msk.f32.mxu1 %vm26835_vm0, %v33523_v34  ;;  %25411 = vmatprep.subr.mxu0 %v33523_v34  ;;  %v7850_v38 = vsub.f32 %v7848_v4, %v7849_v33 }
 0x426   :  { %25416 = vmatprep.subr.mxu1 %v33523_v34  ;;  %25404 = vmatmul.mubr.f32.vlgmr.msra.gmra.mxu0 %v6908_v51  ;;  %v7360_v30 = vsub.f32 %v7358_v49, %v7359_v46 }
 0x427   :  { %25409 = vmatmul.mubr.f32.vlgmr.msra.gmra.mxu1 %v6908_v51  ;;  %25412 = vmatpush3.msra.mxu0 %v28395_v19  ;;  %v7851_v23 = vand.u32 4294901760, %v7850_v38 }
 0x428   :  { %v26683_v42 = vpop.eup %26682  ;;  %25417 = vmatpush3.msra.mxu1 %v7402_v0  ;;  %25413 = vmatprep.mubr.msk.f32.mxu0 %vm26835_vm0, %v33523_v34  ;;  %v7361_v28 = vand.u32 4294901760, %v7360_v30 }
 0x429   :  { %v5489_v14 = vmul.f32 %v26683_v42, %v28298_v50  ;;  %25418 = vmatprep.mubr.msk.f32.mxu1 %vm26835_vm0, %v33523_v34  ;;  %25421 = vmatprep.subr.mxu0 %v33523_v34 }
 0x42a   :  { %25426 = vmatprep.subr.mxu1 %v33523_v34  ;;  %25414 = vmatmul.mubr.f32.vlgmr.msra.gmra.mxu0 %v7361_v28 }
 0x42b   :  { %25419 = vmatmul.mubr.f32.vlgmr.msra.gmra.mxu1 %v7357_v20  ;;  %25422 = vmatpush3.msra.mxu0 %v28404_v8  ;;  %v7738_v10 = vsel %vm5403_vm2, %v5489_v14, 0 }
 0x42c   :  { %25427 = vmatpush3.msra.mxu1 %v28395_v19  ;;  %25423 = vmatprep.mubr.msk.f32.mxu0 %vm26835_vm0, %v33523_v34  ;;  %v7806_v50 = vand.u32 4294901760, %v7738_v10 }
 0x42d   :  { %25428 = vmatprep.mubr.msk.f32.mxu1 %vm26835_vm0, %v33523_v34  ;;  %25431 = vmatprep.subr.mxu0 %v33523_v34 }
 0x42e   :  { %25436 = vmatprep.subr.mxu1 %v33523_v34  ;;  %25424 = vmatmul.mubr.f32.vlgmr.msra.gmra.mxu0 %v7358_v49  ;;  %v7807_v39 = vsub.f32 %v7738_v10, %v7806_v50 }
 0x42f   :  { %25429 = vmatmul.mubr.f32.vlgmr.msra.gmra.mxu1 %v7359_v46  ;;  %25432 = vmatpush3.msra.mxu0 %v7400_v57 }
 0x430   :  { %25437 = vmatpush3.msra.mxu1 %v28395_v19  ;;  %25433 = vmatprep.mubr.msk.f32.mxu0 %vm26835_vm0, %v33523_v34  ;;  %v7808_v40 = vand.u32 4294901760, %v7807_v39 }
 0x431   :  { %25438 = vmatprep.mubr.msk.f32.mxu1 %vm26835_vm0, %v33523_v34  ;;  %25441 = vmatprep.subr.mxu0 %v33523_v34 }
 0x432   :  { %25446 = vmatprep.subr.mxu1 %v33523_v34  ;;  %25434 = vmatmul.mubr.f32.vlgmr.msra.gmra.mxu0 %v7357_v20  ;;  %v7809_v56 = vsub.f32 %v7807_v39, %v7808_v40 }
 0x433   :  { %25439 = vmatmul.mubr.f32.vlgmr.msra.gmra.mxu1 %v7357_v20  ;;  %25442 = vmatpush3.msra.mxu0 %v28418_v35 }
 0x434   :  { %25447 = vmatpush3.msra.mxu1 %v7851_v23  ;;  %25443 = vmatprep.mubr.msk.f32.mxu0 %vm26835_vm0, %v33523_v34  ;;  %v7810_v24 = vand.u32 4294901760, %v7809_v56 }
 0x435   :  { %25448 = vmatprep.mubr.msk.f32.mxu1 %vm26835_vm0, %v33523_v34  ;;  %25451 = vmatprep.subr.mxu0 %v33523_v34 }
 0x436   :  { %25456 = vmatprep.subr.mxu1 %v33523_v34  ;;  %25444 = vmatmul.mubr.f32.vlgmr.msra.gmra.mxu0 %v7810_v24 }
 0x437   :  { %25449 = vmatmul.mubr.f32.vlgmr.msra.gmra.mxu1 %v7806_v50  ;;  %25452 = vmatpush3.msra.mxu0 %v7848_v4 }
 0x438   :  { %25457 = vmatpush3.msra.mxu1 %v28418_v35  ;;  %25453 = vmatprep.mubr.msk.f32.mxu0 %vm26835_vm0, %v33523_v34 }
 0x439   :  { %25458 = vmatprep.mubr.msk.f32.mxu1 %vm26835_vm0, %v33523_v34  ;;  %25461 = vmatprep.subr.mxu0 %v33523_v34 }
 0x43a   :  { %25466 = vmatprep.subr.mxu1 %v33523_v34  ;;  %25454 = vmatmul.mubr.f32.vlgmr.msra.gmra.mxu0 %v7807_v39 }
 0x43b   :  { %25459 = vmatmul.mubr.f32.vlgmr.msra.gmra.mxu1 %v7808_v40  ;;  %25462 = vmatpush3.msra.mxu0 %v7849_v33 }
 0x43c   :  { %25467 = vmatpush3.msra.mxu1 %v28418_v35  ;;  %25463 = vmatprep.mubr.msk.f32.mxu0 %vm26835_vm0, %v33523_v34 }
 0x43d   :  { %25468 = vmatprep.mubr.msk.f32.mxu1 %vm26835_vm0, %v33523_v34  ;;  %25471 = vmatprep.subr.mxu0 %v33523_v34 }
 0x43e   :  { %25464 = vmatmul.mubr.f32.vlgmr.msra.gmra.mxu0 %v7806_v50  ;;  %25476 = vmatprep.subr.mxu1 %v33523_v34 }
 0x43f   :  { %25469 = vmatmul.mubr.f32.vlgmr.msra.gmra.mxu1 %v7806_v50  ;;  %25473 = vmatprep.mubr.msk.f32.mxu0 %vm26835_vm0, %v33523_v34 }
 0x440   :  { %25478 = vmatprep.mubr.msk.f32.mxu1 %vm26835_vm0, %v33523_v34 }
 0x443   :  { %v5472_v36 = vpop.xlane.xlu0 %5471 }
 0x444   :  { %26684 = vrcp.f32 %v5472_v36 }
 0x447   :  { %v1797_v60 = vpop.permute.xlu0 %1796 }
 0x448   :  { %v8220_v55 = vand.u32 4294901760, %v1797_v60 }
 0x44a   :  { %v28478_v45 = vsub.f32 %v1797_v60, %v8220_v55  ;;  %v5643_v16 = vpop.f32.mrf.mxu1  ;;  %25472 = vmatpush3.msra.mxu0 %v8220_v55 }
 0x44b   :  { %25481 = vmatprep.subr.mxu0 %v33523_v34 }
 0x44c   :  { %v8298_v21 = vand.u32 4294901760, %v28478_v45  ;;  %v25300_v43 = vpop.f32.mrf.mxu1 }
 0x44e   :  { %v8299_v25 = vsub.f32 %v28478_v45, %v8298_v21  ;;  %v5791_v6 = vpop.f32.mrf.mxu1 }
 0x44f   :  { %v5475_v2 = vpop.xlane.xlu1 %5474 }
 0x450   :  { %v8300_v44 = vand.u32 4294901760, %v8299_v25  ;;  %v25310_v58 = vpop.f32.mrf.mxu1  ;;  %26686 = vrcp.f32 %v5475_v2 }
 0x451   :  { %v26685_v15 = vpop.eup %26684 }
 0x452   :  { %v5567_v47 = vpop.f32.mrf.mxu0  ;;  %v5937_v9 = vpop.f32.mrf.mxu1  ;;  %25477 = vmatpush3.msra.mxu1 %v8300_v44  ;;  %v5490_v54 = vmul.f32 %v26685_v15, %v28335_v12 }
 0x453   :  { %v5644_v27 = vadd.f32 %v5643_v16, %v5567_v47  ;;  %v1800_v7 = vpop.permute.xlu1 %1799  ;;  %25486 = vmatprep.subr.mxu1 %v33523_v34 }
 0x454   :  { %v25320_v32 = vpop.f32.mrf.mxu1  ;;  %v8669_v31 = vand.u32 4294901760, %v1800_v7  ;;  %v25295_v51 = vpop.f32.mrf.mxu0  ;;  %v8187_v5 = vsel %vm5403_vm2, %v5490_v54, 0 }
 0x455   :  { %v8255_v11 = vand.u32 4294901760, %v8187_v5 }
 0x456   :  { %v8746_v19 = vsub.f32 %v1800_v7, %v8669_v31  ;;  %v5717_v18 = vpop.f32.mrf.mxu0 }
 0x457   :  { %v5718_v61 = vadd.f32 %v5717_v18, %v5644_v27  ;;  %v8256_v29 = vsub.f32 %v8187_v5, %v8255_v11  ;;  %25479 = vmatmul.mubr.f32.vlgmr.msra.gmra.mxu1 %v8255_v11 }
 0x458   :  { %v8747_v59 = vand.u32 4294901760, %v8746_v19  ;;  %v25305_v63 = vpop.f32.mrf.mxu0  ;;  %25487 = vmatpush3.msra.mxu1 %v8220_v55  ;;  %25488 = vmatprep.mubr.msk.f32.mxu1 %vm26835_vm0, %v33523_v34 }
 0x459   :  { %v5792_v12 = vadd.f32 %v5791_v6, %v5718_v61  ;;  %25496 = vmatprep.subr.mxu1 %v33523_v34  ;;  %v8257_v8 = vand.u32 4294901760, %v8256_v29 }
 0x45a   :  { %v8748_v22 = vsub.f32 %v8746_v19, %v8747_v59  ;;  %v5865_v62 = vpop.f32.mrf.mxu0 }
 0x45b   :  { %v5866_v3 = vadd.f32 %v5865_v62, %v5792_v12  ;;  %25489 = vmatmul.mubr.f32.vlgmr.msra.gmra.mxu1 %v8257_v8  ;;  %v8258_v52 = vsub.f32 %v8256_v29, %v8257_v8 }
 0x45c   :  { %v8749_v57 = vand.u32 4294901760, %v8748_v22  ;;  %v25315_v41 = vpop.f32.mrf.mxu0  ;;  %25497 = vmatpush3.msra.mxu1 %v8220_v55  ;;  %25498 = vmatprep.mubr.msk.f32.mxu1 %vm26835_vm0, %v33523_v34 }
 0x45d   :  { %v26687_v13 = vpop.eup %26686  ;;  %v28491_v20 = vadd.f32 %v5937_v9, %v5866_v3  ;;  %25506 = vmatprep.subr.mxu1 %v33523_v34  ;;  %v8259_v35 = vand.u32 4294901760, %v8258_v52 }
 0x45e   :  { %v5491_v1 = vmul.f32 %v26687_v13, %v28339_v17 }
 0x45f   :  { %25474 = vmatmul.mubr.f32.vlgmr.msra.gmra.mxu0 %v8259_v35  ;;  %25499 = vmatmul.mubr.f32.vlgmr.msra.gmra.mxu1 %v8255_v11 }
 0x460   :  { %25482 = vmatpush3.msra.mxu0 %v28478_v45  ;;  %25507 = vmatpush3.msra.mxu1 %v8749_v57  ;;  %v8636_v49 = vsel %vm5403_vm2, %v5491_v1, 0 }
 0x461   :  { %25483 = vmatprep.mubr.msk.f32.mxu0 %vm26835_vm0, %v33523_v34  ;;  %25491 = vmatprep.subr.mxu0 %v33523_v34  ;;  %v8704_v46 = vand.u32 4294901760, %v8636_v49 }
 0x462   :  { %25508 = vmatprep.mubr.msk.f32.mxu1 %vm26835_vm0, %v33523_v34  ;;  %25516 = vmatprep.subr.mxu1 %v33523_v34 }
 0x463   :  { %25484 = vmatmul.mubr.f32.vlgmr.msra.gmra.mxu0 %v8256_v29  ;;  %v8705_v17 = vsub.f32 %v8636_v49, %v8704_v46  ;;  %25509 = vmatmul.mubr.f32.vlgmr.msra.gmra.mxu1 %v8704_v46 }
 0x464   :  { %25492 = vmatpush3.msra.mxu0 %v8298_v21  ;;  %25517 = vmatpush3.msra.mxu1 %v8669_v31 }
 0x465   :  { %25493 = vmatprep.mubr.msk.f32.mxu0 %vm26835_vm0, %v33523_v34  ;;  %25501 = vmatprep.subr.mxu0 %v33523_v34  ;;  %v8706_v4 = vand.u32 4294901760, %v8705_v17 }
 0x466   :  { %25518 = vmatprep.mubr.msk.f32.mxu1 %vm26835_vm0, %v33523_v34  ;;  %25526 = vmatprep.subr.mxu1 %v33523_v34 }
 0x467   :  { %25494 = vmatmul.mubr.f32.vlgmr.msra.gmra.mxu0 %v8255_v11  ;;  %25519 = vmatmul.mubr.f32.vlgmr.msra.gmra.mxu1 %v8706_v4  ;;  %v8707_v0 = vsub.f32 %v8705_v17, %v8706_v4 }
 0x468   :  { %25502 = vmatpush3.msra.mxu0 %v8669_v31  ;;  %25527 = vmatpush3.msra.mxu1 %v8669_v31 }
 0x469   :  { %25503 = vmatprep.mubr.msk.f32.mxu0 %vm26835_vm0, %v33523_v34  ;;  %25511 = vmatprep.subr.mxu0 %v33523_v34  ;;  %v8708_v30 = vand.u32 4294901760, %v8707_v0 }
 0x46a   :  { %25528 = vmatprep.mubr.msk.f32.mxu1 %vm26835_vm0, %v33523_v34 }
 0x46b   :  { %25504 = vmatmul.mubr.f32.vlgmr.msra.gmra.mxu0 %v8708_v30  ;;  %25529 = vmatmul.mubr.f32.vlgmr.msra.gmra.mxu1 %v8704_v46 }
 0x46c   :  { %25512 = vmatpush3.msra.mxu0 %v8746_v19  ;;  %25513 = vmatprep.mubr.msk.f32.mxu0 %vm26835_vm0, %v33523_v34 }
 0x46d   :  { %25521 = vmatprep.subr.mxu0 %v33523_v34 }
 0x46f   :  { %25514 = vmatmul.mubr.f32.vlgmr.msra.gmra.mxu0 %v8705_v17 }
 0x470   :  { %25522 = vmatpush3.msra.mxu0 %v8747_v59  ;;  %25523 = vmatprep.mubr.msk.f32.mxu0 %vm26835_vm0, %v33523_v34 }
 0x473   :  { %25524 = vmatmul.mubr.f32.vlgmr.msra.gmra.mxu0 %v8704_v46 }
 0x4be   :  { %v6092_v42 = vpop.f32.mrf.mxu1 }
 0x4c0   :  { %v25330_v28 = vpop.f32.mrf.mxu1 }
 0x4c2   :  { %v6240_v14 = vpop.f32.mrf.mxu1 }
 0x4c4   :  { %v25340_v33 = vpop.f32.mrf.mxu1 }
 0x4c6   :  { %v6016_v10 = vpop.f32.mrf.mxu0  ;;  %v6386_v50 = vpop.f32.mrf.mxu1 }
 0x4c7   :  { %v6093_v40 = vadd.f32 %v6092_v42, %v6016_v10 }
 0x4c8   :  { %v25325_v38 = vpop.f32.mrf.mxu0  ;;  %v25350_v39 = vpop.f32.mrf.mxu1 }
 0x4ca   :  { %v6166_v23 = vpop.f32.mrf.mxu0  ;;  %v6541_v56 = vpop.f32.mrf.mxu1 }
 0x4cb   :  { %v6167_v24 = vadd.f32 %v6166_v23, %v6093_v40 }
 0x4cc   :  { %v25335_v36 = vpop.f32.mrf.mxu0  ;;  %v25360_v60 = vpop.f32.mrf.mxu1 }
 0x4cd   :  { %v6241_v55 = vadd.f32 %v6240_v14, %v6167_v24  ;;  %v9131_v24 = vld [vmem:[#allocation4 + $0x78] sm:$0xff]  ;;  %v9130_v36 = vld [vmem:[#allocation4 + $0x70] sm:$0xff]  ;;  %v9129_v60 = vld [vmem:[#allocation4 + $0x68] sm:$0xff] }
 0x4ce   :  { %v6314_v45 = vpop.f32.mrf.mxu0  ;;  %v6689_v16 = vpop.f32.mrf.mxu1 }
 0x4cf   :  { %v6315_v21 = vadd.f32 %v6314_v45, %v6241_v55  ;;  %v28524_v45 = vand.u32 4294901760, %v9131_v24 }
 0x4d0   :  { %v25345_v43 = vpop.f32.mrf.mxu0  ;;  %v25370_v25 = vpop.f32.mrf.mxu1 }
 0x4d1   :  { %v6387_v6 = vadd.f32 %v6386_v50, %v6315_v21  ;;  %v28528_v21 = vand.u32 4294901760, %v9129_v60  ;;  %v9128_v43 = vld [vmem:[#allocation4 + $0x60] sm:$0xff]  ;;  %v9127_v25 = vld [vmem:[#allocation4 + $0x58] sm:$0xff]  ;;  %25531 = vmatprep.subr.mxu0 %v28524_v45 }
 0x4d2   :  { %v6465_v2 = vpop.f32.mrf.mxu0  ;;  %v6835_v44 = vpop.f32.mrf.mxu1  ;;  %25532 = vmatpush3.msra.mxu0 %v28524_v45 }
 0x4d3   :  { %9085 = vrot.lane.b32.xlu1 %v6387_v6, %s26838_s21  ;;  %v6542_v47 = vadd.f32 %v6541_v56, %v6465_v2  ;;  %v9126_v6 = vld [vmem:[#allocation4 + $0x50] sm:$0xff] }
 0x4d4   :  { %v25355_v58 = vpop.f32.mrf.mxu0  ;;  %v25380_v15 = vpop.f32.mrf.mxu1 }
 0x4d5   :  { %v28530_v58 = vand.u32 4294901760, %v9128_v43  ;;  %v28532_v15 = vand.u32 4294901760, %v9127_v25 }
 0x4d6   :  { %v6615_v9 = vpop.f32.mrf.mxu0 }
 0x4d7   :  { %v6616_v54 = vadd.f32 %v6615_v9, %v6542_v47  ;;  %v28534_v47 = vand.u32 4294901760, %v9126_v6  ;;  %v9125_v9 = vld [vmem:[#allocation4 + $0x48] sm:$0xff] }
 0x4d8   :  { %v25365_v27 = vpop.f32.mrf.mxu0 }
 0x4d9   :  { %v6690_v7 = vadd.f32 %v6689_v16, %v6616_v54  ;;  %v28526_v16 = vand.u32 4294901760, %v9130_v36  ;;  %v28537_v27 = vsub.f32 %v9131_v24, %v28524_v45 }
 0x4da   :  { %v6763_v32 = vpop.f32.mrf.mxu0 }
 0x4db   :  { %v6764_v31 = vadd.f32 %v6763_v32, %v6690_v7  ;;  %v28540_v7 = vsub.f32 %v9130_v36, %v28526_v16  ;;  %v28543_v32 = vsub.f32 %v9129_v60, %v28528_v21  ;;  %25533 = vmatprep.subr.mxu0 %v28526_v16 }
 0x4dc   :  { %v25375_v51 = vpop.f32.mrf.mxu0  ;;  %25534 = vmatpush3.msra.mxu0 %v28526_v16 }
 0x4dd   :  { %v6836_v5 = vadd.f32 %v6835_v44, %v6764_v31  ;;  %v28546_v31 = vand.u32 4294901760, %v9125_v9  ;;  %v9124_v51 = vld [vmem:[#allocation4 + $0x40] sm:$0xff]  ;;  %25535 = vmatprep.subr.mxu0 %v28528_v21 }
 0x4de   :  { %v6914_v11 = vpop.f32.mrf.mxu0  ;;  %v6990_v19 = vpop.f32.mrf.mxu1  ;;  %25536 = vmatpush3.msra.mxu0 %v28528_v21 }
 0x4df   :  { %9089 = vrot.lane.b32.xlu1 %v6836_v5, %s26836_s19  ;;  %v6991_v29 = vadd.f32 %v6990_v19, %v6914_v11  ;;  %v28549_v11 = vsub.f32 %v9128_v43, %v28530_v58  ;;  %v28552_v19 = vsub.f32 %v9127_v25, %v28532_v15  ;;  %25537 = vmatprep.subr.mxu0 %v28530_v58 }
 0x4e0   :  { %v25385_v18 = vpop.f32.mrf.mxu0  ;;  %v25390_v61 = vpop.f32.mrf.mxu1  ;;  %25538 = vmatpush3.msra.mxu0 %v28530_v58 }
 0x4e1   :  { %v28556_v18 = vsub.f32 %v9126_v6, %v28534_v47  ;;  %25539 = vmatprep.subr.mxu0 %v28532_v15 }
 0x4e2   :  { %v7064_v59 = vpop.f32.mrf.mxu0  ;;  %25540 = vmatpush3.msra.mxu0 %v28532_v15 }
 0x4e3   :  { %v7065_v63 = vadd.f32 %v7064_v59, %v6991_v29  ;;  %v7138_v12 = vpop.f32.mrf.mxu1  ;;  %v28559_v59 = vand.u32 4294901760, %v28537_v27  ;;  %25541 = vmatprep.subr.mxu0 %v28534_v47 }
 0x4e4   :  { %v25395_v8 = vpop.f32.mrf.mxu0  ;;  %25542 = vmatpush3.msra.mxu0 %v28534_v47 }
 0x4e5   :  { %v7139_v22 = vadd.f32 %v7138_v12, %v7065_v63  ;;  %v25400_v62 = vpop.f32.mrf.mxu1  ;;  %v28562_v63 = vand.u32 4294901760, %v28540_v7  ;;  %v28565_v12 = vand.u32 4294901760, %v28543_v32  ;;  %25543 = vmatprep.subr.mxu0 %v28546_v31 }
 0x4e6   :  { %v7212_v3 = vpop.f32.mrf.mxu0  ;;  %v28572_v62 = vand.u32 4294901760, %v28552_v19  ;;  %25544 = vmatpush3.msra.mxu0 %v28546_v31 }
 0x4e7   :  { %v7213_v52 = vadd.f32 %v7212_v3, %v7139_v22  ;;  %v7284_v57 = vpop.f32.mrf.mxu1  ;;  %v28569_v22 = vand.u32 4294901760, %v28549_v11  ;;  %v28576_v3 = vsub.f32 %v9125_v9, %v28546_v31 }
 0x4e8   :  { %v25405_v41 = vpop.f32.mrf.mxu0 }
 0x4e9   :  { %v7285_v13 = vadd.f32 %v7284_v57, %v7213_v52  ;;  %v25410_v35 = vpop.f32.mrf.mxu1  ;;  %v28578_v52 = vand.u32 4294901760, %v9124_v51 }
 0x4ea   :  { %v7363_v1 = vpop.f32.mrf.mxu0  ;;  %v9251_v35 = vsub.f32 %v28540_v7, %v28562_v63 }
 0x4eb   :  { %v7439_v49 = vpop.f32.mrf.mxu1  ;;  %9093 = vrot.lane.b32.xlu1 %v7285_v13, %s26837_s20  ;;  %v9244_v13 = vsub.f32 %v28537_v27, %v28559_v59  ;;  %25545 = vmatprep.subr.mxu0 %v28578_v52 }
 0x4ec   :  { %v7440_v46 = vadd.f32 %v7439_v49, %v7363_v1  ;;  %v25415_v17 = vpop.f32.mrf.mxu0  ;;  %v9258_v1 = vsub.f32 %v28543_v32, %v28565_v12  ;;  %25546 = vmatpush3.msra.mxu0 %v28578_v52 }
 0x4ed   :  { %v25420_v4 = vpop.f32.mrf.mxu1  ;;  %v9123_v17 = vld [vmem:[#allocation4 + $0x38] sm:$0xff] }
 0x4ee   :  { %v7513_v0 = vpop.f32.mrf.mxu0 }
 0x4ef   :  { %v7514_v30 = vadd.f32 %v7513_v0, %v7440_v46  ;;  %v7587_v42 = vpop.f32.mrf.mxu1  ;;  %v28588_v46 = vand.u32 4294901760, %v28556_v18 }
 0x4f0   :  { %v25425_v28 = vpop.f32.mrf.mxu0 }
 0x4f1   :  { %v7588_v14 = vadd.f32 %v7587_v42, %v7514_v30  ;;  %v25430_v33 = vpop.f32.mrf.mxu1  ;;  %v9245_v30 = vand.u32 4294901760, %v9244_v13  ;;  %v9252_v42 = vand.u32 4294901760, %v9251_v35  ;;  %v9265_v28 = vsub.f32 %v28549_v11, %v28569_v22 }
 0x4f2   :  { %v7661_v10 = vpop.f32.mrf.mxu0  ;;  %v9272_v33 = vsub.f32 %v28552_v19, %v28572_v62  ;;  %v9279_v36 = vsub.f32 %v28556_v18, %v28588_v46 }
 0x4f3   :  { %v7662_v50 = vadd.f32 %v7661_v10, %v7588_v14  ;;  %v7733_v38 = vpop.f32.mrf.mxu1  ;;  %v28597_v10 = vand.u32 4294901760, %v28576_v3  ;;  %25566 = vmatprep.subr.mxu1 %v9245_v30  ;;  %v9266_v24 = vand.u32 4294901760, %v9265_v28 }
 0x4f4   :  { %v25435_v39 = vpop.f32.mrf.mxu0  ;;  %25567 = vmatpush3.msra.mxu1 %v9245_v30  ;;  %v9273_v43 = vand.u32 4294901760, %v9272_v33  ;;  %v9119_v30 = vld [vmem:[#allocation4 + $0x18] sm:$0xff] }
 0x4f5   :  { %v28522_v40 = vadd.f32 %v7733_v38, %v7662_v50  ;;  %v25440_v23 = vpop.f32.mrf.mxu1  ;;  %v9259_v39 = vand.u32 4294901760, %v9258_v1  ;;  %25568 = vmatprep.subr.mxu1 %v9252_v42  ;;  %v9286_v25 = vsub.f32 %v28576_v3, %v28597_v10  ;;  %v9120_v1 = vld [vmem:[#allocation4 + $0x20] sm:$0xff] }
 0x4f6   :  { %v7812_v56 = vpop.f32.mrf.mxu0  ;;  %v28601_v23 = vsub.f32 %v9124_v51, %v28578_v52  ;;  %25569 = vmatpush3.msra.mxu1 %v9252_v42 }
 0x4f7   :  { %v7888_v55 = vpop.f32.mrf.mxu1  ;;  %25570 = vmatprep.subr.mxu1 %v9259_v39  ;;  %v9287_v9 = vand.u32 4294901760, %v9286_v25 }
 0x4f8   :  { %v7889_v2 = vadd.f32 %v7888_v55, %v7812_v56  ;;  %v25445_v44 = vpop.f32.mrf.mxu0  ;;  %v28604_v56 = vand.u32 4294901760, %v9123_v17  ;;  %v28611_v60 = vand.u32 4294901760, %v28601_v23  ;;  %25571 = vmatpush3.msra.mxu1 %v9259_v39 }
 0x4f9   :  { %v25450_v54 = vpop.f32.mrf.mxu1  ;;  %25572 = vmatprep.subr.mxu1 %v9266_v24 }
 0x4fa   :  { %v7962_v5 = vpop.f32.mrf.mxu0  ;;  %v28614_v55 = vsub.f32 %v9123_v17, %v28604_v56  ;;  %v9293_v44 = vsub.f32 %v28601_v23, %v28611_v60  ;;  %25573 = vmatpush3.msra.mxu1 %v9266_v24  ;;  %25547 = vmatprep.subr.mxu0 %v28604_v56 }
 0x4fb   :  { %v7963_v61 = vadd.f32 %v7962_v5, %v7889_v2  ;;  %v8036_v29 = vpop.f32.mrf.mxu1  ;;  %v9280_v2 = vand.u32 4294901760, %v9279_v36  ;;  %25574 = vmatprep.subr.mxu1 %v9273_v43  ;;  %25548 = vmatpush3.msra.mxu0 %v28604_v56 }
 0x4fc   :  { %v25455_v8 = vpop.f32.mrf.mxu0  ;;  %v28620_v6 = vand.u32 4294901760, %v28614_v55  ;;  %25575 = vmatpush3.msra.mxu1 %v9273_v43  ;;  %v9294_v51 = vand.u32 4294901760, %v9293_v44  ;;  %v9117_v44 = vld [vmem:[#allocation4 + $0x8] sm:$0xff] }
 0x4fd   :  { %v8037_v57 = vadd.f32 %v8036_v29, %v7963_v61  ;;  %v25460_v41 = vpop.f32.mrf.mxu1  ;;  %25576 = vmatprep.subr.mxu1 %v9280_v2  ;;  %v9122_v61 = vld [vmem:[#allocation4 + $0x30] sm:$0xff] }
 0x4fe   :  { %v8110_v49 = vpop.f32.mrf.mxu0  ;;  %v9300_v54 = vsub.f32 %v28614_v55, %v28620_v6  ;;  %25577 = vmatpush3.msra.mxu1 %v9280_v2  ;;  %v28633_v8 = vand.u32 4294901760, %v9122_v61 }
 0x4ff   :  { %v8111_v4 = vadd.f32 %v8110_v49, %v8037_v57  ;;  %v8182_v0 = vpop.f32.mrf.mxu1  ;;  %25578 = vmatprep.subr.mxu1 %v9287_v9  ;;  %v9121_v57 = vld [vmem:[#allocation4 + $0x28] sm:$0xff] }
 0x500   :  { %v25465_v14 = vpop.f32.mrf.mxu0  ;;  %v9301_v5 = vand.u32 4294901760, %v9300_v54  ;;  %25579 = vmatpush3.msra.mxu1 %v9287_v9  ;;  %v28636_v13 = vsub.f32 %v9122_v61, %v28633_v8  ;;  %v28638_v35 = vand.u32 4294901760, %v9121_v57  ;;  %25549 = vmatprep.subr.mxu0 %v28633_v8  ;;  %v28675_v54 = vand.u32 4294901760, %v9117_v44 }
 0x501   :  { %v8183_v50 = vadd.f32 %v8182_v0, %v8111_v4  ;;  %v25470_v38 = vpop.f32.mrf.mxu1  ;;  %25580 = vmatprep.subr.mxu1 %v9294_v51  ;;  %25550 = vmatpush3.msra.mxu0 %v28633_v8  ;;  %v28648_v0 = vand.u32 4294901760, %v9120_v1 }
 0x502   :  { %25581 = vmatpush3.msra.mxu1 %v9294_v51  ;;  %v28643_v17 = vand.u32 4294901760, %v28636_v13  ;;  %v28646_v4 = vsub.f32 %v9121_v57, %v28638_v35  ;;  %25551 = vmatprep.subr.mxu0 %v28638_v35  ;;  %v9118_v38 = vld [vmem:[#allocation4 + $0x10] sm:$0xff] }
 0x503   :  { %9102 = vrot.lane.b32.xlu0 %v8183_v50, %s26838_s21  ;;  %25582 = vmatprep.subr.mxu1 %v9301_v5  ;;  %v28658_v33 = vsub.f32 %v9120_v1, %v28648_v0  ;;  %v28660_v50 = vand.u32 4294901760, %v9119_v30  ;;  %v28673_v9 = vand.u32 4294901760, %v9118_v38 }
 0x504   :  { %25583 = vmatpush3.msra.mxu1 %v9301_v5  ;;  %25552 = vmatpush3.msra.mxu0 %v28638_v35  ;;  %v9307_v28 = vsub.f32 %v28636_v13, %v28643_v17  ;;  %v28655_v14 = vand.u32 4294901760, %v28646_v4 }
 0x505   :  { %25553 = vmatprep.subr.mxu0 %v28648_v0  ;;  %v28667_v25 = vand.u32 4294901760, %v28658_v33  ;;  %v28670_v2 = vsub.f32 %v9119_v30, %v28660_v50  ;;  %v28684_v30 = vsub.f32 %v9118_v38, %v28673_v9 }
 0x506   :  { %25554 = vmatpush3.msra.mxu0 %v28648_v0  ;;  %v9308_v36 = vand.u32 4294901760, %v9307_v28  ;;  %v9314_v43 = vsub.f32 %v28646_v4, %v28655_v14  ;;  %v9116_v28 = vld [vmem:[#allocation4] sm:$0xff] }
 0x507   :  { %33588 = vst [vmem:[#allocation16_spill] sm:$0xff] %v28667_v25  ;;  %25555 = vmatprep.subr.mxu0 %v28660_v50  ;;  %v9321_v57 = vsub.f32 %v28658_v33, %v28667_v25  ;;  %v28692_v48 = vand.u32 4294901760, %v9116_v28  ;;  %v28696_v38 = vand.u32 4294901760, %v28684_v30 }
 0x508   :  { %25556 = vmatpush3.msra.mxu0 %v28660_v50  ;;  %25584 = vmatprep.subr.mxu1 %v9308_v36  ;;  %v9315_v61 = vand.u32 4294901760, %v9314_v43 }
 0x509   :  { %25585 = vmatpush3.msra.mxu1 %v9308_v36  ;;  %25557 = vmatprep.subr.mxu0 %v28673_v9  ;;  %v9322_v43 = vand.u32 4294901760, %v9321_v57  ;;  %33590 = vst [vmem:[#allocation19_spill] sm:$0xff] %v28696_v38  ;;  %v28703_v26 = vsub.f32 %v9116_v28, %v28692_v48 }
 0x50a   :  { %25586 = vmatprep.subr.mxu1 %v9315_v61  ;;  %25558 = vmatpush3.msra.mxu0 %v28673_v9 }
 0x50b   :  { %25587 = vmatpush3.msra.mxu1 %v9315_v61  ;;  %25559 = vmatprep.subr.mxu0 %v28675_v54  ;;  %v9335_v61 = vsub.f32 %v28684_v30, %v28696_v38 }
 0x50c   :  { %25588 = vmatprep.subr.mxu1 %v9322_v43  ;;  %25560 = vmatpush3.msra.mxu0 %v28675_v54 }
 0x50d   :  { %25589 = vmatpush3.msra.mxu1 %v9322_v43  ;;  %25561 = vmatprep.subr.mxu0 %v28692_v48 }
 0x50e   :  { %25562 = vmatpush3.msra.mxu0 %v28692_v48 }
 0x50f   :  { %25601 = vmatprep.subr.mxu0 %v28537_v27 }
 0x517   :  { %v8337_v29 = vpop.f32.mrf.mxu1 }
 0x519   :  { %v25480_v41 = vpop.f32.mrf.mxu1 }
 0x51a   :  { %v28681_v41 = vand.u32 4294901760, %v28670_v2 }
 0x51b   :  { %v8485_v49 = vpop.f32.mrf.mxu1 }
 0x51c   :  { %33589 = vst [vmem:[#allocation18_spill] sm:$0xff] %v28681_v41  ;;  %v9328_v53 = vsub.f32 %v28670_v2, %v28681_v41 }
 0x51d   :  { %v25490_v42 = vpop.f32.mrf.mxu1 }
 0x51e   :  { %v28687_v42 = vsub.f32 %v9117_v44, %v28675_v54  ;;  %v9329_v57 = vand.u32 4294901760, %v9328_v53  ;;  %v28712_v53 = vand.u32 4294901760, %v28703_v26 }
 0x51f   :  { %v8261_v39 = vpop.f32.mrf.mxu0  ;;  %v8631_v24 = vpop.f32.mrf.mxu1 }
 0x520   :  { %v8338_v1 = vadd.f32 %v8337_v29, %v8261_v39  ;;  %v28699_v39 = vand.u32 4294901760, %v28687_v42  ;;  %25590 = vmatprep.subr.mxu1 %v9329_v57  ;;  %33592 = vst [vmem:[#allocation24_spill] sm:$0xff] %v28712_v53 }
 0x521   :  { %v25475_v51 = vpop.f32.mrf.mxu0  ;;  %v25500_v5 = vpop.f32.mrf.mxu1  ;;  %25591 = vmatpush3.msra.mxu1 %v9329_v57 }
 0x522   :  { %33591 = vst [vmem:[#allocation20_spill] sm:$0xff] %v28699_v39 }
 0x523   :  { %v8411_v51 = vpop.f32.mrf.mxu0  ;;  %v8786_v5 = vpop.f32.mrf.mxu1 }
 0x524   :  { %v8412_v29 = vadd.f32 %v8411_v51, %v8338_v1  ;;  %v9342_v1 = vsub.f32 %v28687_v42, %v28699_v39  ;;  %v9349_v39 = vsub.f32 %v28703_v26, %v28712_v53 }
 0x525   :  { %v25485_v36 = vpop.f32.mrf.mxu0  ;;  %v25510_v44 = vpop.f32.mrf.mxu1 }
 0x526   :  { %v8486_v37 = vadd.f32 %v8485_v49, %v8412_v29  ;;  %v9336_v49 = vand.u32 4294901760, %v9335_v61  ;;  %v9343_v43 = vand.u32 4294901760, %v9342_v1  ;;  %v9350_v25 = vand.u32 4294901760, %v9349_v39 }
 0x527   :  { %v8559_v51 = vpop.f32.mrf.mxu0  ;;  %v8934_v36 = vpop.f32.mrf.mxu1 }
 0x528   :  { %v8560_v28 = vadd.f32 %v8559_v51, %v8486_v37  ;;  %25592 = vmatprep.subr.mxu1 %v9336_v49 }
 0x529   :  { %v25495_v29 = vpop.f32.mrf.mxu0  ;;  %v25520_v44 = vpop.f32.mrf.mxu1  ;;  %25593 = vmatpush3.msra.mxu1 %v9336_v49 }
 0x52a   :  { %v8632_v34 = vadd.f32 %v8631_v24, %v8560_v28  ;;  %25594 = vmatprep.subr.mxu1 %v9343_v43 }
 0x52b   :  { %v8710_v38 = vpop.f32.mrf.mxu0  ;;  %v9080_v41 = vpop.f32.mrf.mxu1  ;;  %25595 = vmatpush3.msra.mxu1 %v9343_v43 }
 0x52c   :  { %9106 = vrot.lane.b32.xlu0 %v8632_v34, %s26836_s19  ;;  %v8787_v61 = vadd.f32 %v8786_v5, %v8710_v38  ;;  %25596 = vmatprep.subr.mxu1 %v9350_v25 }
 0x52d   :  { %v25505_v37 = vpop.f32.mrf.mxu0  ;;  %v25530_v57 = vpop.f32.mrf.mxu1  ;;  %25597 = vmatpush3.msra.mxu1 %v9350_v25 }
 0x52e   :  { %25636 = vmatprep.subr.mxu1 %v28524_v45 }
 0x52f   :  { %v8860_v1 = vpop.f32.mrf.mxu0 }
 0x530   :  { %v8861_v51 = vadd.f32 %v8860_v1, %v8787_v61 }
 0x531   :  { %v25515_v29 = vpop.f32.mrf.mxu0 }
 0x532   :  { %v8935_v24 = vadd.f32 %v8934_v36, %v8861_v51 }
 0x533   :  { %v9008_v28 = vpop.f32.mrf.mxu0 }
 0x534   :  { %v9009_v44 = vadd.f32 %v9008_v28, %v8935_v24 }
 0x535   :  { %v25525_v53 = vpop.f32.mrf.mxu0 }
 0x536   :  { %v9081_v49 = vadd.f32 %v9080_v41, %v9009_v44 }
 0x538   :  { %9110 = vrot.lane.b32.xlu1 %v9081_v49, %s26837_s20 }
 0x545   :  { %v9086_v34 = vpop.permute.xlu1 %9085 }
 0x546   :  { %v9096_v5 = vsel %vm1802_vm1, %v28491_v20, %v9086_v34 }
 0x551   :  { %v9090_v39 = vpop.permute.xlu1 %9089 }
 0x552   :  { %v9098_v25 = vsel %vm9097_vm3, %v9096_v5, %v9090_v39  ;;  %v9892_v39 = vld [vmem:[#allocation6 + $0xd0] sm:$0xff] }
 0x55d   :  { %v9094_v38 = vpop.permute.xlu1 %9093 }
 0x55e   :  { %v9100_v43 = vsel %vm9099_vm4, %v9098_v25, %v9094_v38  ;;  %v28896_v38 = vand.u32 4294901760, %v9892_v39 }
 0x55f   :  { %v28725_v37 = vand.u32 4294901760, %v9100_v43 }
 0x561   :  { %v9221_v36 = vsub.f32 %v9100_v43, %v28725_v37  ;;  %25598 = vmatprep.mubr.f32.mxu1 %v28725_v37  ;;  %v9891_v43 = vld [vmem:[#allocation6 + $0xc8] sm:$0xff] }
 0x563   :  { %v9222_v41 = vand.u32 4294901760, %v9221_v36 }
 0x565   :  { %v9223_v53 = vsub.f32 %v9221_v36, %v9222_v41 }
 0x567   :  { %v9224_v57 = vand.u32 4294901760, %v9223_v53  ;;  %v28907_v53 = vand.u32 4294901760, %v9891_v43 }
 0x569   :  { %25563 = vmatprep.mubr.f32.mxu0 %v9224_v57 }
 0x575   :  { %v9103_v61 = vpop.permute.xlu0 %9102 }
 0x576   :  { %v9113_v20 = vsel %vm1802_vm1, %v28522_v40, %v9103_v61 }
 0x59e   :  { %v9107_v1 = vpop.permute.xlu0 %9106 }
 0x59f   :  { %v9114_v51 = vsel %vm9097_vm3, %v9113_v20, %v9107_v1  ;;  %v28917_v1 = vsub.f32 %v9892_v39, %v28896_v38  ;;  %v9884_v39 = vld [vmem:[#allocation6 + $0x90] sm:$0xff] }
 0x5aa   :  { %v9111_v29 = vpop.permute.xlu1 %9110 }
 0x5ab   :  { %v9115_v24 = vsel %vm9099_vm4, %v9114_v51, %v9111_v29 }
 0x5ac   :  { %v28733_v28 = vand.u32 4294901760, %v9115_v24 }
 0x5ae   :  { %v28736_v44 = vsub.f32 %v9115_v24, %v28733_v28  ;;  %25599 = vmatmul.mubr.f32.vlgmr.msra.gmra.mxu1 %v28733_v28  ;;  %v28924_v24 = vsub.f32 %v9891_v43, %v28907_v53 }
 0x5af   :  { %25637 = vmatpush3.msra.mxu1 %v28524_v45  ;;  %25668 = vmatprep.mubr.f32.mxu1 %v9222_v41 }
 0x5b0   :  { %v9232_v49 = vand.u32 4294901760, %v28736_v44  ;;  %25638 = vmatprep.subr.mxu1 %v28526_v16 }
 0x5b1   :  { %25639 = vmatpush3.msra.mxu1 %v28526_v16 }
 0x5b2   :  { %v9233_v40 = vsub.f32 %v28736_v44, %v9232_v49  ;;  %25640 = vmatprep.subr.mxu1 %v28528_v21 }
 0x5b3   :  { %25641 = vmatpush3.msra.mxu1 %v28528_v21 }
 0x5b4   :  { %v9234_v34 = vand.u32 4294901760, %v9233_v40  ;;  %25642 = vmatprep.subr.mxu1 %v28530_v58 }
 0x5b5   :  { %25643 = vmatpush3.msra.mxu1 %v28530_v58 }
 0x5b6   :  { %25644 = vmatprep.subr.mxu1 %v28532_v15  ;;  %25564 = vmatmul.mubr.f32.vlgmr.msra.gmra.mxu0 %v9234_v34 }
 0x5b7   :  { %25602 = vmatpush3.msra.mxu0 %v28537_v27  ;;  %25645 = vmatpush3.msra.mxu1 %v28532_v15 }
 0x5b8   :  { %25603 = vmatprep.subr.mxu0 %v28540_v7  ;;  %25633 = vmatprep.mubr.f32.mxu0 %v9221_v36 }
 0x5b9   :  { %25646 = vmatprep.subr.mxu1 %v28534_v47  ;;  %25604 = vmatpush3.msra.mxu0 %v28540_v7 }
 0x5ba   :  { %25647 = vmatpush3.msra.mxu1 %v28534_v47  ;;  %25605 = vmatprep.subr.mxu0 %v28543_v32 }
 0x5bb   :  { %25648 = vmatprep.subr.mxu1 %v28546_v31  ;;  %25606 = vmatpush3.msra.mxu0 %v28543_v32 }
 0x5bc   :  { %25649 = vmatpush3.msra.mxu1 %v28546_v31  ;;  %25607 = vmatprep.subr.mxu0 %v28549_v11 }
 0x5bd   :  { %25650 = vmatprep.subr.mxu1 %v28578_v52  ;;  %25608 = vmatpush3.msra.mxu0 %v28549_v11 }
 0x5be   :  { %25651 = vmatpush3.msra.mxu1 %v28578_v52  ;;  %25609 = vmatprep.subr.mxu0 %v28552_v19 }
 0x5bf   :  { %25652 = vmatprep.subr.mxu1 %v28604_v56  ;;  %25610 = vmatpush3.msra.mxu0 %v28552_v19 }
 0x5c0   :  { %25653 = vmatpush3.msra.mxu1 %v28604_v56  ;;  %25611 = vmatprep.subr.mxu0 %v28556_v18 }
 0x5c1   :  { %25654 = vmatprep.subr.mxu1 %v28633_v8  ;;  %25612 = vmatpush3.msra.mxu0 %v28556_v18 }
 0x5c2   :  { %25655 = vmatpush3.msra.mxu1 %v28633_v8  ;;  %25613 = vmatprep.subr.mxu0 %v28576_v3 }
 0x5c3   :  { %25656 = vmatprep.subr.mxu1 %v28638_v35  ;;  %25614 = vmatpush3.msra.mxu0 %v28576_v3 }
 0x5c4   :  { %25657 = vmatpush3.msra.mxu1 %v28638_v35  ;;  %25615 = vmatprep.subr.mxu0 %v28601_v23 }
 0x5c5   :  { %25658 = vmatprep.subr.mxu1 %v28648_v0  ;;  %25616 = vmatpush3.msra.mxu0 %v28601_v23 }
 0x5c6   :  { %25659 = vmatpush3.msra.mxu1 %v28648_v0  ;;  %25617 = vmatprep.subr.mxu0 %v28614_v55 }
 0x5c7   :  { %25660 = vmatprep.subr.mxu1 %v28660_v50  ;;  %25618 = vmatpush3.msra.mxu0 %v28614_v55 }
 0x5c8   :  { %25661 = vmatpush3.msra.mxu1 %v28660_v50  ;;  %25619 = vmatprep.subr.mxu0 %v28636_v13 }
 0x5c9   :  { %25662 = vmatprep.subr.mxu1 %v28673_v9  ;;  %25620 = vmatpush3.msra.mxu0 %v28636_v13  ;;  %v26736_v13 = vld [vmem:[%s32953_s0 + $0x8] sm:$0xff] }
 0x5ca   :  { %25663 = vmatpush3.msra.mxu1 %v28673_v9  ;;  %25621 = vmatprep.subr.mxu0 %v28646_v4 }
 0x5cb   :  { %25664 = vmatprep.subr.mxu1 %v28675_v54  ;;  %25622 = vmatpush3.msra.mxu0 %v28646_v4  ;;  %v26737_v4 = vld [vmem:[%s32953_s0] sm:$0xff] }
 0x5cc   :  { %25665 = vmatpush3.msra.mxu1 %v28675_v54  ;;  %25623 = vmatprep.subr.mxu0 %v28658_v33 }
 0x5cd   :  { %25666 = vmatprep.subr.mxu1 %v28692_v48  ;;  %25624 = vmatpush3.msra.mxu0 %v28658_v33  ;;  %v9896_v33 = vld [vmem:[#allocation6 + $0xf0] sm:$0xff] }
 0x5ce   :  { %25667 = vmatpush3.msra.mxu1 %v28692_v48  ;;  %25625 = vmatprep.subr.mxu0 %v28670_v2 }
 0x5cf   :  { %25669 = vmatmul.mubr.f32.vlgmr.msra.gmra.mxu1 %v9232_v49  ;;  %25706 = vmatprep.subr.mxu1 %v28524_v45  ;;  %v33062_v49 = vand.u32 4294901760, %v28917_v1 }
 0x5d0   :  { %25626 = vmatpush3.msra.mxu0 %v28670_v2  ;;  %25707 = vmatpush3.msra.mxu1 %v28524_v45  ;;  %v33594_v45 = vld [vmem:[#allocation18_spill] sm:$0xff] }
 0x5d1   :  { %25738 = vmatprep.mubr.f32.mxu1 %v28725_v37  ;;  %25627 = vmatprep.subr.mxu0 %v28684_v30 }
 0x5d2   :  { %25708 = vmatprep.subr.mxu1 %v28526_v16  ;;  %25628 = vmatpush3.msra.mxu0 %v28684_v30  ;;  %v9894_v30 = vld [vmem:[#allocation6 + $0xe0] sm:$0xff] }
 0x5d3   :  { %25709 = vmatpush3.msra.mxu1 %v28526_v16  ;;  %25629 = vmatprep.subr.mxu0 %v28687_v42  ;;  %v33595_v16 = vld [vmem:[#allocation19_spill] sm:$0xff]  ;;  %v28892_v5 = vand.u32 4294901760, %v9894_v30 }
 0x5d4   :  { %25710 = vmatprep.subr.mxu1 %v28528_v21  ;;  %25630 = vmatpush3.msra.mxu0 %v28687_v42  ;;  %v9893_v42 = vld [vmem:[#allocation6 + $0xd8] sm:$0xff] }
 0x5d5   :  { %25711 = vmatpush3.msra.mxu1 %v28528_v21  ;;  %25631 = vmatprep.subr.mxu0 %v28703_v26  ;;  %v33596_v21 = vmov 0.0   ;;  %v28894_v25 = vand.u32 4294901760, %v9893_v42  ;;  %v28911_v57 = vsub.f32 %v9894_v30, %v28892_v5 }
 0x5d6   :  { %25712 = vmatprep.subr.mxu1 %v28530_v58  ;;  %25632 = vmatpush3.msra.mxu0 %v28703_v26  ;;  %v33593_v26 = vld [vmem:[#allocation16_spill] sm:$0xff] }
 0x5d7   :  { %25713 = vmatpush3.msra.mxu1 %v28530_v58  ;;  %25634 = vmatmul.mubr.f32.vlgmr.msra.gmra.mxu0 %v28736_v44  ;;  %v33597_v58 = vld [vmem:[#allocation20_spill] sm:$0xff]  ;;  %v28914_v61 = vsub.f32 %v9893_v42, %v28894_v25 }
 0x5d8   :  { %25671 = vmatprep.subr.mxu0 %v28559_v59  ;;  %25714 = vmatprep.subr.mxu1 %v28532_v15 }
 0x5d9   :  { %25672 = vmatpush3.msra.mxu0 %v28559_v59  ;;  %25703 = vmatprep.mubr.f32.mxu0 %v28725_v37  ;;  %v33063_v44 = vand.u32 4294901760, %v28914_v61 }
 0x5da   :  { %25715 = vmatpush3.msra.mxu1 %v28532_v15  ;;  %25673 = vmatprep.subr.mxu0 %v28562_v63  ;;  %v33598_v15 = vld [vmem:[#allocation24_spill] sm:$0xff] }
 0x5db   :  { %25716 = vmatprep.subr.mxu1 %v28534_v47  ;;  %25674 = vmatpush3.msra.mxu0 %v28562_v63 }
 0x5dc   :  { %25717 = vmatpush3.msra.mxu1 %v28534_v47  ;;  %25675 = vmatprep.subr.mxu0 %v28565_v12  ;;  %v23549_v47 = vld [vmem:[%s32957_s4] ss:$0 sm:$0xff] }
 0x5dd   :  { %25718 = vmatprep.subr.mxu1 %v28546_v31  ;;  %25676 = vmatpush3.msra.mxu0 %v28565_v12 }
 0x5de   :  { %25719 = vmatpush3.msra.mxu1 %v28546_v31  ;;  %25677 = vmatprep.subr.mxu0 %v28569_v22 }
 0x5df   :  { %25720 = vmatprep.subr.mxu1 %v28578_v52  ;;  %25678 = vmatpush3.msra.mxu0 %v28569_v22 }
 0x5e0   :  { %25721 = vmatpush3.msra.mxu1 %v28578_v52  ;;  %25679 = vmatprep.subr.mxu0 %v28572_v62 }
 0x5e1   :  { %25722 = vmatprep.subr.mxu1 %v28604_v56  ;;  %25680 = vmatpush3.msra.mxu0 %v28572_v62 }
 0x5e2   :  { %25723 = vmatpush3.msra.mxu1 %v28604_v56  ;;  %25681 = vmatprep.subr.mxu0 %v28588_v46 }
 0x5e3   :  { %25724 = vmatprep.subr.mxu1 %v28633_v8  ;;  %25682 = vmatpush3.msra.mxu0 %v28588_v46 }
 0x5e4   :  { %25725 = vmatpush3.msra.mxu1 %v28633_v8  ;;  %25683 = vmatprep.subr.mxu0 %v28597_v10 }
 0x5e5   :  { %25726 = vmatprep.subr.mxu1 %v28638_v35  ;;  %25684 = vmatpush3.msra.mxu0 %v28597_v10 }
 0x5e6   :  { %25727 = vmatpush3.msra.mxu1 %v28638_v35  ;;  %25685 = vmatprep.subr.mxu0 %v28611_v60 }
 0x5e7   :  { %25728 = vmatprep.subr.mxu1 %v28648_v0  ;;  %25686 = vmatpush3.msra.mxu0 %v28611_v60 }
 0x5e8   :  { %25729 = vmatpush3.msra.mxu1 %v28648_v0  ;;  %25687 = vmatprep.subr.mxu0 %v28620_v6 }
 0x5e9   :  { %25730 = vmatprep.subr.mxu1 %v28660_v50  ;;  %25688 = vmatpush3.msra.mxu0 %v28620_v6 }
 0x5ea   :  { %25731 = vmatpush3.msra.mxu1 %v28660_v50  ;;  %25689 = vmatprep.subr.mxu0 %v28643_v17  ;;  %v9895_v50 = vld [vmem:[#allocation6 + $0xe8] sm:$0xff] }
 0x5eb   :  { %25732 = vmatprep.subr.mxu1 %v28673_v9  ;;  %25690 = vmatpush3.msra.mxu0 %v28643_v17 }
 0x5ec   :  { %25733 = vmatpush3.msra.mxu1 %v28673_v9  ;;  %25691 = vmatprep.subr.mxu0 %v28655_v14  ;;  %v28888_v9 = vand.u32 4294901760, %v9896_v33 }
 0x5ed   :  { %25734 = vmatprep.subr.mxu1 %v28675_v54  ;;  %25692 = vmatpush3.msra.mxu0 %v28655_v14  ;;  %v9897_v14 = vld [vmem:[#allocation6 + $0xf8] sm:$0xff] }
 0x5ee   :  { %25735 = vmatpush3.msra.mxu1 %v28675_v54  ;;  %25693 = vmatprep.subr.mxu0 %v33593_v26  ;;  %v28886_v2 = vand.u32 4294901760, %v9897_v14  ;;  %v28890_v54 = vand.u32 4294901760, %v9895_v50  ;;  %v28902_v36 = vsub.f32 %v9896_v33, %v28888_v9  ;;  %v9885_v33 = vld [vmem:[#allocation6 + $0x98] sm:$0xff] }
 0x5ef   :  { %25736 = vmatprep.subr.mxu1 %v28692_v48  ;;  %25694 = vmatpush3.msra.mxu0 %v33593_v26  ;;  %v28992_v42 = vand.u32 4294901760, %v9885_v33 }
 0x5f0   :  { %25737 = vmatpush3.msra.mxu1 %v28692_v48  ;;  %25695 = vmatprep.subr.mxu0 %v33594_v45  ;;  %v28899_v37 = vsub.f32 %v9897_v14, %v28886_v2  ;;  %v28905_v41 = vsub.f32 %v9895_v50, %v28890_v54  ;;  %v33067_v51 = vand.u32 4294901760, %v28902_v36 }
 0x5f1   :  { %25739 = vmatmul.mubr.f32.vlgmr.msra.gmra.mxu1 %v28733_v28  ;;  %25696 = vmatpush3.msra.mxu0 %v33594_v45  ;;  %v33061_v45 = vand.u32 4294901760, %v28924_v24 }
 0x5f2   :  { %25697 = vmatprep.subr.mxu0 %v33595_v16  ;;  %10253 = vmatprep.mubr.f32.mxu1 %v33596_v21  ;;  %v33069_v20 = vand.u32 4294901760, %v28899_v37  ;;  %v33066_v29 = vand.u32 4294901760, %v28905_v41  ;;  %v10038_v34 = vsub.f32 %v28902_v36, %v33067_v51  ;;  %v9872_v51 = vld [vmem:[#allocation6 + $0x30] sm:$0xff] }
 0x5f3   :  { %25698 = vmatpush3.msra.mxu0 %v33595_v16 }
 0x5f4   :  { %25699 = vmatprep.subr.mxu0 %v33597_v58  ;;  %v10032_v40 = vsub.f32 %v28899_v37, %v33069_v20  ;;  %v10044_v26 = vsub.f32 %v28905_v41, %v33066_v29 }
 0x5f5   :  { %25700 = vmatpush3.msra.mxu0 %v33597_v58  ;;  %v10056_v58 = vsub.f32 %v28914_v61, %v33063_v44 }
 0x5f6   :  { %25701 = vmatprep.subr.mxu0 %v33598_v15 }
 0x5f7   :  { %25702 = vmatpush3.msra.mxu0 %v33598_v15  ;;  %v10062_v15 = vsub.f32 %v28917_v1, %v33062_v49 }
 0x5f8   :  { %25704 = vmatmul.mubr.f32.vlgmr.msra.gmra.mxu0 %v28733_v28  ;;  %9911 = vmatprep.subr.mxu0 %v28886_v2  ;;  %v33065_v28 = vand.u32 4294901760, %v28911_v57 }
 0x5f9   :  { %10006 = vmatprep.mubr.f32.mxu0 %v33596_v21  ;;  %9913 = vmatpush1.msra.mxu0 %v28888_v9 }
 0x5fa   :  { %9915 = vmatprep.subr.mxu0 %v28890_v54  ;;  %v10050_v16 = vsub.f32 %v28911_v57, %v33065_v28 }
 0x5fb   :  { %9917 = vmatpush1.msra.mxu0 %v28892_v5 }
 0x5fc   :  { %9919 = vmatprep.subr.mxu0 %v28894_v25 }
 0x5fd   :  { %9921 = vmatpush1.msra.mxu0 %v28896_v38 }
 0x5fe   :  { %9923 = vmatprep.subr.mxu0 %v28907_v53 }
 0x66e   :  { %v25600_v27 = vpop.f32.mrf.mxu1 }
 0x670   :  { %v9387_v19 = vpop.f32.mrf.mxu1 }
 0x676   :  { %v25565_v48 = vpop.f32.mrf.mxu0 }
 0x677   :  { %v9237_v32 = vadd.f32 %v25565_v48, %v23549_v47  ;;  %v10033_v48 = vand.u32 4294901760, %v10032_v40 }
 0x678   :  { %v9226_v7 = vpop.f32.mrf.mxu0 }
 0x679   :  { %v9227_v11 = vadd.f32 %v23549_v47, %v9226_v7  ;;  %v9394_v18 = vadd.f32 %v25600_v27, %v9237_v32  ;;  %v10039_v47 = vand.u32 4294901760, %v10038_v34  ;;  %v10045_v27 = vand.u32 4294901760, %v10044_v26  ;;  %10034 = vmatprep.subr.mxu1 %v10033_v48 }
 0x67a   :  { %v10068_v7 = vsub.f32 %v28924_v24, %v33061_v45  ;;  %v10051_v32 = vand.u32 4294901760, %v10050_v16  ;;  %v29002_v26 = vand.u32 4294901760, %v9884_v39  ;;  %v9883_v16 = vld [vmem:[#allocation6 + $0x88] sm:$0xff]  ;;  %v29010_v48 = vsub.f32 %v9885_v33, %v28992_v42  ;;  %v9874_v45 = vld [vmem:[#allocation6 + $0x40] sm:$0xff] }
 0x67b   :  { %v9388_v22 = vadd.f32 %v9387_v19, %v9227_v11  ;;  %10040 = vmatpush1.msra.mxu1 %v10039_v47  ;;  %v10063_v11 = vand.u32 4294901760, %v10062_v15  ;;  %v29012_v47 = vand.u32 4294901760, %v9883_v16  ;;  %v29115_v20 = vand.u32 4294901760, %v9874_v45 }
 0x67c   :  { %10046 = vmatprep.subr.mxu1 %v10045_v27  ;;  %v10069_v19 = vand.u32 4294901760, %v10068_v7  ;;  %v9882_v27 = vld [vmem:[#allocation6 + $0x80] sm:$0xff] }
 0x67d   :  { %10052 = vmatpush1.msra.mxu1 %v10051_v32  ;;  %33606 = vst [vmem:[#allocation21_spill] sm:$0xff] %v29115_v20 }
 0x68f   :  { %v25670_v59 = vpop.f32.mrf.mxu1 }
 0x691   :  { %v9593_v3 = vpop.f32.mrf.mxu1 }
 0x697   :  { %v25635_v31 = vpop.f32.mrf.mxu0 }
 0x698   :  { %v9505_v12 = vadd.f32 %v25635_v31, %v9394_v18  ;;  %v10057_v31 = vand.u32 4294901760, %v10056_v58 }
 0x699   :  { %v9497_v63 = vpop.f32.mrf.mxu0 }
 0x69a   :  { %v9498_v62 = vadd.f32 %v9497_v63, %v9388_v22  ;;  %v9602_v52 = vadd.f32 %v25670_v59, %v9505_v12  ;;  %10058 = vmatprep.subr.mxu1 %v10057_v31 }
 0x69b   :  { %10064 = vmatpush1.msra.mxu1 %v10063_v11  ;;  %v29020_v11 = vsub.f32 %v9884_v39, %v29002_v26 }
 0x69c   :  { %v9594_v56 = vadd.f32 %v9593_v3, %v9498_v62  ;;  %10070 = vmatprep.subr.mxu1 %v10069_v19  ;;  %v9881_v19 = vld [vmem:[#allocation6 + $0x78] sm:$0xff] }
 0x6b1   :  { %v25740_v46 = vpop.f32.mrf.mxu1 }
 0x6b3   :  { %v9813_v8 = vpop.f32.mrf.mxu1 }
 0x6b8   :  { %v25705_v10 = vpop.f32.mrf.mxu0 }
 0x6b9   :  { %v9727_v23 = vadd.f32 %v25705_v10, %v9602_v52  ;;  %v9890_v52 = vld [vmem:[#allocation6 + $0xc0] sm:$0xff]  ;;  %v9889_v10 = vld [vmem:[#allocation6 + $0xb8] sm:$0xff] }
 0x6ba   :  { %v9720_v60 = vpop.f32.mrf.mxu0 }
 0x6bb   :  { %v9820_v55 = vadd.f32 %v25740_v46, %v9727_v23  ;;  %v9721_v6 = vadd.f32 %v9720_v60, %v9594_v56  ;;  %v28963_v46 = vand.u32 4294901760, %v9890_v52  ;;  %v28967_v56 = vand.u32 4294901760, %v9889_v10  ;;  %v9888_v60 = vld [vmem:[#allocation6 + $0xb0] sm:$0xff] }
 0x6bd   :  { %v28880_v35 = vadd.f32 %v26736_v13, %v9820_v55  ;;  %v9814_v17 = vadd.f32 %v9813_v8, %v9721_v6  ;;  %v28970_v55 = vsub.f32 %v9890_v52, %v28963_v46  ;;  %v28972_v6 = vand.u32 4294901760, %v9888_v60  ;;  %v9887_v8 = vld [vmem:[#allocation6 + $0xa8] sm:$0xff]  ;;  %9925 = vmatpush1.msra.mxu0 %v28963_v46 }
 0x6be   :  { %v28976_v13 = vsub.f32 %v9889_v10, %v28967_v56  ;;  %9927 = vmatprep.subr.mxu0 %v28967_v56 }
 0x6bf   :  { %9829 = vadd.xlane.f32.xlu1 %v28880_v35  ;;  %v9823_v0 = vadd.f32 %v26737_v4, %v9814_v17  ;;  %v9886_v17 = vld [vmem:[#allocation6 + $0xa0] sm:$0xff]  ;;  %v33059_v4 = vand.u32 4294901760, %v28970_v55  ;;  %9929 = vmatpush1.msra.mxu0 %v28972_v6 }
 0x6c0   :  { %v28985_v14 = vand.u32 4294901760, %v9886_v17  ;;  %v33058_v50 = vand.u32 4294901760, %v28976_v13 }
 0x6c1   :  { %9827 = vadd.xlane.f32.xlu0 %v9823_v0  ;;  %v10074_v43 = vsub.f32 %v28970_v55, %v33059_v4 }
 0x6c2   :  { %v29000_v34 = vsub.f32 %v9886_v17, %v28985_v14  ;;  %v10080_v58 = vsub.f32 %v28976_v13, %v33058_v50 }
 0x6c3   :  { %v10075_v7 = vand.u32 4294901760, %v10074_v43  ;;  %v29041_v43 = vand.u32 4294901760, %v9881_v19 }
 0x6c4   :  { %v33053_v31 = vand.u32 4294901760, %v29000_v34 }
 0x6c5   :  { %10076 = vmatpush1.msra.mxu1 %v10075_v7 }
 0x6c6   :  { %v10098_v10 = vsub.f32 %v29000_v34, %v33053_v31 }
 0x748   :  { %v9830_v18 = vpop.xlane.xlu1 %9829 }
 0x749   :  { %v9833_v63 = vmul.f32 0.0078125, %v9830_v18  ;;  %v10081_v18 = vand.u32 4294901760, %v10080_v58  ;;  %v10099_v58 = vand.u32 4294901760, %v10098_v10 }
 0x74a   :  { %v9828_v59 = vpop.xlane.xlu0 %9827 }
 0x74b   :  { %v9832_v12 = vmul.f32 0.0078125, %v9828_v59  ;;  %v28959_v62 = vsub.f32 %v28880_v35, %v9833_v63  ;;  %v28978_v35 = vand.u32 4294901760, %v9887_v8  ;;  %v33052_v63 = vand.u32 4294901760, %v29010_v48  ;;  %10082 = vmatprep.subr.mxu1 %v10081_v18 }
 0x74d   :  { %v28956_v22 = vsub.f32 %v9823_v0, %v9832_v12  ;;  %v9837_v23 = vmul.f32 %v28959_v62, %v28959_v62  ;;  %v28983_v0 = vsub.f32 %v9888_v60, %v28972_v6  ;;  %v28990_v30 = vsub.f32 %v9887_v8, %v28978_v35  ;;  %9931 = vmatprep.subr.mxu0 %v28978_v35  ;;  %v9879_v8 = vld [vmem:[#allocation6 + $0x68] sm:$0xff] }
 0x74e   :  { %9933 = vmatpush1.msra.mxu0 %v28985_v14  ;;  %v29028_v12 = vsub.f32 %v9883_v16, %v29012_v47  ;;  %v29035_v60 = vand.u32 4294901760, %v9882_v27  ;;  %v10104_v33 = vsub.f32 %v29010_v48, %v33052_v63  ;;  %v9878_v16 = vld [vmem:[#allocation6 + $0x60] sm:$0xff]  ;;  %v29058_v10 = vand.u32 4294901760, %v9879_v8 }
 0x74f   :  { %v9836_v3 = vmul.f32 %v28956_v22, %v28956_v22  ;;  %v33056_v40 = vand.u32 4294901760, %v28983_v0  ;;  %v33055_v15 = vand.u32 4294901760, %v28990_v30  ;;  %9935 = vmatprep.subr.mxu0 %v28992_v42 }
 0x750   :  { %9937 = vmatpush1.msra.mxu0 %v29002_v26  ;;  %v33057_v39 = vand.u32 4294901760, %v29028_v12  ;;  %v10105_v63 = vand.u32 4294901760, %v10104_v33  ;;  %v9875_v33 = vld [vmem:[#allocation6 + $0x48] sm:$0xff]  ;;  %v29070_v50 = vsub.f32 %v9879_v8, %v29058_v10 }
 0x751   :  { %9838 = vadd.xlane.f32.xlu0 %v9836_v3  ;;  %v10086_v32 = vsub.f32 %v28983_v0, %v33056_v40  ;;  %v10092_v59 = vsub.f32 %v28990_v30, %v33055_v15  ;;  %v9880_v3 = vld [vmem:[#allocation6 + $0x70] sm:$0xff]  ;;  %9939 = vmatprep.subr.mxu0 %v29012_v47 }
 0x752   :  { %v29049_v18 = vand.u32 4294901760, %v9880_v3  ;;  %9941 = vmatpush1.msra.mxu0 %v29035_v60  ;;  %v10116_v31 = vsub.f32 %v29028_v12, %v33057_v39  ;;  %33601 = vst [vmem:[#allocation27_spill] sm:$0xff] %v29070_v50  ;;  %v33072_v8 = vand.u32 4294901760, %v29070_v50 }
 0x753   :  { %v10087_v52 = vand.u32 4294901760, %v10086_v32  ;;  %v10093_v17 = vand.u32 4294901760, %v10092_v59  ;;  %v29047_v32 = vsub.f32 %v9882_v27, %v29035_v60  ;;  %v9877_v59 = vld [vmem:[#allocation6 + $0x58] sm:$0xff]  ;;  %9943 = vmatprep.subr.mxu0 %v29041_v43 }
 0x754   :  { %v29063_v40 = vsub.f32 %v9880_v3, %v29049_v18  ;;  %9945 = vmatpush1.msra.mxu0 %v29049_v18  ;;  %v29072_v4 = vand.u32 4294901760, %v9877_v59  ;;  %v10140_v28 = vsub.f32 %v29070_v50, %v33072_v8 }
 0x755   :  { %9840 = vadd.xlane.f32.xlu0 %v9837_v23  ;;  %v33054_v23 = vand.u32 4294901760, %v29020_v11  ;;  %10088 = vmatpush1.msra.mxu1 %v10087_v52  ;;  %v29056_v52 = vsub.f32 %v9881_v19, %v29041_v43  ;;  %v33060_v15 = vand.u32 4294901760, %v29047_v32  ;;  %v10117_v19 = vand.u32 4294901760, %v10116_v31 }
 0x756   :  { %10094 = vmatprep.subr.mxu1 %v10093_v17  ;;  %33600 = vst [vmem:[#allocation26_spill] sm:$0xff] %v29063_v40  ;;  %v29065_v17 = vand.u32 4294901760, %v9878_v16  ;;  %9947 = vmatprep.subr.mxu0 %v29058_v10  ;;  %v10141_v8 = vand.u32 4294901760, %v10140_v28  ;;  %v9869_v28 = vld [vmem:[#allocation6 + $0x18] sm:$0xff] }
 0x757   :  { %v10110_v7 = vsub.f32 %v29020_v11, %v33054_v23  ;;  %33599 = vst [vmem:[#allocation25_spill] sm:$0xff] %v29056_v52  ;;  %v9876_v23 = vld [vmem:[#allocation6 + $0x50] sm:$0xff]  ;;  %10100 = vmatpush1.msra.mxu1 %v10099_v58  ;;  %v33064_v39 = vand.u32 4294901760, %v29056_v52  ;;  %v10122_v3 = vsub.f32 %v29047_v32, %v33060_v15  ;;  %v33068_v58 = vand.u32 4294901760, %v29063_v40 }
 0x758   :  { %10106 = vmatprep.subr.mxu1 %v10105_v63  ;;  %v29082_v31 = vand.u32 4294901760, %v9876_v23  ;;  %9949 = vmatpush1.msra.mxu0 %v29065_v17  ;;  %v29092_v15 = vand.u32 4294901760, %v9875_v33 }
 0x759   :  { %v10111_v27 = vand.u32 4294901760, %v10110_v7  ;;  %v29080_v7 = vsub.f32 %v9878_v16, %v29065_v17  ;;  %v10128_v63 = vsub.f32 %v29056_v52, %v33064_v39  ;;  %9951 = vmatprep.subr.mxu0 %v29072_v4  ;;  %v10123_v16 = vand.u32 4294901760, %v10122_v3  ;;  %v9873_v39 = vld [vmem:[#allocation6 + $0x38] sm:$0xff] }
 0x75a   :  { %v10134_v49 = vsub.f32 %v29063_v40, %v33068_v58  ;;  %v29100_v44 = vsub.f32 %v9876_v23, %v29082_v31  ;;  %9953 = vmatpush1.msra.mxu0 %v29082_v31  ;;  %v29108_v3 = vsub.f32 %v9875_v33, %v29092_v15  ;;  %v9871_v40 = vld [vmem:[#allocation6 + $0x28] sm:$0xff]  ;;  %v29121_v52 = vand.u32 4294901760, %v9873_v39 }
 0x75b   :  { %10112 = vmatpush1.msra.mxu1 %v10111_v27  ;;  %33602 = vst [vmem:[#allocation31_spill] sm:$0xff] %v29080_v7  ;;  %v29090_v27 = vsub.f32 %v9877_v59, %v29072_v4  ;;  %v10129_v59 = vand.u32 4294901760, %v10128_v63  ;;  %9955 = vmatprep.subr.mxu0 %v29092_v15 }
 0x75c   :  { %10118 = vmatprep.subr.mxu1 %v10117_v19  ;;  %v33077_v19 = vand.u32 4294901760, %v29080_v7  ;;  %33604 = vst [vmem:[#allocation17_spill] sm:$0xff] %v29100_v44  ;;  %33605 = vst [vmem:[#allocation32_spill] sm:$0xff] %v29108_v3  ;;  %v10135_v58 = vand.u32 4294901760, %v10134_v49  ;;  %v33083_v63 = vand.u32 4294901760, %v29100_v44  ;;  %v33088_v50 = vand.u32 4294901760, %v29108_v3  ;;  %9957 = vmatpush1.msra.mxu0 %v29115_v20 }
 0x75d   :  { %33603 = vst [vmem:[#allocation15_spill] sm:$0xff] %v29090_v27  ;;  %v33080_v29 = vand.u32 4294901760, %v29090_v27  ;;  %10124 = vmatpush1.msra.mxu1 %v10123_v16  ;;  %33607 = vst [vmem:[#allocation22_spill] sm:$0xff] %v29121_v52  ;;  %v9870_v49 = vld [vmem:[#allocation6 + $0x20] sm:$0xff]  ;;  %9959 = vmatprep.subr.mxu0 %v29121_v52 }
 0x75e   :  { %v10146_v23 = vsub.f32 %v29080_v7, %v33077_v19  ;;  %10130 = vmatprep.subr.mxu1 %v10129_v59  ;;  %v10158_v19 = vsub.f32 %v29100_v44, %v33083_v63  ;;  %v29127_v7 = vsub.f32 %v9874_v45, %v29115_v20  ;;  %v29129_v59 = vand.u32 4294901760, %v9872_v51  ;;  %v9868_v63 = vld [vmem:[#allocation6 + $0x10] sm:$0xff] }
 0x75f   :  { %v10152_v33 = vsub.f32 %v29090_v27, %v33080_v29  ;;  %10136 = vmatpush1.msra.mxu1 %v10135_v58  ;;  %v10164_v27 = vsub.f32 %v29108_v3, %v33088_v50  ;;  %v29136_v58 = vsub.f32 %v9873_v39, %v29121_v52  ;;  %v29152_v52 = vand.u32 4294901760, %v9869_v28 }
 0x760   :  { %v10147_v16 = vand.u32 4294901760, %v10146_v23  ;;  %33608 = vst [vmem:[#allocation33_spill] sm:$0xff] %v29127_v7  ;;  %10142 = vmatprep.subr.mxu1 %v10141_v8  ;;  %v29138_v23 = vand.u32 4294901760, %v9871_v40  ;;  %v10159_v45 = vand.u32 4294901760, %v10158_v19  ;;  %v33093_v44 = vand.u32 4294901760, %v29127_v7  ;;  %9961 = vmatpush1.msra.mxu0 %v29129_v59  ;;  %v9866_v19 = vld [vmem:[#allocation6] sm:$0xff] }
 0x761   :  { %v10153_v29 = vand.u32 4294901760, %v10152_v33  ;;  %33609 = vst [vmem:[#allocation29_spill] sm:$0xff] %v29136_v58  ;;  %v29143_v20 = vsub.f32 %v9872_v51, %v29129_v59  ;;  %v29145_v8 = vand.u32 4294901760, %v9870_v49  ;;  %v9867_v33 = vld [vmem:[#allocation6 + $0x8] sm:$0xff]  ;;  %v10165_v39 = vand.u32 4294901760, %v10164_v27  ;;  %33614 = vst [vmem:[#allocation16_spill] sm:$0xff] %v29152_v52 }
 0x762   :  { %33610 = vst [vmem:[#allocation23_spill] sm:$0xff] %v29138_v23  ;;  %10148 = vmatpush1.msra.mxu1 %v10147_v16  ;;  %v33100_v50 = vand.u32 4294901760, %v29136_v58  ;;  %v29150_v3 = vsub.f32 %v9871_v40, %v29138_v23  ;;  %9963 = vmatprep.subr.mxu0 %v29138_v23  ;;  %v10170_v51 = vsub.f32 %v29127_v7, %v33093_v44  ;;  %v29172_v44 = vand.u32 4294901760, %v9867_v33 }
 0x763   :  { %33611 = vst [vmem:[#allocation34_spill] sm:$0xff] %v29143_v20  ;;  %33612 = vst [vmem:[#allocation12_spill] sm:$0xff] %v29145_v8  ;;  %10154 = vmatprep.subr.mxu1 %v10153_v29  ;;  %v29160_v16 = vsub.f32 %v9870_v49, %v29145_v8  ;;  %v29162_v29 = vand.u32 4294901760, %v9868_v63  ;;  %9965 = vmatpush1.msra.mxu0 %v29145_v8  ;;  %v33616_v7 = vand.u32 4294901760, %v29143_v20 }
 0x764   :  { %33613 = vst [vmem:[#allocation30_spill] sm:$0xff] %v29150_v3  ;;  %10160 = vmatpush1.msra.mxu1 %v10159_v45  ;;  %v10176_v40 = vsub.f32 %v29136_v58, %v33100_v50  ;;  %v33107_v27 = vand.u32 4294901760, %v29150_v3  ;;  %v29170_v45 = vsub.f32 %v9869_v28, %v29152_v52  ;;  %9967 = vmatprep.subr.mxu0 %v29152_v52  ;;  %v10171_v49 = vand.u32 4294901760, %v10170_v51 }
 0x765   :  { %33615 = vst [vmem:[#allocation18_spill] sm:$0xff] %v29162_v29  ;;  %10166 = vmatprep.subr.mxu1 %v10165_v39  ;;  %v10182_v8 = vsub.f32 %v29143_v20, %v33616_v7  ;;  %v33113_v39 = vand.u32 4294901760, %v29160_v16  ;;  %v29180_v23 = vsub.f32 %v9868_v63, %v29162_v29  ;;  %9969 = vmatpush1.msra.mxu0 %v29162_v29 }
 0x766   :  { %v10177_v50 = vand.u32 4294901760, %v10176_v40  ;;  %v10188_v28 = vsub.f32 %v29150_v3, %v33107_v27  ;;  %v33110_v58 = vand.u32 4294901760, %v29170_v45  ;;  %v29188_v51 = vsub.f32 %v9867_v33, %v29172_v44  ;;  %9971 = vmatprep.subr.mxu0 %v29172_v44  ;;  %10172 = vmatpush1.msra.mxu1 %v10171_v49 }
 0x767   :  { %v10183_v7 = vand.u32 4294901760, %v10182_v8  ;;  %v10194_v63 = vsub.f32 %v29160_v16, %v33113_v39  ;;  %v33112_v20 = vand.u32 4294901760, %v29180_v23  ;;  %v29195_v40 = vand.u32 4294901760, %v9866_v19 }
 0x768   :  { %10178 = vmatprep.subr.mxu1 %v10177_v50  ;;  %v10189_v29 = vand.u32 4294901760, %v10188_v28  ;;  %v10200_v27 = vsub.f32 %v29170_v45, %v33110_v58  ;;  %v33111_v33 = vand.u32 4294901760, %v29188_v51 }
 0x769   :  { %10184 = vmatpush1.msra.mxu1 %v10183_v7  ;;  %v10195_v3 = vand.u32 4294901760, %v10194_v63  ;;  %v10206_v8 = vsub.f32 %v29180_v23, %v33112_v20  ;;  %v29205_v49 = vsub.f32 %v9866_v19, %v29195_v40  ;;  %9973 = vmatpush1.msra.mxu0 %v29195_v40 }
 0x76a   :  { %10190 = vmatprep.subr.mxu1 %v10189_v29  ;;  %v10201_v50 = vand.u32 4294901760, %v10200_v27  ;;  %v10212_v28 = vsub.f32 %v29188_v51, %v33111_v33  ;;  %10270 = vmatprep.subr.mxu0 %v28899_v37 }
 0x76b   :  { %10196 = vmatpush1.msra.mxu1 %v10195_v3  ;;  %v10207_v7 = vand.u32 4294901760, %v10206_v8  ;;  %v33114_v63 = vand.u32 4294901760, %v29205_v49 }
 0x76c   :  { %10202 = vmatprep.subr.mxu1 %v10201_v50  ;;  %v10213_v58 = vand.u32 4294901760, %v10212_v28  ;;  %v23550_v28 = vld [vmem:[%s32962_s9] ss:$0 sm:$0xff] }
 0x76d   :  { %10208 = vmatpush1.msra.mxu1 %v10207_v7  ;;  %v10218_v19 = vsub.f32 %v29205_v49, %v33114_v63  ;;  %v33627_v63 = vld [vmem:[#allocation31_spill] sm:$0xff] }
 0x76e   :  { %10214 = vmatprep.subr.mxu1 %v10213_v58  ;;  %v23551_v58 = vld [vmem:[%s32963_s10] ss:$0 sm:$0xff] }
 0x76f   :  { %v10219_v29 = vand.u32 4294901760, %v10218_v19 }
 0x771   :  { %10220 = vmatpush1.msra.mxu1 %v10219_v29 }
 0x772   :  { %10414 = vmatprep.subr.mxu1 %v28886_v2 }
 0x7da   :  { %v9839_v27 = vpop.xlane.xlu0 %9838 }
 0x7db   :  { %v9842_v33 = vmul.f32 0.0078125, %v9839_v27 }
 0x7dd   :  { %v9844_v20 = vadd.f32 1e-05, %v9842_v33 }
 0x7de   :  { %v9841_v39 = vpop.xlane.xlu0 %9840 }
 0x7df   :  { %26688 = vrsqrt.f32 %v9844_v20  ;;  %v9843_v3 = vmul.f32 0.0078125, %v9841_v39 }
 0x7e1   :  { %v9845_v8 = vadd.f32 1e-05, %v9843_v3 }
 0x7e3   :  { %26690 = vrsqrt.f32 %v9845_v8 }
 0x7ec   :  { %v26689_v50 = vpop.eup %26688 }
 0x7ed   :  { %v9848_v7 = vmul.f32 %v26689_v50, %v28956_v22 }
 0x7ef   :  { %v9856_v19 = vmul.f32 %v23550_v28, %v9848_v7 }
 0x7f0   :  { %v26691_v29 = vpop.eup %26690 }
 0x7f1   :  { %v9849_v33 = vmul.f32 %v26691_v29, %v28959_v62  ;;  %v29225_v27 = vadd.f32 %v23551_v58, %v9856_v19 }
 0x7f3   :  { %33617 = vst [vmem:[#allocation19_spill] sm:$0xff] %v29225_v27  ;;  %v29228_v20 = vand.u32 4294901760, %v29225_v27  ;;  %v9857_v39 = vmul.f32 %v23550_v28, %v9849_v33  ;;  %v33621_v33 = vld [vmem:[#allocation21_spill] sm:$0xff] }
 0x7f5   :  { %33618 = vst [vmem:[#allocation20_spill] sm:$0xff] %v29228_v20  ;;  %10255 = vmatmul.mubr.f32.vlgmr.msra.gmra.mxu1 %v29228_v20  ;;  %v29231_v3 = vadd.f32 %v23551_v58, %v9857_v39  ;;  %v29235_v22 = vsub.f32 %v29225_v27, %v29228_v20  ;;  %v33622_v39 = vld [vmem:[#allocation25_spill] sm:$0xff]  ;;  %v33631_v27 = vld [vmem:[#allocation18_spill] sm:$0xff] }
 0x7f6   :  { %10416 = vmatpush1.msra.mxu1 %v28888_v9  ;;  %10260 = vmatprep.mubr.f32.mxu1 %v33596_v21  ;;  %v33633_v20 = vld [vmem:[#allocation33_spill] sm:$0xff] }
 0x7f7   :  { %33619 = vst [vmem:[#allocation24_spill] sm:$0xff] %v29231_v3  ;;  %10418 = vmatprep.subr.mxu1 %v28890_v54  ;;  %v29241_v62 = vand.u32 4294901760, %v29231_v3  ;;  %v33116_v8 = vand.u32 4294901760, %v29235_v22 }
 0x7f8   :  { %10420 = vmatpush1.msra.mxu1 %v28892_v5 }
 0x7f9   :  { %33620 = vst [vmem:[#allocation35_spill] sm:$0xff] %v29241_v62  ;;  %10422 = vmatprep.subr.mxu1 %v28894_v25  ;;  %10262 = vmatmul.mubr.f32.gmra.mxu1 %v29241_v62  ;;  %v10010_v50 = vsub.f32 %v29235_v22, %v33116_v8  ;;  %v29252_v28 = vsub.f32 %v29231_v3, %v29241_v62  ;;  %v33629_v8 = vld [vmem:[#allocation15_spill] sm:$0xff]  ;;  %v33630_v3 = vld [vmem:[#allocation17_spill] sm:$0xff]  ;;  %v33632_v62 = vld [vmem:[#allocation32_spill] sm:$0xff] }
 0x7fa   :  { %10424 = vmatpush1.msra.mxu1 %v28896_v38  ;;  %10509 = vmatprep.mubr.f32.mxu1 %v33596_v21 }
 0x7fb   :  { %10426 = vmatprep.subr.mxu1 %v28907_v53  ;;  %v10011_v7 = vand.u32 4294901760, %v10010_v50  ;;  %v33115_v58 = vand.u32 4294901760, %v29252_v28  ;;  %v33623_v50 = vld [vmem:[#allocation22_spill] sm:$0xff] }
 0x7fc   :  { %10428 = vmatpush1.msra.mxu1 %v28963_v46 }
 0x7fd   :  { %10430 = vmatprep.subr.mxu1 %v28967_v56  ;;  %10012 = vmatmul.mubr.f32.vlgmr.msra.gmra.mxu0 %v10011_v7  ;;  %v10021_v19 = vsub.f32 %v29252_v28, %v33115_v58  ;;  %v33624_v7 = vld [vmem:[#allocation26_spill] sm:$0xff]  ;;  %v33628_v58 = vld [vmem:[#allocation12_spill] sm:$0xff] }
 0x7fe   :  { %10273 = vmatpush1.msra.mxu0 %v28902_v36  ;;  %10432 = vmatpush1.msra.mxu1 %v28972_v6 }
 0x7ff   :  { %10276 = vmatprep.subr.mxu0 %v28905_v41  ;;  %10434 = vmatprep.subr.mxu1 %v28978_v35  ;;  %v10022_v29 = vand.u32 4294901760, %v10021_v19  ;;  %v33625_v19 = vld [vmem:[#allocation27_spill] sm:$0xff] }
 0x800   :  { %10279 = vmatpush1.msra.mxu0 %v28911_v57  ;;  %10436 = vmatpush1.msra.mxu1 %v28985_v14 }
 0x801   :  { %10017 = vmatprep.mubr.f32.mxu0 %v33596_v21  ;;  %10282 = vmatprep.subr.mxu0 %v28914_v61 }
 0x802   :  { %10438 = vmatprep.subr.mxu1 %v28992_v42  ;;  %10023 = vmatmul.mubr.f32.gmra.mxu0 %v10022_v29  ;;  %v33626_v29 = vld [vmem:[#allocation23_spill] sm:$0xff] }
 0x803   :  { %10285 = vmatpush1.msra.mxu0 %v28917_v1  ;;  %10440 = vmatpush1.msra.mxu1 %v29002_v26 }
 0x804   :  { %10288 = vmatprep.subr.mxu0 %v28924_v24  ;;  %10442 = vmatprep.subr.mxu1 %v29012_v47 }
 0x805   :  { %10291 = vmatpush1.msra.mxu0 %v28970_v55  ;;  %10444 = vmatpush1.msra.mxu1 %v29035_v60 }
 0x806   :  { %10294 = vmatprep.subr.mxu0 %v28976_v13  ;;  %10446 = vmatprep.subr.mxu1 %v29041_v43 }
 0x807   :  { %10297 = vmatpush1.msra.mxu0 %v28983_v0  ;;  %10448 = vmatpush1.msra.mxu1 %v29049_v18 }
 0x808   :  { %10300 = vmatprep.subr.mxu0 %v28990_v30  ;;  %10450 = vmatprep.subr.mxu1 %v29058_v10 }
 0x809   :  { %10303 = vmatpush1.msra.mxu0 %v29000_v34  ;;  %10452 = vmatpush1.msra.mxu1 %v29065_v17 }
 0x80a   :  { %10306 = vmatprep.subr.mxu0 %v29010_v48  ;;  %10454 = vmatprep.subr.mxu1 %v29072_v4 }
 0x80b   :  { %10309 = vmatpush1.msra.mxu0 %v29020_v11  ;;  %10456 = vmatpush1.msra.mxu1 %v29082_v31 }
 0x80c   :  { %10312 = vmatprep.subr.mxu0 %v29028_v12  ;;  %10458 = vmatprep.subr.mxu1 %v29092_v15 }
 0x80d   :  { %10315 = vmatpush1.msra.mxu0 %v29047_v32  ;;  %10460 = vmatpush1.msra.mxu1 %v33621_v33 }
 0x80e   :  { %10318 = vmatprep.subr.mxu0 %v33622_v39  ;;  %10462 = vmatprep.subr.mxu1 %v33623_v50 }
 0x80f   :  { %10321 = vmatpush1.msra.mxu0 %v33624_v7  ;;  %10464 = vmatpush1.msra.mxu1 %v29129_v59 }
 0x810   :  { %10324 = vmatprep.subr.mxu0 %v33625_v19  ;;  %10466 = vmatprep.subr.mxu1 %v33626_v29  ;;  %v33634_v29 = vld [vmem:[#allocation29_spill] sm:$0xff] }
 0x811   :  { %10327 = vmatpush1.msra.mxu0 %v33627_v63  ;;  %10468 = vmatpush1.msra.mxu1 %v33628_v58  ;;  %v33635_v58 = vand.u32 4294901760, %v29235_v22 }
 0x812   :  { %10330 = vmatprep.subr.mxu0 %v33629_v8  ;;  %10470 = vmatprep.subr.mxu1 %v29152_v52  ;;  %v33636_v52 = vld [vmem:[#allocation34_spill] sm:$0xff] }
 0x813   :  { %10333 = vmatpush1.msra.mxu0 %v33630_v3  ;;  %10472 = vmatpush1.msra.mxu1 %v33631_v27  ;;  %v33637_v27 = vld [vmem:[#allocation30_spill] sm:$0xff] }
 0x814   :  { %10336 = vmatprep.subr.mxu0 %v33632_v62  ;;  %10474 = vmatprep.subr.mxu1 %v29172_v44 }
 0x815   :  { %10339 = vmatpush1.msra.mxu0 %v33633_v20  ;;  %10476 = vmatpush1.msra.mxu1 %v29195_v40 }
 0x816   :  { %10342 = vmatprep.subr.mxu0 %v33634_v29  ;;  %10513 = vmatmul.mubr.f32.vlgmr.msra.gmra.mxu1 %v33635_v58  ;;  %v33638_v58 = vand.u32 4294901760, %v29252_v28 }
 0x817   :  { %10704 = vmatprep.subr.mxu1 %v28886_v2  ;;  %10345 = vmatpush1.msra.mxu0 %v33636_v52  ;;  %v33639_v2 = vand.u32 4294901760, %v28899_v37  ;;  %v33645_v37 = vand.u32 4294901760, %v28924_v24  ;;  %v33652_v24 = vand.u32 4294901760, %v29020_v11  ;;  %v33669_v11 = vand.u32 4294901760, %v33636_v52 }
 0x818   :  { %10706 = vmatpush1.msra.mxu1 %v28888_v9  ;;  %10348 = vmatprep.subr.mxu0 %v33637_v27  ;;  %v33640_v9 = vand.u32 4294901760, %v28902_v36  ;;  %v33646_v36 = vand.u32 4294901760, %v28970_v55  ;;  %v33655_v55 = vand.u32 4294901760, %v33622_v39  ;;  %v33676_v52 = vand.u32 4294901760, %v29205_v49  ;;  %v10830_v39 = vld [vmem:[#allocation7 + $0x60] sm:$0xff] }
 0x819   :  { %10708 = vmatprep.subr.mxu1 %v28890_v54  ;;  %10351 = vmatpush1.msra.mxu0 %v29160_v16  ;;  %v33641_v54 = vand.u32 4294901760, %v28905_v41  ;;  %v33647_v41 = vand.u32 4294901760, %v28976_v13  ;;  %v33657_v13 = vand.u32 4294901760, %v33625_v19 }
 0x81a   :  { %10518 = vmatprep.mubr.f32.mxu1 %v33596_v21  ;;  %10710 = vmatpush1.msra.mxu1 %v28892_v5  ;;  %v33642_v5 = vand.u32 4294901760, %v28911_v57  ;;  %v33649_v57 = vand.u32 4294901760, %v28990_v30  ;;  %v33662_v30 = vld [vmem:[#allocation16_spill] sm:$0xff] }
 0x81b   :  { %10354 = vmatprep.subr.mxu0 %v29170_v45  ;;  %10522 = vmatmul.mubr.f32.gmra.mxu1 %v33638_v58 }
 0x81c   :  { %10712 = vmatprep.subr.mxu1 %v28894_v25  ;;  %10357 = vmatpush1.msra.mxu0 %v29180_v23  ;;  %v33643_v25 = vand.u32 4294901760, %v28914_v61  ;;  %v33650_v61 = vand.u32 4294901760, %v29000_v34  ;;  %v33664_v34 = vld [vmem:[#allocation18_spill] sm:$0xff] }
 0x81d   :  { %10714 = vmatpush1.msra.mxu1 %v28896_v38  ;;  %10360 = vmatprep.subr.mxu0 %v29188_v51  ;;  %v33644_v38 = vand.u32 4294901760, %v28917_v1  ;;  %v33651_v1 = vand.u32 4294901760, %v29010_v48  ;;  %v33667_v48 = vand.u32 4294901760, %v33634_v29 }
 0x81e   :  { %10716 = vmatprep.subr.mxu1 %v28907_v53  ;;  %10363 = vmatpush1.msra.mxu0 %v29205_v49  ;;  %v33648_v53 = vand.u32 4294901760, %v28983_v0  ;;  %v33660_v0 = vld [vmem:[#allocation12_spill] sm:$0xff] }
 0x81f   :  { %10396 = vmatprep.mubr.f32.mxu0 %v33596_v21  ;;  %10718 = vmatpush1.msra.mxu1 %v28963_v46  ;;  %v33653_v46 = vand.u32 4294901760, %v29028_v12  ;;  %v33670_v12 = vand.u32 4294901760, %v33637_v27 }
 0x820   :  { %10399 = vmatmul.mubr.f32.vlgmr.msra.gmra.mxu0 %v29235_v22  ;;  %10531 = vmatprep.subr.mxu0 %v33639_v2  ;;  %v10831_v22 = vld [vmem:[#allocation7 + $0x68] sm:$0xff] }
 0x821   :  { %10720 = vmatprep.subr.mxu1 %v28967_v56  ;;  %10535 = vmatpush1.msra.mxu0 %v33640_v9  ;;  %v33654_v56 = vand.u32 4294901760, %v29047_v32  ;;  %v33674_v32 = vand.u32 4294901760, %v29180_v23  ;;  %v10848_v23 = vld [vmem:[#allocation7 + $0xf0] sm:$0xff] }
 0x822   :  { %10722 = vmatpush1.msra.mxu1 %v28972_v6  ;;  %10539 = vmatprep.subr.mxu0 %v33641_v54  ;;  %v33656_v6 = vand.u32 4294901760, %v33624_v7  ;;  %v29478_v54 = vand.u32 4294901760, %v10830_v39 }
 0x823   :  { %10724 = vmatprep.subr.mxu1 %v28978_v35  ;;  %10404 = vmatprep.mubr.f32.mxu0 %v33596_v21  ;;  %v33658_v35 = vld [vmem:[#allocation23_spill] sm:$0xff] }
 0x824   :  { %10543 = vmatpush1.msra.mxu0 %v33642_v5  ;;  %10726 = vmatpush1.msra.mxu1 %v28985_v14  ;;  %v33661_v14 = vand.u32 4294901760, %v33629_v8  ;;  %v10845_v5 = vld [vmem:[#allocation7 + $0xd8] sm:$0xff] }
 0x825   :  { %10407 = vmatmul.mubr.f32.gmra.mxu0 %v29252_v28  ;;  %10547 = vmatprep.subr.mxu0 %v33643_v25  ;;  %v29458_v28 = vand.u32 4294901760, %v10831_v22 }
 0x826   :  { %10728 = vmatprep.subr.mxu1 %v28992_v42  ;;  %10551 = vmatpush1.msra.mxu0 %v33644_v38  ;;  %v33663_v42 = vand.u32 4294901760, %v33630_v3 }
 0x827   :  { %10730 = vmatpush1.msra.mxu1 %v29002_v26  ;;  %10555 = vmatprep.subr.mxu0 %v33645_v37  ;;  %v33665_v26 = vand.u32 4294901760, %v33632_v62  ;;  %v29476_v9 = vsub.f32 %v10831_v22, %v29458_v28 }
 0x828   :  { %10732 = vmatprep.subr.mxu1 %v29012_v47  ;;  %10559 = vmatpush1.msra.mxu0 %v33646_v36  ;;  %v33668_v47 = vld [vmem:[#allocation20_spill] sm:$0xff] }
 0x829   :  { %10734 = vmatpush1.msra.mxu1 %v29035_v60  ;;  %10563 = vmatprep.subr.mxu0 %v33647_v41  ;;  %v33672_v60 = vand.u32 4294901760, %v29170_v45  ;;  %v29438_v45 = vand.u32 4294901760, %v10848_v23  ;;  %v10829_v41 = vld [vmem:[#allocation7 + $0x58] sm:$0xff] }
 0x82a   :  { %10736 = vmatprep.subr.mxu1 %v29041_v43  ;;  %10567 = vmatpush1.msra.mxu0 %v33648_v53  ;;  %v33673_v43 = vld [vmem:[#allocation35_spill] sm:$0xff] }
 0x82b   :  { %10738 = vmatpush1.msra.mxu1 %v29049_v18  ;;  %10571 = vmatprep.subr.mxu0 %v33649_v57  ;;  %v33675_v18 = vand.u32 4294901760, %v29188_v51  ;;  %v10832_v51 = vld [vmem:[#allocation7 + $0x70] sm:$0xff] }
 0x82c   :  { %10740 = vmatprep.subr.mxu1 %v29058_v10  ;;  %10575 = vmatpush1.msra.mxu0 %v33650_v61  ;;  %v10849_v10 = vld [vmem:[#allocation7 + $0xf8] sm:$0xff]  ;;  %v29444_v49 = vand.u32 4294901760, %v10832_v51  ;;  %v33135_v61 = vand.u32 4294901760, %v29476_v9 }
 0x82d   :  { %10742 = vmatpush1.msra.mxu1 %v29065_v17  ;;  %10579 = vmatprep.subr.mxu0 %v33651_v1  ;;  %v29431_v17 = vand.u32 4294901760, %v10849_v10  ;;  %v29494_v1 = vsub.f32 %v10830_v39, %v29478_v54 }
 0x82e   :  { %10744 = vmatprep.subr.mxu1 %v29072_v4  ;;  %10583 = vmatpush1.msra.mxu0 %v33652_v24  ;;  %v33659_v4 = vand.u32 4294901760, %v33627_v63  ;;  %v10847_v63 = vld [vmem:[#allocation7 + $0xe8] sm:$0xff]  ;;  %v29456_v8 = vsub.f32 %v10832_v51, %v29444_v49  ;;  %v10844_v24 = vld [vmem:[#allocation7 + $0xd0] sm:$0xff] }
 0x82f   :  { %10746 = vmatpush1.msra.mxu1 %v29082_v31  ;;  %10587 = vmatprep.subr.mxu0 %v33653_v46  ;;  %33677 = vst [vmem:[#allocation21_spill] sm:$0xff] %v29431_v17  ;;  %v10833_v31 = vld [vmem:[#allocation7 + $0x78] sm:$0xff]  ;;  %v29451_v3 = vand.u32 4294901760, %v10847_v63 }
 0x830   :  { %10748 = vmatprep.subr.mxu1 %v29092_v15  ;;  %10591 = vmatpush1.msra.mxu0 %v33654_v56  ;;  %v33666_v15 = vand.u32 4294901760, %v33633_v20  ;;  %v29449_v20 = vsub.f32 %v10848_v23, %v29438_v45  ;;  %v33138_v2 = vand.u32 4294901760, %v29456_v8 }
 0x831   :  { %10750 = vmatpush1.msra.mxu1 %v33621_v33  ;;  %10595 = vmatprep.subr.mxu0 %v33655_v55  ;;  %v10846_v33 = vld [vmem:[#allocation7 + $0xe0] sm:$0xff]  ;;  %v29466_v19 = vsub.f32 %v10847_v63, %v29451_v3 }
 0x832   :  { %10752 = vmatprep.subr.mxu1 %v33623_v50  ;;  %10599 = vmatpush1.msra.mxu0 %v33656_v6  ;;  %v33139_v7 = vand.u32 4294901760, %v29449_v20  ;;  %v29468_v29 = vand.u32 4294901760, %v10846_v33  ;;  %v10995_v57 = vsub.f32 %v29456_v8, %v33138_v2  ;;  %v29501_v6 = vand.u32 4294901760, %v10845_v5 }
 0x833   :  { %10754 = vmatpush1.msra.mxu1 %v29129_v59  ;;  %10603 = vmatprep.subr.mxu0 %v33657_v13  ;;  %v29433_v59 = vand.u32 4294901760, %v10833_v31  ;;  %v33136_v37 = vand.u32 4294901760, %v29466_v19  ;;  %v10828_v13 = vld [vmem:[#allocation7 + $0x50] sm:$0xff] }
 0x834   :  { %10756 = vmatprep.subr.mxu1 %v33658_v35  ;;  %10607 = vmatpush1.msra.mxu0 %v33659_v4  ;;  %v11107_v38 = vsub.f32 %v29449_v20, %v33139_v7  ;;  %v29486_v36 = vsub.f32 %v10846_v33, %v29468_v29  ;;  %v10996_v35 = vand.u32 4294901760, %v10995_v57  ;;  %v11002_v4 = vsub.f32 %v29476_v9, %v33135_v61 }
 0x835   :  { %10758 = vmatpush1.msra.mxu1 %v33660_v0  ;;  %10611 = vmatprep.subr.mxu0 %v33661_v14  ;;  %v11114_v56 = vsub.f32 %v29466_v19, %v33136_v37  ;;  %v33132_v0 = vand.u32 4294901760, %v29494_v1  ;;  %v29507_v14 = vand.u32 4294901760, %v10829_v41 }
 0x836   :  { %10760 = vmatprep.subr.mxu1 %v33662_v30  ;;  %10615 = vmatpush1.msra.mxu0 %v33663_v42  ;;  %v11108_v46 = vand.u32 4294901760, %v11107_v38  ;;  %v33134_v55 = vand.u32 4294901760, %v29486_v36  ;;  %v10843_v30 = vld [vmem:[#allocation7 + $0xc8] sm:$0xff] }
 0x837   :  { %10762 = vmatpush1.msra.mxu1 %v33664_v34  ;;  %10619 = vmatprep.subr.mxu0 %v33665_v26  ;;  %v11115_v42 = vand.u32 4294901760, %v11114_v56  ;;  %v29513_v26 = vsub.f32 %v10845_v5, %v29501_v6  ;;  %v10825_v56 = vld [vmem:[#allocation7 + $0x38] sm:$0xff] }
 0x838   :  { %10764 = vmatprep.subr.mxu1 %v29172_v44  ;;  %10623 = vmatpush1.msra.mxu0 %v33666_v15  ;;  %v33671_v44 = vand.u32 4294901760, %v29160_v16  ;;  %v29436_v16 = vsub.f32 %v10849_v10, %v29431_v17  ;;  %v11121_v34 = vsub.f32 %v29486_v36, %v33134_v55  ;;  %v29515_v15 = vand.u32 4294901760, %v10844_v24  ;;  %v10826_v10 = vld [vmem:[#allocation7 + $0x40] sm:$0xff]  ;;  %v10837_v55 = vld [vmem:[#allocation7 + $0x98] sm:$0xff] }
 0x839   :  { %10766 = vmatpush1.msra.mxu1 %v29195_v40  ;;  %10799 = vmatprep.mubr.f32.mxu1 %v33596_v21  ;;  %v29442_v40 = vsub.f32 %v10833_v31, %v29433_v59  ;;  %v29558_v38 = vand.u32 4294901760, %v10826_v10 }
 0x83a   :  { %10627 = vmatprep.subr.mxu0 %v33667_v48  ;;  %10801 = vmatmul.mubr.f32.vlgmr.msra.gmra.mxu1 %v33668_v47  ;;  %33678 = vst [vmem:[#allocation25_spill] sm:$0xff] %v29436_v16  ;;  %v33142_v27 = vand.u32 4294901760, %v29436_v16  ;;  %v10827_v48 = vld [vmem:[#allocation7 + $0x48] sm:$0xff] }
 0x83b   :  { %10631 = vmatpush1.msra.mxu0 %v33669_v11  ;;  %10806 = vmatprep.mubr.f32.mxu1 %v33596_v21  ;;  %v33140_v62 = vand.u32 4294901760, %v29442_v40  ;;  %v11009_v11 = vsub.f32 %v29494_v1, %v33132_v0  ;;  %v29538_v63 = vand.u32 4294901760, %v10827_v48 }
 0x83c   :  { %10635 = vmatprep.subr.mxu0 %v33670_v12  ;;  %10688 = vmatprep.mubr.f32.mxu0 %v33596_v21  ;;  %v11100_v50 = vsub.f32 %v29436_v16, %v33142_v27  ;;  %v29522_v12 = vsub.f32 %v10829_v41, %v29507_v14  ;;  %v10841_v41 = vld [vmem:[#allocation7 + $0xb8] sm:$0xff]  ;;  %v29661_v27 = vand.u32 4294901760, %v10837_v55 }
 0x83d   :  { %10639 = vmatpush1.msra.mxu0 %v33671_v44  ;;  %v10988_v58 = vsub.f32 %v29442_v40, %v33140_v62  ;;  %v29524_v44 = vand.u32 4294901760, %v10828_v13  ;;  %v11010_v31 = vand.u32 4294901760, %v11009_v11  ;;  %v29581_v11 = vand.u32 4294901760, %v10841_v41  ;;  %v10836_v62 = vld [vmem:[#allocation7 + $0x90] sm:$0xff] }
 0x83e   :  { %10643 = vmatprep.subr.mxu0 %v33672_v60  ;;  %10808 = vmatmul.mubr.f32.gmra.mxu1 %v33673_v43  ;;  %v11101_v25 = vand.u32 4294901760, %v11100_v50  ;;  %v10842_v60 = vld [vmem:[#allocation7 + $0xc0] sm:$0xff]  ;;  %v33129_v23 = vand.u32 4294901760, %v29522_v12  ;;  %33696 = vst [vmem:[#allocation36_spill] sm:$0xff] %v29661_v27 }
 0x83f   :  { %10647 = vmatpush1.msra.mxu0 %v33674_v32  ;;  %v10989_v53 = vand.u32 4294901760, %v10988_v58  ;;  %v33131_v32 = vand.u32 4294901760, %v29513_v26  ;;  %v29536_v51 = vsub.f32 %v10828_v13, %v29524_v44  ;;  %v29548_v50 = vand.u32 4294901760, %v10842_v60 }
 0x840   :  { %10651 = vmatprep.subr.mxu0 %v33675_v18  ;;  %24015 = vmatprep.subr.mxu1 %v11101_v25  ;;  %v29529_v18 = vsub.f32 %v10844_v24, %v29515_v15  ;;  %v11016_v58 = vsub.f32 %v29522_v12, %v33129_v23  ;;  %v29556_v25 = vsub.f32 %v10827_v48, %v29538_v63 }
 0x841   :  { %10655 = vmatpush1.msra.mxu0 %v33676_v52  ;;  %24016 = vmatpush3.msra.mxu1 %v10989_v53  ;;  %v29531_v52 = vand.u32 4294901760, %v10843_v30  ;;  %v11128_v22 = vsub.f32 %v29513_v26, %v33131_v32  ;;  %v33126_v5 = vand.u32 4294901760, %v29536_v51 }
 0x842   :  { %10690 = vmatmul.mubr.f32.vlgmr.msra.gmra.mxu0 %v33668_v47  ;;  %23977 = vmatprep.subr.mxu0 %v29431_v17  ;;  %v11003_v47 = vand.u32 4294901760, %v11002_v4  ;;  %v33128_v33 = vand.u32 4294901760, %v29529_v18  ;;  %33680 = vst [vmem:[#allocation26_spill] sm:$0xff] %v29556_v25  ;;  %v11017_v13 = vand.u32 4294901760, %v11016_v58  ;;  %v33125_v4 = vand.u32 4294901760, %v29556_v25  ;;  %v10839_v58 = vld [vmem:[#allocation7 + $0xa8] sm:$0xff] }
 0x843   :  { %10695 = vmatprep.mubr.f32.mxu0 %v33596_v21  ;;  %23978 = vmatpush3.msra.mxu0 %v29433_v59  ;;  %v29546_v39 = vsub.f32 %v10843_v30, %v29531_v52  ;;  %v11129_v53 = vand.u32 4294901760, %v11128_v22  ;;  %v29574_v30 = vsub.f32 %v10826_v10, %v29558_v38  ;;  %v29587_v22 = vand.u32 4294901760, %v10825_v56  ;;  %v10820_v21 = vld [vmem:[#allocation7 + $0x10] sm:$0xff] }
 0x844   :  { %23979 = vmatprep.subr.mxu0 %v29438_v45  ;;  %24017 = vmatprep.subr.mxu1 %v11108_v46  ;;  %v11135_v57 = vsub.f32 %v29529_v18, %v33128_v33  ;;  %v29566_v46 = vsub.f32 %v10842_v60, %v29548_v50  ;;  %v10824_v60 = vld [vmem:[#allocation7 + $0x30] sm:$0xff]  ;;  %v11030_v10 = vsub.f32 %v29556_v25, %v33125_v4 }
 0x845   :  { %23980 = vmatpush3.msra.mxu0 %v29444_v49  ;;  %24018 = vmatpush3.msra.mxu1 %v10996_v35  ;;  %33679 = vst [vmem:[#allocation22_spill] sm:$0xff] %v29546_v39  ;;  %v33124_v24 = vand.u32 4294901760, %v29546_v39  ;;  %v11023_v35 = vsub.f32 %v29536_v51, %v33126_v5  ;;  %33682 = vst [vmem:[#allocation31_spill] sm:$0xff] %v29574_v30 }
 0x846   :  { %10697 = vmatmul.mubr.f32.gmra.mxu0 %v33673_v43  ;;  %23981 = vmatprep.subr.mxu0 %v29451_v3  ;;  %v11122_v43 = vand.u32 4294901760, %v11121_v34  ;;  %33681 = vst [vmem:[#allocation27_spill] sm:$0xff] %v29566_v46  ;;  %v11136_v34 = vand.u32 4294901760, %v11135_v57  ;;  %v11031_v4 = vand.u32 4294901760, %v11030_v10  ;;  %v10822_v10 = vld [vmem:[#allocation7 + $0x20] sm:$0xff] }
 0x847   :  { %23982 = vmatpush3.msra.mxu0 %v29458_v28  ;;  %24019 = vmatprep.subr.mxu1 %v11115_v42  ;;  %v10840_v42 = vld [vmem:[#allocation7 + $0xb0] sm:$0xff]  ;;  %v11142_v48 = vsub.f32 %v29546_v39, %v33124_v24  ;;  %v29593_v24 = vsub.f32 %v10841_v41, %v29581_v11 }
 0x848   :  { %23983 = vmatprep.subr.mxu0 %v29468_v29  ;;  %24020 = vmatpush3.msra.mxu1 %v11003_v47  ;;  %v33127_v47 = vand.u32 4294901760, %v29566_v46 }
 0x849   :  { %23984 = vmatpush3.msra.mxu0 %v29478_v54  ;;  %24021 = vmatprep.subr.mxu1 %v11122_v43  ;;  %v11024_v43 = vand.u32 4294901760, %v11023_v35  ;;  %33683 = vst [vmem:[#allocation15_spill] sm:$0xff] %v29593_v24  ;;  %v10823_v35 = vld [vmem:[#allocation7 + $0x28] sm:$0xff]  ;;  %v33133_v33 = vand.u32 4294901760, %v29593_v24 }
 0x84a   :  { %23985 = vmatprep.subr.mxu0 %v29501_v6  ;;  %24022 = vmatpush3.msra.mxu1 %v11010_v31  ;;  %v33130_v31 = vand.u32 4294901760, %v29574_v30  ;;  %v11149_v57 = vsub.f32 %v29566_v46, %v33127_v47  ;;  %v10838_v47 = vld [vmem:[#allocation7 + $0xa0] sm:$0xff]  ;;  %v29618_v0 = vand.u32 4294901760, %v10823_v35 }
 0x84b   :  { %23986 = vmatpush3.msra.mxu0 %v29507_v14  ;;  %24023 = vmatprep.subr.mxu1 %v11129_v53  ;;  %v11143_v53 = vand.u32 4294901760, %v11142_v48  ;;  %v29604_v48 = vand.u32 4294901760, %v10824_v60 }
 0x84c   :  { %23987 = vmatprep.subr.mxu0 %v29515_v15  ;;  %24024 = vmatpush3.msra.mxu1 %v11017_v13  ;;  %v29595_v13 = vand.u32 4294901760, %v10840_v42  ;;  %v11037_v5 = vsub.f32 %v29574_v30, %v33130_v31  ;;  %v11150_v41 = vand.u32 4294901760, %v11149_v57  ;;  %33689 = vst [vmem:[#allocation30_spill] sm:$0xff] %v29618_v0 }
 0x84d   :  { %23988 = vmatpush3.msra.mxu0 %v29524_v44  ;;  %24025 = vmatprep.subr.mxu1 %v11136_v34  ;;  %v29602_v34 = vsub.f32 %v10825_v56, %v29587_v22  ;;  %33685 = vst [vmem:[#allocation32_spill] sm:$0xff] %v29604_v48  ;;  %v29616_v32 = vsub.f32 %v10824_v60, %v29604_v48 }
 0x84e   :  { %23989 = vmatprep.subr.mxu0 %v29531_v52  ;;  %24026 = vmatpush3.msra.mxu1 %v11024_v43  ;;  %v29609_v23 = vsub.f32 %v10840_v42, %v29595_v13  ;;  %v29611_v43 = vand.u32 4294901760, %v10839_v58  ;;  %v11038_v56 = vand.u32 4294901760, %v11037_v5  ;;  %v11156_v42 = vsub.f32 %v29593_v24, %v33133_v33 }
 0x84f   :  { %23990 = vmatpush3.msra.mxu0 %v29538_v63  ;;  %33684 = vst [vmem:[#allocation17_spill] sm:$0xff] %v29602_v34  ;;  %24027 = vmatprep.subr.mxu1 %v11143_v53  ;;  %v33137_v31 = vand.u32 4294901760, %v29602_v34  ;;  %33688 = vst [vmem:[#allocation34_spill] sm:$0xff] %v29616_v32  ;;  %v29628_v5 = vand.u32 4294901760, %v10838_v47  ;;  %v33144_v60 = vand.u32 4294901760, %v29616_v32  ;;  %v29638_v33 = vand.u32 4294901760, %v10822_v10 }
 0x850   :  { %23991 = vmatprep.subr.mxu0 %v29548_v50  ;;  %33686 = vst [vmem:[#allocation33_spill] sm:$0xff] %v29609_v23  ;;  %33687 = vst [vmem:[#allocation29_spill] sm:$0xff] %v29611_v43  ;;  %24028 = vmatpush3.msra.mxu1 %v11031_v4  ;;  %v33141_v53 = vand.u32 4294901760, %v29609_v23  ;;  %v29626_v57 = vsub.f32 %v10839_v58, %v29611_v43  ;;  %v11157_v58 = vand.u32 4294901760, %v11156_v42 }
 0x851   :  { %23992 = vmatpush3.msra.mxu0 %v29558_v38  ;;  %24029 = vmatprep.subr.mxu1 %v11150_v41  ;;  %33691 = vst [vmem:[#allocation12_spill] sm:$0xff] %v29628_v5  ;;  %v11044_v4 = vsub.f32 %v29602_v34, %v33137_v31  ;;  %v29636_v41 = vsub.f32 %v10823_v35, %v29618_v0  ;;  %33693 = vst [vmem:[#allocation18_spill] sm:$0xff] %v29638_v33  ;;  %v10821_v31 = vld [vmem:[#allocation7 + $0x18] sm:$0xff] }
 0x852   :  { %23993 = vmatprep.subr.mxu0 %v29581_v11  ;;  %33690 = vst [vmem:[#allocation23_spill] sm:$0xff] %v29626_v57  ;;  %24030 = vmatpush3.msra.mxu1 %v11038_v56  ;;  %v11163_v61 = vsub.f32 %v29609_v23, %v33141_v53  ;;  %v33149_v56 = vand.u32 4294901760, %v29626_v57  ;;  %v29646_v37 = vsub.f32 %v10838_v47, %v29628_v5  ;;  %v29667_v23 = vand.u32 4294901760, %v10821_v31 }
 0x853   :  { %23994 = vmatpush3.msra.mxu0 %v29587_v22  ;;  %33692 = vst [vmem:[#allocation16_spill] sm:$0xff] %v29636_v41  ;;  %v11045_v35 = vand.u32 4294901760, %v11044_v4  ;;  %v11051_v2 = vsub.f32 %v29616_v32, %v33144_v60  ;;  %v33152_v7 = vand.u32 4294901760, %v29636_v41  ;;  %v29654_v42 = vsub.f32 %v10822_v10, %v29638_v33  ;;  %24031 = vmatprep.subr.mxu1 %v11157_v58 }
 0x854   :  { %23995 = vmatprep.subr.mxu0 %v29595_v13  ;;  %33694 = vst [vmem:[#allocation20_spill] sm:$0xff] %v29646_v37  ;;  %v11164_v53 = vand.u32 4294901760, %v11163_v61  ;;  %v11170_v47 = vsub.f32 %v29626_v57, %v33149_v56  ;;  %v33155_v4 = vand.u32 4294901760, %v29646_v37  ;;  %33697 = vst [vmem:[#allocation37_spill] sm:$0xff] %v29667_v23  ;;  %v10835_v61 = vld [vmem:[#allocation7 + $0x88] sm:$0xff]  ;;  %v29673_v57 = vsub.f32 %v10837_v55, %v29661_v27 }
 0x855   :  { %23996 = vmatpush3.msra.mxu0 %v29604_v48  ;;  %33695 = vst [vmem:[#allocation35_spill] sm:$0xff] %v29654_v42  ;;  %24032 = vmatpush3.msra.mxu1 %v11045_v35  ;;  %v11052_v60 = vand.u32 4294901760, %v11051_v2  ;;  %v11058_v10 = vsub.f32 %v29636_v41, %v33152_v7  ;;  %v33160_v32 = vand.u32 4294901760, %v29654_v42  ;;  %v29675_v35 = vand.u32 4294901760, %v10836_v62  ;;  %v10819_v2 = vld [vmem:[#allocation7 + $0x8] sm:$0xff] }
 0x856   :  { %23997 = vmatprep.subr.mxu0 %v29611_v43  ;;  %24033 = vmatprep.subr.mxu1 %v11164_v53  ;;  %v11171_v58 = vand.u32 4294901760, %v11170_v47  ;;  %v11177_v56 = vsub.f32 %v29646_v37, %v33155_v4  ;;  %33698 = vst [vmem:[#allocation38_spill] sm:$0xff] %v29673_v57  ;;  %v29682_v53 = vsub.f32 %v10821_v31, %v29667_v23  ;;  %v29684_v47 = vand.u32 4294901760, %v10820_v21  ;;  %v10834_v4 = vld [vmem:[#allocation7 + $0x80] sm:$0xff] }
 0x857   :  { %23998 = vmatpush3.msra.mxu0 %v29618_v0  ;;  %33699 = vst [vmem:[#allocation39_spill] sm:$0xff] %v29675_v35  ;;  %24034 = vmatpush3.msra.mxu1 %v11052_v60  ;;  %v11059_v7 = vand.u32 4294901760, %v11058_v10  ;;  %v11065_v41 = vsub.f32 %v29654_v42, %v33160_v32  ;;  %v33165_v37 = vand.u32 4294901760, %v29673_v57  ;;  %v29689_v34 = vsub.f32 %v10836_v62, %v29675_v35  ;;  %v10818_v10 = vld [vmem:[#allocation7] sm:$0xff] }
 0x858   :  { %23999 = vmatprep.subr.mxu0 %v29628_v5  ;;  %33700 = vst [vmem:[#allocation40_spill] sm:$0xff] %v29682_v53  ;;  %33701 = vst [vmem:[#allocation41_spill] sm:$0xff] %v29684_v47  ;;  %24035 = vmatprep.subr.mxu1 %v11171_v58  ;;  %v11178_v55 = vand.u32 4294901760, %v11177_v56  ;;  %v29691_v60 = vand.u32 4294901760, %v10835_v61  ;;  %v33170_v32 = vand.u32 4294901760, %v29682_v53  ;;  %v29696_v42 = vsub.f32 %v10820_v21, %v29684_v47 }
 0x859   :  { %24000 = vmatpush3.msra.mxu0 %v29638_v33  ;;  %33702 = vst [vmem:[#allocation42_spill] sm:$0xff] %v29689_v34  ;;  %24036 = vmatpush3.msra.mxu1 %v11059_v7  ;;  %v11066_v31 = vand.u32 4294901760, %v11065_v41  ;;  %v11184_v62 = vsub.f32 %v29673_v57, %v33165_v37  ;;  %v33173_v56 = vand.u32 4294901760, %v29689_v34  ;;  %v29708_v7 = vand.u32 4294901760, %v10834_v4 }
 0x85a   :  { %24001 = vmatprep.subr.mxu0 %v29661_v27  ;;  %33703 = vst [vmem:[#allocation43_spill] sm:$0xff] %v29691_v60  ;;  %33704 = vst [vmem:[#allocation44_spill] sm:$0xff] %v29696_v42  ;;  %24037 = vmatprep.subr.mxu1 %v11178_v55  ;;  %v29706_v58 = vsub.f32 %v10835_v61, %v29691_v60  ;;  %v11072_v21 = vsub.f32 %v29682_v53, %v33170_v32  ;;  %v33176_v41 = vand.u32 4294901760, %v29696_v42 }
 0x85b   :  { %24002 = vmatpush3.msra.mxu0 %v29667_v23  ;;  %v29698_v23 = vand.u32 4294901760, %v10819_v2  ;;  %33707 = vst [vmem:[#allocation47_spill] sm:$0xff] %v29708_v7  ;;  %24038 = vmatpush3.msra.mxu1 %v11066_v31  ;;  %v29718_v37 = vand.u32 4294901760, %v10818_v10  ;;  %v11185_v61 = vand.u32 4294901760, %v11184_v62  ;;  %v11191_v57 = vsub.f32 %v29689_v34, %v33173_v56 }
 0x85c   :  { %24003 = vmatprep.subr.mxu0 %v29675_v35  ;;  %33706 = vst [vmem:[#allocation46_spill] sm:$0xff] %v29706_v58  ;;  %v33179_v31 = vand.u32 4294901760, %v29706_v58  ;;  %v11073_v32 = vand.u32 4294901760, %v11072_v21 }
 0x85d   :  { %33705 = vst [vmem:[#allocation45_spill] sm:$0xff] %v29698_v23  ;;  %24004 = vmatpush3.msra.mxu0 %v29684_v47  ;;  %v29716_v55 = vsub.f32 %v10819_v2, %v29698_v23  ;;  %33709 = vst [vmem:[#allocation49_spill] sm:$0xff] %v29718_v37  ;;  %v11079_v2 = vsub.f32 %v29696_v42, %v33176_v41  ;;  %v29734_v62 = vsub.f32 %v10818_v10, %v29718_v37 }
 0x85e   :  { %24005 = vmatprep.subr.mxu0 %v29691_v60  ;;  %v29726_v60 = vsub.f32 %v10834_v4, %v29708_v7  ;;  %24039 = vmatprep.subr.mxu1 %v11185_v61  ;;  %v11192_v56 = vand.u32 4294901760, %v11191_v57  ;;  %v11198_v4 = vsub.f32 %v29706_v58, %v33179_v31 }
 0x85f   :  { %33708 = vst [vmem:[#allocation48_spill] sm:$0xff] %v29716_v55  ;;  %24006 = vmatpush3.msra.mxu0 %v29698_v23  ;;  %v33180_v53 = vand.u32 4294901760, %v29716_v55  ;;  %33711 = vst [vmem:[#allocation51_spill] sm:$0xff] %v29734_v62  ;;  %24040 = vmatpush3.msra.mxu1 %v11073_v32  ;;  %v11080_v21 = vand.u32 4294901760, %v11079_v2  ;;  %v33185_v10 = vand.u32 4294901760, %v29734_v62 }
 0x860   :  { %33710 = vst [vmem:[#allocation50_spill] sm:$0xff] %v29726_v60  ;;  %24007 = vmatprep.subr.mxu0 %v29708_v7  ;;  %v33184_v34 = vand.u32 4294901760, %v29726_v60  ;;  %24041 = vmatprep.subr.mxu1 %v11192_v56  ;;  %v11199_v42 = vand.u32 4294901760, %v11198_v4 }
 0x861   :  { %24008 = vmatpush3.msra.mxu0 %v29718_v37  ;;  %v11086_v41 = vsub.f32 %v29716_v55, %v33180_v53  ;;  %24042 = vmatpush3.msra.mxu1 %v11080_v21  ;;  %v11093_v31 = vsub.f32 %v29734_v62, %v33185_v10 }
 0x862   :  { %24053 = vmatprep.subr.mxu0 %v29436_v16  ;;  %v11205_v57 = vsub.f32 %v29726_v60, %v33184_v34  ;;  %24043 = vmatprep.subr.mxu1 %v11199_v42 }
 0x863   :  { %v11087_v61 = vand.u32 4294901760, %v11086_v41  ;;  %v11094_v2 = vand.u32 4294901760, %v11093_v31  ;;  %v9898_v41 = vld [vmem:[%s32959_s6] sm:$0x3] }
 0x864   :  { %v11206_v32 = vand.u32 4294901760, %v11205_v57  ;;  %v33712_v57 = vld [vmem:[#allocation13_spill] sm:$0xff] }
 0x865   :  { %24044 = vmatpush3.msra.mxu1 %v11087_v61  ;;  %v9903_v61 = vrot.slane %v9898_v41, %v33712_v57 }
 0x866   :  { %24045 = vmatprep.subr.mxu1 %v11206_v32 }
 0x867   :  { %24046 = vmatpush3.msra.mxu1 %v11094_v2  ;;  %v33713_v2 = vld [vmem:[#allocation14_spill] sm:$0xff] }
 0x868   :  { %24091 = vmatprep.subr.mxu1 %v29431_v17  ;;  %v9907_v62 = vrot.slane %v9898_v41, %v33713_v2 }
 0x8b5   :  { %v10256_v56 = vpop.f32.mrf.mxu1 }
 0x8b7   :  { %v10258_v4 = vpop.f32.mrf.mxu1 }
 0x8b9   :  { %v10263_v16 = vpop.f32.mrf.mxu1 }
 0x8bb   :  { %v10265_v34 = vpop.f32.mrf.mxu1 }
 0x8bd   :  { %v10013_v53 = vpop.f32.mrf.mxu0 }
 0x8be   :  { %v10014_v60 = vadd.f32 %v10013_v53, %v9903_v61 }
 0x8bf   :  { %v10015_v55 = vpop.f32.mrf.mxu0 }
 0x8c0   :  { %v10016_v37 = vadd.f32 %v10015_v55, %v9907_v62  ;;  %v10257_v23 = vadd.f32 %v10256_v56, %v10014_v60 }
 0x8c2   :  { %v10024_v21 = vpop.f32.mrf.mxu0  ;;  %v10259_v33 = vadd.f32 %v10258_v4, %v10016_v37 }
 0x8c3   :  { %v10025_v7 = vadd.f32 %v10024_v21, %v9903_v61 }
 0x8c4   :  { %v10026_v42 = vpop.f32.mrf.mxu0 }
 0x8c5   :  { %v10027_v27 = vadd.f32 %v10026_v42, %v9907_v62  ;;  %v10264_v46 = vadd.f32 %v10263_v16, %v10025_v7 }
 0x8c7   :  { %v10266_v25 = vadd.f32 %v10265_v34, %v10027_v27 }
 0x8d6   :  { %v10514_v10 = vpop.f32.mrf.mxu1 }
 0x8d8   :  { %v10516_v31 = vpop.f32.mrf.mxu1 }
 0x8db   :  { %v10523_v58 = vpop.f32.mrf.mxu1 }
 0x8dd   :  { %v10525_v47 = vpop.f32.mrf.mxu1 }
 0x8e0   :  { %v10400_v32 = vpop.f32.mrf.mxu0 }
 0x8e1   :  { %v10401_v24 = vadd.f32 %v10400_v32, %v10257_v23 }
 0x8e2   :  { %v10402_v17 = vpop.f32.mrf.mxu0 }
 0x8e3   :  { %v10403_v5 = vadd.f32 %v10402_v17, %v10259_v33  ;;  %v10515_v43 = vadd.f32 %v10514_v10, %v10401_v24 }
 0x8e5   :  { %v10408_v35 = vpop.f32.mrf.mxu0  ;;  %v10517_v48 = vadd.f32 %v10516_v31, %v10403_v5 }
 0x8e6   :  { %v10409_v57 = vadd.f32 %v10408_v35, %v10264_v46 }
 0x8e7   :  { %v10410_v0 = vpop.f32.mrf.mxu0 }
 0x8e8   :  { %v10411_v53 = vadd.f32 %v10410_v0, %v10266_v25  ;;  %v10524_v56 = vadd.f32 %v10523_v58, %v10409_v57 }
 0x8ea   :  { %v10526_v17 = vadd.f32 %v10525_v47, %v10411_v53 }
 0x8fa   :  { %v10802_v30 = vpop.f32.mrf.mxu1 }
 0x8fc   :  { %v10804_v39 = vpop.f32.mrf.mxu1 }
 0x8fe   :  { %v10809_v61 = vpop.f32.mrf.mxu1 }
 0x900   :  { %v10811_v34 = vpop.f32.mrf.mxu1 }
 0x902   :  { %v10691_v41 = vpop.f32.mrf.mxu0 }
 0x903   :  { %v10692_v2 = vadd.f32 %v10691_v41, %v10515_v43 }
 0x904   :  { %v10693_v55 = vpop.f32.mrf.mxu0 }
 0x905   :  { %v10803_v21 = vadd.f32 %v10802_v30, %v10692_v2  ;;  %v10694_v60 = vadd.f32 %v10693_v55, %v10517_v48 }
 0x906   :  { %v10698_v62 = vpop.f32.mrf.mxu0 }
 0x907   :  { %v10814_v23 = vmax.f32 %v10803_v21, 0.0  ;;  %v10805_v37 = vadd.f32 %v10804_v39, %v10694_v60  ;;  %v10699_v4 = vadd.f32 %v10698_v62, %v10524_v56  ;;  %v33717_v56 = vld [vmem:[#allocation32_spill] sm:$0xff]  ;;  %v33719_v62 = vld [vmem:[#allocation29_spill] sm:$0xff] }
 0x908   :  { %v10700_v16 = vpop.f32.mrf.mxu0 }
 0x909   :  { %v29758_v33 = vand.u32 4294901760, %v10814_v23  ;;  %v10815_v27 = vmax.f32 %v10805_v37, 0.0  ;;  %v10810_v24 = vadd.f32 %v10809_v61, %v10699_v4  ;;  %v10701_v46 = vadd.f32 %v10700_v16, %v10526_v17  ;;  %v33718_v61 = vld [vmem:[#allocation22_spill] sm:$0xff]  ;;  %v33722_v4 = vld [vmem:[#allocation27_spill] sm:$0xff]  ;;  %v33723_v17 = vld [vmem:[#allocation12_spill] sm:$0xff] }
 0x90a   :  { %v33721_v37 = vld [vmem:[#allocation30_spill] sm:$0xff]  ;;  %v33724_v16 = vld [vmem:[#allocation31_spill] sm:$0xff] }
 0x90b   :  { %33714 = vst [vmem:[#allocation52_spill] sm:$0xff] %v29758_v33  ;;  %v29761_v0 = vsub.f32 %v10814_v23, %v29758_v33  ;;  %v29763_v25 = vand.u32 4294901760, %v10815_v27  ;;  %v10816_v30 = vmax.f32 %v10810_v24, 0.0  ;;  %v10812_v48 = vadd.f32 %v10811_v34, %v10701_v46  ;;  %v33720_v23 = vld [vmem:[#allocation26_spill] sm:$0xff]  ;;  %v33726_v24 = vld [vmem:[#allocation15_spill] sm:$0xff]  ;;  %v33727_v46 = vld [vmem:[#allocation36_spill] sm:$0xff] }
 0x90c   :  { %v33728_v34 = vld [vmem:[#allocation17_spill] sm:$0xff] }
 0x90d   :  { %v10961_v43 = vand.u32 4294901760, %v29761_v0  ;;  %v10954_v39 = vsub.f32 %v10815_v27, %v29763_v25  ;;  %v29767_v5 = vand.u32 4294901760, %v10816_v30  ;;  %v10817_v35 = vmax.f32 %v10812_v48, 0.0  ;;  %11209 = vmatprep.mubr.f32.mxu1 %v29763_v25  ;;  %v33725_v27 = vld [vmem:[#allocation18_spill] sm:$0xff]  ;;  %v33730_v48 = vld [vmem:[#allocation33_spill] sm:$0xff] }
 0x90e   :  { %11211 = vmatmul.mubr.f32.vlgmr.msra.gmra.mxu1 %v29758_v33  ;;  %v33746_v33 = vld [vmem:[#allocation42_spill] sm:$0xff] }
 0x90f   :  { %33715 = vst [vmem:[#allocation53_spill] sm:$0xff] %v29767_v5  ;;  %v29772_v47 = vsub.f32 %v10816_v30, %v29767_v5  ;;  %v29774_v58 = vand.u32 4294901760, %v10817_v35  ;;  %24092 = vmatpush3.msra.mxu1 %v29433_v59  ;;  %v10955_v7 = vand.u32 4294901760, %v10954_v39  ;;  %v10962_v10 = vsub.f32 %v29761_v0, %v10961_v43  ;;  %v33729_v30 = vld [vmem:[#allocation37_spill] sm:$0xff] }
 0x910   :  { %24093 = vmatprep.subr.mxu1 %v29438_v45 }
 0x911   :  { %33716 = vst [vmem:[#allocation54_spill] sm:$0xff] %v29774_v58  ;;  %v33225_v42 = vand.u32 4294901760, %v29772_v47  ;;  %v29783_v57 = vsub.f32 %v10817_v35, %v29774_v58  ;;  %24094 = vmatpush3.msra.mxu1 %v29444_v49  ;;  %11216 = vmatprep.mubr.f32.mxu1 %v29774_v58  ;;  %v10956_v31 = vsub.f32 %v10954_v39, %v10955_v7  ;;  %v10963_v41 = vand.u32 4294901760, %v10962_v10  ;;  %v33732_v35 = vld [vmem:[#allocation34_spill] sm:$0xff]  ;;  %v33734_v10 = vld [vmem:[#allocation23_spill] sm:$0xff] }
 0x912   :  { %24095 = vmatprep.subr.mxu1 %v29451_v3  ;;  %11218 = vmatmul.mubr.f32.gmra.mxu1 %v29767_v5  ;;  %v33744_v5 = vld [vmem:[#allocation40_spill] sm:$0xff] }
 0x913   :  { %24096 = vmatpush3.msra.mxu1 %v29458_v28  ;;  %11469 = vmatprep.mubr.f32.mxu1 %v10955_v7  ;;  %v10957_v32 = vand.u32 4294901760, %v10956_v31  ;;  %v33226_v2 = vand.u32 4294901760, %v29783_v57  ;;  %v10977_v55 = vsub.f32 %v29772_v47, %v33225_v42  ;;  %v33733_v7 = vld [vmem:[#allocation41_spill] sm:$0xff]  ;;  %v33735_v31 = vld [vmem:[#allocation43_spill] sm:$0xff]  ;;  %v33742_v42 = vld [vmem:[#allocation38_spill] sm:$0xff]  ;;  %v33745_v58 = vand.u32 4294901760, %v29783_v57 }
 0x914   :  { %24097 = vmatprep.subr.mxu1 %v29468_v29 }
 0x915   :  { %24098 = vmatpush3.msra.mxu1 %v29478_v54  ;;  %10958 = vmatprep.mubr.f32.mxu0 %v10957_v32  ;;  %v10971_v53 = vsub.f32 %v29783_v57, %v33226_v2  ;;  %v10978_v60 = vand.u32 4294901760, %v10977_v55  ;;  %v33736_v32 = vld [vmem:[#allocation16_spill] sm:$0xff]  ;;  %v33739_v55 = vld [vmem:[#allocation47_spill] sm:$0xff]  ;;  %v33743_v2 = vld [vmem:[#allocation21_spill] sm:$0xff] }
 0x916   :  { %24099 = vmatprep.subr.mxu1 %v29501_v6  ;;  %10964 = vmatmul.mubr.f32.vlgmr.msra.gmra.mxu0 %v10963_v41  ;;  %v33737_v41 = vld [vmem:[#allocation45_spill] sm:$0xff] }
 0x917   :  { %24054 = vmatpush3.msra.mxu0 %v29442_v40  ;;  %24100 = vmatpush3.msra.mxu1 %v29507_v14  ;;  %v10972_v21 = vand.u32 4294901760, %v10971_v53  ;;  %v33738_v53 = vld [vmem:[#allocation20_spill] sm:$0xff] }
 0x918   :  { %24055 = vmatprep.subr.mxu0 %v29449_v20  ;;  %24101 = vmatprep.subr.mxu1 %v29515_v15 }
 0x919   :  { %24056 = vmatpush3.msra.mxu0 %v29456_v8  ;;  %24102 = vmatpush3.msra.mxu1 %v29524_v44 }
 0x91a   :  { %10973 = vmatprep.mubr.f32.mxu0 %v10972_v21  ;;  %24057 = vmatprep.subr.mxu0 %v29466_v19  ;;  %v33740_v21 = vld [vmem:[#allocation35_spill] sm:$0xff] }
 0x91b   :  { %24103 = vmatprep.subr.mxu1 %v29531_v52  ;;  %10979 = vmatmul.mubr.f32.gmra.mxu0 %v10978_v60  ;;  %v33741_v60 = vld [vmem:[#allocation49_spill] sm:$0xff] }
 0x91c   :  { %24058 = vmatpush3.msra.mxu0 %v29476_v9  ;;  %24104 = vmatpush3.msra.mxu1 %v29538_v63 }
 0x91d   :  { %24059 = vmatprep.subr.mxu0 %v29486_v36  ;;  %11353 = vmatprep.mubr.f32.mxu0 %v10954_v39  ;;  %v33731_v39 = vld [vmem:[#allocation39_spill] sm:$0xff] }
 0x91e   :  { %24105 = vmatprep.subr.mxu1 %v29548_v50  ;;  %24060 = vmatpush3.msra.mxu0 %v29494_v1 }
 0x91f   :  { %24106 = vmatpush3.msra.mxu1 %v29558_v38  ;;  %24061 = vmatprep.subr.mxu0 %v29513_v26 }
 0x920   :  { %24107 = vmatprep.subr.mxu1 %v29581_v11  ;;  %24062 = vmatpush3.msra.mxu0 %v29522_v12 }
 0x921   :  { %24108 = vmatpush3.msra.mxu1 %v29587_v22  ;;  %24063 = vmatprep.subr.mxu0 %v29529_v18 }
 0x922   :  { %24109 = vmatprep.subr.mxu1 %v29595_v13  ;;  %24064 = vmatpush3.msra.mxu0 %v29536_v51 }
 0x923   :  { %24110 = vmatpush3.msra.mxu1 %v33717_v56  ;;  %24065 = vmatprep.subr.mxu0 %v33718_v61 }
 0x924   :  { %24111 = vmatprep.subr.mxu1 %v33719_v62  ;;  %24066 = vmatpush3.msra.mxu0 %v33720_v23 }
 0x925   :  { %24112 = vmatpush3.msra.mxu1 %v33721_v37  ;;  %24067 = vmatprep.subr.mxu0 %v33722_v4 }
 0x926   :  { %24113 = vmatprep.subr.mxu1 %v33723_v17  ;;  %24068 = vmatpush3.msra.mxu0 %v33724_v16 }
 0x927   :  { %24114 = vmatpush3.msra.mxu1 %v33725_v27  ;;  %24069 = vmatprep.subr.mxu0 %v33726_v24 }
 0x928   :  { %24115 = vmatprep.subr.mxu1 %v33727_v46  ;;  %24070 = vmatpush3.msra.mxu0 %v33728_v34 }
 0x929   :  { %24116 = vmatpush3.msra.mxu1 %v33729_v30  ;;  %24071 = vmatprep.subr.mxu0 %v33730_v48 }
 0x92a   :  { %24117 = vmatprep.subr.mxu1 %v33731_v39  ;;  %24072 = vmatpush3.msra.mxu0 %v33732_v35 }
 0x92b   :  { %24118 = vmatpush3.msra.mxu1 %v33733_v7  ;;  %24073 = vmatprep.subr.mxu0 %v33734_v10 }
 0x92c   :  { %24119 = vmatprep.subr.mxu1 %v33735_v31  ;;  %24074 = vmatpush3.msra.mxu0 %v33736_v32 }
 0x92d   :  { %24120 = vmatpush3.msra.mxu1 %v33737_v41  ;;  %24075 = vmatprep.subr.mxu0 %v33738_v53 }
 0x92e   :  { %24121 = vmatprep.subr.mxu1 %v33739_v55  ;;  %24076 = vmatpush3.msra.mxu0 %v33740_v21  ;;  %v33747_v21 = vld [vmem:[#allocation44_spill] sm:$0xff] }
 0x92f   :  { %24122 = vmatpush3.msra.mxu1 %v33741_v60  ;;  %24077 = vmatprep.subr.mxu0 %v33742_v42  ;;  %v33748_v42 = vld [vmem:[#allocation46_spill] sm:$0xff] }
 0x930   :  { %11473 = vmatmul.mubr.f32.vlgmr.msra.gmra.mxu1 %v10961_v43  ;;  %24167 = vmatprep.subr.mxu1 %v33743_v2  ;;  %v33749_v43 = vand.u32 4294901760, %v29772_v47  ;;  %v33750_v2 = vld [vmem:[#allocation48_spill] sm:$0xff] }
 0x931   :  { %24078 = vmatpush3.msra.mxu0 %v33744_v5  ;;  %11480 = vmatprep.mubr.f32.mxu1 %v33745_v58 }
 0x932   :  { %24168 = vmatpush3.msra.mxu1 %v29433_v59  ;;  %24079 = vmatprep.subr.mxu0 %v33746_v33  ;;  %v33751_v59 = vld [vmem:[#allocation50_spill] sm:$0xff] }
 0x933   :  { %24169 = vmatprep.subr.mxu1 %v29438_v45  ;;  %24080 = vmatpush3.msra.mxu0 %v33747_v21  ;;  %v33752_v45 = vld [vmem:[#allocation51_spill] sm:$0xff] }
 0x934   :  { %24170 = vmatpush3.msra.mxu1 %v29444_v49  ;;  %24081 = vmatprep.subr.mxu0 %v33748_v42  ;;  %v33753_v49 = vld [vmem:[#allocation25_spill] sm:$0xff] }
 0x935   :  { %11484 = vmatmul.mubr.f32.gmra.mxu1 %v33749_v43  ;;  %24171 = vmatprep.subr.mxu1 %v29451_v3  ;;  %v33754_v58 = vand.u32 4294901760, %v33753_v49  ;;  %v33755_v3 = vand.u32 4294901760, %v29442_v40  ;;  %v33759_v40 = vand.u32 4294901760, %v29476_v9  ;;  %v33763_v9 = vand.u32 4294901760, %v29522_v12 }
 0x936   :  { %24082 = vmatpush3.msra.mxu0 %v33750_v2  ;;  %24172 = vmatpush3.msra.mxu1 %v29458_v28  ;;  %v33756_v28 = vand.u32 4294901760, %v29449_v20  ;;  %v33760_v20 = vand.u32 4294901760, %v29486_v36  ;;  %v33764_v36 = vand.u32 4294901760, %v29529_v18  ;;  %v33770_v12 = vand.u32 4294901760, %v33726_v24 }
 0x937   :  { %11761 = vmatprep.mubr.f32.mxu1 %v29763_v25  ;;  %24083 = vmatprep.subr.mxu0 %v33751_v59  ;;  %v33772_v18 = vand.u32 4294901760, %v33730_v48 }
 0x938   :  { %24173 = vmatprep.subr.mxu1 %v29468_v29  ;;  %24084 = vmatpush3.msra.mxu0 %v33752_v45  ;;  %v33757_v29 = vand.u32 4294901760, %v29456_v8  ;;  %v33761_v8 = vand.u32 4294901760, %v29494_v1  ;;  %v33765_v1 = vand.u32 4294901760, %v29536_v51  ;;  %v33774_v51 = vand.u32 4294901760, %v33734_v10 }
 0x939   :  { %24174 = vmatpush3.msra.mxu1 %v29478_v54  ;;  %11356 = vmatmul.mubr.f32.vlgmr.msra.gmra.mxu0 %v29761_v0  ;;  %v33758_v54 = vand.u32 4294901760, %v29466_v19  ;;  %v33762_v19 = vand.u32 4294901760, %v29513_v26  ;;  %v33768_v26 = vand.u32 4294901760, %v33722_v4  ;;  %v33781_v0 = vld [vmem:[#allocation52_spill] sm:$0xff]  ;;  %v33791_v4 = vand.u32 4294901760, %v33752_v45 }
 0x93a   :  { %24129 = vmatprep.subr.mxu0 %v33754_v58  ;;  %24175 = vmatprep.subr.mxu1 %v29501_v6  ;;  %v33766_v6 = vand.u32 4294901760, %v33718_v61  ;;  %v33786_v61 = vand.u32 4294901760, %v33748_v42 }
 0x93b   :  { %11362 = vmatprep.mubr.f32.mxu0 %v29783_v57  ;;  %24130 = vmatpush3.msra.mxu0 %v33755_v3  ;;  %v33784_v57 = vand.u32 4294901760, %v33746_v33 }
 0x93c   :  { %24176 = vmatpush3.msra.mxu1 %v29507_v14  ;;  %24131 = vmatprep.subr.mxu0 %v33756_v28  ;;  %v33767_v14 = vand.u32 4294901760, %v33720_v23  ;;  %v33788_v23 = vand.u32 4294901760, %v33750_v2 }
 0x93d   :  { %24177 = vmatprep.subr.mxu1 %v29515_v15  ;;  %24132 = vmatpush3.msra.mxu0 %v33757_v29  ;;  %v33769_v15 = vand.u32 4294901760, %v33724_v16 }
 0x93e   :  { %24178 = vmatpush3.msra.mxu1 %v29524_v44  ;;  %11365 = vmatmul.mubr.f32.gmra.mxu0 %v29772_v47  ;;  %v33771_v44 = vand.u32 4294901760, %v33728_v34  ;;  %v33783_v47 = vld [vmem:[#allocation54_spill] sm:$0xff] }
 0x93f   :  { %24133 = vmatprep.subr.mxu0 %v33758_v54  ;;  %24179 = vmatprep.subr.mxu1 %v29531_v52  ;;  %v33773_v52 = vand.u32 4294901760, %v33732_v35 }
 0x940   :  { %24134 = vmatpush3.msra.mxu0 %v33759_v40  ;;  %11650 = vmatprep.mubr.f32.mxu0 %v29763_v25  ;;  %v33782_v25 = vand.u32 4294901760, %v33744_v5  ;;  %v33790_v5 = vmov 0.0  }
 0x941   :  { %24180 = vmatpush3.msra.mxu1 %v29538_v63  ;;  %24135 = vmatprep.subr.mxu0 %v33760_v20  ;;  %v33775_v63 = vand.u32 4294901760, %v33736_v32 }
 0x942   :  { %24181 = vmatprep.subr.mxu1 %v29548_v50  ;;  %24136 = vmatpush3.msra.mxu0 %v33761_v8  ;;  %v33776_v50 = vand.u32 4294901760, %v33738_v53 }
 0x943   :  { %24182 = vmatpush3.msra.mxu1 %v29558_v38  ;;  %24137 = vmatprep.subr.mxu0 %v33762_v19  ;;  %v33777_v38 = vld [vmem:[#allocation35_spill] sm:$0xff] }
 0x944   :  { %24183 = vmatprep.subr.mxu1 %v29581_v11  ;;  %24138 = vmatpush3.msra.mxu0 %v33763_v9  ;;  %v33778_v11 = vand.u32 4294901760, %v33777_v38 }
 0x945   :  { %24184 = vmatpush3.msra.mxu1 %v29587_v22  ;;  %24139 = vmatprep.subr.mxu0 %v33764_v36  ;;  %v33779_v22 = vld [vmem:[#allocation38_spill] sm:$0xff] }
 0x946   :  { %24185 = vmatprep.subr.mxu1 %v29595_v13  ;;  %24140 = vmatpush3.msra.mxu0 %v33765_v1  ;;  %v33780_v13 = vand.u32 4294901760, %v33779_v22  ;;  %v33793_v22 = vld [vmem:[#allocation24_spill] sm:$0xff] }
 0x947   :  { %24186 = vmatpush3.msra.mxu1 %v33717_v56  ;;  %24141 = vmatprep.subr.mxu0 %v33766_v6  ;;  %v33785_v56 = vand.u32 4294901760, %v33747_v21 }
 0x948   :  { %24187 = vmatprep.subr.mxu1 %v33719_v62  ;;  %24142 = vmatpush3.msra.mxu0 %v33767_v14  ;;  %v33787_v62 = vld [vmem:[#allocation53_spill] sm:$0xff] }
 0x949   :  { %24188 = vmatpush3.msra.mxu1 %v33721_v37  ;;  %24143 = vmatprep.subr.mxu0 %v33768_v26  ;;  %v33789_v37 = vand.u32 4294901760, %v33751_v59 }
 0x94a   :  { %24189 = vmatprep.subr.mxu1 %v33723_v17  ;;  %24144 = vmatpush3.msra.mxu0 %v33769_v15 }
 0x94b   :  { %24190 = vmatpush3.msra.mxu1 %v33725_v27  ;;  %24145 = vmatprep.subr.mxu0 %v33770_v12 }
 0x94c   :  { %24191 = vmatprep.subr.mxu1 %v33727_v46  ;;  %24146 = vmatpush3.msra.mxu0 %v33771_v44 }
 0x94d   :  { %24192 = vmatpush3.msra.mxu1 %v33729_v30  ;;  %24147 = vmatprep.subr.mxu0 %v33772_v18 }
 0x94e   :  { %24193 = vmatprep.subr.mxu1 %v33731_v39  ;;  %24148 = vmatpush3.msra.mxu0 %v33773_v52 }
 0x94f   :  { %24194 = vmatpush3.msra.mxu1 %v33733_v7  ;;  %24149 = vmatprep.subr.mxu0 %v33774_v51 }
 0x950   :  { %24195 = vmatprep.subr.mxu1 %v33735_v31  ;;  %24150 = vmatpush3.msra.mxu0 %v33775_v63  ;;  %v23552_v31 = vld [vmem:[%s32961_s8] ss:$0 sm:$0xff] }
 0x951   :  { %24196 = vmatpush3.msra.mxu1 %v33737_v41  ;;  %24151 = vmatprep.subr.mxu0 %v33776_v50  ;;  %v33792_v50 = vld [vmem:[#allocation19_spill] sm:$0xff] }
 0x952   :  { %24197 = vmatprep.subr.mxu1 %v33739_v55  ;;  %24152 = vmatpush3.msra.mxu0 %v33778_v11 }
 0x953   :  { %24198 = vmatpush3.msra.mxu1 %v33741_v60  ;;  %24153 = vmatprep.subr.mxu0 %v33780_v13 }
 0x954   :  { %11763 = vmatmul.mubr.f32.vlgmr.msra.gmra.mxu1 %v33781_v0  ;;  %24154 = vmatpush3.msra.mxu0 %v33782_v25  ;;  %v11863_v25 = vld [vmem:[#allocation2 + $0x2e8] sm:$0xff] }
 0x955   :  { %11768 = vmatprep.mubr.f32.mxu1 %v33783_v47  ;;  %24155 = vmatprep.subr.mxu0 %v33784_v57 }
 0x956   :  { %24156 = vmatpush3.msra.mxu0 %v33785_v56  ;;  %v29982_v56 = vand.u32 4294901760, %v11863_v25 }
 0x957   :  { %24157 = vmatprep.subr.mxu0 %v33786_v61 }
 0x958   :  { %11770 = vmatmul.mubr.f32.gmra.mxu1 %v33787_v62  ;;  %24158 = vmatpush3.msra.mxu0 %v33788_v23  ;;  %v11858_v23 = vld [vmem:[#allocation2 + $0x2c0] sm:$0xff] }
 0x959   :  { %24159 = vmatprep.subr.mxu0 %v33789_v37  ;;  %12227 = vmatprep.mubr.f32.mxu1 %v33790_v5  ;;  %v11857_v37 = vld [vmem:[#allocation2 + $0x2b8] sm:$0xff] }
 0x95a   :  { %24160 = vmatpush3.msra.mxu0 %v33791_v4 }
 0x95b   :  { %11652 = vmatmul.mubr.f32.vlgmr.msra.gmra.mxu0 %v33781_v0  ;;  %v11864_v0 = vld [vmem:[#allocation2 + $0x2f0] sm:$0xff] }
 0x95c   :  { %11657 = vmatprep.mubr.f32.mxu0 %v33783_v47  ;;  %v11861_v47 = vld [vmem:[#allocation2 + $0x2d8] sm:$0xff]  ;;  %v29980_v57 = vand.u32 4294901760, %v11864_v0 }
 0x95d   :  { %v29984_v61 = vand.u32 4294901760, %v11861_v47 }
 0x95e   :  { %11885 = vmatprep.subr.mxu0 %v29980_v57 }
 0x95f   :  { %11659 = vmatmul.mubr.f32.gmra.mxu0 %v33787_v62  ;;  %v11860_v62 = vld [vmem:[#allocation2 + $0x2d0] sm:$0xff] }
 0x960   :  { %11980 = vmatprep.mubr.f32.mxu0 %v33790_v5  ;;  %v29986_v4 = vand.u32 4294901760, %v11860_v62  ;;  %11887 = vmatpush1.msra.mxu0 %v29982_v56 }
 0x961   :  { %11889 = vmatprep.subr.mxu0 %v29984_v61 }
 0x962   :  { %11891 = vmatpush1.msra.mxu0 %v29986_v4 }
 0x9ce   :  { %v24047_v33 = vpop.f32.mrf.mxu1 }
 0x9d0   :  { %v24048_v42 = vpop.f32.mrf.mxu1 }
 0x9d1   :  { %v24049_v60 = vadd.f32 %v24048_v42, %v24047_v33  ;;  %v29988_v33 = vand.u32 4294901760, %v11858_v23  ;;  %v29990_v42 = vand.u32 4294901760, %v11857_v37 }
 0x9d2   :  { %v24050_v16 = vpop.f32.mrf.mxu1 }
 0x9d3   :  { %11893 = vmatprep.subr.mxu0 %v29988_v33 }
 0x9d4   :  { %v24051_v24 = vpop.f32.mrf.mxu1  ;;  %11895 = vmatpush1.msra.mxu0 %v29990_v42 }
 0x9d5   :  { %v24052_v58 = vadd.f32 %v24051_v24, %v24050_v16  ;;  %v29993_v16 = vsub.f32 %v11864_v0, %v29980_v57  ;;  %v29999_v24 = vsub.f32 %v11861_v47, %v29984_v61 }
 0x9d6   :  { %v24009_v17 = vpop.f32.mrf.mxu0 }
 0x9d8   :  { %v24010_v27 = vpop.f32.mrf.mxu0 }
 0x9d9   :  { %v24011_v10 = vadd.f32 %v24010_v27, %v24009_v17  ;;  %v11855_v17 = vld [vmem:[#allocation2 + $0x2a8] sm:$0xff]  ;;  %v29996_v27 = vsub.f32 %v11863_v25, %v29982_v56  ;;  %v11846_v25 = vld [vmem:[#allocation2 + $0x260] sm:$0xff] }
 0x9db   :  { %v24012_v46 = vpop.f32.mrf.mxu0  ;;  %v10966_v53 = vadd.f32 %v24011_v10, %v23552_v31 }
 0x9dd   :  { %v24013_v30 = vpop.f32.mrf.mxu0  ;;  %v11213_v45 = vadd.f32 %v24049_v60, %v10966_v53 }
 0x9de   :  { %v24014_v55 = vadd.f32 %v24013_v30, %v24012_v46  ;;  %v30001_v46 = vand.u32 4294901760, %v11855_v17  ;;  %v30008_v30 = vsub.f32 %v11858_v23, %v29988_v33  ;;  %v30087_v23 = vand.u32 4294901760, %v11846_v25 }
 0x9e0   :  { %v10981_v59 = vadd.f32 %v24014_v55, %v23552_v31  ;;  %v30018_v10 = vsub.f32 %v11855_v17, %v30001_v46  ;;  %11897 = vmatprep.subr.mxu0 %v30001_v46 }
 0x9e2   :  { %v11220_v40 = vadd.f32 %v24052_v58, %v10981_v59  ;;  %v33242_v60 = vand.u32 4294901760, %v30018_v10 }
 0x9f0   :  { %v24123_v34 = vpop.f32.mrf.mxu1 }
 0x9f2   :  { %v24124_v48 = vpop.f32.mrf.mxu1 }
 0x9f3   :  { %v24125_v54 = vadd.f32 %v24124_v48, %v24123_v34  ;;  %v30005_v34 = vsub.f32 %v11860_v62, %v29986_v4  ;;  %v30011_v48 = vsub.f32 %v11857_v37, %v29990_v42  ;;  %v11845_v37 = vld [vmem:[#allocation2 + $0x258] sm:$0xff] }
 0x9f5   :  { %v24126_v35 = vpop.f32.mrf.mxu1  ;;  %v33246_v31 = vand.u32 4294901760, %v30005_v34 }
 0x9f7   :  { %v24127_v32 = vpop.f32.mrf.mxu1 }
 0x9f8   :  { %v24128_v6 = vadd.f32 %v24127_v32, %v24126_v35  ;;  %v33248_v35 = vand.u32 4294901760, %v29996_v27  ;;  %v33244_v32 = vand.u32 4294901760, %v30008_v30 }
 0x9f9   :  { %v24085_v39 = vpop.f32.mrf.mxu0 }
 0x9fa   :  { %v12012_v55 = vsub.f32 %v29996_v27, %v33248_v35  ;;  %v11827_v35 = vld [vmem:[#allocation2 + $0x1c8] sm:$0xff] }
 0x9fb   :  { %v24086_v7 = vpop.f32.mrf.mxu0 }
 0x9fc   :  { %v24087_v43 = vadd.f32 %v24086_v7, %v24085_v39  ;;  %v33250_v39 = vand.u32 4294901760, %v29993_v16  ;;  %v33247_v7 = vand.u32 4294901760, %v29999_v24 }
 0x9fe   :  { %v24088_v41 = vpop.f32.mrf.mxu0  ;;  %v11358_v3 = vadd.f32 %v24087_v43, %v11213_v45  ;;  %v12006_v53 = vsub.f32 %v29993_v16, %v33250_v39  ;;  %v12024_v43 = vsub.f32 %v30005_v34, %v33246_v31 }
 0xa00   :  { %v24089_v2 = vpop.f32.mrf.mxu0  ;;  %v11475_v9 = vadd.f32 %v24125_v54, %v11358_v3  ;;  %v12007_v45 = vand.u32 4294901760, %v12006_v53  ;;  %v12042_v3 = vsub.f32 %v30018_v10, %v33242_v60  ;;  %v11830_v60 = vld [vmem:[#allocation2 + $0x1e0] sm:$0xff] }
 0xa01   :  { %v24090_v28 = vadd.f32 %v24089_v2, %v24088_v41  ;;  %v33243_v41 = vand.u32 4294901760, %v30011_v48  ;;  %v12030_v2 = vsub.f32 %v30008_v30, %v33244_v32  ;;  %v30210_v39 = vand.u32 4294901760, %v11830_v60 }
 0xa02   :  { %12008 = vmatprep.subr.mxu1 %v12007_v45  ;;  %v30105_v45 = vsub.f32 %v11846_v25, %v30087_v23 }
 0xa03   :  { %v11367_v19 = vadd.f32 %v24090_v28, %v11220_v40  ;;  %v12036_v59 = vsub.f32 %v30011_v48, %v33243_v41  ;;  %v12025_v28 = vand.u32 4294901760, %v12024_v43  ;;  %v12043_v40 = vand.u32 4294901760, %v12042_v3  ;;  %v11843_v43 = vld [vmem:[#allocation2 + $0x248] sm:$0xff]  ;;  %33801 = vst [vmem:[#allocation31_spill] sm:$0xff] %v30210_v39 }
 0xa05   :  { %v11486_v44 = vadd.f32 %v24128_v6, %v11367_v19  ;;  %v12037_v54 = vand.u32 4294901760, %v12036_v59 }
 0xa14   :  { %v24199_v21 = vpop.f32.mrf.mxu1 }
 0xa16   :  { %v24200_v49 = vpop.f32.mrf.mxu1 }
 0xa17   :  { %v24201_v14 = vadd.f32 %v24200_v49, %v24199_v21  ;;  %v12018_v21 = vsub.f32 %v29999_v24, %v33247_v7  ;;  %v12013_v49 = vand.u32 4294901760, %v12012_v55 }
 0xa18   :  { %v24202_v20 = vpop.f32.mrf.mxu1 }
 0xa19   :  { %v12019_v58 = vand.u32 4294901760, %v12018_v21  ;;  %12014 = vmatpush1.msra.mxu1 %v12013_v49  ;;  %v30097_v21 = vand.u32 4294901760, %v11845_v37  ;;  %v30107_v49 = vand.u32 4294901760, %v11843_v43 }
 0xa1a   :  { %v24203_v15 = vpop.f32.mrf.mxu1 }
 0xa1b   :  { %v24161_v29 = vpop.f32.mrf.mxu0  ;;  %v24204_v51 = vadd.f32 %v24203_v15, %v24202_v20  ;;  %12020 = vmatprep.subr.mxu1 %v12019_v58  ;;  %v11852_v15 = vld [vmem:[#allocation2 + $0x290] sm:$0xff]  ;;  %v11842_v58 = vld [vmem:[#allocation2 + $0x240] sm:$0xff] }
 0xa1c   :  { %12026 = vmatpush1.msra.mxu1 %v12025_v28 }
 0xa1d   :  { %v24162_v8 = vpop.f32.mrf.mxu0 }
 0xa1e   :  { %v24163_v36 = vadd.f32 %v24162_v8, %v24161_v29  ;;  %v12031_v29 = vand.u32 4294901760, %v12030_v2 }
 0xa1f   :  { %v24164_v1 = vpop.f32.mrf.mxu0 }
 0xa20   :  { %v11654_v26 = vadd.f32 %v24163_v36, %v11475_v9  ;;  %12032 = vmatprep.subr.mxu1 %v12031_v29 }
 0xa21   :  { %v24165_v12 = vpop.f32.mrf.mxu0  ;;  %12038 = vmatpush1.msra.mxu1 %v12037_v54  ;;  %v30115_v54 = vsub.f32 %v11845_v37, %v30097_v21 }
 0xa22   :  { %v24166_v18 = vadd.f32 %v24165_v12, %v24164_v1  ;;  %v11765_v52 = vadd.f32 %v24201_v14, %v11654_v26  ;;  %12044 = vmatprep.subr.mxu1 %v12043_v40  ;;  %v11854_v14 = vld [vmem:[#allocation2 + $0x2a0] sm:$0xff]  ;;  %v11840_v40 = vld [vmem:[#allocation2 + $0x230] sm:$0xff] }
 0xa23   :  { %v30058_v26 = vand.u32 4294901760, %v11854_v14 }
 0xa24   :  { %v11661_v63 = vadd.f32 %v24166_v18, %v11486_v44  ;;  %v29973_v38 = vadd.f32 %v11765_v52, %v33792_v50  ;;  %v30062_v44 = vand.u32 4294901760, %v11852_v15  ;;  %v11851_v18 = vld [vmem:[#allocation2 + $0x288] sm:$0xff] }
 0xa25   :  { %v30065_v52 = vsub.f32 %v11854_v14, %v30058_v26  ;;  %11899 = vmatpush1.msra.mxu0 %v30058_v26 }
 0xa26   :  { %11779 = vadd.xlane.f32.xlu1 %v29973_v38  ;;  %v11772_v11 = vadd.f32 %v24204_v51, %v11661_v63  ;;  %v30067_v51 = vand.u32 4294901760, %v11851_v18  ;;  %v11849_v63 = vld [vmem:[#allocation2 + $0x278] sm:$0xff]  ;;  %v30071_v50 = vsub.f32 %v11852_v15, %v30062_v44  ;;  %11901 = vmatprep.subr.mxu0 %v30062_v44 }
 0xa28   :  { %v29977_v13 = vadd.f32 %v11772_v11, %v33793_v22  ;;  %v11848_v11 = vld [vmem:[#allocation2 + $0x270] sm:$0xff]  ;;  %v33240_v22 = vand.u32 4294901760, %v30065_v52  ;;  %11903 = vmatpush1.msra.mxu0 %v30067_v51  ;;  %v33239_v47 = vand.u32 4294901760, %v30071_v50 }
 0xa29   :  { %v30080_v0 = vand.u32 4294901760, %v11848_v11 }
 0xa2a   :  { %11781 = vadd.xlane.f32.xlu0 %v29977_v13  ;;  %v12048_v17 = vsub.f32 %v30065_v52, %v33240_v22  ;;  %v12054_v2 = vsub.f32 %v30071_v50, %v33239_v47 }
 0xa2b   :  { %v30095_v55 = vsub.f32 %v11848_v11, %v30080_v0 }
 0xa2c   :  { %v12049_v3 = vand.u32 4294901760, %v12048_v17  ;;  %v30136_v17 = vand.u32 4294901760, %v11840_v40 }
 0xa2d   :  { %v33234_v29 = vand.u32 4294901760, %v30095_v55 }
 0xa2e   :  { %12050 = vmatpush1.msra.mxu1 %v12049_v3 }
 0xa2f   :  { %v12072_v15 = vsub.f32 %v30095_v55, %v33234_v29 }
 0xaaf   :  { %v11780_v20 = vpop.xlane.xlu1 %11779 }
 0xab0   :  { %v11783_v8 = vmul.f32 0.0078125, %v11780_v20  ;;  %v12055_v20 = vand.u32 4294901760, %v12054_v2  ;;  %v12073_v2 = vand.u32 4294901760, %v12072_v15 }
 0xab2   :  { %v30051_v19 = vsub.f32 %v29973_v38, %v11783_v8  ;;  %v30073_v38 = vand.u32 4294901760, %v11849_v63  ;;  %12056 = vmatprep.subr.mxu1 %v12055_v20 }
 0xab3   :  { %v11782_v9 = vpop.xlane.xlu0 %11781 }
 0xab4   :  { %v11784_v36 = vmul.f32 0.0078125, %v11782_v9  ;;  %v11787_v1 = vmul.f32 %v30051_v19, %v30051_v19  ;;  %v30085_v62 = vsub.f32 %v11849_v63, %v30073_v38  ;;  %11905 = vmatprep.subr.mxu0 %v30073_v38  ;;  %v33233_v9 = vand.u32 4294901760, %v30105_v45  ;;  %v11837_v63 = vld [vmem:[#allocation2 + $0x218] sm:$0xff] }
 0xab5   :  { %11907 = vmatpush1.msra.mxu0 %v30080_v0  ;;  %v30153_v15 = vand.u32 4294901760, %v11837_v63 }
 0xab6   :  { %v30056_v6 = vsub.f32 %v29977_v13, %v11784_v36  ;;  %11789 = vadd.xlane.f32.xlu1 %v11787_v1  ;;  %v30078_v13 = vsub.f32 %v11851_v18, %v30067_v51  ;;  %v33236_v59 = vand.u32 4294901760, %v30085_v62  ;;  %11909 = vmatprep.subr.mxu0 %v30087_v23  ;;  %v30123_v36 = vsub.f32 %v11843_v43, %v30107_v49  ;;  %v11839_v1 = vld [vmem:[#allocation2 + $0x228] sm:$0xff]  ;;  %v11836_v43 = vld [vmem:[#allocation2 + $0x210] sm:$0xff] }
 0xab7   :  { %11911 = vmatpush1.msra.mxu0 %v30097_v21  ;;  %v30130_v18 = vand.u32 4294901760, %v11842_v58  ;;  %v12078_v25 = vsub.f32 %v30105_v45, %v33233_v9  ;;  %v30144_v20 = vand.u32 4294901760, %v11839_v1  ;;  %v30165_v47 = vsub.f32 %v11837_v63, %v30153_v15 }
 0xab8   :  { %v11788_v12 = vmul.f32 %v30056_v6, %v30056_v6  ;;  %v33237_v53 = vand.u32 4294901760, %v30078_v13  ;;  %v12066_v8 = vsub.f32 %v30085_v62, %v33236_v59  ;;  %11913 = vmatprep.subr.mxu0 %v30107_v49  ;;  %v33238_v37 = vand.u32 4294901760, %v30123_v36 }
 0xab9   :  { %11915 = vmatpush1.msra.mxu0 %v30130_v18  ;;  %v12079_v9 = vand.u32 4294901760, %v12078_v25  ;;  %v11831_v25 = vld [vmem:[#allocation2 + $0x1e8] sm:$0xff]  ;;  %33796 = vst [vmem:[#allocation29_spill] sm:$0xff] %v30165_v47  ;;  %v33253_v63 = vand.u32 4294901760, %v30165_v47 }
 0xaba   :  { %11791 = vadd.xlane.f32.xlu0 %v11788_v12  ;;  %v12060_v28 = vsub.f32 %v30078_v13, %v33237_v53  ;;  %v33235_v12 = vand.u32 4294901760, %v30115_v54  ;;  %v12067_v11 = vand.u32 4294901760, %v12066_v8  ;;  %v11834_v8 = vld [vmem:[#allocation2 + $0x200] sm:$0xff]  ;;  %v12090_v29 = vsub.f32 %v30123_v36, %v33238_v37  ;;  %11917 = vmatprep.subr.mxu0 %v30136_v17 }
 0xabb   :  { %v30158_v53 = vsub.f32 %v11839_v1, %v30144_v20  ;;  %11919 = vmatpush1.msra.mxu0 %v30144_v20  ;;  %v30167_v22 = vand.u32 4294901760, %v11834_v8  ;;  %v12114_v31 = vsub.f32 %v30165_v47, %v33253_v63 }
 0xabc   :  { %v12061_v14 = vand.u32 4294901760, %v12060_v28  ;;  %v12084_v3 = vsub.f32 %v30115_v54, %v33235_v12  ;;  %v30142_v28 = vsub.f32 %v11842_v58, %v30130_v18  ;;  %v11833_v12 = vld [vmem:[#allocation2 + $0x1f8] sm:$0xff]  ;;  %11921 = vmatprep.subr.mxu0 %v30153_v15 }
 0xabd   :  { %33795 = vst [vmem:[#allocation22_spill] sm:$0xff] %v30158_v53  ;;  %v12115_v63 = vand.u32 4294901760, %v12114_v31  ;;  %v11822_v31 = vld [vmem:[#allocation2 + $0x1a0] sm:$0xff] }
 0xabe   :  { %12062 = vmatpush1.msra.mxu1 %v12061_v14  ;;  %v30151_v14 = vsub.f32 %v11840_v40, %v30136_v17  ;;  %v12085_v58 = vand.u32 4294901760, %v12084_v3  ;;  %v33241_v59 = vand.u32 4294901760, %v30142_v28  ;;  %v12091_v40 = vand.u32 4294901760, %v12090_v29 }
 0xabf   :  { %12068 = vmatprep.subr.mxu1 %v12067_v11  ;;  %v30160_v11 = vand.u32 4294901760, %v11836_v43  ;;  %v30177_v29 = vand.u32 4294901760, %v11833_v12 }
 0xac0   :  { %33794 = vst [vmem:[#allocation32_spill] sm:$0xff] %v30151_v14  ;;  %12074 = vmatpush1.msra.mxu1 %v12073_v2  ;;  %v33245_v37 = vand.u32 4294901760, %v30151_v14  ;;  %v12096_v1 = vsub.f32 %v30142_v28, %v33241_v59  ;;  %v33249_v2 = vand.u32 4294901760, %v30158_v53  ;;  %v30187_v59 = vand.u32 4294901760, %v11831_v25 }
 0xac1   :  { %12080 = vmatprep.subr.mxu1 %v12079_v9  ;;  %v30175_v3 = vsub.f32 %v11836_v43, %v30160_v11  ;;  %11923 = vmatpush1.msra.mxu0 %v30160_v11  ;;  %v30195_v32 = vsub.f32 %v11833_v12, %v30177_v29 }
 0xac2   :  { %12086 = vmatpush1.msra.mxu1 %v12085_v58  ;;  %v12102_v9 = vsub.f32 %v30151_v14, %v33245_v37  ;;  %v30185_v58 = vsub.f32 %v11834_v8, %v30167_v22  ;;  %11925 = vmatprep.subr.mxu0 %v30167_v22  ;;  %v12097_v43 = vand.u32 4294901760, %v12096_v1  ;;  %v12108_v41 = vsub.f32 %v30158_v53, %v33249_v2  ;;  %v11828_v37 = vld [vmem:[#allocation2 + $0x1d0] sm:$0xff]  ;;  %v11825_v53 = vld [vmem:[#allocation2 + $0x1b8] sm:$0xff] }
 0xac3   :  { %33797 = vst [vmem:[#allocation26_spill] sm:$0xff] %v30175_v3  ;;  %12092 = vmatprep.subr.mxu1 %v12091_v40  ;;  %v33258_v40 = vand.u32 4294901760, %v30175_v3  ;;  %33799 = vst [vmem:[#allocation27_spill] sm:$0xff] %v30195_v32  ;;  %11927 = vmatpush1.msra.mxu0 %v30177_v29  ;;  %v30203_v1 = vsub.f32 %v11831_v25, %v30187_v59  ;;  %v30216_v14 = vand.u32 4294901760, %v11828_v37 }
 0xac4   :  { %33798 = vst [vmem:[#allocation30_spill] sm:$0xff] %v30185_v58  ;;  %v12103_v8 = vand.u32 4294901760, %v12102_v9  ;;  %v33261_v7 = vand.u32 4294901760, %v30185_v58  ;;  %11929 = vmatprep.subr.mxu0 %v30187_v59  ;;  %12098 = vmatpush1.msra.mxu1 %v12097_v43  ;;  %v12109_v2 = vand.u32 4294901760, %v12108_v41  ;;  %v33264_v9 = vand.u32 4294901760, %v30195_v32  ;;  %v11824_v41 = vld [vmem:[#allocation2 + $0x1b0] sm:$0xff] }
 0xac5   :  { %33800 = vst [vmem:[#allocation12_spill] sm:$0xff] %v30203_v1  ;;  %v12120_v12 = vsub.f32 %v30175_v3, %v33258_v40  ;;  %v33269_v47 = vand.u32 4294901760, %v30203_v1  ;;  %33802 = vst [vmem:[#allocation18_spill] sm:$0xff] %v30216_v14  ;;  %v30222_v3 = vsub.f32 %v11830_v60, %v30210_v39  ;;  %11931 = vmatpush1.msra.mxu0 %v30210_v39 }
 0xac6   :  { %12104 = vmatprep.subr.mxu1 %v12103_v8  ;;  %v12126_v25 = vsub.f32 %v30185_v58, %v33261_v7  ;;  %v12132_v40 = vsub.f32 %v30195_v32, %v33264_v9  ;;  %v30224_v8 = vand.u32 4294901760, %v11827_v35  ;;  %v11821_v9 = vld [vmem:[#allocation2 + $0x198] sm:$0xff]  ;;  %11933 = vmatprep.subr.mxu0 %v30216_v14 }
 0xac7   :  { %12110 = vmatpush1.msra.mxu1 %v12109_v2  ;;  %v12121_v43 = vand.u32 4294901760, %v12120_v12  ;;  %33803 = vst [vmem:[#allocation15_spill] sm:$0xff] %v30222_v3  ;;  %v12138_v58 = vsub.f32 %v30203_v1, %v33269_v47  ;;  %v30231_v2 = vsub.f32 %v11828_v37, %v30216_v14  ;;  %v30233_v12 = vand.u32 4294901760, %v11825_v53 }
 0xac8   :  { %33804 = vst [vmem:[#allocation36_spill] sm:$0xff] %v30224_v8  ;;  %12116 = vmatprep.subr.mxu1 %v12115_v63  ;;  %v12127_v7 = vand.u32 4294901760, %v12126_v25  ;;  %v12133_v60 = vand.u32 4294901760, %v12132_v40  ;;  %v33274_v32 = vand.u32 4294901760, %v30222_v3  ;;  %v30238_v39 = vsub.f32 %v11827_v35, %v30224_v8  ;;  %v11819_v25 = vld [vmem:[#allocation2 + $0x188] sm:$0xff]  ;;  %11935 = vmatpush1.msra.mxu0 %v30224_v8  ;;  %v11818_v40 = vld [vmem:[#allocation2 + $0x180] sm:$0xff] }
 0xac9   :  { %33805 = vst [vmem:[#allocation17_spill] sm:$0xff] %v30231_v2  ;;  %33806 = vst [vmem:[#allocation37_spill] sm:$0xff] %v30233_v12  ;;  %12122 = vmatpush1.msra.mxu1 %v12121_v43  ;;  %v30240_v63 = vand.u32 4294901760, %v11824_v41  ;;  %v12139_v37 = vand.u32 4294901760, %v12138_v58  ;;  %v33281_v47 = vand.u32 4294901760, %v30231_v2  ;;  %v30245_v1 = vsub.f32 %v11825_v53, %v30233_v12  ;;  %11937 = vmatprep.subr.mxu0 %v30233_v12 }
 0xaca   :  { %33807 = vst [vmem:[#allocation33_spill] sm:$0xff] %v30238_v39  ;;  %12128 = vmatprep.subr.mxu1 %v12127_v7  ;;  %v30247_v14 = vand.u32 4294901760, %v11822_v31  ;;  %v12144_v35 = vsub.f32 %v30222_v3, %v33274_v32  ;;  %v30257_v7 = vand.u32 4294901760, %v11821_v9  ;;  %v30267_v32 = vand.u32 4294901760, %v11819_v25 }
 0xacb   :  { %33808 = vst [vmem:[#allocation39_spill] sm:$0xff] %v30240_v63  ;;  %33809 = vst [vmem:[#allocation34_spill] sm:$0xff] %v30245_v1  ;;  %12134 = vmatpush1.msra.mxu1 %v12133_v60  ;;  %v30255_v43 = vsub.f32 %v11824_v41, %v30240_v63  ;;  %11939 = vmatpush1.msra.mxu0 %v30240_v63  ;;  %v12150_v53 = vsub.f32 %v30231_v2, %v33281_v47  ;;  %v33288_v58 = vand.u32 4294901760, %v30245_v1 }
 0xacc   :  { %33810 = vst [vmem:[#allocation41_spill] sm:$0xff] %v30257_v7  ;;  %12140 = vmatprep.subr.mxu1 %v12139_v37  ;;  %v30265_v60 = vsub.f32 %v11822_v31, %v30247_v14  ;;  %11941 = vmatprep.subr.mxu0 %v30247_v14  ;;  %v12145_v41 = vand.u32 4294901760, %v12144_v35  ;;  %v33811_v3 = vand.u32 4294901760, %v30238_v39  ;;  %v30275_v12 = vsub.f32 %v11821_v9, %v30257_v7 }
 0xacd   :  { %v33294_v37 = vand.u32 4294901760, %v30255_v43  ;;  %11943 = vmatpush1.msra.mxu0 %v30257_v7  ;;  %v12151_v47 = vand.u32 4294901760, %v12150_v53  ;;  %v12162_v31 = vsub.f32 %v30245_v1, %v33288_v58  ;;  %v30283_v35 = vsub.f32 %v11819_v25, %v30267_v32 }
 0xace   :  { %v12156_v63 = vsub.f32 %v30238_v39, %v33811_v3  ;;  %v33291_v2 = vand.u32 4294901760, %v30265_v60  ;;  %11945 = vmatprep.subr.mxu0 %v30267_v32  ;;  %12146 = vmatpush1.msra.mxu1 %v12145_v41  ;;  %v33293_v39 = vand.u32 4294901760, %v30275_v12  ;;  %v30290_v53 = vand.u32 4294901760, %v11818_v40 }
 0xacf   :  { %v12168_v9 = vsub.f32 %v30255_v43, %v33294_v37  ;;  %12152 = vmatprep.subr.mxu1 %v12151_v47  ;;  %v12163_v7 = vand.u32 4294901760, %v12162_v31  ;;  %v33292_v25 = vand.u32 4294901760, %v30283_v35 }
 0xad0   :  { %v12157_v3 = vand.u32 4294901760, %v12156_v63  ;;  %v12174_v58 = vsub.f32 %v30265_v60, %v33291_v2  ;;  %v12180_v63 = vsub.f32 %v30275_v12, %v33293_v39  ;;  %v30300_v41 = vsub.f32 %v11818_v40, %v30290_v53  ;;  %11947 = vmatpush1.msra.mxu0 %v30290_v53 }
 0xad1   :  { %v12169_v1 = vand.u32 4294901760, %v12168_v9  ;;  %v12186_v31 = vsub.f32 %v30283_v35, %v33292_v25  ;;  %12244 = vmatprep.subr.mxu0 %v29993_v16 }
 0xad2   :  { %12158 = vmatpush1.msra.mxu1 %v12157_v3  ;;  %v12175_v47 = vand.u32 4294901760, %v12174_v58  ;;  %v12181_v3 = vand.u32 4294901760, %v12180_v63  ;;  %v33295_v9 = vand.u32 4294901760, %v30300_v41 }
 0xad3   :  { %12164 = vmatprep.subr.mxu1 %v12163_v7  ;;  %v12187_v2 = vand.u32 4294901760, %v12186_v31  ;;  %v23553_v31 = vld [vmem:[%s32964_s11] ss:$0 sm:$0xff] }
 0xad4   :  { %12170 = vmatpush1.msra.mxu1 %v12169_v1  ;;  %v12192_v40 = vsub.f32 %v30300_v41, %v33295_v9  ;;  %v33822_v9 = vld [vmem:[#allocation29_spill] sm:$0xff] }
 0xad5   :  { %12176 = vmatprep.subr.mxu1 %v12175_v47 }
 0xad6   :  { %12182 = vmatpush1.msra.mxu1 %v12181_v3  ;;  %v12193_v7 = vand.u32 4294901760, %v12192_v40 }
 0xad7   :  { %12188 = vmatprep.subr.mxu1 %v12187_v2  ;;  %v23554_v2 = vld [vmem:[%s32965_s12] ss:$0 sm:$0xff] }
 0xad8   :  { %12194 = vmatpush1.msra.mxu1 %v12193_v7 }
 0xad9   :  { %12388 = vmatprep.subr.mxu1 %v29980_v57 }
 0xb3f   :  { %v11790_v58 = vpop.xlane.xlu1 %11789 }
 0xb40   :  { %v11793_v25 = vmul.f32 0.0078125, %v11790_v58 }
 0xb42   :  { %v11795_v39 = vadd.f32 1e-05, %v11793_v25 }
 0xb43   :  { %v11792_v37 = vpop.xlane.xlu0 %11791 }
 0xb44   :  { %26692 = vrsqrt.f32 %v11795_v39  ;;  %v11794_v1 = vmul.f32 0.0078125, %v11792_v37 }
 0xb46   :  { %v11796_v63 = vadd.f32 1e-05, %v11794_v1 }
 0xb48   :  { %26694 = vrsqrt.f32 %v11796_v63 }
 0xb51   :  { %v26693_v47 = vpop.eup %26692 }
 0xb52   :  { %v11799_v3 = vmul.f32 %v26693_v47, %v30051_v19 }
 0xb54   :  { %v11807_v40 = vmul.f32 %v23553_v31, %v11799_v3 }
 0xb55   :  { %v26695_v7 = vpop.eup %26694 }
 0xb56   :  { %v30319_v58 = vadd.f32 %v23554_v2, %v11807_v40  ;;  %v11800_v39 = vmul.f32 %v26695_v7, %v30056_v6 }
 0xb58   :  { %33812 = vst [vmem:[#allocation23_spill] sm:$0xff] %v30319_v58  ;;  %v30323_v37 = vand.u32 4294901760, %v30319_v58  ;;  %v11808_v25 = vmul.f32 %v23553_v31, %v11800_v39  ;;  %v33818_v39 = vld [vmem:[#allocation31_spill] sm:$0xff] }
 0xb5a   :  { %33813 = vst [vmem:[#allocation43_spill] sm:$0xff] %v30323_v37  ;;  %v30327_v1 = vsub.f32 %v30319_v58, %v30323_v37  ;;  %v30329_v63 = vadd.f32 %v23554_v2, %v11808_v25  ;;  %12229 = vmatmul.mubr.f32.vlgmr.msra.gmra.mxu1 %v30323_v37  ;;  %v33819_v25 = vld [vmem:[#allocation32_spill] sm:$0xff]  ;;  %v33823_v58 = vld [vmem:[#allocation37_spill] sm:$0xff] }
 0xb5b   :  { %12390 = vmatpush1.msra.mxu1 %v29982_v56  ;;  %12234 = vmatprep.mubr.f32.mxu1 %v33790_v5  ;;  %v33828_v37 = vld [vmem:[#allocation41_spill] sm:$0xff] }
 0xb5c   :  { %33814 = vst [vmem:[#allocation16_spill] sm:$0xff] %v30329_v63  ;;  %12392 = vmatprep.subr.mxu1 %v29984_v61  ;;  %v30336_v19 = vand.u32 4294901760, %v30329_v63  ;;  %v30339_v6 = vand.u32 4294901760, %v30327_v1 }
 0xb5d   :  { %12394 = vmatpush1.msra.mxu1 %v29986_v4 }
 0xb5e   :  { %33815 = vst [vmem:[#allocation45_spill] sm:$0xff] %v30336_v19  ;;  %12396 = vmatprep.subr.mxu1 %v29988_v33  ;;  %12236 = vmatmul.mubr.f32.gmra.mxu1 %v30336_v19  ;;  %v11984_v47 = vsub.f32 %v30327_v1, %v30339_v6  ;;  %v30348_v31 = vsub.f32 %v30329_v63, %v30336_v19  ;;  %v33824_v63 = vld [vmem:[#allocation26_spill] sm:$0xff]  ;;  %v33827_v19 = vld [vmem:[#allocation27_spill] sm:$0xff] }
 0xb5f   :  { %12398 = vmatpush1.msra.mxu1 %v29990_v42  ;;  %12483 = vmatprep.mubr.f32.mxu1 %v33790_v5 }
 0xb60   :  { %12400 = vmatprep.subr.mxu1 %v30001_v46  ;;  %v30353_v3 = vand.u32 4294901760, %v11984_v47  ;;  %v30356_v2 = vand.u32 4294901760, %v30348_v31  ;;  %v33820_v47 = vld [vmem:[#allocation18_spill] sm:$0xff] }
 0xb61   :  { %12402 = vmatpush1.msra.mxu1 %v30058_v26 }
 0xb62   :  { %33816 = vst [vmem:[#allocation20_spill] sm:$0xff] %v30353_v3  ;;  %12404 = vmatprep.subr.mxu1 %v30062_v44  ;;  %11986 = vmatmul.mubr.f32.vlgmr.msra.gmra.mxu0 %v30353_v3  ;;  %v11995_v40 = vsub.f32 %v30348_v31, %v30356_v2  ;;  %v33826_v3 = vld [vmem:[#allocation30_spill] sm:$0xff] }
 0xb63   :  { %12247 = vmatpush1.msra.mxu0 %v29996_v27  ;;  %12406 = vmatpush1.msra.mxu1 %v30067_v51 }
 0xb64   :  { %12250 = vmatprep.subr.mxu0 %v29999_v24  ;;  %12408 = vmatprep.subr.mxu1 %v30073_v38  ;;  %v30367_v7 = vand.u32 4294901760, %v11995_v40  ;;  %v33821_v40 = vld [vmem:[#allocation22_spill] sm:$0xff] }
 0xb65   :  { %12253 = vmatpush1.msra.mxu0 %v30005_v34  ;;  %12410 = vmatpush1.msra.mxu1 %v30080_v0 }
 0xb66   :  { %33817 = vst [vmem:[#allocation47_spill] sm:$0xff] %v30367_v7  ;;  %11991 = vmatprep.mubr.f32.mxu0 %v33790_v5  ;;  %12256 = vmatprep.subr.mxu0 %v30008_v30 }
 0xb67   :  { %12412 = vmatprep.subr.mxu1 %v30087_v23  ;;  %11997 = vmatmul.mubr.f32.gmra.mxu0 %v30367_v7  ;;  %v33825_v7 = vld [vmem:[#allocation39_spill] sm:$0xff] }
 0xb68   :  { %12259 = vmatpush1.msra.mxu0 %v30011_v48  ;;  %12414 = vmatpush1.msra.mxu1 %v30097_v21 }
 0xb69   :  { %12262 = vmatprep.subr.mxu0 %v30018_v10  ;;  %12416 = vmatprep.subr.mxu1 %v30107_v49 }
 0xb6a   :  { %12265 = vmatpush1.msra.mxu0 %v30065_v52  ;;  %12418 = vmatpush1.msra.mxu1 %v30130_v18 }
 0xb6b   :  { %12268 = vmatprep.subr.mxu0 %v30071_v50  ;;  %12420 = vmatprep.subr.mxu1 %v30136_v17 }
 0xb6c   :  { %12271 = vmatpush1.msra.mxu0 %v30078_v13  ;;  %12422 = vmatpush1.msra.mxu1 %v30144_v20 }
 0xb6d   :  { %12274 = vmatprep.subr.mxu0 %v30085_v62  ;;  %12424 = vmatprep.subr.mxu1 %v30153_v15 }
 0xb6e   :  { %12277 = vmatpush1.msra.mxu0 %v30095_v55  ;;  %12426 = vmatpush1.msra.mxu1 %v30160_v11 }
 0xb6f   :  { %12280 = vmatprep.subr.mxu0 %v30105_v45  ;;  %12428 = vmatprep.subr.mxu1 %v30167_v22 }
 0xb70   :  { %12283 = vmatpush1.msra.mxu0 %v30115_v54  ;;  %12430 = vmatpush1.msra.mxu1 %v30177_v29 }
 0xb71   :  { %12286 = vmatprep.subr.mxu0 %v30123_v36  ;;  %12432 = vmatprep.subr.mxu1 %v30187_v59 }
 0xb72   :  { %12289 = vmatpush1.msra.mxu0 %v30142_v28  ;;  %12434 = vmatpush1.msra.mxu1 %v33818_v39 }
 0xb73   :  { %12292 = vmatprep.subr.mxu0 %v33819_v25  ;;  %12436 = vmatprep.subr.mxu1 %v33820_v47  ;;  %v33829_v47 = vld [vmem:[#allocation12_spill] sm:$0xff] }
 0xb74   :  { %12295 = vmatpush1.msra.mxu0 %v33821_v40  ;;  %12438 = vmatpush1.msra.mxu1 %v30224_v8  ;;  %v33830_v8 = vld [vmem:[#allocation15_spill] sm:$0xff] }
 0xb75   :  { %12298 = vmatprep.subr.mxu0 %v33822_v9  ;;  %12440 = vmatprep.subr.mxu1 %v33823_v58  ;;  %v33831_v58 = vld [vmem:[#allocation17_spill] sm:$0xff] }
 0xb76   :  { %12301 = vmatpush1.msra.mxu0 %v33824_v63  ;;  %12442 = vmatpush1.msra.mxu1 %v33825_v7 }
 0xb77   :  { %12304 = vmatprep.subr.mxu0 %v33826_v3  ;;  %12444 = vmatprep.subr.mxu1 %v30247_v14  ;;  %v33832_v3 = vld [vmem:[#allocation33_spill] sm:$0xff] }
 0xb78   :  { %12307 = vmatpush1.msra.mxu0 %v33827_v19  ;;  %12446 = vmatpush1.msra.mxu1 %v33828_v37  ;;  %v33833_v19 = vld [vmem:[#allocation34_spill] sm:$0xff] }
 0xb79   :  { %12310 = vmatprep.subr.mxu0 %v33829_v47  ;;  %12448 = vmatprep.subr.mxu1 %v30267_v32 }
 0xb7a   :  { %12313 = vmatpush1.msra.mxu0 %v33830_v8  ;;  %12450 = vmatpush1.msra.mxu1 %v30290_v53 }
 0xb7b   :  { %12316 = vmatprep.subr.mxu0 %v33831_v58  ;;  %12487 = vmatmul.mubr.f32.vlgmr.msra.gmra.mxu1 %v30339_v6 }
 0xb7c   :  { %12678 = vmatprep.subr.mxu1 %v29980_v57  ;;  %12319 = vmatpush1.msra.mxu0 %v33832_v3  ;;  %v33834_v57 = vand.u32 4294901760, %v29993_v16  ;;  %v33839_v16 = vand.u32 4294901760, %v30011_v48 }
 0xb7d   :  { %12680 = vmatpush1.msra.mxu1 %v29982_v56  ;;  %12322 = vmatprep.subr.mxu0 %v33833_v19  ;;  %v33835_v56 = vand.u32 4294901760, %v29996_v27  ;;  %v11862_v27 = vld [vmem:[#allocation2 + $0x2e0] sm:$0xff] }
 0xb7e   :  { %12682 = vmatprep.subr.mxu1 %v29984_v61  ;;  %12325 = vmatpush1.msra.mxu0 %v30255_v43  ;;  %v33836_v61 = vand.u32 4294901760, %v29999_v24  ;;  %v33840_v24 = vand.u32 4294901760, %v30018_v10  ;;  %v30464_v48 = vand.u32 4294901760, %v11862_v27  ;;  %v33843_v10 = vand.u32 4294901760, %v30078_v13 }
 0xb7f   :  { %12492 = vmatprep.mubr.f32.mxu1 %v33790_v5  ;;  %12684 = vmatpush1.msra.mxu1 %v29986_v4  ;;  %v33837_v4 = vand.u32 4294901760, %v30005_v34  ;;  %v33841_v34 = vand.u32 4294901760, %v30065_v52  ;;  %v33846_v13 = vand.u32 4294901760, %v30105_v45  ;;  %v33849_v45 = vand.u32 4294901760, %v30142_v28 }
 0xb80   :  { %12328 = vmatprep.subr.mxu0 %v30265_v60  ;;  %12496 = vmatmul.mubr.f32.gmra.mxu1 %v30356_v2 }
 0xb81   :  { %12686 = vmatprep.subr.mxu1 %v29988_v33  ;;  %12331 = vmatpush1.msra.mxu0 %v30275_v12  ;;  %v11865_v33 = vld [vmem:[#allocation2 + $0x2f8] sm:$0xff] }
 0xb82   :  { %12688 = vmatpush1.msra.mxu1 %v29990_v42  ;;  %12334 = vmatprep.subr.mxu0 %v30283_v35  ;;  %v33838_v42 = vand.u32 4294901760, %v30008_v30  ;;  %v33842_v30 = vand.u32 4294901760, %v30071_v50  ;;  %v33845_v50 = vand.u32 4294901760, %v30095_v55  ;;  %v33848_v55 = vand.u32 4294901760, %v30123_v36 }
 0xb83   :  { %12690 = vmatprep.subr.mxu1 %v30001_v46  ;;  %12337 = vmatpush1.msra.mxu0 %v30300_v41  ;;  %v30456_v46 = vand.u32 4294901760, %v11865_v33 }
 0xb84   :  { %12370 = vmatprep.mubr.f32.mxu0 %v33790_v5  ;;  %12692 = vmatpush1.msra.mxu1 %v30058_v26  ;;  %v11859_v26 = vld [vmem:[#allocation2 + $0x2c8] sm:$0xff] }
 0xb85   :  { %12373 = vmatmul.mubr.f32.vlgmr.msra.gmra.mxu0 %v30327_v1  ;;  %12505 = vmatprep.subr.mxu0 %v33834_v57  ;;  %v30473_v52 = vsub.f32 %v11865_v33, %v30456_v46  ;;  %v33855_v57 = vld [vmem:[#allocation37_spill] sm:$0xff] }
 0xb86   :  { %12694 = vmatprep.subr.mxu1 %v30062_v44  ;;  %12509 = vmatpush1.msra.mxu0 %v33835_v56  ;;  %v33844_v44 = vand.u32 4294901760, %v30085_v62  ;;  %v33847_v62 = vand.u32 4294901760, %v30115_v54  ;;  %v11850_v54 = vld [vmem:[#allocation2 + $0x280] sm:$0xff]  ;;  %v33856_v56 = vand.u32 4294901760, %v33824_v63 }
 0xb87   :  { %12696 = vmatpush1.msra.mxu1 %v30067_v51  ;;  %12513 = vmatprep.subr.mxu0 %v33836_v61  ;;  %v11856_v51 = vld [vmem:[#allocation2 + $0x2b0] sm:$0xff] }
 0xb88   :  { %12698 = vmatprep.subr.mxu1 %v30073_v38  ;;  %12378 = vmatprep.mubr.f32.mxu0 %v33790_v5  ;;  %v30478_v38 = vand.u32 4294901760, %v11859_v26  ;;  %v33857_v61 = vld [vmem:[#allocation30_spill] sm:$0xff] }
 0xb89   :  { %12517 = vmatpush1.msra.mxu0 %v33837_v4  ;;  %12700 = vmatpush1.msra.mxu1 %v30080_v0  ;;  %v30484_v0 = vsub.f32 %v11862_v27, %v30464_v48  ;;  %v33858_v4 = vand.u32 4294901760, %v33857_v61 }
 0xb8a   :  { %12381 = vmatmul.mubr.f32.gmra.mxu0 %v30348_v31  ;;  %12521 = vmatprep.subr.mxu0 %v33838_v42  ;;  %v11844_v42 = vld [vmem:[#allocation2 + $0x250] sm:$0xff] }
 0xb8b   :  { %12702 = vmatprep.subr.mxu1 %v30087_v23  ;;  %12525 = vmatpush1.msra.mxu0 %v33839_v16  ;;  %v30489_v23 = vand.u32 4294901760, %v11856_v51  ;;  %v30507_v36 = vand.u32 4294901760, %v30484_v0  ;;  %v33859_v16 = vld [vmem:[#allocation27_spill] sm:$0xff] }
 0xb8c   :  { %12704 = vmatpush1.msra.mxu1 %v30097_v21  ;;  %12529 = vmatprep.subr.mxu0 %v33840_v24  ;;  %v11853_v21 = vld [vmem:[#allocation2 + $0x298] sm:$0xff]  ;;  %v33860_v63 = vand.u32 4294901760, %v33859_v16  ;;  %v33871_v16 = vand.u32 4294901760, %v30283_v35 }
 0xb8d   :  { %12706 = vmatprep.subr.mxu1 %v30107_v49  ;;  %12533 = vmatpush1.msra.mxu0 %v33841_v34  ;;  %v30495_v49 = vand.u32 4294901760, %v30473_v52  ;;  %v30515_v28 = vsub.f32 %v11856_v51, %v30489_v23  ;;  %v33863_v51 = vand.u32 4294901760, %v33831_v58  ;;  %v33866_v58 = vand.u32 4294901760, %v33833_v19 }
 0xb8e   :  { %12708 = vmatpush1.msra.mxu1 %v30130_v18  ;;  %12537 = vmatprep.subr.mxu0 %v33842_v30  ;;  %v33850_v18 = vand.u32 4294901760, %v33819_v25  ;;  %v11847_v25 = vld [vmem:[#allocation2 + $0x268] sm:$0xff] }
 0xb8f   :  { %12710 = vmatprep.subr.mxu1 %v30136_v17  ;;  %12541 = vmatpush1.msra.mxu0 %v33843_v10  ;;  %v30509_v17 = vand.u32 4294901760, %v11853_v21  ;;  %v30542_v27 = vand.u32 4294901760, %v30515_v28  ;;  %v30544_v24 = vand.u32 4294901760, %v11847_v25  ;;  %v30557_v10 = vand.u32 4294901760, %v11844_v42 }
 0xb90   :  { %12712 = vmatpush1.msra.mxu1 %v30144_v20  ;;  %12545 = vmatprep.subr.mxu0 %v33844_v44  ;;  %v33851_v20 = vld [vmem:[#allocation18_spill] sm:$0xff]  ;;  %v11841_v44 = vld [vmem:[#allocation2 + $0x238] sm:$0xff] }
 0xb91   :  { %12714 = vmatprep.subr.mxu1 %v30153_v15  ;;  %12549 = vmatpush1.msra.mxu0 %v33845_v50  ;;  %v33853_v15 = vld [vmem:[#allocation36_spill] sm:$0xff]  ;;  %v30536_v33 = vsub.f32 %v11853_v21, %v30509_v17  ;;  %v30570_v50 = vsub.f32 %v11847_v25, %v30544_v24  ;;  %v30577_v21 = vand.u32 4294901760, %v11841_v44 }
 0xb92   :  { %12716 = vmatpush1.msra.mxu1 %v30160_v11  ;;  %12553 = vmatprep.subr.mxu0 %v33846_v13  ;;  %v33854_v11 = vand.u32 4294901760, %v33822_v9  ;;  %v12900_v9 = vsub.f32 %v30484_v0, %v30507_v36  ;;  %v11838_v13 = vld [vmem:[#allocation2 + $0x220] sm:$0xff] }
 0xb93   :  { %12718 = vmatprep.subr.mxu1 %v30167_v22  ;;  %12557 = vmatpush1.msra.mxu0 %v33847_v62  ;;  %v30501_v22 = vsub.f32 %v11859_v26, %v30478_v38  ;;  %v30592_v19 = vand.u32 4294901760, %v30570_v50  ;;  %v30600_v25 = vsub.f32 %v11841_v44, %v30577_v21 }
 0xb94   :  { %12720 = vmatpush1.msra.mxu1 %v30177_v29  ;;  %12561 = vmatprep.subr.mxu0 %v33848_v55  ;;  %v12893_v29 = vsub.f32 %v30473_v52, %v30495_v49 }
 0xb95   :  { %12722 = vmatprep.subr.mxu1 %v30187_v59  ;;  %12565 = vmatpush1.msra.mxu0 %v33849_v45  ;;  %v33852_v59 = vand.u32 4294901760, %v33821_v40  ;;  %v30528_v40 = vand.u32 4294901760, %v30501_v22  ;;  %v30582_v45 = vsub.f32 %v11844_v42, %v30557_v10 }
 0xb96   :  { %12724 = vmatpush1.msra.mxu1 %v33818_v39  ;;  %12569 = vmatprep.subr.mxu0 %v33850_v18  ;;  %v30522_v39 = vand.u32 4294901760, %v11850_v54  ;;  %v12894_v34 = vand.u32 4294901760, %v12893_v29  ;;  %v33867_v18 = vand.u32 4294901760, %v30255_v43  ;;  %v33869_v29 = vld [vmem:[#allocation45_spill] sm:$0xff] }
 0xb97   :  { %12726 = vmatprep.subr.mxu1 %v33851_v20  ;;  %12573 = vmatpush1.msra.mxu0 %v33852_v59  ;;  %v12907_v26 = vsub.f32 %v30501_v22, %v30528_v40  ;;  %v30588_v20 = vand.u32 4294901760, %v11838_v13  ;;  %v30607_v61 = vand.u32 4294901760, %v30582_v45 }
 0xb98   :  { %12728 = vmatpush1.msra.mxu1 %v33853_v15  ;;  %12577 = vmatprep.subr.mxu0 %v33854_v11  ;;  %v30550_v30 = vsub.f32 %v11850_v54, %v30522_v39  ;;  %v11835_v54 = vld [vmem:[#allocation2 + $0x208] sm:$0xff]  ;;  %v11832_v15 = vld [vmem:[#allocation2 + $0x1f0] sm:$0xff]  ;;  %v33868_v11 = vand.u32 4294901760, %v30265_v60 }
 0xb99   :  { %12730 = vmatprep.subr.mxu1 %v33855_v57  ;;  %12581 = vmatpush1.msra.mxu0 %v33856_v56  ;;  %v12908_v55 = vand.u32 4294901760, %v12907_v26  ;;  %v30602_v57 = vand.u32 4294901760, %v11835_v54  ;;  %v33870_v56 = vand.u32 4294901760, %v30275_v12  ;;  %v30613_v42 = vand.u32 4294901760, %v11832_v15 }
 0xb9a   :  { %12732 = vmatpush1.msra.mxu1 %v33825_v7  ;;  %12585 = vmatprep.subr.mxu0 %v33858_v4  ;;  %v33861_v7 = vand.u32 4294901760, %v33829_v47  ;;  %v30562_v47 = vand.u32 4294901760, %v30536_v33  ;;  %v30575_v62 = vand.u32 4294901760, %v30550_v30  ;;  %v11829_v4 = vld [vmem:[#allocation2 + $0x1d8] sm:$0xff]  ;;  %v12935_v12 = vsub.f32 %v30570_v50, %v30592_v19 }
 0xb9b   :  { %12734 = vmatprep.subr.mxu1 %v30247_v14  ;;  %12589 = vmatpush1.msra.mxu0 %v33860_v63  ;;  %v33862_v14 = vand.u32 4294901760, %v33830_v8  ;;  %v12914_v8 = vsub.f32 %v30515_v28, %v30542_v27  ;;  %v11826_v63 = vld [vmem:[#allocation2 + $0x1c0] sm:$0xff]  ;;  %v30626_v26 = vsub.f32 %v11835_v54, %v30602_v57  ;;  %v30628_v44 = vand.u32 4294901760, %v11829_v4 }
 0xb9c   :  { %12736 = vmatpush1.msra.mxu1 %v33828_v37  ;;  %12593 = vmatprep.subr.mxu0 %v33861_v7  ;;  %v12901_v37 = vand.u32 4294901760, %v12900_v9  ;;  %v12928_v43 = vsub.f32 %v30550_v30, %v30575_v62  ;;  %v30611_v9 = vsub.f32 %v11838_v13, %v30588_v20  ;;  %v33872_v7 = vand.u32 4294901760, %v30300_v41 }
 0xb9d   :  { %12738 = vmatprep.subr.mxu1 %v30267_v32  ;;  %12597 = vmatpush1.msra.mxu0 %v33862_v14  ;;  %v33864_v32 = vld [vmem:[#allocation43_spill] sm:$0xff]  ;;  %v12915_v59 = vand.u32 4294901760, %v12914_v8  ;;  %v30623_v14 = vand.u32 4294901760, %v30600_v25  ;;  %v12942_v35 = vsub.f32 %v30582_v45, %v30607_v61  ;;  %v30640_v8 = vand.u32 4294901760, %v11826_v63 }
 0xb9e   :  { %12740 = vmatpush1.msra.mxu1 %v30290_v53  ;;  %12773 = vmatprep.mubr.f32.mxu1 %v33790_v5  ;;  %v33865_v53 = vand.u32 4294901760, %v33832_v3  ;;  %v12921_v3 = vsub.f32 %v30536_v33, %v30562_v47  ;;  %v30635_v41 = vand.u32 4294901760, %v30611_v9  ;;  %v12936_v13 = vand.u32 4294901760, %v12935_v12 }
 0xb9f   :  { %12601 = vmatprep.subr.mxu0 %v33863_v51  ;;  %12775 = vmatmul.mubr.f32.vlgmr.msra.gmra.mxu1 %v33864_v32  ;;  %v30638_v51 = vsub.f32 %v11832_v15, %v30613_v42  ;;  %v30650_v54 = vsub.f32 %v11829_v4, %v30628_v44 }
 0xba0   :  { %25776 = vmatprep.subr.mxu1 %v12894_v34  ;;  %12605 = vmatpush1.msra.mxu0 %v33865_v53  ;;  %v12922_v60 = vand.u32 4294901760, %v12921_v3  ;;  %v11820_v53 = vld [vmem:[#allocation2 + $0x190] sm:$0xff]  ;;  %v12943_v3 = vand.u32 4294901760, %v12942_v35 }
 0xba1   :  { %25777 = vmatpush3.msra.mxu1 %v12894_v34  ;;  %12609 = vmatprep.subr.mxu0 %v33866_v58  ;;  %v12929_v34 = vand.u32 4294901760, %v12928_v43  ;;  %v12949_v58 = vsub.f32 %v30600_v25, %v30623_v14  ;;  %v30660_v15 = vand.u32 4294901760, %v30638_v51  ;;  %v30665_v43 = vand.u32 4294901760, %v11820_v53 }
 0xba2   :  { %25778 = vmatprep.subr.mxu1 %v12901_v37  ;;  %12613 = vmatpush1.msra.mxu0 %v33867_v18 }
 0xba3   :  { %12780 = vmatprep.mubr.f32.mxu1 %v33790_v5  ;;  %25779 = vmatpush3.msra.mxu1 %v12901_v37  ;;  %v11823_v37 = vld [vmem:[#allocation2 + $0x1a8] sm:$0xff]  ;;  %v12950_v4 = vand.u32 4294901760, %v12949_v58  ;;  %v30686_v35 = vsub.f32 %v11820_v53, %v30665_v43 }
 0xba4   :  { %12617 = vmatprep.subr.mxu0 %v33868_v11  ;;  %12782 = vmatmul.mubr.f32.gmra.mxu1 %v33869_v29  ;;  %v30652_v18 = vand.u32 4294901760, %v11823_v37  ;;  %v30663_v11 = vsub.f32 %v11826_v63, %v30640_v8 }
 0xba5   :  { %25780 = vmatprep.subr.mxu1 %v12908_v55  ;;  %12621 = vmatpush1.msra.mxu0 %v33870_v56  ;;  %v33873_v56 = vld [vmem:[#allocation20_spill] sm:$0xff] }
 0xba6   :  { %25781 = vmatpush3.msra.mxu1 %v12908_v55  ;;  %25808 = vmatprep.mubr.f32.mxu1 %v33864_v32  ;;  %v30647_v55 = vand.u32 4294901760, %v30626_v26  ;;  %v30676_v12 = vsub.f32 %v11823_v37, %v30652_v18 }
 0xba7   :  { %12625 = vmatprep.subr.mxu0 %v33871_v16  ;;  %25782 = vmatprep.subr.mxu1 %v12915_v59  ;;  %v30673_v16 = vand.u32 4294901760, %v30650_v54 }
 0xba8   :  { %12629 = vmatpush1.msra.mxu0 %v33872_v7  ;;  %12662 = vmatprep.mubr.f32.mxu0 %v33790_v5  ;;  %v12970_v7 = vsub.f32 %v30638_v51, %v30660_v15  ;;  %v30693_v58 = vand.u32 4294901760, %v30676_v12 }
 0xba9   :  { %25783 = vmatpush3.msra.mxu1 %v12915_v59  ;;  %12664 = vmatmul.mubr.f32.vlgmr.msra.gmra.mxu0 %v33864_v32  ;;  %v12956_v59 = vsub.f32 %v30611_v9, %v30635_v41 }
 0xbaa   :  { %25741 = vmatprep.subr.mxu0 %v30456_v46  ;;  %25784 = vmatprep.subr.mxu1 %v12922_v60  ;;  %v12971_v53 = vand.u32 4294901760, %v12970_v7 }
 0xbab   :  { %25742 = vmatpush3.msra.mxu0 %v30456_v46  ;;  %25785 = vmatpush3.msra.mxu1 %v12922_v60  ;;  %v12963_v60 = vsub.f32 %v30626_v26, %v30647_v55  ;;  %v12957_v63 = vand.u32 4294901760, %v12956_v59  ;;  %v30700_v59 = vand.u32 4294901760, %v30686_v35 }
 0xbac   :  { %25743 = vmatprep.subr.mxu0 %v30464_v48  ;;  %25786 = vmatprep.subr.mxu1 %v12929_v34 }
 0xbad   :  { %12669 = vmatprep.mubr.f32.mxu0 %v33790_v5  ;;  %25744 = vmatpush3.msra.mxu0 %v30464_v48  ;;  %v12964_v37 = vand.u32 4294901760, %v12963_v60  ;;  %v12998_v7 = vsub.f32 %v30686_v35, %v30700_v59 }
 0xbae   :  { %25787 = vmatpush3.msra.mxu1 %v12929_v34  ;;  %12671 = vmatmul.mubr.f32.gmra.mxu0 %v33869_v29  ;;  %v30683_v34 = vand.u32 4294901760, %v30663_v11 }
 0xbaf   :  { %25745 = vmatprep.subr.mxu0 %v30478_v38  ;;  %25788 = vmatprep.subr.mxu1 %v12936_v13 }
 0xbb0   :  { %25746 = vmatpush3.msra.mxu0 %v30478_v38  ;;  %25773 = vmatprep.mubr.f32.mxu0 %v33873_v56 }
 0xbb1   :  { %25789 = vmatpush3.msra.mxu1 %v12936_v13  ;;  %25747 = vmatprep.subr.mxu0 %v30489_v23  ;;  %v12977_v13 = vsub.f32 %v30650_v54, %v30673_v16 }
 0xbb2   :  { %25790 = vmatprep.subr.mxu1 %v12943_v3  ;;  %25748 = vmatpush3.msra.mxu0 %v30489_v23 }
 0xbb3   :  { %25791 = vmatpush3.msra.mxu1 %v12943_v3  ;;  %25749 = vmatprep.subr.mxu0 %v30509_v17  ;;  %v12984_v3 = vsub.f32 %v30663_v11, %v30683_v34  ;;  %v12978_v56 = vand.u32 4294901760, %v12977_v13 }
 0xbb4   :  { %25792 = vmatprep.subr.mxu1 %v12950_v4  ;;  %25750 = vmatpush3.msra.mxu0 %v30509_v17 }
 0xbb5   :  { %25793 = vmatpush3.msra.mxu1 %v12950_v4  ;;  %25751 = vmatprep.subr.mxu0 %v30522_v39  ;;  %v12991_v4 = vsub.f32 %v30676_v12, %v30693_v58  ;;  %v12985_v60 = vand.u32 4294901760, %v12984_v3 }
 0xbb6   :  { %25794 = vmatprep.subr.mxu1 %v12957_v63  ;;  %25752 = vmatpush3.msra.mxu0 %v30522_v39 }
 0xbb7   :  { %25795 = vmatpush3.msra.mxu1 %v12957_v63  ;;  %25753 = vmatprep.subr.mxu0 %v30544_v24  ;;  %v12992_v63 = vand.u32 4294901760, %v12991_v4 }
 0xbb8   :  { %25796 = vmatprep.subr.mxu1 %v12964_v37  ;;  %25754 = vmatpush3.msra.mxu0 %v30544_v24 }
 0xbb9   :  { %25797 = vmatpush3.msra.mxu1 %v12964_v37  ;;  %25755 = vmatprep.subr.mxu0 %v30557_v10  ;;  %v12999_v37 = vand.u32 4294901760, %v12998_v7 }
 0xbba   :  { %25798 = vmatprep.subr.mxu1 %v12971_v53  ;;  %25756 = vmatpush3.msra.mxu0 %v30557_v10 }
 0xbbb   :  { %25799 = vmatpush3.msra.mxu1 %v12971_v53  ;;  %25757 = vmatprep.subr.mxu0 %v30577_v21 }
 0xbbc   :  { %25800 = vmatprep.subr.mxu1 %v12978_v56  ;;  %25758 = vmatpush3.msra.mxu0 %v30577_v21 }
 0xbbd   :  { %25801 = vmatpush3.msra.mxu1 %v12978_v56  ;;  %25759 = vmatprep.subr.mxu0 %v30588_v20 }
 0xbbe   :  { %25802 = vmatprep.subr.mxu1 %v12985_v60  ;;  %25760 = vmatpush3.msra.mxu0 %v30588_v20 }
 0xbbf   :  { %25803 = vmatpush3.msra.mxu1 %v12985_v60  ;;  %25761 = vmatprep.subr.mxu0 %v30602_v57 }
 0xbc0   :  { %25804 = vmatprep.subr.mxu1 %v12992_v63  ;;  %25762 = vmatpush3.msra.mxu0 %v30602_v57 }
 0xbc1   :  { %25805 = vmatpush3.msra.mxu1 %v12992_v63  ;;  %25763 = vmatprep.subr.mxu0 %v30613_v42 }
 0xbc2   :  { %25806 = vmatprep.subr.mxu1 %v12999_v37  ;;  %25764 = vmatpush3.msra.mxu0 %v30613_v42 }
 0xbc3   :  { %25807 = vmatpush3.msra.mxu1 %v12999_v37  ;;  %25765 = vmatprep.subr.mxu0 %v30628_v44 }
 0xbc4   :  { %25809 = vmatmul.mubr.f32.vlgmr.msra.gmra.mxu1 %v33869_v29  ;;  %25846 = vmatprep.subr.mxu1 %v30456_v46 }
 0xbc5   :  { %25766 = vmatpush3.msra.mxu0 %v30628_v44  ;;  %25847 = vmatpush3.msra.mxu1 %v30456_v46 }
 0xbc6   :  { %25878 = vmatprep.mubr.f32.mxu1 %v30339_v6  ;;  %25767 = vmatprep.subr.mxu0 %v30640_v8  ;;  %v33874_v6 = vld [vmem:[#allocation47_spill] sm:$0xff] }
 0xbc7   :  { %25848 = vmatprep.subr.mxu1 %v30464_v48  ;;  %25768 = vmatpush3.msra.mxu0 %v30640_v8 }
 0xbc8   :  { %25849 = vmatpush3.msra.mxu1 %v30464_v48  ;;  %25769 = vmatprep.subr.mxu0 %v30652_v18 }
 0xbc9   :  { %25850 = vmatprep.subr.mxu1 %v30478_v38  ;;  %25770 = vmatpush3.msra.mxu0 %v30652_v18 }
 0xbca   :  { %25851 = vmatpush3.msra.mxu1 %v30478_v38  ;;  %25771 = vmatprep.subr.mxu0 %v30665_v43 }
 0xbcb   :  { %25852 = vmatprep.subr.mxu1 %v30489_v23  ;;  %25772 = vmatpush3.msra.mxu0 %v30665_v43 }
 0xbcc   :  { %25853 = vmatpush3.msra.mxu1 %v30489_v23  ;;  %25774 = vmatmul.mubr.f32.vlgmr.msra.gmra.mxu0 %v33874_v6 }
 0xbcd   :  { %25811 = vmatprep.subr.mxu0 %v30473_v52  ;;  %25854 = vmatprep.subr.mxu1 %v30509_v17 }
 0xbce   :  { %25812 = vmatpush3.msra.mxu0 %v30473_v52  ;;  %25843 = vmatprep.mubr.f32.mxu0 %v30327_v1 }
 0xbcf   :  { %25855 = vmatpush3.msra.mxu1 %v30509_v17  ;;  %25813 = vmatprep.subr.mxu0 %v30484_v0 }
 0xbd0   :  { %25856 = vmatprep.subr.mxu1 %v30522_v39  ;;  %25814 = vmatpush3.msra.mxu0 %v30484_v0  ;;  %v30873_v0 = vld [vmem:[%s32955_s2 + $0x3] sm:$0x7] }
 0xbd1   :  { %25857 = vmatpush3.msra.mxu1 %v30522_v39  ;;  %25815 = vmatprep.subr.mxu0 %v30501_v22 }
 0xbd2   :  { %25858 = vmatprep.subr.mxu1 %v30544_v24  ;;  %25816 = vmatpush3.msra.mxu0 %v30501_v22  ;;  %v33875_v22 = vld [vmem:[#allocation13_spill] sm:$0xff] }
 0xbd3   :  { %25859 = vmatpush3.msra.mxu1 %v30544_v24  ;;  %25817 = vmatprep.subr.mxu0 %v30515_v28 }
 0xbd4   :  { %25860 = vmatprep.subr.mxu1 %v30557_v10  ;;  %25818 = vmatpush3.msra.mxu0 %v30515_v28  ;;  %v33876_v28 = vld [vmem:[#allocation14_spill] sm:$0xff] }
 0xbd5   :  { %25861 = vmatpush3.msra.mxu1 %v30557_v10  ;;  %25819 = vmatprep.subr.mxu0 %v30536_v33 }
 0xbd6   :  { %25862 = vmatprep.subr.mxu1 %v30577_v21  ;;  %25820 = vmatpush3.msra.mxu0 %v30536_v33 }
 0xbd7   :  { %25863 = vmatpush3.msra.mxu1 %v30577_v21  ;;  %25821 = vmatprep.subr.mxu0 %v30550_v30 }
 0xbd8   :  { %25864 = vmatprep.subr.mxu1 %v30588_v20  ;;  %25822 = vmatpush3.msra.mxu0 %v30550_v30 }
 0xbd9   :  { %25865 = vmatpush3.msra.mxu1 %v30588_v20  ;;  %25823 = vmatprep.subr.mxu0 %v30570_v50 }
 0xbda   :  { %25866 = vmatprep.subr.mxu1 %v30602_v57  ;;  %25824 = vmatpush3.msra.mxu0 %v30570_v50 }
 0xbdb   :  { %25867 = vmatpush3.msra.mxu1 %v30602_v57  ;;  %25825 = vmatprep.subr.mxu0 %v30582_v45 }
 0xbdc   :  { %25868 = vmatprep.subr.mxu1 %v30613_v42  ;;  %25826 = vmatpush3.msra.mxu0 %v30582_v45 }
 0xbdd   :  { %25869 = vmatpush3.msra.mxu1 %v30613_v42  ;;  %25827 = vmatprep.subr.mxu0 %v30600_v25 }
 0xbde   :  { %25870 = vmatprep.subr.mxu1 %v30628_v44  ;;  %25828 = vmatpush3.msra.mxu0 %v30600_v25 }
 0xbdf   :  { %25871 = vmatpush3.msra.mxu1 %v30628_v44  ;;  %25829 = vmatprep.subr.mxu0 %v30611_v9 }
 0xbe0   :  { %25872 = vmatprep.subr.mxu1 %v30640_v8  ;;  %25830 = vmatpush3.msra.mxu0 %v30611_v9 }
 0xbe1   :  { %25873 = vmatpush3.msra.mxu1 %v30640_v8  ;;  %25831 = vmatprep.subr.mxu0 %v30626_v26 }
 0xbe2   :  { %25874 = vmatprep.subr.mxu1 %v30652_v18  ;;  %25832 = vmatpush3.msra.mxu0 %v30626_v26 }
 0xbe3   :  { %25875 = vmatpush3.msra.mxu1 %v30652_v18  ;;  %25833 = vmatprep.subr.mxu0 %v30638_v51 }
 0xbe4   :  { %25876 = vmatprep.subr.mxu1 %v30665_v43  ;;  %25834 = vmatpush3.msra.mxu0 %v30638_v51 }
 0xbe5   :  { %25877 = vmatpush3.msra.mxu1 %v30665_v43  ;;  %25835 = vmatprep.subr.mxu0 %v30650_v54 }
 0xbe6   :  { %25879 = vmatmul.mubr.f32.vlgmr.msra.gmra.mxu1 %v30356_v2  ;;  %25916 = vmatprep.subr.mxu1 %v30456_v46 }
 0xbe7   :  { %25836 = vmatpush3.msra.mxu0 %v30650_v54  ;;  %25917 = vmatpush3.msra.mxu1 %v30456_v46 }
 0xbe8   :  { %25948 = vmatprep.mubr.f32.mxu1 %v33864_v32  ;;  %25837 = vmatprep.subr.mxu0 %v30663_v11 }
 0xbe9   :  { %25918 = vmatprep.subr.mxu1 %v30464_v48  ;;  %25838 = vmatpush3.msra.mxu0 %v30663_v11 }
 0xbea   :  { %25919 = vmatpush3.msra.mxu1 %v30464_v48  ;;  %25839 = vmatprep.subr.mxu0 %v30676_v12 }
 0xbeb   :  { %25920 = vmatprep.subr.mxu1 %v30478_v38  ;;  %25840 = vmatpush3.msra.mxu0 %v30676_v12 }
 0xbec   :  { %25921 = vmatpush3.msra.mxu1 %v30478_v38  ;;  %25841 = vmatprep.subr.mxu0 %v30686_v35 }
 0xbed   :  { %25922 = vmatprep.subr.mxu1 %v30489_v23  ;;  %25842 = vmatpush3.msra.mxu0 %v30686_v35 }
 0xbee   :  { %25923 = vmatpush3.msra.mxu1 %v30489_v23  ;;  %25844 = vmatmul.mubr.f32.vlgmr.msra.gmra.mxu0 %v30348_v31 }
 0xbef   :  { %25881 = vmatprep.subr.mxu0 %v30495_v49  ;;  %25924 = vmatprep.subr.mxu1 %v30509_v17 }
 0xbf0   :  { %25882 = vmatpush3.msra.mxu0 %v30495_v49  ;;  %25913 = vmatprep.mubr.f32.mxu0 %v33864_v32 }
 0xbf1   :  { %25925 = vmatpush3.msra.mxu1 %v30509_v17  ;;  %25883 = vmatprep.subr.mxu0 %v30507_v36 }
 0xbf2   :  { %25926 = vmatprep.subr.mxu1 %v30522_v39  ;;  %25884 = vmatpush3.msra.mxu0 %v30507_v36  ;;  %v11872_v36 = vrot.slane %v30873_v0, %v33875_v22 }
 0xbf3   :  { %25927 = vmatpush3.msra.mxu1 %v30522_v39  ;;  %25885 = vmatprep.subr.mxu0 %v30528_v40  ;;  %v11876_v39 = vrot.slane %v30873_v0, %v33876_v28 }
 0xbf4   :  { %25928 = vmatprep.subr.mxu1 %v30544_v24  ;;  %25886 = vmatpush3.msra.mxu0 %v30528_v40 }
 0xbf5   :  { %25929 = vmatpush3.msra.mxu1 %v30544_v24  ;;  %25887 = vmatprep.subr.mxu0 %v30542_v27 }
 0xbf6   :  { %25930 = vmatprep.subr.mxu1 %v30557_v10  ;;  %25888 = vmatpush3.msra.mxu0 %v30542_v27 }
 0xbf7   :  { %25931 = vmatpush3.msra.mxu1 %v30557_v10  ;;  %25889 = vmatprep.subr.mxu0 %v30562_v47 }
 0xbf8   :  { %25932 = vmatprep.subr.mxu1 %v30577_v21  ;;  %25890 = vmatpush3.msra.mxu0 %v30562_v47 }
 0xbf9   :  { %25933 = vmatpush3.msra.mxu1 %v30577_v21  ;;  %25891 = vmatprep.subr.mxu0 %v30575_v62 }
 0xbfa   :  { %25934 = vmatprep.subr.mxu1 %v30588_v20  ;;  %25892 = vmatpush3.msra.mxu0 %v30575_v62 }
 0xbfb   :  { %25935 = vmatpush3.msra.mxu1 %v30588_v20  ;;  %25893 = vmatprep.subr.mxu0 %v30592_v19 }
 0xbfc   :  { %25936 = vmatprep.subr.mxu1 %v30602_v57  ;;  %25894 = vmatpush3.msra.mxu0 %v30592_v19 }
 0xbfd   :  { %25937 = vmatpush3.msra.mxu1 %v30602_v57  ;;  %25895 = vmatprep.subr.mxu0 %v30607_v61 }
 0xbfe   :  { %25938 = vmatprep.subr.mxu1 %v30613_v42  ;;  %25896 = vmatpush3.msra.mxu0 %v30607_v61 }
 0xbff   :  { %25939 = vmatpush3.msra.mxu1 %v30613_v42  ;;  %25897 = vmatprep.subr.mxu0 %v30623_v14 }
 0xc00   :  { %25940 = vmatprep.subr.mxu1 %v30628_v44  ;;  %25898 = vmatpush3.msra.mxu0 %v30623_v14 }
 0xc01   :  { %25941 = vmatpush3.msra.mxu1 %v30628_v44  ;;  %25899 = vmatprep.subr.mxu0 %v30635_v41 }
 0xc02   :  { %25942 = vmatprep.subr.mxu1 %v30640_v8  ;;  %25900 = vmatpush3.msra.mxu0 %v30635_v41 }
 0xc03   :  { %25943 = vmatpush3.msra.mxu1 %v30640_v8  ;;  %25901 = vmatprep.subr.mxu0 %v30647_v55 }
 0xc04   :  { %25944 = vmatprep.subr.mxu1 %v30652_v18  ;;  %25902 = vmatpush3.msra.mxu0 %v30647_v55 }
 0xc05   :  { %25945 = vmatpush3.msra.mxu1 %v30652_v18  ;;  %25903 = vmatprep.subr.mxu0 %v30660_v15 }
 0xc06   :  { %25946 = vmatprep.subr.mxu1 %v30665_v43  ;;  %25904 = vmatpush3.msra.mxu0 %v30660_v15 }
 0xc07   :  { %25947 = vmatpush3.msra.mxu1 %v30665_v43  ;;  %25905 = vmatprep.subr.mxu0 %v30673_v16 }
 0xc08   :  { %25949 = vmatmul.mubr.f32.vlgmr.msra.gmra.mxu1 %v33869_v29  ;;  %25906 = vmatpush3.msra.mxu0 %v30673_v16 }
 0xc09   :  { %25907 = vmatprep.subr.mxu0 %v30683_v34  ;;  %25956 = vmatprep.subr.mxu1 %v33790_v5 }
 0xc0a   :  { %25908 = vmatpush3.msra.mxu0 %v30683_v34  ;;  %25958 = vmatprep.mubr.msk.f32.mxu1 %vm26835_vm0, %v33790_v5 }
 0xc0b   :  { %25909 = vmatprep.subr.mxu0 %v30693_v58 }
 0xc0c   :  { %25910 = vmatpush3.msra.mxu0 %v30693_v58 }
 0xc0d   :  { %25911 = vmatprep.subr.mxu0 %v30700_v59 }
 0xc0e   :  { %25912 = vmatpush3.msra.mxu0 %v30700_v59 }
 0xc0f   :  { %25914 = vmatmul.mubr.f32.vlgmr.msra.gmra.mxu0 %v33869_v29  ;;  %25951 = vmatprep.subr.mxu0 %v33790_v5 }
 0xc10   :  { %25953 = vmatprep.mubr.msk.f32.mxu0 %vm26835_vm0, %v33790_v5 }
 0xc1a   :  { %v12230_v1 = vpop.f32.mrf.mxu1 }
 0xc1c   :  { %v12232_v2 = vpop.f32.mrf.mxu1 }
 0xc1e   :  { %v12237_v48 = vpop.f32.mrf.mxu1 }
 0xc20   :  { %v12239_v38 = vpop.f32.mrf.mxu1 }
 0xc22   :  { %v11987_v31 = vpop.f32.mrf.mxu0 }
 0xc23   :  { %v11988_v33 = vadd.f32 %v11987_v31, %v11872_v36 }
 0xc24   :  { %v11989_v46 = vpop.f32.mrf.mxu0 }
 0xc25   :  { %v11990_v24 = vadd.f32 %v11989_v46, %v11876_v39  ;;  %v12231_v10 = vadd.f32 %v12230_v1, %v11988_v33 }
 0xc27   :  { %v11998_v52 = vpop.f32.mrf.mxu0  ;;  %v12233_v50 = vadd.f32 %v12232_v2, %v11990_v24  ;;  %v33877_v2 = vld [vmem:[#allocation28_spill] sm:$0xff] }
 0xc28   :  { %v11999_v51 = vadd.f32 %v11998_v52, %v11872_v36  ;;  %v33878_v46 = vsub.s32 2, %v33877_v2 }
 0xc29   :  { %v12000_v23 = vpop.f32.mrf.mxu0 }
 0xc2a   :  { %v12001_v62 = vadd.f32 %v12000_v23, %v11876_v39  ;;  %v12238_v13 = vadd.f32 %v12237_v48, %v11999_v51  ;;  %v30924_v48 = vrot.slane %v30873_v0, %v33878_v46 }
 0xc2c   :  { %v12240_v25 = vadd.f32 %v12239_v38, %v12001_v62 }
 0xc3b   :  { %v12488_v49 = vpop.f32.mrf.mxu1 }
 0xc3d   :  { %v12490_v40 = vpop.f32.mrf.mxu1 }
 0xc40   :  { %v12497_v30 = vpop.f32.mrf.mxu1 }
 0xc42   :  { %v12499_v21 = vpop.f32.mrf.mxu1 }
 0xc45   :  { %v12374_v17 = vpop.f32.mrf.mxu0 }
 0xc46   :  { %v12375_v32 = vadd.f32 %v12374_v17, %v12231_v10 }
 0xc47   :  { %v12376_v27 = vpop.f32.mrf.mxu0 }
 0xc48   :  { %v12377_v45 = vadd.f32 %v12376_v27, %v12233_v50  ;;  %v12489_v29 = vadd.f32 %v12488_v49, %v12375_v32 }
 0xc4a   :  { %v12382_v47 = vpop.f32.mrf.mxu0  ;;  %v12491_v9 = vadd.f32 %v12490_v40, %v12377_v45 }
 0xc4b   :  { %v12383_v59 = vadd.f32 %v12382_v47, %v12238_v13 }
 0xc4c   :  { %v12384_v20 = vpop.f32.mrf.mxu0 }
 0xc4d   :  { %v12385_v42 = vadd.f32 %v12384_v20, %v12240_v25  ;;  %v12498_v37 = vadd.f32 %v12497_v30, %v12383_v59 }
 0xc4f   :  { %v12500_v11 = vadd.f32 %v12499_v21, %v12385_v42 }
 0xc5f   :  { %v12776_v19 = vpop.f32.mrf.mxu1 }
 0xc61   :  { %v12778_v14 = vpop.f32.mrf.mxu1 }
 0xc64   :  { %v12783_v18 = vpop.f32.mrf.mxu1 }
 0xc66   :  { %v12785_v58 = vpop.f32.mrf.mxu1 }
 0xc69   :  { %v12665_v57 = vpop.f32.mrf.mxu0 }
 0xc6a   :  { %v12666_v61 = vadd.f32 %v12665_v57, %v12489_v29 }
 0xc6b   :  { %v12667_v26 = vpop.f32.mrf.mxu0 }
 0xc6c   :  { %v12777_v44 = vadd.f32 %v12776_v19, %v12666_v61  ;;  %v12668_v41 = vadd.f32 %v12667_v26, %v12491_v9 }
 0xc6e   :  { %v13520_v8 = vsel %vm1802_vm1, %v12777_v44, 0  ;;  %v12779_v55 = vadd.f32 %v12778_v14, %v12668_v41  ;;  %v12672_v54 = vpop.f32.mrf.mxu0  ;;  %13473 = vrot.lane.b32.xlu0 %v12777_v44, %s26837_s20 }
 0xc6f   :  { %v13590_v15 = vand.u32 4294901760, %v13520_v8  ;;  %v12673_v1 = vadd.f32 %v12672_v54, %v12498_v37 }
 0xc70   :  { %v12674_v43 = vpop.f32.mrf.mxu0  ;;  %13487 = vrot.lane.b32.xlu1 %v12779_v55, %s26837_s20  ;;  %v13522_v16 = vsel %vm1802_vm1, %v12779_v55, 0 }
 0xc71   :  { %v13591_v12 = vsub.f32 %v13520_v8, %v13590_v15  ;;  %v12675_v34 = vadd.f32 %v12674_v43, %v12500_v11  ;;  %v13555_v35 = vand.u32 4294901760, %v13522_v16  ;;  %v30898_v31 = vadd.f32 %v12783_v18, %v12673_v1 }
 0xc72   :  { %13491 = vrot.lane.b32.xlu0 %v12779_v55, %s26838_s21 }
 0xc73   :  { %25952 = vmatpush3.xpose.msra.mxu0 %v13555_v35  ;;  %v13592_v53 = vand.u32 4294901760, %v13591_v12  ;;  %v13632_v3 = vsub.f32 %v13522_v16, %v13555_v35  ;;  %v30884_v56 = vadd.f32 %v12785_v58, %v12675_v34  ;;  %v15320_v37 = vsel %vm1802_vm1, %v30898_v31, 0 }
 0xc74   :  { %13489 = vrot.lane.b32.xlu1 %v12779_v55, %s26836_s19  ;;  %25961 = vmatprep.subr.mxu0 %v33790_v5  ;;  %v30987_v2 = vand.u32 4294901760, %v15320_v37 }
 0xc75   :  { %v13593_v4 = vsub.f32 %v13591_v12, %v13592_v53  ;;  %v13633_v60 = vand.u32 4294901760, %v13632_v3  ;;  %v15322_v1 = vsel %vm1802_vm1, %v30884_v56, 0 }
 0xc76   :  { %13494 = vrot.lane.b32.xlu0 %v30884_v56, %s26837_s20 }
 0xc77   :  { %v13594_v7 = vand.u32 4294901760, %v13593_v4  ;;  %v13634_v63 = vsub.f32 %v13632_v3, %v13633_v60 }
 0xc78   :  { %13475 = vrot.lane.b32.xlu1 %v12777_v44, %s26836_s19 }
 0xc79   :  { %25954 = vmatmul.mubr.f32.vlgmr.msra.gmra.mxu0 %v13594_v7  ;;  %v13635_v6 = vand.u32 4294901760, %v13634_v63 }
 0xc7a   :  { %25962 = vmatpush3.xpose.msra.mxu0 %v13632_v3  ;;  %13496 = vrot.lane.b32.xlu0 %v30884_v56, %s26836_s19 }
 0xc7b   :  { %25957 = vmatpush3.xpose.msra.mxu1 %v13635_v6  ;;  %25963 = vmatprep.mubr.msk.f32.mxu0 %vm26835_vm0, %v33790_v5 }
 0xc7c   :  { %13477 = vrot.lane.b32.xlu1 %v12777_v44, %s26838_s21  ;;  %25971 = vmatprep.subr.mxu0 %v33790_v5 }
 0xc7d   :  { %25964 = vmatmul.mubr.f32.vlgmr.msra.gmra.mxu0 %v13591_v12  ;;  %25966 = vmatprep.subr.mxu1 %v33790_v5 }
 0xc7e   :  { %25972 = vmatpush3.xpose.msra.mxu0 %v13633_v60  ;;  %25959 = vmatmul.mubr.f32.vlgmr.msra.gmra.mxu1 %v13590_v15 }
 0xc7f   :  { %13498 = vrot.lane.b32.xlu0 %v30884_v56, %s26838_s21  ;;  %25967 = vmatpush3.xpose.msra.mxu1 %v13555_v35  ;;  %v30998_v56 = vand.u32 4294901760, %v15322_v1 }
 0xc80   :  { %25973 = vmatprep.mubr.msk.f32.mxu0 %vm26835_vm0, %v33790_v5  ;;  %13480 = vrot.lane.b32.xlu1 %v30898_v31, %s26837_s20 }
 0xc81   :  { %25968 = vmatprep.mubr.msk.f32.mxu1 %vm26835_vm0, %v33790_v5  ;;  %25974 = vmatmul.mubr.f32.vlgmr.msra.gmra.mxu0 %v13590_v15 }
 0xc82   :  { %25969 = vmatmul.mubr.f32.vlgmr.msra.gmra.mxu1 %v13592_v53  ;;  %25976 = vmatprep.subr.mxu1 %v33790_v5 }
 0xc83   :  { %25977 = vmatpush3.xpose.msra.mxu1 %v13555_v35  ;;  %25978 = vmatprep.mubr.msk.f32.mxu1 %vm26835_vm0, %v33790_v5 }
 0xc84   :  { %13482 = vrot.lane.b32.xlu1 %v30898_v31, %s26836_s19  ;;  %25981 = vmatprep.subr.mxu0 %v33790_v5  ;;  %v25810_v23 = vpop.f32.mrf.mxu1 }
 0xc85   :  { %25983 = vmatprep.mubr.msk.f32.mxu0 %vm26835_vm0, %v33790_v5  ;;  %25986 = vmatprep.subr.mxu1 %v33790_v5 }
 0xc86   :  { %25979 = vmatmul.mubr.f32.vlgmr.msra.gmra.mxu1 %v13590_v15  ;;  %v30929_v17 = vpop.f32.mrf.mxu1 }
 0xc87   :  { %25988 = vmatprep.mubr.msk.f32.mxu1 %vm26835_vm0, %v33790_v5 }
 0xc88   :  { %13484 = vrot.lane.b32.xlu1 %v30898_v31, %s26838_s21 }
 0xc8c   :  { %v25775_v52 = vpop.f32.mrf.mxu0 }
 0xc8d   :  { %v12886_v38 = vadd.f32 %v25775_v52, %v30924_v48  ;;  %v31002_v52 = vsub.f32 %v15320_v37, %v30987_v2 }
 0xc8e   :  { %v30927_v36 = vpop.f32.mrf.mxu0 }
 0xc8f   :  { %v13043_v49 = vadd.f32 %v25810_v23, %v12886_v38 }
 0xca6   :  { %v25880_v33 = vpop.f32.mrf.mxu1 }
 0xca8   :  { %v30933_v30 = vpop.f32.mrf.mxu1 }
 0xcae   :  { %v25845_v39 = vpop.f32.mrf.mxu0 }
 0xcaf   :  { %v13154_v40 = vadd.f32 %v25845_v39, %v13043_v49  ;;  %v15432_v39 = vsub.f32 %v15322_v1, %v30998_v56 }
 0xcb0   :  { %v30931_v24 = vpop.f32.mrf.mxu0 }
 0xcb1   :  { %v13251_v27 = vadd.f32 %v25880_v33, %v13154_v40  ;;  %v15392_v33 = vand.u32 4294901760, %v31002_v52 }
 0xcc8   :  { %v25950_v47 = vpop.f32.mrf.mxu1 }
 0xcca   :  { %v13462_v37 = vpop.f32.mrf.mxu1 }
 0xccf   :  { %v25915_v10 = vpop.f32.mrf.mxu0 }
 0xcd0   :  { %v13376_v0 = vadd.f32 %v25915_v10, %v13251_v27  ;;  %v15433_v10 = vand.u32 4294901760, %v15432_v39 }
 0xcd2   :  { %v30935_v32 = vadd.f32 %v25950_v47, %v13376_v0 }
 0xce0   :  { %v13474_v50 = vpop.permute.xlu0 %13473 }
 0xce1   :  { %v13970_v62 = vsel %vm1802_vm1, %v13474_v50, 0  ;;  %v15393_v50 = vsub.f32 %v31002_v52, %v15392_v33 }
 0xce2   :  { %v14040_v21 = vand.u32 4294901760, %v13970_v62  ;;  %v13488_v45 = vpop.permute.xlu1 %13487 }
 0xce3   :  { %v13972_v20 = vsel %vm1802_vm1, %v13488_v45, 0 }
 0xce4   :  { %v14041_v19 = vsub.f32 %v13970_v62, %v14040_v21  ;;  %v14005_v29 = vand.u32 4294901760, %v13972_v20  ;;  %v13492_v15 = vpop.permute.xlu0 %13491 }
 0xce5   :  { %v14872_v35 = vsel %vm1802_vm1, %v13492_v15, 0 }
 0xce6   :  { %v14042_v25 = vand.u32 4294901760, %v14041_v19  ;;  %v14082_v57 = vsub.f32 %v13972_v20, %v14005_v29  ;;  %v13490_v61 = vpop.permute.xlu1 %13489  ;;  %25982 = vmatpush3.xpose.msra.mxu0 %v14005_v29  ;;  %v30961_v53 = vand.u32 4294901760, %v14872_v35  ;;  %v15394_v20 = vand.u32 4294901760, %v15393_v50 }
 0xce7   :  { %v14422_v9 = vsel %vm1802_vm1, %v13490_v61, 0  ;;  %25991 = vmatprep.subr.mxu0 %v33790_v5 }
 0xce8   :  { %v14043_v42 = vsub.f32 %v14041_v19, %v14042_v25  ;;  %v14083_v14 = vand.u32 4294901760, %v14082_v57  ;;  %v30941_v26 = vand.u32 4294901760, %v14422_v9  ;;  %v14982_v60 = vsub.f32 %v14872_v35, %v30961_v53  ;;  %v13495_v40 = vpop.permute.xlu0 %13494 }
 0xce9   :  { %v15772_v0 = vsel %vm1802_vm1, %v13495_v40, 0 }
 0xcea   :  { %v14044_v44 = vand.u32 4294901760, %v14043_v42  ;;  %v14084_v41 = vsub.f32 %v14082_v57, %v14083_v14  ;;  %v13476_v51 = vpop.permute.xlu1 %13475  ;;  %v14532_v54 = vsub.f32 %v14422_v9, %v30941_v26  ;;  %v14983_v6 = vand.u32 4294901760, %v14982_v60 }
 0xceb   :  { %v14420_v8 = vsel %vm1802_vm1, %v13476_v51, 0  ;;  %v31033_v62 = vand.u32 4294901760, %v15772_v0 }
 0xcec   :  { %v14085_v55 = vand.u32 4294901760, %v14084_v41  ;;  %v30945_v18 = vand.u32 4294901760, %v14420_v8  ;;  %25984 = vmatmul.mubr.f32.vlgmr.msra.gmra.mxu0 %v14044_v44  ;;  %v14533_v12 = vand.u32 4294901760, %v14532_v54  ;;  %v14984_v31 = vsub.f32 %v14982_v60, %v14983_v6 }
 0xced   :  { %25992 = vmatpush3.xpose.msra.mxu0 %v14082_v57  ;;  %25993 = vmatprep.mubr.msk.f32.mxu0 %vm26835_vm0, %v33790_v5  ;;  %v13497_v57 = vpop.permute.xlu0 %13496 }
 0xcee   :  { %v14491_v11 = vsub.f32 %v14420_v8, %v30945_v18  ;;  %v13478_v43 = vpop.permute.xlu1 %13477  ;;  %25987 = vmatpush3.xpose.msra.mxu1 %v14085_v55  ;;  %26001 = vmatprep.subr.mxu0 %v33790_v5  ;;  %v14534_v3 = vsub.f32 %v14532_v54, %v14533_v12  ;;  %v14985_v23 = vand.u32 4294901760, %v14984_v31 }
 0xcef   :  { %v14870_v16 = vsel %vm1802_vm1, %v13478_v43, 0  ;;  %25996 = vmatprep.subr.mxu1 %v33790_v5 }
 0xcf0   :  { %v14492_v34 = vand.u32 4294901760, %v14491_v11  ;;  %25994 = vmatmul.mubr.f32.vlgmr.msra.gmra.mxu0 %v14041_v19  ;;  %v30954_v58 = vand.u32 4294901760, %v14870_v16  ;;  %v14535_v7 = vand.u32 4294901760, %v14534_v3  ;;  %v15882_v19 = vsub.f32 %v15772_v0, %v31033_v62 }
 0xcf1   :  { %26002 = vmatpush3.xpose.msra.mxu0 %v14083_v14  ;;  %25989 = vmatmul.mubr.f32.vlgmr.msra.gmra.mxu1 %v14040_v21  ;;  %v16222_v14 = vsel %vm1802_vm1, %v13497_v57, 0  ;;  %v13499_v43 = vpop.permute.xlu0 %13498 }
 0xcf2   :  { %v14493_v13 = vsub.f32 %v14491_v11, %v14492_v34  ;;  %25997 = vmatpush3.xpose.msra.mxu1 %v14005_v29  ;;  %26003 = vmatprep.mubr.msk.f32.mxu0 %vm26835_vm0, %v33790_v5  ;;  %v30966_v4 = vsub.f32 %v14870_v16, %v30954_v58  ;;  %v13481_v49 = vpop.permute.xlu1 %13480  ;;  %v15883_v42 = vand.u32 4294901760, %v15882_v19  ;;  %v31072_v51 = vand.u32 4294901760, %v16222_v14 }
 0xcf3   :  { %26011 = vmatprep.subr.mxu0 %v33790_v5  ;;  %25998 = vmatprep.mubr.msk.f32.mxu1 %vm26835_vm0, %v33790_v5  ;;  %v15770_v27 = vsel %vm1802_vm1, %v13481_v49, 0 }
 0xcf4   :  { %26004 = vmatmul.mubr.f32.vlgmr.msra.gmra.mxu0 %v14040_v21  ;;  %26006 = vmatprep.subr.mxu1 %v33790_v5  ;;  %v14494_v59 = vand.u32 4294901760, %v14493_v13  ;;  %v14942_v63 = vand.u32 4294901760, %v30966_v4  ;;  %v31024_v47 = vand.u32 4294901760, %v15770_v27  ;;  %v15884_v41 = vsub.f32 %v15882_v19, %v15883_v42 }
 0xcf5   :  { %26012 = vmatpush3.xpose.msra.mxu0 %v30941_v26  ;;  %25999 = vmatmul.mubr.f32.vlgmr.msra.gmra.mxu1 %v14042_v25  ;;  %v16332_v15 = vsub.f32 %v16222_v14, %v31072_v51 }
 0xcf6   :  { %26007 = vmatpush3.xpose.msra.mxu1 %v14005_v29  ;;  %26013 = vmatprep.mubr.msk.f32.mxu0 %vm26835_vm0, %v33790_v5  ;;  %v14943_v46 = vsub.f32 %v30966_v4, %v14942_v63  ;;  %v31039_v45 = vsub.f32 %v15770_v27, %v31024_v47  ;;  %v13483_v29 = vpop.permute.xlu1 %13482 }
 0xcf7   :  { %26021 = vmatprep.subr.mxu0 %v33790_v5  ;;  %26008 = vmatprep.mubr.msk.f32.mxu1 %vm26835_vm0, %v33790_v5  ;;  %v16220_v9 = vsel %vm1802_vm1, %v13483_v29, 0 }
 0xcf8   :  { %26014 = vmatmul.mubr.f32.vlgmr.msra.gmra.mxu0 %v14494_v59  ;;  %26016 = vmatprep.subr.mxu1 %v33790_v5  ;;  %v14944_v38 = vand.u32 4294901760, %v14943_v46  ;;  %v15842_v61 = vand.u32 4294901760, %v31039_v45  ;;  %v31064_v44 = vand.u32 4294901760, %v16220_v9 }
 0xcf9   :  { %26022 = vmatpush3.xpose.msra.mxu0 %v14532_v54  ;;  %26009 = vmatmul.mubr.f32.vlgmr.msra.gmra.mxu1 %v14040_v21  ;;  %v15434_v21 = vsub.f32 %v15432_v39, %v15433_v10  ;;  %v12876_v54 = vadd.f32 %v30927_v36, %v30924_v48  ;;  %v16333_v36 = vand.u32 4294901760, %v16332_v15 }
 0xcfa   :  { %26017 = vmatpush3.xpose.msra.mxu1 %v14535_v7  ;;  %26023 = vmatprep.mubr.msk.f32.mxu0 %vm26835_vm0, %v33790_v5  ;;  %v31078_v55 = vsub.f32 %v16220_v9, %v31064_v44 }
 0xcfb   :  { %26031 = vmatprep.subr.mxu0 %v33790_v5  ;;  %26018 = vmatprep.mubr.msk.f32.mxu1 %vm26835_vm0, %v33790_v5  ;;  %v15435_v25 = vand.u32 4294901760, %v15434_v21  ;;  %v13037_v48 = vadd.f32 %v30929_v17, %v12876_v54  ;;  %v16334_v17 = vsub.f32 %v16332_v15, %v16333_v36 }
 0xcfc   :  { %26024 = vmatmul.mubr.f32.vlgmr.msra.gmra.mxu0 %v14491_v11  ;;  %26026 = vmatprep.subr.mxu1 %v33790_v5  ;;  %v13485_v11 = vpop.permute.xlu1 %13484  ;;  %v16292_v16 = vand.u32 4294901760, %v31078_v55 }
 0xcfd   :  { %26032 = vmatpush3.xpose.msra.mxu0 %v14533_v12  ;;  %26019 = vmatmul.mubr.f32.vlgmr.msra.gmra.mxu1 %v30945_v18  ;;  %v16670_v12 = vsel %vm1802_vm1, %v13485_v11, 0  ;;  %v13147_v35 = vadd.f32 %v30931_v24, %v13037_v48  ;;  %v13369_v24 = vpop.f32.mrf.mxu0  ;;  %v16335_v7 = vand.u32 4294901760, %v16334_v17 }
 0xcfe   :  { %26027 = vmatpush3.xpose.msra.mxu1 %v30941_v26  ;;  %26033 = vmatprep.mubr.msk.f32.mxu0 %vm26835_vm0, %v33790_v5  ;;  %v16293_v13 = vsub.f32 %v31078_v55, %v16292_v16 }
 0xcff   :  { %26041 = vmatprep.subr.mxu0 %v33790_v5  ;;  %26028 = vmatprep.mubr.msk.f32.mxu1 %vm26835_vm0, %v33790_v5  ;;  %v13243_v3 = vadd.f32 %v30933_v30, %v13147_v35 }
 0xd00   :  { %26034 = vmatmul.mubr.f32.vlgmr.msra.gmra.mxu0 %v30945_v18  ;;  %26036 = vmatprep.subr.mxu1 %v33790_v5  ;;  %v16294_v59 = vand.u32 4294901760, %v16293_v13 }
 0xd01   :  { %26042 = vmatpush3.xpose.msra.mxu0 %v30961_v53  ;;  %26029 = vmatmul.mubr.f32.vlgmr.msra.gmra.mxu1 %v14492_v34  ;;  %v16672_v34 = vsel %vm1802_vm1, %v13499_v43, 0 }
 0xd02   :  { %26037 = vmatpush3.xpose.msra.mxu1 %v30941_v26  ;;  %26043 = vmatprep.mubr.msk.f32.mxu0 %vm26835_vm0, %v33790_v5  ;;  %v15843_v26 = vsub.f32 %v31039_v45, %v15842_v61 }
 0xd03   :  { %26051 = vmatprep.subr.mxu0 %v33790_v5  ;;  %26038 = vmatprep.mubr.msk.f32.mxu1 %vm26835_vm0, %v33790_v5 }
 0xd04   :  { %26044 = vmatmul.mubr.f32.vlgmr.msra.gmra.mxu0 %v14944_v38  ;;  %26046 = vmatprep.subr.mxu1 %v33790_v5  ;;  %v15844_v8 = vand.u32 4294901760, %v15843_v26 }
 0xd05   :  { %26052 = vmatpush3.xpose.msra.mxu0 %v14982_v60  ;;  %26039 = vmatmul.mubr.f32.vlgmr.msra.gmra.mxu1 %v30945_v18  ;;  %v15885_v18 = vand.u32 4294901760, %v15884_v41  ;;  %v13370_v60 = vadd.f32 %v13369_v24, %v13243_v3 }
 0xd06   :  { %26047 = vmatpush3.xpose.msra.mxu1 %v14985_v23  ;;  %26053 = vmatprep.mubr.msk.f32.mxu0 %vm26835_vm0, %v33790_v5 }
 0xd07   :  { %26061 = vmatprep.subr.mxu0 %v33790_v5  ;;  %26048 = vmatprep.mubr.msk.f32.mxu1 %vm26835_vm0, %v33790_v5 }
 0xd08   :  { %26054 = vmatmul.mubr.f32.vlgmr.msra.gmra.mxu0 %v30966_v4  ;;  %26056 = vmatprep.subr.mxu1 %v33790_v5 }
 0xd09   :  { %26062 = vmatpush3.xpose.msra.mxu0 %v14983_v6  ;;  %26049 = vmatmul.mubr.f32.vlgmr.msra.gmra.mxu1 %v30954_v58  ;;  %v31139_v6 = vadd.f32 %v13462_v37, %v13370_v60 }
 0xd0a   :  { %26057 = vmatpush3.xpose.msra.mxu1 %v30961_v53  ;;  %26063 = vmatprep.mubr.msk.f32.mxu0 %vm26835_vm0, %v33790_v5 }
 0xd0b   :  { %26071 = vmatprep.subr.mxu0 %v33790_v5  ;;  %26058 = vmatprep.mubr.msk.f32.mxu1 %vm26835_vm0, %v33790_v5  ;;  %v31154_v31 = vand.u32 4294901760, %v31139_v6 }
 0xd0c   :  { %26064 = vmatmul.mubr.f32.vlgmr.msra.gmra.mxu0 %v30954_v58  ;;  %26066 = vmatprep.subr.mxu1 %v33790_v5 }
 0xd0d   :  { %26072 = vmatpush3.xpose.msra.mxu0 %v30998_v56  ;;  %26059 = vmatmul.mubr.f32.vlgmr.msra.gmra.mxu1 %v14942_v63  ;;  %v31166_v38 = vsub.f32 %v31139_v6, %v31154_v31 }
 0xd0e   :  { %26067 = vmatpush3.xpose.msra.mxu1 %v30961_v53  ;;  %26073 = vmatprep.mubr.msk.f32.mxu0 %vm26835_vm0, %v33790_v5  ;;  %v31113_v53 = vand.u32 4294901760, %v16672_v34 }
 0xd0f   :  { %26081 = vmatprep.subr.mxu0 %v33790_v5  ;;  %26068 = vmatprep.mubr.msk.f32.mxu1 %vm26835_vm0, %v33790_v5  ;;  %v17320_v23 = vand.u32 4294901760, %v31166_v38 }
 0xd10   :  { %26074 = vmatmul.mubr.f32.vlgmr.msra.gmra.mxu0 %v15394_v20  ;;  %26076 = vmatprep.subr.mxu1 %v33790_v5  ;;  %v16782_v63 = vsub.f32 %v16672_v34, %v31113_v53 }
 0xd11   :  { %26082 = vmatpush3.xpose.msra.mxu0 %v15432_v39  ;;  %26069 = vmatmul.mubr.f32.vlgmr.msra.gmra.mxu1 %v30954_v58  ;;  %v31105_v58 = vand.u32 4294901760, %v16670_v12  ;;  %v17321_v40 = vsub.f32 %v31166_v38, %v17320_v23 }
 0xd12   :  { %26077 = vmatpush3.xpose.msra.mxu1 %v15435_v25  ;;  %26083 = vmatprep.mubr.msk.f32.mxu0 %vm26835_vm0, %v33790_v5  ;;  %v16783_v1 = vand.u32 4294901760, %v16782_v63 }
 0xd13   :  { %26091 = vmatprep.subr.mxu0 %v33790_v5  ;;  %26078 = vmatprep.mubr.msk.f32.mxu1 %vm26835_vm0, %v33790_v5  ;;  %v31122_v4 = vsub.f32 %v16670_v12, %v31105_v58  ;;  %v17322_v50 = vand.u32 4294901760, %v17321_v40 }
 0xd14   :  { %26084 = vmatmul.mubr.f32.vlgmr.msra.gmra.mxu0 %v31002_v52  ;;  %26086 = vmatprep.subr.mxu1 %v33790_v5  ;;  %v16784_v46 = vsub.f32 %v16782_v63, %v16783_v1 }
 0xd15   :  { %26092 = vmatpush3.xpose.msra.mxu0 %v15433_v10  ;;  %26079 = vmatmul.mubr.f32.vlgmr.msra.gmra.mxu1 %v30987_v2  ;;  %v16742_v30 = vand.u32 4294901760, %v31122_v4 }
 0xd16   :  { %26087 = vmatpush3.xpose.msra.mxu1 %v30998_v56  ;;  %26093 = vmatprep.mubr.msk.f32.mxu0 %vm26835_vm0, %v33790_v5  ;;  %v16785_v52 = vand.u32 4294901760, %v16784_v46 }
 0xd17   :  { %26101 = vmatprep.subr.mxu0 %v33790_v5  ;;  %26088 = vmatprep.mubr.msk.f32.mxu1 %vm26835_vm0, %v33790_v5 }
 0xd18   :  { %26094 = vmatmul.mubr.f32.vlgmr.msra.gmra.mxu0 %v30987_v2  ;;  %26096 = vmatprep.subr.mxu1 %v33790_v5 }
 0xd19   :  { %26102 = vmatpush3.xpose.msra.mxu0 %v31033_v62  ;;  %26089 = vmatmul.mubr.f32.vlgmr.msra.gmra.mxu1 %v15392_v33 }
 0xd1a   :  { %26097 = vmatpush3.xpose.msra.mxu1 %v30998_v56  ;;  %26103 = vmatprep.mubr.msk.f32.mxu0 %vm26835_vm0, %v33790_v5 }
 0xd1b   :  { %26111 = vmatprep.subr.mxu0 %v33790_v5  ;;  %26098 = vmatprep.mubr.msk.f32.mxu1 %vm26835_vm0, %v33790_v5 }
 0xd1c   :  { %26104 = vmatmul.mubr.f32.vlgmr.msra.gmra.mxu0 %v15844_v8  ;;  %26106 = vmatprep.subr.mxu1 %v33790_v5 }
 0xd1d   :  { %26112 = vmatpush3.xpose.msra.mxu0 %v15882_v19  ;;  %26099 = vmatmul.mubr.f32.vlgmr.msra.gmra.mxu1 %v30987_v2  ;;  %v16743_v2 = vsub.f32 %v31122_v4, %v16742_v30 }
 0xd1e   :  { %26107 = vmatpush3.xpose.msra.mxu1 %v15885_v18  ;;  %26113 = vmatprep.mubr.msk.f32.mxu0 %vm26835_vm0, %v33790_v5 }
 0xd1f   :  { %26121 = vmatprep.subr.mxu0 %v33790_v5  ;;  %26108 = vmatprep.mubr.msk.f32.mxu1 %vm26835_vm0, %v33790_v5  ;;  %v16744_v56 = vand.u32 4294901760, %v16743_v2 }
 0xd20   :  { %26114 = vmatmul.mubr.f32.vlgmr.msra.gmra.mxu0 %v31039_v45  ;;  %26116 = vmatprep.subr.mxu1 %v33790_v5 }
 0xd21   :  { %26122 = vmatpush3.xpose.msra.mxu0 %v15883_v42  ;;  %26109 = vmatmul.mubr.f32.vlgmr.msra.gmra.mxu1 %v31024_v47 }
 0xd22   :  { %26117 = vmatpush3.xpose.msra.mxu1 %v31033_v62  ;;  %26123 = vmatprep.mubr.msk.f32.mxu0 %vm26835_vm0, %v33790_v5 }
 0xd23   :  { %26131 = vmatprep.subr.mxu0 %v33790_v5  ;;  %26118 = vmatprep.mubr.msk.f32.mxu1 %vm26835_vm0, %v33790_v5 }
 0xd24   :  { %26124 = vmatmul.mubr.f32.vlgmr.msra.gmra.mxu0 %v31024_v47  ;;  %26126 = vmatprep.subr.mxu1 %v33790_v5 }
 0xd25   :  { %26132 = vmatpush3.xpose.msra.mxu0 %v31072_v51  ;;  %26119 = vmatmul.mubr.f32.vlgmr.msra.gmra.mxu1 %v15842_v61 }
 0xd26   :  { %26127 = vmatpush3.xpose.msra.mxu1 %v31033_v62  ;;  %26133 = vmatprep.mubr.msk.f32.mxu0 %vm26835_vm0, %v33790_v5 }
 0xd27   :  { %26141 = vmatprep.subr.mxu0 %v33790_v5  ;;  %26128 = vmatprep.mubr.msk.f32.mxu1 %vm26835_vm0, %v33790_v5 }
 0xd28   :  { %26134 = vmatmul.mubr.f32.vlgmr.msra.gmra.mxu0 %v16294_v59  ;;  %26136 = vmatprep.subr.mxu1 %v33790_v5 }
 0xd29   :  { %26142 = vmatpush3.xpose.msra.mxu0 %v16332_v15  ;;  %26129 = vmatmul.mubr.f32.vlgmr.msra.gmra.mxu1 %v31024_v47 }
 0xd2a   :  { %26137 = vmatpush3.xpose.msra.mxu1 %v16335_v7  ;;  %26143 = vmatprep.mubr.msk.f32.mxu0 %vm26835_vm0, %v33790_v5 }
 0xd2b   :  { %26151 = vmatprep.subr.mxu0 %v33790_v5  ;;  %26138 = vmatprep.mubr.msk.f32.mxu1 %vm26835_vm0, %v33790_v5 }
 0xd2c   :  { %26144 = vmatmul.mubr.f32.vlgmr.msra.gmra.mxu0 %v31078_v55  ;;  %26146 = vmatprep.subr.mxu1 %v33790_v5 }
 0xd2d   :  { %26152 = vmatpush3.xpose.msra.mxu0 %v16333_v36  ;;  %26139 = vmatmul.mubr.f32.vlgmr.msra.gmra.mxu1 %v31064_v44 }
 0xd2e   :  { %26147 = vmatpush3.xpose.msra.mxu1 %v31072_v51  ;;  %26153 = vmatprep.mubr.msk.f32.mxu0 %vm26835_vm0, %v33790_v5 }
 0xd2f   :  { %26161 = vmatprep.subr.mxu0 %v33790_v5  ;;  %26148 = vmatprep.mubr.msk.f32.mxu1 %vm26835_vm0, %v33790_v5 }
 0xd30   :  { %26154 = vmatmul.mubr.f32.vlgmr.msra.gmra.mxu0 %v31064_v44  ;;  %26156 = vmatprep.subr.mxu1 %v33790_v5 }
 0xd31   :  { %26162 = vmatpush3.xpose.msra.mxu0 %v31113_v53  ;;  %26149 = vmatmul.mubr.f32.vlgmr.msra.gmra.mxu1 %v16292_v16 }
 0xd32   :  { %26157 = vmatpush3.xpose.msra.mxu1 %v31072_v51  ;;  %26163 = vmatprep.mubr.msk.f32.mxu0 %vm26835_vm0, %v33790_v5 }
 0xd33   :  { %26171 = vmatprep.subr.mxu0 %v33790_v5  ;;  %26158 = vmatprep.mubr.msk.f32.mxu1 %vm26835_vm0, %v33790_v5 }
 0xd34   :  { %26164 = vmatmul.mubr.f32.vlgmr.msra.gmra.mxu0 %v16744_v56  ;;  %26166 = vmatprep.subr.mxu1 %v33790_v5 }
 0xd35   :  { %26172 = vmatpush3.xpose.msra.mxu0 %v16782_v63  ;;  %26159 = vmatmul.mubr.f32.vlgmr.msra.gmra.mxu1 %v31064_v44 }
 0xd36   :  { %26167 = vmatpush3.xpose.msra.mxu1 %v16785_v52  ;;  %26173 = vmatprep.mubr.msk.f32.mxu0 %vm26835_vm0, %v33790_v5 }
 0xd37   :  { %26181 = vmatprep.subr.mxu0 %v33790_v5  ;;  %26168 = vmatprep.mubr.msk.f32.mxu1 %vm26835_vm0, %v33790_v5 }
 0xd38   :  { %26174 = vmatmul.mubr.f32.vlgmr.msra.gmra.mxu0 %v31122_v4  ;;  %26176 = vmatprep.subr.mxu1 %v33790_v5 }
 0xd39   :  { %26182 = vmatpush3.xpose.msra.mxu0 %v16783_v1  ;;  %v13596_v49 = vpop.f32.mrf.mxu0  ;;  %26169 = vmatmul.mubr.f32.vlgmr.msra.gmra.mxu1 %v31105_v58 }
 0xd3a   :  { %26177 = vmatpush3.xpose.msra.mxu1 %v31113_v53  ;;  %26183 = vmatprep.mubr.msk.f32.mxu0 %vm26835_vm0, %v33790_v5 }
 0xd3b   :  { %v25955_v39 = vpop.f32.mrf.mxu0  ;;  %26191 = vmatprep.subr.mxu0 %v33790_v5  ;;  %26178 = vmatprep.mubr.msk.f32.mxu1 %vm26835_vm0, %v33790_v5 }
 0xd3c   :  { %26184 = vmatmul.mubr.f32.vlgmr.msra.gmra.mxu0 %v31105_v58  ;;  %26186 = vmatprep.subr.mxu1 %v33790_v5 }
 0xd3d   :  { %26192 = vmatpush3.msra.mxu0 %v31154_v31  ;;  %v13746_v33 = vpop.f32.mrf.mxu0  ;;  %26179 = vmatmul.mubr.f32.vlgmr.msra.gmra.mxu1 %v16742_v30 }
 0xd3e   :  { %v13672_v27 = vpop.f32.mrf.mxu1  ;;  %26187 = vmatpush3.xpose.msra.mxu1 %v31113_v53  ;;  %26188 = vmatprep.mubr.msk.f32.mxu1 %vm26835_vm0, %v33790_v5 }
 0xd3f   :  { %v13673_v10 = vadd.f32 %v13672_v27, %v13596_v49  ;;  %v25965_v0 = vpop.f32.mrf.mxu0  ;;  %26196 = vmatprep.subr.mxu1 %v33790_v5  ;;  %26193 = vmatprep.mubr.msk.f32.mxu0 %vm26835_vm0, %v33790_v5 }
 0xd40   :  { %v25960_v47 = vpop.f32.mrf.mxu1  ;;  %26201 = vmatprep.subr.mxu0 %v33790_v5 }
 0xd41   :  { %v13894_v62 = vpop.f32.mrf.mxu0  ;;  %26189 = vmatmul.mubr.f32.vlgmr.msra.gmra.mxu1 %v31105_v58  ;;  %v13747_v21 = vadd.f32 %v13746_v33, %v13673_v10 }
 0xd42   :  { %v13820_v45 = vpop.f32.mrf.mxu1  ;;  %26197 = vmatpush3.msra.mxu1 %v17322_v50  ;;  %26198 = vmatprep.mubr.msk.f32.mxu1 %vm26835_vm0, %v33790_v5 }
 0xd43   :  { %v13821_v20 = vadd.f32 %v13820_v45, %v13747_v21  ;;  %v25975_v19 = vpop.f32.mrf.mxu0  ;;  %26206 = vmatprep.subr.mxu1 %v33790_v5 }
 0xd44   :  { %v25970_v29 = vpop.f32.mrf.mxu1 }
 0xd45   :  { %v13895_v25 = vadd.f32 %v13894_v62, %v13821_v20 }
 0xd46   :  { %v13966_v57 = vpop.f32.mrf.mxu1 }
 0xd47   :  { %v31201_v61 = vadd.f32 %v13966_v57, %v13895_v25 }
 0xd48   :  { %v25980_v9 = vpop.f32.mrf.mxu1 }
 0xd49   :  { %v17120_v42 = vsel %vm5403_vm2, %v31201_v61, -inf }
 0xd4a   :  { %17121 = vmax.xlane.f32.xlu0 %v17120_v42 }
 0xdac   :  { %v14046_v14 = vpop.f32.mrf.mxu0 }
 0xdae   :  { %v25985_v26 = vpop.f32.mrf.mxu0 }
 0xdb0   :  { %v14196_v44 = vpop.f32.mrf.mxu0 }
 0xdb1   :  { %v14122_v41 = vpop.f32.mrf.mxu1 }
 0xdb2   :  { %v14123_v51 = vadd.f32 %v14122_v41, %v14046_v14  ;;  %v25995_v8 = vpop.f32.mrf.mxu0 }
 0xdb3   :  { %v25990_v55 = vpop.f32.mrf.mxu1 }
 0xdb4   :  { %v14344_v54 = vpop.f32.mrf.mxu0  ;;  %v14197_v18 = vadd.f32 %v14196_v44, %v14123_v51 }
 0xdb5   :  { %v14270_v15 = vpop.f32.mrf.mxu1 }
 0xdb6   :  { %v14271_v11 = vadd.f32 %v14270_v15, %v14197_v18  ;;  %v26005_v43 = vpop.f32.mrf.mxu0 }
 0xdb7   :  { %v26000_v16 = vpop.f32.mrf.mxu1 }
 0xdb8   :  { %v14496_v12 = vpop.f32.mrf.mxu0  ;;  %v14345_v48 = vadd.f32 %v14344_v54, %v14271_v11 }
 0xdb9   :  { %v14416_v36 = vpop.f32.mrf.mxu1 }
 0xdba   :  { %v31205_v34 = vadd.f32 %v14416_v36, %v14345_v48  ;;  %v26015_v35 = vpop.f32.mrf.mxu0 }
 0xdbb   :  { %v26010_v13 = vpop.f32.mrf.mxu1 }
 0xdbc   :  { %v14646_v58 = vpop.f32.mrf.mxu0  ;;  %v17123_v17 = vsel %vm5403_vm2, %v31205_v34, -inf }
 0xdbd   :  { %v14572_v53 = vpop.f32.mrf.mxu1  ;;  %17124 = vmax.xlane.f32.xlu1 %v17123_v17 }
 0xdbe   :  { %v14573_v24 = vadd.f32 %v14572_v53, %v14496_v12  ;;  %v26025_v3 = vpop.f32.mrf.mxu0 }
 0xdbf   :  { %v26020_v59 = vpop.f32.mrf.mxu1 }
 0xdc0   :  { %v14794_v4 = vpop.f32.mrf.mxu0  ;;  %v14647_v60 = vadd.f32 %v14646_v58, %v14573_v24 }
 0xdc1   :  { %v14720_v7 = vpop.f32.mrf.mxu1 }
 0xdc2   :  { %v14721_v63 = vadd.f32 %v14720_v7, %v14647_v60  ;;  %v26035_v30 = vpop.f32.mrf.mxu0 }
 0xdc3   :  { %v26030_v37 = vpop.f32.mrf.mxu1 }
 0xdc4   :  { %v14946_v1 = vpop.f32.mrf.mxu0  ;;  %v14795_v2 = vadd.f32 %v14794_v4, %v14721_v63 }
 0xdc5   :  { %v14866_v46 = vpop.f32.mrf.mxu1 }
 0xdc6   :  { %v31209_v56 = vadd.f32 %v14866_v46, %v14795_v2  ;;  %v26045_v52 = vpop.f32.mrf.mxu0 }
 0xdc7   :  { %v26040_v49 = vpop.f32.mrf.mxu1 }
 0xdc8   :  { %v15096_v39 = vpop.f32.mrf.mxu0  ;;  %v17126_v40 = vsel %vm5403_vm2, %v31209_v56, -inf }
 0xdc9   :  { %v15022_v33 = vpop.f32.mrf.mxu1  ;;  %17127 = vmax.xlane.f32.xlu0 %v17126_v40 }
 0xdca   :  { %v15023_v27 = vadd.f32 %v15022_v33, %v14946_v1  ;;  %v26055_v10 = vpop.f32.mrf.mxu0 }
 0xdcb   :  { %v26050_v0 = vpop.f32.mrf.mxu1 }
 0xdcc   :  { %v15244_v47 = vpop.f32.mrf.mxu0  ;;  %v15097_v50 = vadd.f32 %v15096_v39, %v15023_v27 }
 0xdcd   :  { %v15170_v62 = vpop.f32.mrf.mxu1 }
 0xdce   :  { %v15171_v21 = vadd.f32 %v15170_v62, %v15097_v50  ;;  %v26065_v45 = vpop.f32.mrf.mxu0 }
 0xdcf   :  { %v26060_v20 = vpop.f32.mrf.mxu1 }
 0xdd0   :  { %v15396_v19 = vpop.f32.mrf.mxu0  ;;  %v15245_v29 = vadd.f32 %v15244_v47, %v15171_v21 }
 0xdd1   :  { %v15316_v25 = vpop.f32.mrf.mxu1 }
 0xdd2   :  { %v31213_v57 = vadd.f32 %v15316_v25, %v15245_v29  ;;  %v26075_v9 = vpop.f32.mrf.mxu0 }
 0xdd3   :  { %v26070_v42 = vpop.f32.mrf.mxu1  ;;  %v17122_v14 = vpop.xlane.xlu0 %17121 }
 0xdd4   :  { %v17144_v26 = vsub.f32 %v31201_v61, %v17122_v14  ;;  %v15546_v44 = vpop.f32.mrf.mxu0  ;;  %v17129_v41 = vsel %vm5403_vm2, %v31213_v57, -inf }
 0xdd5   :  { %17130 = vmax.xlane.f32.xlu0 %v17129_v41  ;;  %v15472_v51 = vpop.f32.mrf.mxu1 }
 0xdd6   :  { %v17152_v8 = vmul.f32 1.442695, %v17144_v26  ;;  %v15473_v55 = vadd.f32 %v15472_v51, %v15396_v19  ;;  %v26085_v54 = vpop.f32.mrf.mxu0 }
 0xdd7   :  { %v26080_v18 = vpop.f32.mrf.mxu1 }
 0xdd8   :  { %26696 = vpow2.f32 %v17152_v8  ;;  %v15694_v15 = vpop.f32.mrf.mxu0  ;;  %v15547_v11 = vadd.f32 %v15546_v44, %v15473_v55 }
 0xdd9   :  { %v15620_v43 = vpop.f32.mrf.mxu1 }
 0xdda   :  { %v15621_v16 = vadd.f32 %v15620_v43, %v15547_v11  ;;  %v26095_v12 = vpop.f32.mrf.mxu0 }
 0xddb   :  { %v26090_v48 = vpop.f32.mrf.mxu1 }
 0xddc   :  { %v15846_v36 = vpop.f32.mrf.mxu0  ;;  %v15695_v35 = vadd.f32 %v15694_v15, %v15621_v16 }
 0xddd   :  { %v15766_v61 = vpop.f32.mrf.mxu1 }
 0xdde   :  { %v31218_v13 = vadd.f32 %v15766_v61, %v15695_v35  ;;  %v26105_v58 = vpop.f32.mrf.mxu0 }
 0xddf   :  { %v26100_v17 = vpop.f32.mrf.mxu1 }
 0xde0   :  { %v15996_v53 = vpop.f32.mrf.mxu0  ;;  %v17132_v24 = vsel %vm5403_vm2, %v31218_v13, -inf }
 0xde1   :  { %v15922_v3 = vpop.f32.mrf.mxu1  ;;  %17133 = vmax.xlane.f32.xlu1 %v17132_v24 }
 0xde2   :  { %v15923_v59 = vadd.f32 %v15922_v3, %v15846_v36  ;;  %v26115_v4 = vpop.f32.mrf.mxu0 }
 0xde3   :  { %v26110_v60 = vpop.f32.mrf.mxu1 }
 0xde4   :  { %v16144_v7 = vpop.f32.mrf.mxu0  ;;  %v15997_v63 = vadd.f32 %v15996_v53, %v15923_v59 }
 0xde5   :  { %v31222_v30 = vpop.eup %26696  ;;  %v16070_v37 = vpop.f32.mrf.mxu1 }
 0xde6   :  { %v16071_v1 = vadd.f32 %v16070_v37, %v15997_v63  ;;  %v26125_v2 = vpop.f32.mrf.mxu0  ;;  %v17168_v46 = vsel %vm5403_vm2, %v31222_v30, 0.0 }
 0xde7   :  { %v26120_v52 = vpop.f32.mrf.mxu1  ;;  %17169 = vadd.xlane.f32.xlu1 %v17168_v46 }
 0xde8   :  { %v16296_v49 = vpop.f32.mrf.mxu0  ;;  %v16145_v39 = vadd.f32 %v16144_v7, %v16071_v1 }
 0xde9   :  { %v16216_v40 = vpop.f32.mrf.mxu1 }
 0xdea   :  { %v31226_v33 = vadd.f32 %v16216_v40, %v16145_v39  ;;  %v26135_v27 = vpop.f32.mrf.mxu0 }
 0xdeb   :  { %v26130_v10 = vpop.f32.mrf.mxu1 }
 0xdec   :  { %v16446_v0 = vpop.f32.mrf.mxu0  ;;  %v17135_v47 = vsel %vm5403_vm2, %v31226_v33, -inf }
 0xded   :  { %v16372_v50 = vpop.f32.mrf.mxu1  ;;  %17136 = vmax.xlane.f32.xlu0 %v17135_v47 }
 0xdee   :  { %v16373_v62 = vadd.f32 %v16372_v50, %v16296_v49  ;;  %v26145_v21 = vpop.f32.mrf.mxu0 }
 0xdef   :  { %v26140_v45 = vpop.f32.mrf.mxu1 }
 0xdf0   :  { %v16594_v20 = vpop.f32.mrf.mxu0  ;;  %v16447_v19 = vadd.f32 %v16446_v0, %v16373_v62 }
 0xdf1   :  { %v16520_v29 = vpop.f32.mrf.mxu1 }
 0xdf2   :  { %v16521_v25 = vadd.f32 %v16520_v29, %v16447_v19  ;;  %v26155_v9 = vpop.f32.mrf.mxu0 }
 0xdf3   :  { %v26150_v42 = vpop.f32.mrf.mxu1 }
 0xdf4   :  { %v16746_v14 = vpop.f32.mrf.mxu0  ;;  %v16595_v26 = vadd.f32 %v16594_v20, %v16521_v25 }
 0xdf5   :  { %v16666_v44 = vpop.f32.mrf.mxu1 }
 0xdf6   :  { %v31230_v41 = vadd.f32 %v16666_v44, %v16595_v26  ;;  %v26165_v51 = vpop.f32.mrf.mxu0 }
 0xdf7   :  { %v26160_v8 = vpop.f32.mrf.mxu1 }
 0xdf8   :  { %v16896_v55 = vpop.f32.mrf.mxu0  ;;  %v17138_v54 = vsel %vm5403_vm2, %v31230_v41, -inf }
 0xdf9   :  { %v16822_v18 = vpop.f32.mrf.mxu1  ;;  %17139 = vmax.xlane.f32.xlu1 %v17138_v54 }
 0xdfa   :  { %v16823_v15 = vadd.f32 %v16822_v18, %v16746_v14  ;;  %v26175_v11 = vpop.f32.mrf.mxu0 }
 0xdfb   :  { %v26170_v43 = vpop.f32.mrf.mxu1 }
 0xdfc   :  { %v17044_v16 = vpop.f32.mrf.mxu0  ;;  %v16897_v12 = vadd.f32 %v16896_v55, %v16823_v15 }
 0xdfd   :  { %v16970_v48 = vpop.f32.mrf.mxu1 }
 0xdfe   :  { %v16971_v36 = vadd.f32 %v16970_v48, %v16897_v12  ;;  %v26185_v35 = vpop.f32.mrf.mxu0 }
 0xdff   :  { %v26180_v61 = vpop.f32.mrf.mxu1 }
 0xe00   :  { %v17045_v58 = vadd.f32 %v17044_v16, %v16971_v36 }
 0xe01   :  { %v17116_v17 = vpop.f32.mrf.mxu1 }
 0xe02   :  { %v31234_v53 = vadd.f32 %v17116_v17, %v17045_v58 }
 0xe03   :  { %v26190_v24 = vpop.f32.mrf.mxu1 }
 0xe04   :  { %v17141_v3 = vsel %vm5403_vm2, %v31234_v53, -inf }
 0xe05   :  { %17142 = vmax.xlane.f32.xlu0 %v17141_v3 }
 0xe0a   :  { %13501 = vrot.lane.b32.xlu1 %v31139_v6, %s26837_s20 }
 0xe1b   :  { %13504 = vrot.lane.b32.xlu0 %v31139_v6, %s26836_s19 }
 0xe46   :  { %v17125_v59 = vpop.xlane.xlu1 %17124 }
 0xe47   :  { %v17145_v4 = vsub.f32 %v31205_v34, %v17125_v59 }
 0xe49   :  { %v17154_v60 = vmul.f32 1.442695, %v17145_v4 }
 0xe4b   :  { %26698 = vpow2.f32 %v17154_v60 }
 0xe52   :  { %v17128_v7 = vpop.xlane.xlu0 %17127 }
 0xe53   :  { %v17146_v63 = vsub.f32 %v31209_v56, %v17128_v7 }
 0xe55   :  { %v17156_v37 = vmul.f32 1.442695, %v17146_v63 }
 0xe57   :  { %26700 = vpow2.f32 %v17156_v37 }
 0xe58   :  { %v31244_v1 = vpop.eup %26698 }
 0xe59   :  { %v17171_v2 = vsel %vm5403_vm2, %v31244_v1, 0.0 }
 0xe5a   :  { %17172 = vadd.xlane.f32.xlu0 %v17171_v2 }
 0xe5e   :  { %v17131_v46 = vpop.xlane.xlu0 %17130 }
 0xe5f   :  { %v17147_v52 = vsub.f32 %v31213_v57, %v17131_v46 }
 0xe61   :  { %v17158_v49 = vmul.f32 1.442695, %v17147_v52 }
 0xe63   :  { %26702 = vpow2.f32 %v17158_v49 }
 0xe64   :  { %v31249_v39 = vpop.eup %26700 }
 0xe65   :  { %v17174_v34 = vsel %vm5403_vm2, %v31249_v39, 0.0 }
 0xe66   :  { %17175 = vadd.xlane.f32.xlu1 %v17174_v34 }
 0xe6a   :  { %v17134_v56 = vpop.xlane.xlu1 %17133 }
 0xe6b   :  { %v17148_v40 = vsub.f32 %v31218_v13, %v17134_v56 }
 0xe6d   :  { %v17160_v27 = vmul.f32 1.442695, %v17148_v40 }
 0xe6f   :  { %26704 = vpow2.f32 %v17160_v27 }
 0xe70   :  { %v31254_v10 = vpop.eup %26702  ;;  %v17170_v0 = vpop.xlane.xlu1 %17169 }
 0xe71   :  { %26706 = vrcp.f32 %v17170_v0  ;;  %v17177_v57 = vsel %vm5403_vm2, %v31254_v10, 0.0 }
 0xe72   :  { %17178 = vadd.xlane.f32.xlu0 %v17177_v57 }
 0xe76   :  { %v17137_v47 = vpop.xlane.xlu0 %17136 }
 0xe77   :  { %v17149_v50 = vsub.f32 %v31226_v33, %v17137_v47 }
 0xe79   :  { %v17162_v62 = vmul.f32 1.442695, %v17149_v50 }
 0xe7b   :  { %26708 = vpow2.f32 %v17162_v62 }
 0xe7c   :  { %v31259_v21 = vpop.eup %26704 }
 0xe7d   :  { %v17180_v13 = vsel %vm5403_vm2, %v31259_v21, 0.0 }
 0xe7e   :  { %v26707_v45 = vpop.eup %26706  ;;  %17181 = vadd.xlane.f32.xlu0 %v17180_v13 }
 0xe7f   :  { %v17200_v20 = vmul.f32 %v26707_v45, %v31222_v30 }
 0xe81   :  { %v17209_v19 = vsel %vm5403_vm2, %v17200_v20, 0  ;;  %v31368_v20 = vand.u32 4294901760, %v30935_v32 }
 0xe82   :  { %v17140_v29 = vpop.xlane.xlu1 %17139  ;;  %v17277_v25 = vand.u32 4294901760, %v17209_v19 }
 0xe84   :  { %v17278_v9 = vsub.f32 %v17209_v19, %v17277_v25  ;;  %26199 = vmatmul.mubr.f32.vlgmr.msra.gmra.mxu1 %v17277_v25 }
 0xe85   :  { %26207 = vmatpush3.msra.mxu1 %v31154_v31  ;;  %26208 = vmatprep.mubr.msk.f32.mxu1 %vm26835_vm0, %v33790_v5 }
 0xe86   :  { %v13502_v33 = vpop.permute.xlu1 %13501  ;;  %26216 = vmatprep.subr.mxu1 %v33790_v5  ;;  %v17279_v42 = vand.u32 4294901760, %v17278_v9 }
 0xe87   :  { %v31269_v14 = vand.u32 4294901760, %v13502_v33 }
 0xe88   :  { %v31271_v26 = vpop.eup %26708  ;;  %26209 = vmatmul.mubr.f32.vlgmr.msra.gmra.mxu1 %v17279_v42  ;;  %v17280_v30 = vsub.f32 %v17278_v9, %v17279_v42  ;;  %v31377_v42 = vsub.f32 %v30935_v32, %v31368_v20 }
 0xe89   :  { %v31274_v44 = vsub.f32 %v13502_v33, %v31269_v14  ;;  %26217 = vmatpush3.msra.mxu1 %v31154_v31  ;;  %v17183_v51 = vsel %vm5403_vm2, %v31271_v26, 0.0  ;;  %26218 = vmatprep.mubr.msk.f32.mxu1 %vm26835_vm0, %v33790_v5 }
 0xe8a   :  { %17184 = vadd.xlane.f32.xlu1 %v17183_v51  ;;  %v17281_v8 = vand.u32 4294901760, %v17280_v30  ;;  %26226 = vmatprep.subr.mxu1 %v33790_v5 }
 0xe8b   :  { %v17769_v55 = vand.u32 4294901760, %v31274_v44 }
 0xe8c   :  { %26194 = vmatmul.mubr.f32.vlgmr.msra.gmra.mxu0 %v17281_v8  ;;  %26219 = vmatmul.mubr.f32.vlgmr.msra.gmra.mxu1 %v17277_v25  ;;  %v19116_v8 = vand.u32 4294901760, %v31377_v42 }
 0xe8d   :  { %v17770_v54 = vsub.f32 %v31274_v44, %v17769_v55  ;;  %26202 = vmatpush3.msra.mxu0 %v31166_v38  ;;  %26203 = vmatprep.mubr.msk.f32.mxu0 %vm26835_vm0, %v33790_v5  ;;  %v17150_v38 = vsub.f32 %v31230_v41, %v17140_v29 }
 0xe8e   :  { %26211 = vmatprep.subr.mxu0 %v33790_v5  ;;  %26228 = vmatprep.mubr.msk.f32.mxu1 %vm26835_vm0, %v33790_v5  ;;  %v17143_v18 = vpop.xlane.xlu0 %17142 }
 0xe8f   :  { %v17771_v31 = vand.u32 4294901760, %v17770_v54  ;;  %v17151_v15 = vsub.f32 %v31234_v53, %v17143_v18 }
 0xe90   :  { %26204 = vmatmul.mubr.f32.vlgmr.msra.gmra.mxu0 %v17278_v9 }
 0xe91   :  { %26212 = vmatpush3.msra.mxu0 %v17320_v23  ;;  %26227 = vmatpush3.msra.mxu1 %v17771_v31  ;;  %v17164_v23 = vmul.f32 1.442695, %v17150_v38  ;;  %v17166_v11 = vmul.f32 1.442695, %v17151_v15  ;;  %v19117_v31 = vsub.f32 %v31377_v42, %v19116_v8 }
 0xe92   :  { %26213 = vmatprep.mubr.msk.f32.mxu0 %vm26835_vm0, %v33790_v5  ;;  %26221 = vmatprep.subr.mxu0 %v33790_v5  ;;  %v13505_v12 = vpop.permute.xlu0 %13504 }
 0xe93   :  { %26236 = vmatprep.subr.mxu1 %v33790_v5  ;;  %26710 = vpow2.f32 %v17164_v23  ;;  %v18140_v36 = vand.u32 4294901760, %v13505_v12  ;;  %v19118_v15 = vand.u32 4294901760, %v19117_v31 }
 0xe94   :  { %26214 = vmatmul.mubr.f32.vlgmr.msra.gmra.mxu0 %v17277_v25  ;;  %13507 = vrot.lane.b32.xlu0 %v31139_v6, %s26838_s21  ;;  %26712 = vpow2.f32 %v17166_v11 }
 0xe95   :  { %26222 = vmatpush3.msra.mxu0 %v31269_v14  ;;  %26223 = vmatprep.mubr.msk.f32.mxu0 %vm26835_vm0, %v33790_v5  ;;  %v31320_v58 = vsub.f32 %v13505_v12, %v18140_v36 }
 0xe96   :  { %26231 = vmatprep.subr.mxu0 %v33790_v5 }
 0xe97   :  { %v18218_v3 = vand.u32 4294901760, %v31320_v58 }
 0xe99   :  { %v18219_v60 = vsub.f32 %v31320_v58, %v18218_v3 }
 0xe9b   :  { %13511 = vrot.lane.b32.xlu1 %v30935_v32, %s26837_s20  ;;  %v18220_v2 = vand.u32 4294901760, %v18219_v60 }
 0xea0   :  { %v31308_v6 = vpop.eup %26710 }
 0xea1   :  { %v17186_v43 = vsel %vm5403_vm2, %v31308_v6, 0.0  ;;  %v31312_v16 = vpop.eup %26712 }
 0xea2   :  { %v17189_v41 = vsel %vm5403_vm2, %v31312_v16, 0.0 }
 0xeb3   :  { %17187 = vadd.xlane.f32.xlu0 %v17186_v43 }
 0xebf   :  { %17190 = vadd.xlane.f32.xlu1 %v17189_v41 }
 0xec9   :  { %13514 = vrot.lane.b32.xlu0 %v30935_v32, %s26836_s19 }
 0xed0   :  { %13517 = vrot.lane.b32.xlu1 %v30935_v32, %s26838_s21 }
 0xee3   :  { %v17173_v48 = vpop.xlane.xlu0 %17172 }
 0xee4   :  { %26714 = vrcp.f32 %v17173_v48 }
 0xeef   :  { %v17176_v35 = vpop.xlane.xlu1 %17175 }
 0xef0   :  { %26716 = vrcp.f32 %v17176_v35 }
 0xef1   :  { %v26715_v61 = vpop.eup %26714 }
 0xef2   :  { %v17201_v17 = vmul.f32 %v26715_v61, %v31244_v1 }
 0xef4   :  { %v17658_v53 = vsel %vm5403_vm2, %v17201_v17, 0 }
 0xef5   :  { %v17726_v24 = vand.u32 4294901760, %v17658_v53 }
 0xef7   :  { %v17727_v59 = vsub.f32 %v17658_v53, %v17726_v24  ;;  %26229 = vmatmul.mubr.f32.vlgmr.msra.gmra.mxu1 %v17726_v24 }
 0xef8   :  { %26237 = vmatpush3.msra.mxu1 %v31269_v14  ;;  %26238 = vmatprep.mubr.msk.f32.mxu1 %vm26835_vm0, %v33790_v5 }
 0xef9   :  { %26246 = vmatprep.subr.mxu1 %v33790_v5  ;;  %v17728_v4 = vand.u32 4294901760, %v17727_v59 }
 0xefb   :  { %26239 = vmatmul.mubr.f32.vlgmr.msra.gmra.mxu1 %v17728_v4  ;;  %v17179_v7 = vpop.xlane.xlu0 %17178  ;;  %v17729_v63 = vsub.f32 %v17727_v59, %v17728_v4 }
 0xefc   :  { %26247 = vmatpush3.msra.mxu1 %v31269_v14  ;;  %26718 = vrcp.f32 %v17179_v7  ;;  %26248 = vmatprep.mubr.msk.f32.mxu1 %vm26835_vm0, %v33790_v5 }
 0xefd   :  { %v26717_v37 = vpop.eup %26716  ;;  %26256 = vmatprep.subr.mxu1 %v33790_v5  ;;  %v17730_v1 = vand.u32 4294901760, %v17729_v63 }
 0xefe   :  { %v17202_v46 = vmul.f32 %v26717_v37, %v31249_v39 }
 0xeff   :  { %26224 = vmatmul.mubr.f32.vlgmr.msra.gmra.mxu0 %v17730_v1  ;;  %26249 = vmatmul.mubr.f32.vlgmr.msra.gmra.mxu1 %v17726_v24 }
 0xf00   :  { %26232 = vmatpush3.msra.mxu0 %v31274_v44  ;;  %26257 = vmatpush3.msra.mxu1 %v18220_v2  ;;  %v18107_v52 = vsel %vm5403_vm2, %v17202_v46, 0 }
 0xf01   :  { %26233 = vmatprep.mubr.msk.f32.mxu0 %vm26835_vm0, %v33790_v5  ;;  %26241 = vmatprep.subr.mxu0 %v33790_v5  ;;  %v18175_v49 = vand.u32 4294901760, %v18107_v52 }
 0xf02   :  { %26258 = vmatprep.mubr.msk.f32.mxu1 %vm26835_vm0, %v33790_v5  ;;  %26266 = vmatprep.subr.mxu1 %v33790_v5 }
 0xf03   :  { %26234 = vmatmul.mubr.f32.vlgmr.msra.gmra.mxu0 %v17727_v59  ;;  %v18176_v39 = vsub.f32 %v18107_v52, %v18175_v49  ;;  %26259 = vmatmul.mubr.f32.vlgmr.msra.gmra.mxu1 %v18175_v49 }
 0xf04   :  { %26242 = vmatpush3.msra.mxu0 %v17769_v55  ;;  %26267 = vmatpush3.msra.mxu1 %v18140_v36 }
 0xf05   :  { %26243 = vmatprep.mubr.msk.f32.mxu0 %vm26835_vm0, %v33790_v5  ;;  %26251 = vmatprep.subr.mxu0 %v33790_v5  ;;  %v18177_v34 = vand.u32 4294901760, %v18176_v39 }
 0xf06   :  { %26268 = vmatprep.mubr.msk.f32.mxu1 %vm26835_vm0, %v33790_v5  ;;  %26276 = vmatprep.subr.mxu1 %v33790_v5 }
 0xf07   :  { %26244 = vmatmul.mubr.f32.vlgmr.msra.gmra.mxu0 %v17726_v24  ;;  %26269 = vmatmul.mubr.f32.vlgmr.msra.gmra.mxu1 %v18177_v34  ;;  %v17182_v56 = vpop.xlane.xlu0 %17181  ;;  %v18178_v40 = vsub.f32 %v18176_v39, %v18177_v34 }
 0xf08   :  { %26252 = vmatpush3.msra.mxu0 %v18140_v36  ;;  %26277 = vmatpush3.msra.mxu1 %v18140_v36  ;;  %26720 = vrcp.f32 %v17182_v56 }
 0xf09   :  { %v26719_v27 = vpop.eup %26718  ;;  %26253 = vmatprep.mubr.msk.f32.mxu0 %vm26835_vm0, %v33790_v5  ;;  %26261 = vmatprep.subr.mxu0 %v33790_v5  ;;  %v18179_v0 = vand.u32 4294901760, %v18178_v40 }
 0xf0a   :  { %v17203_v57 = vmul.f32 %v26719_v27, %v31254_v10  ;;  %26278 = vmatprep.mubr.msk.f32.mxu1 %vm26835_vm0, %v33790_v5  ;;  %26286 = vmatprep.subr.mxu1 %v33790_v5 }
 0xf0b   :  { %26254 = vmatmul.mubr.f32.vlgmr.msra.gmra.mxu0 %v18179_v0  ;;  %26279 = vmatmul.mubr.f32.vlgmr.msra.gmra.mxu1 %v18175_v49  ;;  %v13508_v47 = vpop.permute.xlu0 %13507 }
 0xf0c   :  { %v18556_v50 = vsel %vm5403_vm2, %v17203_v57, 0  ;;  %26262 = vmatpush3.msra.mxu0 %v31320_v58  ;;  %v18589_v62 = vand.u32 4294901760, %v13508_v47  ;;  %26263 = vmatprep.mubr.msk.f32.mxu0 %vm26835_vm0, %v33790_v5 }
 0xf0d   :  { %v18624_v13 = vand.u32 4294901760, %v18556_v50  ;;  %26271 = vmatprep.subr.mxu0 %v33790_v5  ;;  %26288 = vmatprep.mubr.msk.f32.mxu1 %vm26835_vm0, %v33790_v5 }
 0xf0e   :  { %v18666_v10 = vsub.f32 %v13508_v47, %v18589_v62 }
 0xf0f   :  { %26264 = vmatmul.mubr.f32.vlgmr.msra.gmra.mxu0 %v18176_v39  ;;  %v18625_v45 = vsub.f32 %v18556_v50, %v18624_v13 }
 0xf10   :  { %v18667_v19 = vand.u32 4294901760, %v18666_v10  ;;  %26272 = vmatpush3.msra.mxu0 %v18218_v3  ;;  %26273 = vmatprep.mubr.msk.f32.mxu0 %vm26835_vm0, %v33790_v5 }
 0xf11   :  { %26281 = vmatprep.subr.mxu0 %v33790_v5  ;;  %v18626_v29 = vand.u32 4294901760, %v18625_v45 }
 0xf12   :  { %v18668_v25 = vsub.f32 %v18666_v10, %v18667_v19 }
 0xf13   :  { %v17185_v9 = vpop.xlane.xlu1 %17184  ;;  %26274 = vmatmul.mubr.f32.vlgmr.msra.gmra.mxu0 %v18175_v49  ;;  %v18627_v33 = vsub.f32 %v18625_v45, %v18626_v29 }
 0xf14   :  { %v18669_v14 = vand.u32 4294901760, %v18668_v25  ;;  %26722 = vrcp.f32 %v17185_v9  ;;  %26282 = vmatpush3.msra.mxu0 %v18589_v62  ;;  %26283 = vmatprep.mubr.msk.f32.mxu0 %vm26835_vm0, %v33790_v5 }
 0xf15   :  { %v26721_v30 = vpop.eup %26720  ;;  %26291 = vmatprep.subr.mxu0 %v33790_v5  ;;  %v18628_v44 = vand.u32 4294901760, %v18627_v33 }
 0xf16   :  { %v17204_v51 = vmul.f32 %v26721_v30, %v31259_v21  ;;  %26287 = vmatpush3.msra.mxu1 %v18669_v14 }
 0xf17   :  { %26284 = vmatmul.mubr.f32.vlgmr.msra.gmra.mxu0 %v18628_v44  ;;  %26289 = vmatmul.mubr.f32.vlgmr.msra.gmra.mxu1 %v18624_v13  ;;  %v13512_v55 = vpop.permute.xlu1 %13511 }
 0xf18   :  { %v19005_v32 = vsel %vm5403_vm2, %v17204_v51, 0  ;;  %26292 = vmatpush3.msra.mxu0 %v18666_v10  ;;  %26296 = vmatprep.subr.mxu1 %v33790_v5  ;;  %v31391_v21 = vand.u32 4294901760, %v13512_v55 }
 0xf19   :  { %v19073_v54 = vand.u32 4294901760, %v19005_v32  ;;  %26297 = vmatpush3.msra.mxu1 %v18589_v62  ;;  %26293 = vmatprep.mubr.msk.f32.mxu0 %vm26835_vm0, %v33790_v5 }
 0xf1a   :  { %26298 = vmatprep.mubr.msk.f32.mxu1 %vm26835_vm0, %v33790_v5  ;;  %26301 = vmatprep.subr.mxu0 %v33790_v5  ;;  %v19564_v18 = vsub.f32 %v13512_v55, %v31391_v21 }
 0xf1b   :  { %26306 = vmatprep.subr.mxu1 %v33790_v5  ;;  %26294 = vmatmul.mubr.f32.vlgmr.msra.gmra.mxu0 %v18625_v45  ;;  %v19074_v38 = vsub.f32 %v19005_v32, %v19073_v54 }
 0xf1c   :  { %26299 = vmatmul.mubr.f32.vlgmr.msra.gmra.mxu1 %v18626_v29  ;;  %26302 = vmatpush3.msra.mxu0 %v18667_v19  ;;  %v19565_v48 = vand.u32 4294901760, %v19564_v18 }
 0xf1d   :  { %26307 = vmatpush3.msra.mxu1 %v18589_v62  ;;  %26303 = vmatprep.mubr.msk.f32.mxu0 %vm26835_vm0, %v33790_v5  ;;  %v19075_v23 = vand.u32 4294901760, %v19074_v38 }
 0xf1e   :  { %26308 = vmatprep.mubr.msk.f32.mxu1 %vm26835_vm0, %v33790_v5  ;;  %26311 = vmatprep.subr.mxu0 %v33790_v5 }
 0xf1f   :  { %26316 = vmatprep.subr.mxu1 %v33790_v5  ;;  %26304 = vmatmul.mubr.f32.vlgmr.msra.gmra.mxu0 %v18624_v13  ;;  %v19076_v11 = vsub.f32 %v19074_v38, %v19075_v23 }
 0xf20   :  { %26309 = vmatmul.mubr.f32.vlgmr.msra.gmra.mxu1 %v18624_v13  ;;  %26312 = vmatpush3.msra.mxu0 %v31368_v20 }
 0xf21   :  { %v26723_v43 = vpop.eup %26722  ;;  %26317 = vmatpush3.msra.mxu1 %v19118_v15  ;;  %26313 = vmatprep.mubr.msk.f32.mxu0 %vm26835_vm0, %v33790_v5  ;;  %v19077_v41 = vand.u32 4294901760, %v19076_v11 }
 0xf22   :  { %v17205_v12 = vmul.f32 %v26723_v43, %v31271_v26  ;;  %26318 = vmatprep.mubr.msk.f32.mxu1 %vm26835_vm0, %v33790_v5  ;;  %26321 = vmatprep.subr.mxu0 %v33790_v5  ;;  %v19566_v26 = vsub.f32 %v19564_v18, %v19565_v48 }
 0xf23   :  { %26326 = vmatprep.subr.mxu1 %v33790_v5  ;;  %26314 = vmatmul.mubr.f32.vlgmr.msra.gmra.mxu0 %v19077_v41 }
 0xf24   :  { %v19454_v36 = vsel %vm5403_vm2, %v17205_v12, 0  ;;  %26319 = vmatmul.mubr.f32.vlgmr.msra.gmra.mxu1 %v19073_v54  ;;  %26322 = vmatpush3.msra.mxu0 %v31377_v42  ;;  %v19567_v17 = vand.u32 4294901760, %v19566_v26 }
 0xf25   :  { %v19522_v35 = vand.u32 4294901760, %v19454_v36  ;;  %26327 = vmatpush3.msra.mxu1 %v31368_v20  ;;  %26323 = vmatprep.mubr.msk.f32.mxu0 %vm26835_vm0, %v33790_v5 }
 0xf26   :  { %26328 = vmatprep.mubr.msk.f32.mxu1 %vm26835_vm0, %v33790_v5  ;;  %26331 = vmatprep.subr.mxu0 %v33790_v5 }
 0xf27   :  { %26336 = vmatprep.subr.mxu1 %v33790_v5  ;;  %26324 = vmatmul.mubr.f32.vlgmr.msra.gmra.mxu0 %v19074_v38  ;;  %v19523_v61 = vsub.f32 %v19454_v36, %v19522_v35 }
 0xf28   :  { %26329 = vmatmul.mubr.f32.vlgmr.msra.gmra.mxu1 %v19075_v23  ;;  %26332 = vmatpush3.msra.mxu0 %v19116_v8 }
 0xf29   :  { %26337 = vmatpush3.msra.mxu1 %v31368_v20  ;;  %26333 = vmatprep.mubr.msk.f32.mxu0 %vm26835_vm0, %v33790_v5  ;;  %v19524_v58 = vand.u32 4294901760, %v19523_v61 }
 0xf2a   :  { %26338 = vmatprep.mubr.msk.f32.mxu1 %vm26835_vm0, %v33790_v5  ;;  %26341 = vmatprep.subr.mxu0 %v33790_v5 }
 0xf2b   :  { %26346 = vmatprep.subr.mxu1 %v33790_v5  ;;  %26334 = vmatmul.mubr.f32.vlgmr.msra.gmra.mxu0 %v19073_v54  ;;  %v19525_v53 = vsub.f32 %v19523_v61, %v19524_v58 }
 0xf2c   :  { %26339 = vmatmul.mubr.f32.vlgmr.msra.gmra.mxu1 %v19073_v54  ;;  %26342 = vmatpush3.msra.mxu0 %v31391_v21 }
 0xf2d   :  { %26347 = vmatpush3.msra.mxu1 %v19567_v17  ;;  %26343 = vmatprep.mubr.msk.f32.mxu0 %vm26835_vm0, %v33790_v5  ;;  %v19526_v24 = vand.u32 4294901760, %v19525_v53 }
 0xf2e   :  { %26348 = vmatprep.mubr.msk.f32.mxu1 %vm26835_vm0, %v33790_v5  ;;  %26351 = vmatprep.subr.mxu0 %v33790_v5 }
 0xf2f   :  { %26356 = vmatprep.subr.mxu1 %v33790_v5  ;;  %26344 = vmatmul.mubr.f32.vlgmr.msra.gmra.mxu0 %v19526_v24 }
 0xf30   :  { %26349 = vmatmul.mubr.f32.vlgmr.msra.gmra.mxu1 %v19522_v35  ;;  %26352 = vmatpush3.msra.mxu0 %v19564_v18 }
 0xf31   :  { %26357 = vmatpush3.msra.mxu1 %v31391_v21  ;;  %26353 = vmatprep.mubr.msk.f32.mxu0 %vm26835_vm0, %v33790_v5 }
 0xf32   :  { %26358 = vmatprep.mubr.msk.f32.mxu1 %vm26835_vm0, %v33790_v5  ;;  %26361 = vmatprep.subr.mxu0 %v33790_v5 }
 0xf33   :  { %26366 = vmatprep.subr.mxu1 %v33790_v5  ;;  %26354 = vmatmul.mubr.f32.vlgmr.msra.gmra.mxu0 %v19523_v61 }
 0xf34   :  { %26359 = vmatmul.mubr.f32.vlgmr.msra.gmra.mxu1 %v19524_v58  ;;  %26362 = vmatpush3.msra.mxu0 %v19565_v48 }
 0xf35   :  { %26367 = vmatpush3.msra.mxu1 %v31391_v21  ;;  %26363 = vmatprep.mubr.msk.f32.mxu0 %vm26835_vm0, %v33790_v5 }
 0xf36   :  { %26368 = vmatprep.mubr.msk.f32.mxu1 %vm26835_vm0, %v33790_v5  ;;  %26371 = vmatprep.subr.mxu0 %v33790_v5 }
 0xf37   :  { %26364 = vmatmul.mubr.f32.vlgmr.msra.gmra.mxu0 %v19522_v35  ;;  %26376 = vmatprep.subr.mxu1 %v33790_v5 }
 0xf38   :  { %26369 = vmatmul.mubr.f32.vlgmr.msra.gmra.mxu1 %v19522_v35  ;;  %26373 = vmatprep.mubr.msk.f32.mxu0 %vm26835_vm0, %v33790_v5 }
 0xf39   :  { %26378 = vmatprep.mubr.msk.f32.mxu1 %vm26835_vm0, %v33790_v5 }
 0xf3c   :  { %v17188_v3 = vpop.xlane.xlu0 %17187 }
 0xf3d   :  { %26724 = vrcp.f32 %v17188_v3 }
 0xf40   :  { %v13515_v59 = vpop.permute.xlu0 %13514 }
 0xf41   :  { %v19936_v4 = vand.u32 4294901760, %v13515_v59 }
 0xf43   :  { %v31451_v60 = vsub.f32 %v13515_v59, %v19936_v4  ;;  %26372 = vmatpush3.msra.mxu0 %v19936_v4 }
 0xf44   :  { %v17359_v7 = vpop.f32.mrf.mxu1  ;;  %26381 = vmatprep.subr.mxu0 %v33790_v5 }
 0xf45   :  { %v20014_v63 = vand.u32 4294901760, %v31451_v60 }
 0xf46   :  { %v26200_v37 = vpop.f32.mrf.mxu1 }
 0xf47   :  { %v20015_v1 = vsub.f32 %v31451_v60, %v20014_v63 }
 0xf48   :  { %v17507_v2 = vpop.f32.mrf.mxu1  ;;  %v17191_v46 = vpop.xlane.xlu1 %17190 }
 0xf49   :  { %v20016_v52 = vand.u32 4294901760, %v20015_v1  ;;  %26726 = vrcp.f32 %v17191_v46 }
 0xf4a   :  { %v26725_v49 = vpop.eup %26724  ;;  %v26210_v39 = vpop.f32.mrf.mxu1 }
 0xf4b   :  { %v17206_v34 = vmul.f32 %v26725_v49, %v31308_v6  ;;  %26377 = vmatpush3.msra.mxu1 %v20016_v52 }
 0xf4c   :  { %v17653_v56 = vpop.f32.mrf.mxu1  ;;  %v13518_v40 = vpop.permute.xlu1 %13517  ;;  %26386 = vmatprep.subr.mxu1 %v33790_v5 }
 0xf4d   :  { %v20385_v27 = vand.u32 4294901760, %v13518_v40  ;;  %v17283_v0 = vpop.f32.mrf.mxu0  ;;  %v19903_v57 = vsel %vm5403_vm2, %v17206_v34, 0 }
 0xf4e   :  { %v17360_v47 = vadd.f32 %v17359_v7, %v17283_v0  ;;  %v26220_v50 = vpop.f32.mrf.mxu1  ;;  %v19971_v62 = vand.u32 4294901760, %v19903_v57 }
 0xf4f   :  { %v20462_v13 = vsub.f32 %v13518_v40, %v20385_v27  ;;  %v26195_v10 = vpop.f32.mrf.mxu0 }
 0xf50   :  { %v19972_v45 = vsub.f32 %v19903_v57, %v19971_v62  ;;  %26379 = vmatmul.mubr.f32.vlgmr.msra.gmra.mxu1 %v19971_v62 }
 0xf51   :  { %v20463_v20 = vand.u32 4294901760, %v20462_v13  ;;  %v17433_v19 = vpop.f32.mrf.mxu0  ;;  %26387 = vmatpush3.msra.mxu1 %v19936_v4  ;;  %26388 = vmatprep.mubr.msk.f32.mxu1 %vm26835_vm0, %v33790_v5 }
 0xf52   :  { %v17434_v6 = vadd.f32 %v17433_v19, %v17360_v47  ;;  %26396 = vmatprep.subr.mxu1 %v33790_v5  ;;  %v19973_v29 = vand.u32 4294901760, %v19972_v45 }
 0xf53   :  { %v20464_v25 = vsub.f32 %v20462_v13, %v20463_v20  ;;  %v26205_v9 = vpop.f32.mrf.mxu0 }
 0xf54   :  { %v17508_v33 = vadd.f32 %v17507_v2, %v17434_v6  ;;  %26389 = vmatmul.mubr.f32.vlgmr.msra.gmra.mxu1 %v19973_v29  ;;  %v19974_v42 = vsub.f32 %v19972_v45, %v19973_v29 }
 0xf55   :  { %v20465_v14 = vand.u32 4294901760, %v20464_v25  ;;  %v17581_v30 = vpop.f32.mrf.mxu0  ;;  %26397 = vmatpush3.msra.mxu1 %v19936_v4  ;;  %26398 = vmatprep.mubr.msk.f32.mxu1 %vm26835_vm0, %v33790_v5 }
 0xf56   :  { %v26727_v44 = vpop.eup %26726  ;;  %v17582_v51 = vadd.f32 %v17581_v30, %v17508_v33  ;;  %26406 = vmatprep.subr.mxu1 %v33790_v5  ;;  %v19975_v8 = vand.u32 4294901760, %v19974_v42 }
 0xf57   :  { %v17207_v32 = vmul.f32 %v26727_v44, %v31312_v16  ;;  %v26215_v55 = vpop.f32.mrf.mxu0 }
 0xf58   :  { %v31466_v54 = vadd.f32 %v17653_v56, %v17582_v51  ;;  %26374 = vmatmul.mubr.f32.vlgmr.msra.gmra.mxu0 %v19975_v8  ;;  %26399 = vmatmul.mubr.f32.vlgmr.msra.gmra.mxu1 %v19971_v62 }
 0xf59   :  { %26382 = vmatpush3.msra.mxu0 %v31451_v60  ;;  %26407 = vmatpush3.msra.mxu1 %v20465_v14  ;;  %v20352_v21 = vsel %vm5403_vm2, %v17207_v32, 0 }
 0xf5a   :  { %26383 = vmatprep.mubr.msk.f32.mxu0 %vm26835_vm0, %v33790_v5  ;;  %26391 = vmatprep.subr.mxu0 %v33790_v5  ;;  %v20420_v31 = vand.u32 4294901760, %v20352_v21 }
 0xf5b   :  { %26408 = vmatprep.mubr.msk.f32.mxu1 %vm26835_vm0, %v33790_v5  ;;  %26416 = vmatprep.subr.mxu1 %v33790_v5 }
 0xf5c   :  { %26384 = vmatmul.mubr.f32.vlgmr.msra.gmra.mxu0 %v19972_v45  ;;  %v20421_v16 = vsub.f32 %v20352_v21, %v20420_v31  ;;  %26409 = vmatmul.mubr.f32.vlgmr.msra.gmra.mxu1 %v20420_v31 }
 0xf5d   :  { %26392 = vmatpush3.msra.mxu0 %v20014_v63  ;;  %26417 = vmatpush3.msra.mxu1 %v20385_v27 }
 0xf5e   :  { %26393 = vmatprep.mubr.msk.f32.mxu0 %vm26835_vm0, %v33790_v5  ;;  %26401 = vmatprep.subr.mxu0 %v33790_v5  ;;  %v20422_v38 = vand.u32 4294901760, %v20421_v16 }
 0xf5f   :  { %26418 = vmatprep.mubr.msk.f32.mxu1 %vm26835_vm0, %v33790_v5  ;;  %26426 = vmatprep.subr.mxu1 %v33790_v5 }
 0xf60   :  { %26394 = vmatmul.mubr.f32.vlgmr.msra.gmra.mxu0 %v19971_v62  ;;  %26419 = vmatmul.mubr.f32.vlgmr.msra.gmra.mxu1 %v20422_v38  ;;  %v20423_v23 = vsub.f32 %v20421_v16, %v20422_v38 }
 0xf61   :  { %26402 = vmatpush3.msra.mxu0 %v20385_v27  ;;  %26427 = vmatpush3.msra.mxu1 %v20385_v27 }
 0xf62   :  { %26403 = vmatprep.mubr.msk.f32.mxu0 %vm26835_vm0, %v33790_v5  ;;  %26411 = vmatprep.subr.mxu0 %v33790_v5  ;;  %v20424_v18 = vand.u32 4294901760, %v20423_v23 }
 0xf63   :  { %26428 = vmatprep.mubr.msk.f32.mxu1 %vm26835_vm0, %v33790_v5 }
 0xf64   :  { %26404 = vmatmul.mubr.f32.vlgmr.msra.gmra.mxu0 %v20424_v18  ;;  %26429 = vmatmul.mubr.f32.vlgmr.msra.gmra.mxu1 %v20420_v31 }
 0xf65   :  { %26412 = vmatpush3.msra.mxu0 %v20462_v13  ;;  %26413 = vmatprep.mubr.msk.f32.mxu0 %vm26835_vm0, %v33790_v5 }
 0xf66   :  { %26421 = vmatprep.subr.mxu0 %v33790_v5 }
 0xf68   :  { %26414 = vmatmul.mubr.f32.vlgmr.msra.gmra.mxu0 %v20421_v16 }
 0xf69   :  { %26422 = vmatpush3.msra.mxu0 %v20463_v20  ;;  %26423 = vmatprep.mubr.msk.f32.mxu0 %vm26835_vm0, %v33790_v5 }
 0xf6c   :  { %26424 = vmatmul.mubr.f32.vlgmr.msra.gmra.mxu0 %v20420_v31 }
 0xfb7   :  { %v17808_v15 = vpop.f32.mrf.mxu1 }
 0xfb9   :  { %v26230_v11 = vpop.f32.mrf.mxu1 }
 0xfbb   :  { %v17956_v43 = vpop.f32.mrf.mxu1 }
 0xfbd   :  { %v26240_v41 = vpop.f32.mrf.mxu1 }
 0xfbf   :  { %v17732_v12 = vpop.f32.mrf.mxu0  ;;  %v18102_v48 = vpop.f32.mrf.mxu1 }
 0xfc0   :  { %v17809_v26 = vadd.f32 %v17808_v15, %v17732_v12 }
 0xfc1   :  { %v26225_v36 = vpop.f32.mrf.mxu0  ;;  %v26250_v35 = vpop.f32.mrf.mxu1 }
 0xfc3   :  { %v17882_v61 = vpop.f32.mrf.mxu0  ;;  %v18257_v58 = vpop.f32.mrf.mxu1 }
 0xfc4   :  { %v17883_v17 = vadd.f32 %v17882_v61, %v17809_v26  ;;  %v20846_v61 = vld [vmem:[#allocation4 + $0xf8] sm:$0xff] }
 0xfc5   :  { %v26235_v53 = vpop.f32.mrf.mxu0  ;;  %v26260_v24 = vpop.f32.mrf.mxu1 }
 0xfc6   :  { %v17957_v3 = vadd.f32 %v17956_v43, %v17883_v17  ;;  %v20844_v17 = vld [vmem:[#allocation4 + $0xe8] sm:$0xff]  ;;  %v31497_v24 = vand.u32 4294901760, %v20846_v61 }
 0xfc7   :  { %v18030_v59 = vpop.f32.mrf.mxu0  ;;  %v18405_v4 = vpop.f32.mrf.mxu1 }
 0xfc8   :  { %v18031_v60 = vadd.f32 %v18030_v59, %v17957_v3  ;;  %v31501_v59 = vand.u32 4294901760, %v20844_v17  ;;  %26431 = vmatprep.subr.mxu0 %v31497_v24 }
 0xfc9   :  { %v26245_v7 = vpop.f32.mrf.mxu0  ;;  %v26270_v63 = vpop.f32.mrf.mxu1  ;;  %26432 = vmatpush3.msra.mxu0 %v31497_v24 }
 0xfca   :  { %v18103_v37 = vadd.f32 %v18102_v48, %v18031_v60  ;;  %v20842_v60 = vld [vmem:[#allocation4 + $0xd8] sm:$0xff]  ;;  %v20841_v7 = vld [vmem:[#allocation4 + $0xd0] sm:$0xff] }
 0xfcb   :  { %v18181_v1 = vpop.f32.mrf.mxu0  ;;  %v18551_v2 = vpop.f32.mrf.mxu1 }
 0xfcc   :  { %20801 = vrot.lane.b32.xlu1 %v18103_v37, %s26838_s21  ;;  %v18258_v49 = vadd.f32 %v18257_v58, %v18181_v1  ;;  %v20845_v58 = vld [vmem:[#allocation4 + $0xf0] sm:$0xff] }
 0xfcd   :  { %v26255_v46 = vpop.f32.mrf.mxu0  ;;  %v26280_v52 = vpop.f32.mrf.mxu1  ;;  %v31499_v3 = vand.u32 4294901760, %v20845_v58 }
 0xfce   :  { %v31507_v46 = vand.u32 4294901760, %v20841_v7  ;;  %v20840_v52 = vld [vmem:[#allocation4 + $0xc8] sm:$0xff] }
 0xfcf   :  { %v18331_v39 = vpop.f32.mrf.mxu0  ;;  %26433 = vmatprep.subr.mxu0 %v31499_v3 }
 0xfd0   :  { %v18332_v34 = vadd.f32 %v18331_v39, %v18258_v49  ;;  %v31510_v39 = vsub.f32 %v20846_v61, %v31497_v24  ;;  %26434 = vmatpush3.msra.mxu0 %v31499_v3 }
 0xfd1   :  { %v26265_v56 = vpop.f32.mrf.mxu0  ;;  %26435 = vmatprep.subr.mxu0 %v31501_v59 }
 0xfd2   :  { %v18406_v40 = vadd.f32 %v18405_v4, %v18332_v34  ;;  %v20843_v4 = vld [vmem:[#allocation4 + $0xe0] sm:$0xff]  ;;  %v31513_v34 = vsub.f32 %v20845_v58, %v31499_v3  ;;  %v31516_v56 = vsub.f32 %v20844_v17, %v31501_v59  ;;  %26436 = vmatpush3.msra.mxu0 %v31501_v59 }
 0xfd3   :  { %v18479_v27 = vpop.f32.mrf.mxu0  ;;  %v31503_v1 = vand.u32 4294901760, %v20843_v4 }
 0xfd4   :  { %v18480_v0 = vadd.f32 %v18479_v27, %v18406_v40  ;;  %v31519_v40 = vand.u32 4294901760, %v20840_v52  ;;  %v20839_v27 = vld [vmem:[#allocation4 + $0xc0] sm:$0xff] }
 0xfd5   :  { %v26275_v57 = vpop.f32.mrf.mxu0  ;;  %26437 = vmatprep.subr.mxu0 %v31503_v1 }
 0xfd6   :  { %v18552_v47 = vadd.f32 %v18551_v2, %v18480_v0  ;;  %v31505_v2 = vand.u32 4294901760, %v20842_v60  ;;  %v31522_v57 = vsub.f32 %v20843_v4, %v31503_v1  ;;  %26438 = vmatpush3.msra.mxu0 %v31503_v1 }
 0xfd7   :  { %v18630_v50 = vpop.f32.mrf.mxu0  ;;  %v18706_v62 = vpop.f32.mrf.mxu1 }
 0xfd8   :  { %20805 = vrot.lane.b32.xlu1 %v18552_v47, %s26836_s19  ;;  %v18707_v45 = vadd.f32 %v18706_v62, %v18630_v50  ;;  %v31525_v47 = vsub.f32 %v20842_v60, %v31505_v2  ;;  %v31529_v50 = vsub.f32 %v20841_v7, %v31507_v46  ;;  %26439 = vmatprep.subr.mxu0 %v31505_v2 }
 0xfd9   :  { %v26285_v13 = vpop.f32.mrf.mxu0  ;;  %v26290_v10 = vpop.f32.mrf.mxu1  ;;  %26440 = vmatpush3.msra.mxu0 %v31505_v2 }
 0xfda   :  { %v31532_v10 = vand.u32 4294901760, %v31510_v39  ;;  %26441 = vmatprep.subr.mxu0 %v31507_v46 }
 0xfdb   :  { %v18780_v20 = vpop.f32.mrf.mxu0  ;;  %26442 = vmatpush3.msra.mxu0 %v31507_v46 }
 0xfdc   :  { %v18781_v19 = vadd.f32 %v18780_v20, %v18707_v45  ;;  %v18854_v6 = vpop.f32.mrf.mxu1  ;;  %v31535_v45 = vand.u32 4294901760, %v31513_v34  ;;  %v31538_v20 = vand.u32 4294901760, %v31516_v56  ;;  %26443 = vmatprep.subr.mxu0 %v31519_v40 }
 0xfdd   :  { %v26295_v29 = vpop.f32.mrf.mxu0  ;;  %26444 = vmatpush3.msra.mxu0 %v31519_v40 }
 0xfde   :  { %v18855_v25 = vadd.f32 %v18854_v6, %v18781_v19  ;;  %v26300_v9 = vpop.f32.mrf.mxu1  ;;  %v31542_v6 = vand.u32 4294901760, %v31522_v57  ;;  %v31545_v29 = vand.u32 4294901760, %v31525_v47 }
 0xfdf   :  { %v18928_v33 = vpop.f32.mrf.mxu0  ;;  %v31551_v9 = vand.u32 4294901760, %v20839_v27 }
 0xfe0   :  { %v18929_v42 = vadd.f32 %v18928_v33, %v18855_v25  ;;  %v19000_v14 = vpop.f32.mrf.mxu1  ;;  %v31549_v25 = vsub.f32 %v20840_v52, %v31519_v40 }
 0xfe1   :  { %v26305_v30 = vpop.f32.mrf.mxu0  ;;  %26445 = vmatprep.subr.mxu0 %v31551_v9 }
 0xfe2   :  { %v19001_v44 = vadd.f32 %v19000_v14, %v18929_v42  ;;  %v26310_v51 = vpop.f32.mrf.mxu1  ;;  %v20960_v14 = vsub.f32 %v31510_v39, %v31532_v10  ;;  %v20967_v30 = vsub.f32 %v31513_v34, %v31535_v45  ;;  %26446 = vmatpush3.msra.mxu0 %v31551_v9 }
 0xfe3   :  { %v19079_v8 = vpop.f32.mrf.mxu0 }
 0xfe4   :  { %v19155_v32 = vpop.f32.mrf.mxu1  ;;  %20809 = vrot.lane.b32.xlu1 %v19001_v44, %s26837_s20  ;;  %v20974_v44 = vsub.f32 %v31516_v56, %v31538_v20 }
 0xfe5   :  { %v19156_v55 = vadd.f32 %v19155_v32, %v19079_v8  ;;  %v26315_v21 = vpop.f32.mrf.mxu0  ;;  %v31561_v8 = vand.u32 4294901760, %v31529_v50  ;;  %v20838_v32 = vld [vmem:[#allocation4 + $0xb8] sm:$0xff] }
 0xfe6   :  { %v26320_v31 = vpop.f32.mrf.mxu1 }
 0xfe7   :  { %v19229_v16 = vpop.f32.mrf.mxu0  ;;  %v20961_v31 = vand.u32 4294901760, %v20960_v14 }
 0xfe8   :  { %v19230_v38 = vadd.f32 %v19229_v16, %v19156_v55  ;;  %v19303_v23 = vpop.f32.mrf.mxu1  ;;  %v20968_v16 = vand.u32 4294901760, %v20967_v30 }
 0xfe9   :  { %v26325_v18 = vpop.f32.mrf.mxu0  ;;  %26466 = vmatprep.subr.mxu1 %v20961_v31 }
 0xfea   :  { %v19304_v15 = vadd.f32 %v19303_v23, %v19230_v38  ;;  %v26330_v11 = vpop.f32.mrf.mxu1  ;;  %v20981_v38 = vsub.f32 %v31522_v57, %v31542_v6  ;;  %v20988_v18 = vsub.f32 %v31525_v47, %v31545_v29  ;;  %26467 = vmatpush3.msra.mxu1 %v20961_v31 }
 0xfeb   :  { %v19377_v43 = vpop.f32.mrf.mxu0  ;;  %26468 = vmatprep.subr.mxu1 %v20968_v16 }
 0xfec   :  { %v19378_v41 = vadd.f32 %v19377_v43, %v19304_v15  ;;  %v19449_v12 = vpop.f32.mrf.mxu1  ;;  %v31570_v15 = vand.u32 4294901760, %v31549_v25  ;;  %26469 = vmatpush3.msra.mxu1 %v20968_v16  ;;  %v20989_v17 = vand.u32 4294901760, %v20988_v18 }
 0xfed   :  { %v26335_v48 = vpop.f32.mrf.mxu0 }
 0xfee   :  { %v31495_v36 = vadd.f32 %v19449_v12, %v19378_v41  ;;  %v26340_v35 = vpop.f32.mrf.mxu1  ;;  %v20975_v41 = vand.u32 4294901760, %v20974_v44  ;;  %v31574_v12 = vsub.f32 %v20839_v27, %v31551_v9  ;;  %v31577_v48 = vand.u32 4294901760, %v20838_v32 }
 0xfef   :  { %v19528_v26 = vpop.f32.mrf.mxu0  ;;  %v20982_v35 = vand.u32 4294901760, %v20981_v38 }
 0xff0   :  { %v19604_v53 = vpop.f32.mrf.mxu1  ;;  %v31584_v61 = vand.u32 4294901760, %v31574_v12  ;;  %v31587_v58 = vsub.f32 %v20838_v32, %v31577_v48  ;;  %26470 = vmatprep.subr.mxu1 %v20975_v41  ;;  %26447 = vmatprep.subr.mxu0 %v31577_v48  ;;  %v20835_v32 = vld [vmem:[#allocation4 + $0xa0] sm:$0xff] }
 0xff1   :  { %v19605_v63 = vadd.f32 %v19604_v53, %v19528_v26  ;;  %v26345_v37 = vpop.f32.mrf.mxu0  ;;  %v20995_v26 = vsub.f32 %v31529_v50, %v31561_v8  ;;  %v21002_v53 = vsub.f32 %v31549_v25, %v31570_v15  ;;  %26471 = vmatpush3.msra.mxu1 %v20975_v41  ;;  %26448 = vmatpush3.msra.mxu0 %v31577_v48  ;;  %v31621_v38 = vand.u32 4294901760, %v20835_v32 }
 0xff2   :  { %v26350_v49 = vpop.f32.mrf.mxu1  ;;  %v31593_v4 = vand.u32 4294901760, %v31587_v58  ;;  %26472 = vmatprep.subr.mxu1 %v20982_v35  ;;  %v21009_v7 = vsub.f32 %v31574_v12, %v31584_v61 }
 0xff3   :  { %v19678_v0 = vpop.f32.mrf.mxu0  ;;  %v20996_v60 = vand.u32 4294901760, %v20995_v26  ;;  %26473 = vmatpush3.msra.mxu1 %v20982_v35 }
 0xff4   :  { %v19679_v62 = vadd.f32 %v19678_v0, %v19605_v63  ;;  %v19752_v13 = vpop.f32.mrf.mxu1  ;;  %26474 = vmatprep.subr.mxu1 %v20989_v17  ;;  %v21003_v63 = vand.u32 4294901760, %v21002_v53  ;;  %v21016_v37 = vsub.f32 %v31587_v58, %v31593_v4  ;;  %v21010_v52 = vand.u32 4294901760, %v21009_v7 }
 0xff5   :  { %v26355_v19 = vpop.f32.mrf.mxu0  ;;  %26475 = vmatpush3.msra.mxu1 %v20989_v17 }
 0xff6   :  { %v19753_v33 = vadd.f32 %v19752_v13, %v19679_v62  ;;  %v26360_v42 = vpop.f32.mrf.mxu1  ;;  %26476 = vmatprep.subr.mxu1 %v20996_v60  ;;  %v21017_v49 = vand.u32 4294901760, %v21016_v37  ;;  %v20837_v13 = vld [vmem:[#allocation4 + $0xb0] sm:$0xff] }
 0xff7   :  { %v19826_v51 = vpop.f32.mrf.mxu0  ;;  %26477 = vmatpush3.msra.mxu1 %v20996_v60  ;;  %v31606_v19 = vand.u32 4294901760, %v20837_v13  ;;  %v20836_v42 = vld [vmem:[#allocation4 + $0xa8] sm:$0xff]  ;;  %v31637_v60 = vsub.f32 %v20835_v32, %v31621_v38 }
 0xff8   :  { %v19827_v55 = vadd.f32 %v19826_v51, %v19753_v33  ;;  %v19898_v21 = vpop.f32.mrf.mxu1  ;;  %26478 = vmatprep.subr.mxu1 %v21003_v63  ;;  %v31611_v30 = vand.u32 4294901760, %v20836_v42 }
 0xff9   :  { %v26365_v23 = vpop.f32.mrf.mxu0  ;;  %26479 = vmatpush3.msra.mxu1 %v21003_v63  ;;  %v31609_v14 = vsub.f32 %v20837_v13, %v31606_v19  ;;  %26449 = vmatprep.subr.mxu0 %v31606_v19 }
 0xffa   :  { %v19899_v11 = vadd.f32 %v19898_v21, %v19827_v55  ;;  %v26370_v43 = vpop.f32.mrf.mxu1  ;;  %26480 = vmatprep.subr.mxu1 %v21010_v52  ;;  %v20834_v55 = vld [vmem:[#allocation4 + $0x98] sm:$0xff]  ;;  %v20833_v21 = vld [vmem:[#allocation4 + $0x90] sm:$0xff]  ;;  %26450 = vmatpush3.msra.mxu0 %v31606_v19  ;;  %v31619_v16 = vsub.f32 %v20836_v42, %v31611_v30  ;;  %v20832_v23 = vld [vmem:[#allocation4 + $0x88] sm:$0xff] }
 0xffb   :  { %26481 = vmatpush3.msra.mxu1 %v21010_v52  ;;  %v31616_v31 = vand.u32 4294901760, %v31609_v14  ;;  %26451 = vmatprep.subr.mxu0 %v31611_v30  ;;  %v31624_v43 = vand.u32 4294901760, %v20834_v55  ;;  %v31626_v41 = vand.u32 4294901760, %v20833_v21  ;;  %v31628_v35 = vand.u32 4294901760, %v20832_v23 }
 0xffc   :  { %20816 = vrot.lane.b32.xlu0 %v19899_v11, %s26838_s21  ;;  %26482 = vmatprep.subr.mxu1 %v21017_v49  ;;  %v31634_v53 = vand.u32 4294901760, %v31619_v16 }
 0xffd   :  { %26483 = vmatpush3.msra.mxu1 %v21017_v49  ;;  %26452 = vmatpush3.msra.mxu0 %v31611_v30  ;;  %v21023_v17 = vsub.f32 %v31609_v14, %v31616_v31  ;;  %v31641_v37 = vsub.f32 %v20834_v55, %v31624_v43  ;;  %v31644_v52 = vsub.f32 %v20833_v21, %v31626_v41 }
 0xffe   :  { %26453 = vmatprep.subr.mxu0 %v31621_v38  ;;  %v31647_v49 = vsub.f32 %v20832_v23, %v31628_v35  ;;  %v21030_v13 = vsub.f32 %v31619_v16, %v31634_v53 }
 0xfff   :  { %26454 = vmatpush3.msra.mxu0 %v31621_v38  ;;  %v31657_v32 = vand.u32 4294901760, %v31641_v37  ;;  %v31660_v55 = vand.u32 4294901760, %v31644_v52 }
0x1000   :  { %26455 = vmatprep.subr.mxu0 %v31624_v43  ;;  %v31663_v21 = vand.u32 4294901760, %v31647_v49 }
0x1001   :  { %33879 = vst [vmem:[#allocation49_spill] sm:$0xff] %v31657_v32  ;;  %33880 = vst [vmem:[#allocation21_spill] sm:$0xff] %v31660_v55  ;;  %26456 = vmatpush3.msra.mxu0 %v31624_v43 }
0x1002   :  { %33881 = vst [vmem:[#allocation40_spill] sm:$0xff] %v31663_v21  ;;  %26457 = vmatprep.subr.mxu0 %v31626_v41 }
0x1003   :  { %26458 = vmatpush3.msra.mxu0 %v31626_v41 }
0x1004   :  { %26459 = vmatprep.subr.mxu0 %v31628_v35 }
0x1005   :  { %26460 = vmatpush3.msra.mxu0 %v31628_v35 }
0x1010   :  { %v20053_v27 = vpop.f32.mrf.mxu1 }
0x1012   :  { %v26380_v0 = vpop.f32.mrf.mxu1 }
0x1013   :  { %v21024_v0 = vand.u32 4294901760, %v21023_v17 }
0x1014   :  { %v20201_v62 = vpop.f32.mrf.mxu1 }
0x1015   :  { %26484 = vmatprep.subr.mxu1 %v21024_v0 }
0x1016   :  { %v26390_v33 = vpop.f32.mrf.mxu1  ;;  %26485 = vmatpush3.msra.mxu1 %v21024_v0 }
0x1017   :  { %v31653_v33 = vand.u32 4294901760, %v31637_v60 }
0x1018   :  { %v19977_v44 = vpop.f32.mrf.mxu0  ;;  %v20347_v51 = vpop.f32.mrf.mxu1 }
0x1019   :  { %v20054_v26 = vadd.f32 %v20053_v27, %v19977_v44 }
0x101a   :  { %v26375_v18 = vpop.f32.mrf.mxu0  ;;  %v26400_v11 = vpop.f32.mrf.mxu1 }
0x101b   :  { %v21031_v18 = vand.u32 4294901760, %v21030_v13  ;;  %v21037_v11 = vsub.f32 %v31637_v60, %v31653_v33  ;;  %v21058_v13 = vsub.f32 %v31647_v49, %v31663_v21 }
0x101c   :  { %v20127_v7 = vpop.f32.mrf.mxu0  ;;  %v20502_v63 = vpop.f32.mrf.mxu1 }
0x101d   :  { %v20128_v27 = vadd.f32 %v20127_v7, %v20054_v26  ;;  %v21044_v7 = vsub.f32 %v31641_v37, %v31657_v32  ;;  %26486 = vmatprep.subr.mxu1 %v21031_v18 }
0x101e   :  { %v26385_v42 = vpop.f32.mrf.mxu0  ;;  %v26410_v44 = vpop.f32.mrf.mxu1  ;;  %26487 = vmatpush3.msra.mxu1 %v21031_v18 }
0x101f   :  { %v20202_v23 = vadd.f32 %v20201_v62, %v20128_v27  ;;  %v21051_v42 = vsub.f32 %v31644_v52, %v31660_v55  ;;  %v20831_v44 = vld [vmem:[#allocation4 + $0x80] sm:$0xff]  ;;  %v21038_v27 = vand.u32 4294901760, %v21037_v11  ;;  %v21045_v5 = vand.u32 4294901760, %v21044_v7 }
0x1020   :  { %v20275_v26 = vpop.f32.mrf.mxu0  ;;  %v20650_v17 = vpop.f32.mrf.mxu1  ;;  %v31676_v28 = vand.u32 4294901760, %v20831_v44 }
0x1021   :  { %v20276_v62 = vadd.f32 %v20275_v26, %v20202_v23  ;;  %26488 = vmatprep.subr.mxu1 %v21038_v27  ;;  %v21052_v32 = vand.u32 4294901760, %v21051_v42 }
0x1022   :  { %v26395_v0 = vpop.f32.mrf.mxu0  ;;  %v26420_v22 = vpop.f32.mrf.mxu1  ;;  %v31681_v23 = vsub.f32 %v20831_v44, %v31676_v28  ;;  %26461 = vmatprep.subr.mxu0 %v31676_v28  ;;  %26489 = vmatpush3.msra.mxu1 %v21038_v27 }
0x1023   :  { %v20348_v55 = vadd.f32 %v20347_v51, %v20276_v62  ;;  %26462 = vmatpush3.msra.mxu0 %v31676_v28  ;;  %26490 = vmatprep.subr.mxu1 %v21045_v5  ;;  %v21059_v22 = vand.u32 4294901760, %v21058_v13 }
0x1024   :  { %v20426_v11 = vpop.f32.mrf.mxu0  ;;  %v20796_v26 = vpop.f32.mrf.mxu1  ;;  %v31687_v18 = vand.u32 4294901760, %v31681_v23  ;;  %26491 = vmatpush3.msra.mxu1 %v21045_v5  ;;  %26501 = vmatprep.subr.mxu0 %v31510_v39 }
0x1025   :  { %20820 = vrot.lane.b32.xlu0 %v20348_v55, %s26836_s19  ;;  %v20503_v42 = vadd.f32 %v20502_v63, %v20426_v11  ;;  %26492 = vmatprep.subr.mxu1 %v21052_v32 }
0x1026   :  { %v26405_v51 = vpop.f32.mrf.mxu0  ;;  %v26430_v7 = vpop.f32.mrf.mxu1  ;;  %v21065_v44 = vsub.f32 %v31681_v23, %v31687_v18  ;;  %26493 = vmatpush3.msra.mxu1 %v21052_v32 }
0x1027   :  { %26494 = vmatprep.subr.mxu1 %v21059_v22 }
0x1028   :  { %v20576_v62 = vpop.f32.mrf.mxu0  ;;  %v21066_v55 = vand.u32 4294901760, %v21065_v44  ;;  %26495 = vmatpush3.msra.mxu1 %v21059_v22 }
0x1029   :  { %v20577_v27 = vadd.f32 %v20576_v62, %v20503_v42 }
0x102a   :  { %v26415_v0 = vpop.f32.mrf.mxu0  ;;  %26496 = vmatprep.subr.mxu1 %v21066_v55 }
0x102b   :  { %v20651_v13 = vadd.f32 %v20650_v17, %v20577_v27  ;;  %26497 = vmatpush3.msra.mxu1 %v21066_v55 }
0x102c   :  { %v20724_v21 = vpop.f32.mrf.mxu0  ;;  %26536 = vmatprep.subr.mxu1 %v31497_v24 }
0x102d   :  { %v20725_v51 = vadd.f32 %v20724_v21, %v20651_v13 }
0x102e   :  { %v26425_v5 = vpop.f32.mrf.mxu0 }
0x102f   :  { %v20797_v63 = vadd.f32 %v20796_v26, %v20725_v51 }
0x1031   :  { %20824 = vrot.lane.b32.xlu1 %v20797_v63, %s26837_s20 }
0x103e   :  { %v20802_v11 = vpop.permute.xlu1 %20801 }
0x103f   :  { %v20812_v32 = vsel %vm1802_vm1, %v31466_v54, %v20802_v11 }
0x104a   :  { %v20806_v7 = vpop.permute.xlu1 %20805 }
0x104b   :  { %v20813_v42 = vsel %vm9097_vm3, %v20812_v32, %v20806_v7 }
0x1056   :  { %v20810_v44 = vpop.permute.xlu1 %20809 }
0x1057   :  { %v20814_v17 = vsel %vm9099_vm4, %v20813_v42, %v20810_v44  ;;  %v21609_v42 = vld [vmem:[#allocation6 + $0x1c8] sm:$0xff] }
0x1058   :  { %v31698_v22 = vand.u32 4294901760, %v20814_v17 }
0x105a   :  { %v20937_v21 = vsub.f32 %v20814_v17, %v31698_v22  ;;  %26498 = vmatprep.mubr.f32.mxu1 %v31698_v22 }
0x105c   :  { %v20938_v62 = vand.u32 4294901760, %v20937_v21 }
0x105e   :  { %v20939_v26 = vsub.f32 %v20937_v21, %v20938_v62 }
0x1060   :  { %v20940_v27 = vand.u32 4294901760, %v20939_v26 }
0x1062   :  { %26463 = vmatprep.mubr.f32.mxu0 %v20940_v27 }
0x106e   :  { %v20817_v55 = vpop.permute.xlu0 %20816 }
0x106f   :  { %v20827_v54 = vsel %vm1802_vm1, %v31495_v36, %v20817_v55 }
0x1097   :  { %v20821_v0 = vpop.permute.xlu0 %20820 }
0x1098   :  { %v20828_v13 = vsel %vm9097_vm3, %v20827_v54, %v20821_v0 }
0x10a3   :  { %v20825_v51 = vpop.permute.xlu1 %20824 }
0x10a4   :  { %v20829_v5 = vsel %vm9099_vm4, %v20828_v13, %v20825_v51 }
0x10a5   :  { %v31706_v63 = vand.u32 4294901760, %v20829_v5 }
0x10a7   :  { %v31709_v11 = vsub.f32 %v20829_v5, %v31706_v63  ;;  %26499 = vmatmul.mubr.f32.vlgmr.msra.gmra.mxu1 %v31706_v63 }
0x10a8   :  { %26537 = vmatpush3.msra.mxu1 %v31497_v24  ;;  %26568 = vmatprep.mubr.f32.mxu1 %v20938_v62 }
0x10a9   :  { %v20948_v7 = vand.u32 4294901760, %v31709_v11  ;;  %26538 = vmatprep.subr.mxu1 %v31499_v3 }
0x10aa   :  { %26539 = vmatpush3.msra.mxu1 %v31499_v3 }
0x10ab   :  { %v20949_v36 = vsub.f32 %v31709_v11, %v20948_v7  ;;  %26540 = vmatprep.subr.mxu1 %v31501_v59 }
0x10ac   :  { %26541 = vmatpush3.msra.mxu1 %v31501_v59 }
0x10ad   :  { %v20950_v32 = vand.u32 4294901760, %v20949_v36  ;;  %26542 = vmatprep.subr.mxu1 %v31503_v1 }
0x10ae   :  { %26543 = vmatpush3.msra.mxu1 %v31503_v1 }
0x10af   :  { %26544 = vmatprep.subr.mxu1 %v31505_v2  ;;  %26464 = vmatmul.mubr.f32.vlgmr.msra.gmra.mxu0 %v20950_v32 }
0x10b0   :  { %26502 = vmatpush3.msra.mxu0 %v31510_v39  ;;  %26545 = vmatpush3.msra.mxu1 %v31505_v2 }
0x10b1   :  { %26503 = vmatprep.subr.mxu0 %v31513_v34  ;;  %26533 = vmatprep.mubr.f32.mxu0 %v20937_v21  ;;  %v31876_v21 = vand.u32 4294901760, %v21609_v42 }
0x10b2   :  { %26546 = vmatprep.subr.mxu1 %v31507_v46  ;;  %26504 = vmatpush3.msra.mxu0 %v31513_v34 }
0x10b3   :  { %26547 = vmatpush3.msra.mxu1 %v31507_v46  ;;  %26505 = vmatprep.subr.mxu0 %v31516_v56  ;;  %v31893_v13 = vsub.f32 %v21609_v42, %v31876_v21 }
0x10b4   :  { %26548 = vmatprep.subr.mxu1 %v31519_v40  ;;  %26506 = vmatpush3.msra.mxu0 %v31516_v56 }
0x10b5   :  { %26549 = vmatpush3.msra.mxu1 %v31519_v40  ;;  %26507 = vmatprep.subr.mxu0 %v31522_v57  ;;  %v33321_v32 = vand.u32 4294901760, %v31893_v13 }
0x10b6   :  { %26550 = vmatprep.subr.mxu1 %v31551_v9  ;;  %26508 = vmatpush3.msra.mxu0 %v31522_v57 }
0x10b7   :  { %26551 = vmatpush3.msra.mxu1 %v31551_v9  ;;  %26509 = vmatprep.subr.mxu0 %v31525_v47 }
0x10b8   :  { %26552 = vmatprep.subr.mxu1 %v31577_v48  ;;  %26510 = vmatpush3.msra.mxu0 %v31525_v47 }
0x10b9   :  { %26553 = vmatpush3.msra.mxu1 %v31577_v48  ;;  %26511 = vmatprep.subr.mxu0 %v31529_v50 }
0x10ba   :  { %26554 = vmatprep.subr.mxu1 %v31606_v19  ;;  %26512 = vmatpush3.msra.mxu0 %v31529_v50 }
0x10bb   :  { %26555 = vmatpush3.msra.mxu1 %v31606_v19  ;;  %26513 = vmatprep.subr.mxu0 %v31549_v25 }
0x10bc   :  { %26556 = vmatprep.subr.mxu1 %v31611_v30  ;;  %26514 = vmatpush3.msra.mxu0 %v31549_v25 }
0x10bd   :  { %26557 = vmatpush3.msra.mxu1 %v31611_v30  ;;  %26515 = vmatprep.subr.mxu0 %v31574_v12 }
0x10be   :  { %26558 = vmatprep.subr.mxu1 %v31621_v38  ;;  %26516 = vmatpush3.msra.mxu0 %v31574_v12 }
0x10bf   :  { %26559 = vmatpush3.msra.mxu1 %v31621_v38  ;;  %26517 = vmatprep.subr.mxu0 %v31587_v58 }
0x10c0   :  { %26560 = vmatprep.subr.mxu1 %v31624_v43  ;;  %26518 = vmatpush3.msra.mxu0 %v31587_v58 }
0x10c1   :  { %26561 = vmatpush3.msra.mxu1 %v31624_v43  ;;  %26519 = vmatprep.subr.mxu0 %v31609_v14 }
0x10c2   :  { %26562 = vmatprep.subr.mxu1 %v31626_v41  ;;  %26520 = vmatpush3.msra.mxu0 %v31609_v14  ;;  %v33886_v14 = vld [vmem:[#allocation16_spill] sm:$0xff] }
0x10c3   :  { %26563 = vmatpush3.msra.mxu1 %v31626_v41  ;;  %26521 = vmatprep.subr.mxu0 %v31619_v16 }
0x10c4   :  { %26564 = vmatprep.subr.mxu1 %v31628_v35  ;;  %26522 = vmatpush3.msra.mxu0 %v31619_v16 }
0x10c5   :  { %26565 = vmatpush3.msra.mxu1 %v31628_v35  ;;  %26523 = vmatprep.subr.mxu0 %v31637_v60 }
0x10c6   :  { %26566 = vmatprep.subr.mxu1 %v31676_v28  ;;  %26524 = vmatpush3.msra.mxu0 %v31637_v60 }
0x10c7   :  { %26567 = vmatpush3.msra.mxu1 %v31676_v28  ;;  %26525 = vmatprep.subr.mxu0 %v31641_v37 }
0x10c8   :  { %26569 = vmatmul.mubr.f32.vlgmr.msra.gmra.mxu1 %v20948_v7  ;;  %26606 = vmatprep.subr.mxu1 %v31497_v24 }
0x10c9   :  { %26526 = vmatpush3.msra.mxu0 %v31641_v37  ;;  %26607 = vmatpush3.msra.mxu1 %v31497_v24  ;;  %v33882_v24 = vld [vmem:[#allocation49_spill] sm:$0xff]  ;;  %v21612_v37 = vld [vmem:[#allocation6 + $0x1e0] sm:$0xff] }
0x10ca   :  { %26638 = vmatprep.mubr.f32.mxu1 %v31698_v22  ;;  %26527 = vmatprep.subr.mxu0 %v31644_v52 }
0x10cb   :  { %26608 = vmatprep.subr.mxu1 %v31499_v3  ;;  %26528 = vmatpush3.msra.mxu0 %v31644_v52  ;;  %v21611_v52 = vld [vmem:[#allocation6 + $0x1d8] sm:$0xff] }
0x10cc   :  { %26609 = vmatpush3.msra.mxu1 %v31499_v3  ;;  %26529 = vmatprep.subr.mxu0 %v31647_v49  ;;  %v33883_v3 = vld [vmem:[#allocation21_spill] sm:$0xff] }
0x10cd   :  { %26610 = vmatprep.subr.mxu1 %v31501_v59  ;;  %26530 = vmatpush3.msra.mxu0 %v31647_v49  ;;  %v21610_v49 = vld [vmem:[#allocation6 + $0x1d0] sm:$0xff] }
0x10ce   :  { %26611 = vmatpush3.msra.mxu1 %v31501_v59  ;;  %26531 = vmatprep.subr.mxu0 %v31681_v23  ;;  %v33884_v59 = vmov 0.0  }
0x10cf   :  { %26612 = vmatprep.subr.mxu1 %v31503_v1  ;;  %26532 = vmatpush3.msra.mxu0 %v31681_v23  ;;  %v31863_v23 = vand.u32 4294901760, %v21611_v52 }
0x10d0   :  { %26613 = vmatpush3.msra.mxu1 %v31503_v1  ;;  %26534 = vmatmul.mubr.f32.vlgmr.msra.gmra.mxu0 %v31709_v11  ;;  %v33885_v1 = vld [vmem:[#allocation40_spill] sm:$0xff] }
0x10d1   :  { %26571 = vmatprep.subr.mxu0 %v31532_v10  ;;  %26614 = vmatprep.subr.mxu1 %v31505_v2  ;;  %v31883_v26 = vsub.f32 %v21611_v52, %v31863_v23 }
0x10d2   :  { %26572 = vmatpush3.msra.mxu0 %v31532_v10  ;;  %26603 = vmatprep.mubr.f32.mxu0 %v31698_v22 }
0x10d3   :  { %26615 = vmatpush3.msra.mxu1 %v31505_v2  ;;  %26573 = vmatprep.subr.mxu0 %v31535_v45  ;;  %v23557_v2 = vld [vmem:[%s32957_s4 + $0x1] ss:$0 sm:$0xff]  ;;  %v33323_v5 = vand.u32 4294901760, %v31883_v26 }
0x10d4   :  { %26616 = vmatprep.subr.mxu1 %v31507_v46  ;;  %26574 = vmatpush3.msra.mxu0 %v31535_v45 }
0x10d5   :  { %26617 = vmatpush3.msra.mxu1 %v31507_v46  ;;  %26575 = vmatprep.subr.mxu0 %v31538_v20 }
0x10d6   :  { %26618 = vmatprep.subr.mxu1 %v31519_v40  ;;  %26576 = vmatpush3.msra.mxu0 %v31538_v20 }
0x10d7   :  { %26619 = vmatpush3.msra.mxu1 %v31519_v40  ;;  %26577 = vmatprep.subr.mxu0 %v31542_v6 }
0x10d8   :  { %26620 = vmatprep.subr.mxu1 %v31551_v9  ;;  %26578 = vmatpush3.msra.mxu0 %v31542_v6 }
0x10d9   :  { %26621 = vmatpush3.msra.mxu1 %v31551_v9  ;;  %26579 = vmatprep.subr.mxu0 %v31545_v29 }
0x10da   :  { %26622 = vmatprep.subr.mxu1 %v31577_v48  ;;  %26580 = vmatpush3.msra.mxu0 %v31545_v29 }
0x10db   :  { %26623 = vmatpush3.msra.mxu1 %v31577_v48  ;;  %26581 = vmatprep.subr.mxu0 %v31561_v8 }
0x10dc   :  { %26624 = vmatprep.subr.mxu1 %v31606_v19  ;;  %26582 = vmatpush3.msra.mxu0 %v31561_v8 }
0x10dd   :  { %26625 = vmatpush3.msra.mxu1 %v31606_v19  ;;  %26583 = vmatprep.subr.mxu0 %v31570_v15 }
0x10de   :  { %26626 = vmatprep.subr.mxu1 %v31611_v30  ;;  %26584 = vmatpush3.msra.mxu0 %v31570_v15 }
0x10df   :  { %26627 = vmatpush3.msra.mxu1 %v31611_v30  ;;  %26585 = vmatprep.subr.mxu0 %v31584_v61 }
0x10e0   :  { %26628 = vmatprep.subr.mxu1 %v31621_v38  ;;  %26586 = vmatpush3.msra.mxu0 %v31584_v61 }
0x10e1   :  { %26629 = vmatpush3.msra.mxu1 %v31621_v38  ;;  %26587 = vmatprep.subr.mxu0 %v31593_v4  ;;  %v21615_v38 = vld [vmem:[#allocation6 + $0x1f8] sm:$0xff] }
0x10e2   :  { %26630 = vmatprep.subr.mxu1 %v31624_v43  ;;  %26588 = vmatpush3.msra.mxu0 %v31593_v4 }
0x10e3   :  { %26631 = vmatpush3.msra.mxu1 %v31624_v43  ;;  %26589 = vmatprep.subr.mxu0 %v31616_v31  ;;  %v21614_v43 = vld [vmem:[#allocation6 + $0x1f0] sm:$0xff] }
0x10e4   :  { %26632 = vmatprep.subr.mxu1 %v31626_v41  ;;  %26590 = vmatpush3.msra.mxu0 %v31616_v31  ;;  %v33887_v31 = vld [vmem:[#allocation23_spill] sm:$0xff] }
0x10e5   :  { %26633 = vmatpush3.msra.mxu1 %v31626_v41  ;;  %26591 = vmatprep.subr.mxu0 %v31634_v53  ;;  %v21613_v41 = vld [vmem:[#allocation6 + $0x1e8] sm:$0xff] }
0x10e6   :  { %26634 = vmatprep.subr.mxu1 %v31628_v35  ;;  %26592 = vmatpush3.msra.mxu0 %v31634_v53  ;;  %v31857_v53 = vand.u32 4294901760, %v21614_v43  ;;  %v31859_v60 = vand.u32 4294901760, %v21613_v41 }
0x10e7   :  { %26635 = vmatpush3.msra.mxu1 %v31628_v35  ;;  %26593 = vmatprep.subr.mxu0 %v31653_v33  ;;  %v31855_v35 = vand.u32 4294901760, %v21615_v38 }
0x10e8   :  { %26636 = vmatprep.subr.mxu1 %v31676_v28  ;;  %26594 = vmatpush3.msra.mxu0 %v31653_v33  ;;  %v31861_v33 = vand.u32 4294901760, %v21612_v37  ;;  %v31871_v17 = vsub.f32 %v21614_v43, %v31857_v53  ;;  %v31874_v22 = vsub.f32 %v21613_v41, %v31859_v60  ;;  %v21603_v43 = vld [vmem:[#allocation6 + $0x198] sm:$0xff] }
0x10e9   :  { %26637 = vmatpush3.msra.mxu1 %v31676_v28  ;;  %26595 = vmatprep.subr.mxu0 %v33882_v24  ;;  %v31868_v44 = vsub.f32 %v21615_v38, %v31855_v35  ;;  %v31961_v52 = vand.u32 4294901760, %v21603_v43 }
0x10ea   :  { %26639 = vmatmul.mubr.f32.vlgmr.msra.gmra.mxu1 %v31706_v63  ;;  %26596 = vmatpush3.msra.mxu0 %v33882_v24  ;;  %v31880_v62 = vsub.f32 %v21612_v37, %v31861_v33  ;;  %v33327_v0 = vand.u32 4294901760, %v31871_v17  ;;  %v33326_v54 = vand.u32 4294901760, %v31874_v22 }
0x10eb   :  { %26597 = vmatprep.subr.mxu0 %v33883_v3  ;;  %21972 = vmatprep.mubr.f32.mxu1 %v33884_v59  ;;  %v33329_v55 = vand.u32 4294901760, %v31868_v44 }
0x10ec   :  { %26598 = vmatpush3.msra.mxu0 %v33883_v3  ;;  %v33325_v51 = vand.u32 4294901760, %v31880_v62  ;;  %v21757_v7 = vsub.f32 %v31871_v17, %v33327_v0  ;;  %v21763_v36 = vsub.f32 %v31874_v22, %v33326_v54  ;;  %v21775_v3 = vsub.f32 %v31883_v26, %v33323_v5  ;;  %v21590_v0 = vld [vmem:[#allocation6 + $0x130] sm:$0xff] }
0x10ed   :  { %26599 = vmatprep.subr.mxu0 %v33885_v1  ;;  %v21751_v11 = vsub.f32 %v31868_v44, %v33329_v55 }
0x10ee   :  { %26600 = vmatpush3.msra.mxu0 %v33885_v1  ;;  %v21769_v24 = vsub.f32 %v31880_v62, %v33325_v51 }
0x10ef   :  { %26601 = vmatprep.subr.mxu0 %v31687_v18 }
0x10f0   :  { %26602 = vmatpush3.msra.mxu0 %v31687_v18  ;;  %v31865_v18 = vand.u32 4294901760, %v21610_v49 }
0x10f1   :  { %26604 = vmatmul.mubr.f32.vlgmr.msra.gmra.mxu0 %v31706_v63  ;;  %21630 = vmatprep.subr.mxu0 %v31855_v35 }
0x10f2   :  { %21725 = vmatprep.mubr.f32.mxu0 %v33884_v59  ;;  %v31886_v27 = vsub.f32 %v21610_v49, %v31865_v18  ;;  %21632 = vmatpush1.msra.mxu0 %v31857_v53  ;;  %v21602_v49 = vld [vmem:[#allocation6 + $0x190] sm:$0xff] }
0x10f3   :  { %21634 = vmatprep.subr.mxu0 %v31859_v60 }
0x10f4   :  { %v33322_v63 = vand.u32 4294901760, %v31886_v27  ;;  %21636 = vmatpush1.msra.mxu0 %v31861_v33 }
0x10f5   :  { %21638 = vmatprep.subr.mxu0 %v31863_v23 }
0x10f6   :  { %v21781_v1 = vsub.f32 %v31886_v27, %v33322_v63  ;;  %21640 = vmatpush1.msra.mxu0 %v31865_v18 }
0x10f7   :  { %21642 = vmatprep.subr.mxu0 %v31876_v21 }
0x1167   :  { %v26500_v46 = vpop.f32.mrf.mxu1 }
0x1169   :  { %v21103_v57 = vpop.f32.mrf.mxu1 }
0x116f   :  { %v26465_v28 = vpop.f32.mrf.mxu0 }
0x1170   :  { %v20953_v34 = vadd.f32 %v26465_v28, %v23557_v2  ;;  %v21752_v28 = vand.u32 4294901760, %v21751_v11 }
0x1171   :  { %v20942_v39 = vpop.f32.mrf.mxu0 }
0x1172   :  { %v20943_v40 = vadd.f32 %v23557_v2, %v20942_v39  ;;  %v21110_v47 = vadd.f32 %v26500_v46, %v20953_v34  ;;  %v21758_v2 = vand.u32 4294901760, %v21757_v7  ;;  %v21764_v46 = vand.u32 4294901760, %v21763_v36  ;;  %21753 = vmatprep.subr.mxu1 %v21752_v28 }
0x1173   :  { %v21787_v39 = vsub.f32 %v31893_v13, %v33321_v32  ;;  %v21770_v34 = vand.u32 4294901760, %v21769_v24  ;;  %v31971_v36 = vand.u32 4294901760, %v21602_v49  ;;  %v21601_v24 = vld [vmem:[#allocation6 + $0x188] sm:$0xff]  ;;  %v31979_v28 = vsub.f32 %v21603_v43, %v31961_v52  ;;  %v21592_v32 = vld [vmem:[#allocation6 + $0x140] sm:$0xff] }
0x1174   :  { %v21104_v20 = vadd.f32 %v21103_v57, %v20943_v40  ;;  %21759 = vmatpush1.msra.mxu1 %v21758_v2  ;;  %v21782_v40 = vand.u32 4294901760, %v21781_v1  ;;  %v31981_v2 = vand.u32 4294901760, %v21601_v24  ;;  %v32084_v55 = vand.u32 4294901760, %v21592_v32 }
0x1175   :  { %21765 = vmatprep.subr.mxu1 %v21764_v46  ;;  %v21788_v57 = vand.u32 4294901760, %v21787_v39  ;;  %v21600_v46 = vld [vmem:[#allocation6 + $0x180] sm:$0xff] }
0x1176   :  { %21771 = vmatpush1.msra.mxu1 %v21770_v34  ;;  %33895 = vst [vmem:[#allocation35_spill] sm:$0xff] %v32084_v55 }
0x1188   :  { %v26570_v50 = vpop.f32.mrf.mxu1 }
0x118a   :  { %v21309_v29 = vpop.f32.mrf.mxu1 }
0x1190   :  { %v26535_v56 = vpop.f32.mrf.mxu0 }
0x1191   :  { %v21221_v45 = vadd.f32 %v26535_v56, %v21110_v47  ;;  %v21776_v56 = vand.u32 4294901760, %v21775_v3 }
0x1192   :  { %v21213_v10 = vpop.f32.mrf.mxu0 }
0x1193   :  { %v21214_v6 = vadd.f32 %v21213_v10, %v21104_v20  ;;  %v21318_v25 = vadd.f32 %v26570_v50, %v21221_v45  ;;  %21777 = vmatprep.subr.mxu1 %v21776_v56 }
0x1194   :  { %21783 = vmatpush1.msra.mxu1 %v21782_v40  ;;  %v31989_v40 = vsub.f32 %v21602_v49, %v31971_v36 }
0x1195   :  { %v21310_v12 = vadd.f32 %v21309_v29, %v21214_v6  ;;  %21789 = vmatprep.subr.mxu1 %v21788_v57  ;;  %v21599_v57 = vld [vmem:[#allocation6 + $0x178] sm:$0xff] }
0x11aa   :  { %v26640_v9 = vpop.f32.mrf.mxu1 }
0x11ac   :  { %v21529_v4 = vpop.f32.mrf.mxu1 }
0x11b1   :  { %v26605_v8 = vpop.f32.mrf.mxu0 }
0x11b2   :  { %v21443_v15 = vadd.f32 %v26605_v8, %v21318_v25 }
0x11b3   :  { %v21436_v48 = vpop.f32.mrf.mxu0 }
0x11b4   :  { %v21536_v61 = vadd.f32 %v26640_v9, %v21443_v15  ;;  %v21437_v58 = vadd.f32 %v21436_v48, %v21310_v12  ;;  %v21608_v9 = vld [vmem:[#allocation6 + $0x1c0] sm:$0xff]  ;;  %v21607_v15 = vld [vmem:[#allocation6 + $0x1b8] sm:$0xff]  ;;  %v21606_v48 = vld [vmem:[#allocation6 + $0x1b0] sm:$0xff] }
0x11b5   :  { %v31934_v8 = vand.u32 4294901760, %v21608_v9  ;;  %v31936_v12 = vand.u32 4294901760, %v21607_v15 }
0x11b6   :  { %v21530_v19 = vadd.f32 %v21529_v4, %v21437_v58  ;;  %v31851_v30 = vadd.f32 %v21536_v61, %v33886_v14  ;;  %v31941_v58 = vand.u32 4294901760, %v21606_v48  ;;  %v21605_v4 = vld [vmem:[#allocation6 + $0x1a8] sm:$0xff] }
0x11b7   :  { %v31939_v61 = vsub.f32 %v21608_v9, %v31934_v8  ;;  %21644 = vmatpush1.msra.mxu0 %v31934_v8  ;;  %v31947_v14 = vand.u32 4294901760, %v21605_v4 }
0x11b8   :  { %21547 = vadd.xlane.f32.xlu1 %v31851_v30  ;;  %v21539_v16 = vadd.f32 %v21530_v19, %v33887_v31  ;;  %v31945_v19 = vsub.f32 %v21607_v15, %v31936_v12  ;;  %21646 = vmatprep.subr.mxu0 %v31936_v12  ;;  %v33314_v15 = vand.u32 4294901760, %v31989_v40 }
0x11b9   :  { %v33319_v31 = vand.u32 4294901760, %v31939_v61  ;;  %21648 = vmatpush1.msra.mxu0 %v31941_v58  ;;  %v31959_v37 = vsub.f32 %v21605_v4, %v31947_v14  ;;  %v21597_v4 = vld [vmem:[#allocation6 + $0x168] sm:$0xff] }
0x11ba   :  { %21545 = vadd.xlane.f32.xlu0 %v21539_v16  ;;  %v33318_v41 = vand.u32 4294901760, %v31945_v19  ;;  %21650 = vmatprep.subr.mxu0 %v31947_v14 }
0x11bb   :  { %v21793_v42 = vsub.f32 %v31939_v61, %v33319_v31  ;;  %v33315_v1 = vand.u32 4294901760, %v31959_v37 }
0x11bc   :  { %v21799_v3 = vsub.f32 %v31945_v19, %v33318_v41 }
0x11bd   :  { %v21794_v39 = vand.u32 4294901760, %v21793_v42  ;;  %v32010_v42 = vand.u32 4294901760, %v21599_v57 }
0x11bf   :  { %21795 = vmatpush1.msra.mxu1 %v21794_v39  ;;  %v21829_v39 = vsub.f32 %v31989_v40, %v33314_v15  ;;  %v21594_v15 = vld [vmem:[#allocation6 + $0x150] sm:$0xff] }
0x1241   :  { %v21548_v47 = vpop.xlane.xlu1 %21547 }
0x1242   :  { %v21550_v10 = vmul.f32 0.0078125, %v21548_v47  ;;  %v21800_v47 = vand.u32 4294901760, %v21799_v3 }
0x1243   :  { %v21546_v50 = vpop.xlane.xlu0 %21545 }
0x1244   :  { %v21549_v45 = vmul.f32 0.0078125, %v21546_v50  ;;  %v31928_v6 = vsub.f32 %v31851_v30, %v21550_v10  ;;  %v21604_v30 = vld [vmem:[#allocation6 + $0x1a0] sm:$0xff]  ;;  %v21811_v50 = vsub.f32 %v31959_v37, %v33315_v1  ;;  %v33312_v10 = vand.u32 4294901760, %v31979_v28  ;;  %21801 = vmatprep.subr.mxu1 %v21800_v47 }
0x1245   :  { %v31954_v38 = vand.u32 4294901760, %v21604_v30 }
0x1246   :  { %v31925_v20 = vsub.f32 %v21539_v16, %v21549_v45  ;;  %v21554_v25 = vmul.f32 %v31928_v6, %v31928_v6  ;;  %v31952_v16 = vsub.f32 %v21606_v48, %v31941_v58  ;;  %v31997_v45 = vsub.f32 %v21601_v24, %v31981_v2  ;;  %v21596_v24 = vld [vmem:[#allocation6 + $0x160] sm:$0xff] }
0x1247   :  { %v31969_v7 = vsub.f32 %v21604_v30, %v31954_v38  ;;  %21652 = vmatpush1.msra.mxu0 %v31954_v38  ;;  %v32004_v48 = vand.u32 4294901760, %v21600_v46  ;;  %v21812_v30 = vand.u32 4294901760, %v21811_v50  ;;  %v21823_v43 = vsub.f32 %v31979_v28, %v33312_v10  ;;  %v21595_v50 = vld [vmem:[#allocation6 + $0x158] sm:$0xff] }
0x1248   :  { %v21553_v29 = vmul.f32 %v31925_v20, %v31925_v20  ;;  %v33316_v11 = vand.u32 4294901760, %v31952_v16  ;;  %21654 = vmatprep.subr.mxu0 %v31961_v52  ;;  %v33317_v49 = vand.u32 4294901760, %v31997_v45  ;;  %v32041_v31 = vand.u32 4294901760, %v21595_v50 }
0x1249   :  { %v33313_v56 = vand.u32 4294901760, %v31969_v7  ;;  %21656 = vmatpush1.msra.mxu0 %v31971_v36  ;;  %v21824_v10 = vand.u32 4294901760, %v21823_v43  ;;  %v21593_v43 = vld [vmem:[#allocation6 + $0x148] sm:$0xff] }
0x124a   :  { %21555 = vadd.xlane.f32.xlu0 %v21553_v29  ;;  %v21805_v34 = vsub.f32 %v31952_v16, %v33316_v11  ;;  %v21598_v29 = vld [vmem:[#allocation6 + $0x170] sm:$0xff]  ;;  %21658 = vmatprep.subr.mxu0 %v31981_v2 }
0x124b   :  { %v21817_v9 = vsub.f32 %v31969_v7, %v33313_v56  ;;  %v32018_v47 = vand.u32 4294901760, %v21598_v29  ;;  %21660 = vmatpush1.msra.mxu0 %v32004_v48  ;;  %v21835_v56 = vsub.f32 %v31997_v45, %v33317_v49 }
0x124c   :  { %21662 = vmatprep.subr.mxu0 %v32010_v42 }
0x124d   :  { %v21818_v3 = vand.u32 4294901760, %v21817_v9  ;;  %v32027_v9 = vand.u32 4294901760, %v21597_v4  ;;  %v32032_v11 = vsub.f32 %v21598_v29, %v32018_v47  ;;  %21664 = vmatpush1.msra.mxu0 %v32018_v47 }
0x124e   :  { %21557 = vadd.xlane.f32.xlu0 %v21554_v25  ;;  %v21806_v25 = vand.u32 4294901760, %v21805_v34  ;;  %v32016_v34 = vsub.f32 %v21600_v46, %v32004_v48  ;;  %v21830_v46 = vand.u32 4294901760, %v21829_v39 }
0x124f   :  { %33889 = vst [vmem:[#allocation44_spill] sm:$0xff] %v32032_v11  ;;  %v32039_v41 = vsub.f32 %v21597_v4, %v32027_v9  ;;  %21666 = vmatprep.subr.mxu0 %v32027_v9 }
0x1250   :  { %21807 = vmatpush1.msra.mxu1 %v21806_v25  ;;  %v32025_v25 = vsub.f32 %v21599_v57, %v32010_v42  ;;  %v33320_v1 = vand.u32 4294901760, %v32016_v34  ;;  %v21836_v57 = vand.u32 4294901760, %v21835_v56  ;;  %v32051_v56 = vand.u32 4294901760, %v21594_v15 }
0x1251   :  { %21813 = vmatprep.subr.mxu1 %v21812_v30  ;;  %v32034_v30 = vand.u32 4294901760, %v21596_v24  ;;  %33890 = vst [vmem:[#allocation46_spill] sm:$0xff] %v32039_v41  ;;  %v33332_v4 = vand.u32 4294901760, %v32039_v41 }
0x1252   :  { %33888 = vst [vmem:[#allocation42_spill] sm:$0xff] %v32025_v25  ;;  %21819 = vmatpush1.msra.mxu1 %v21818_v3  ;;  %v33324_v49 = vand.u32 4294901760, %v32025_v25  ;;  %v21841_v29 = vsub.f32 %v32016_v34, %v33320_v1  ;;  %v33328_v3 = vand.u32 4294901760, %v32032_v11  ;;  %v32061_v1 = vand.u32 4294901760, %v21593_v43 }
0x1253   :  { %21825 = vmatprep.subr.mxu1 %v21824_v10  ;;  %v32049_v39 = vsub.f32 %v21596_v24, %v32034_v30  ;;  %21668 = vmatpush1.msra.mxu0 %v32034_v30  ;;  %v32069_v5 = vsub.f32 %v21594_v15, %v32051_v56  ;;  %v21859_v51 = vsub.f32 %v32039_v41, %v33332_v4 }
0x1254   :  { %21831 = vmatpush1.msra.mxu1 %v21830_v46  ;;  %v21847_v10 = vsub.f32 %v32025_v25, %v33324_v49  ;;  %v32059_v46 = vsub.f32 %v21595_v50, %v32041_v31  ;;  %21670 = vmatprep.subr.mxu0 %v32041_v31  ;;  %v21842_v24 = vand.u32 4294901760, %v21841_v29  ;;  %v21853_v63 = vsub.f32 %v32032_v11, %v33328_v3  ;;  %v21591_v49 = vld [vmem:[#allocation6 + $0x138] sm:$0xff]  ;;  %v21589_v11 = vld [vmem:[#allocation6 + $0x128] sm:$0xff] }
0x1255   :  { %33891 = vst [vmem:[#allocation48_spill] sm:$0xff] %v32049_v39  ;;  %21837 = vmatprep.subr.mxu1 %v21836_v57  ;;  %v33337_v57 = vand.u32 4294901760, %v32049_v39  ;;  %33893 = vst [vmem:[#allocation51_spill] sm:$0xff] %v32069_v5  ;;  %21672 = vmatpush1.msra.mxu0 %v32051_v56  ;;  %v32077_v29 = vsub.f32 %v21593_v43, %v32061_v1  ;;  %v21860_v4 = vand.u32 4294901760, %v21859_v51  ;;  %v32090_v25 = vand.u32 4294901760, %v21591_v49  ;;  %v21587_v51 = vld [vmem:[#allocation6 + $0x118] sm:$0xff] }
0x1256   :  { %33892 = vst [vmem:[#allocation50_spill] sm:$0xff] %v32059_v46  ;;  %v21848_v50 = vand.u32 4294901760, %v21847_v10  ;;  %v33340_v54 = vand.u32 4294901760, %v32059_v46  ;;  %21674 = vmatprep.subr.mxu0 %v32061_v1  ;;  %21843 = vmatpush1.msra.mxu1 %v21842_v24  ;;  %v21854_v3 = vand.u32 4294901760, %v21853_v63  ;;  %v33343_v10 = vand.u32 4294901760, %v32069_v5  ;;  %v21588_v63 = vld [vmem:[#allocation6 + $0x120] sm:$0xff] }
0x1257   :  { %33894 = vst [vmem:[#allocation25_spill] sm:$0xff] %v32077_v29  ;;  %v21865_v15 = vsub.f32 %v32049_v39, %v33337_v57  ;;  %v33348_v41 = vand.u32 4294901760, %v32077_v29  ;;  %33896 = vst [vmem:[#allocation38_spill] sm:$0xff] %v32090_v25  ;;  %v32096_v39 = vsub.f32 %v21592_v32, %v32084_v55  ;;  %21676 = vmatpush1.msra.mxu0 %v32084_v55 }
0x1258   :  { %21849 = vmatprep.subr.mxu1 %v21848_v50  ;;  %v21871_v43 = vsub.f32 %v32059_v46, %v33340_v54  ;;  %v21877_v57 = vsub.f32 %v32069_v5, %v33343_v10  ;;  %v32098_v50 = vand.u32 4294901760, %v21590_v0  ;;  %v21586_v10 = vld [vmem:[#allocation6 + $0x110] sm:$0xff]  ;;  %21678 = vmatprep.subr.mxu0 %v32090_v25 }
0x1259   :  { %21855 = vmatpush1.msra.mxu1 %v21854_v3  ;;  %v21866_v24 = vand.u32 4294901760, %v21865_v15  ;;  %33897 = vst [vmem:[#allocation52_spill] sm:$0xff] %v32096_v39  ;;  %v21883_v46 = vsub.f32 %v32077_v29, %v33348_v41  ;;  %v32105_v3 = vsub.f32 %v21591_v49, %v32090_v25  ;;  %v32107_v15 = vand.u32 4294901760, %v21589_v11 }
0x125a   :  { %21861 = vmatprep.subr.mxu1 %v21860_v4  ;;  %v21872_v54 = vand.u32 4294901760, %v21871_v43  ;;  %v21878_v32 = vand.u32 4294901760, %v21877_v57  ;;  %v33353_v5 = vand.u32 4294901760, %v32096_v39  ;;  %v32112_v55 = vsub.f32 %v21590_v0, %v32098_v50  ;;  %v21585_v43 = vld [vmem:[#allocation6 + $0x108] sm:$0xff]  ;;  %21680 = vmatpush1.msra.mxu0 %v32098_v50  ;;  %v21584_v57 = vld [vmem:[#allocation6 + $0x100] sm:$0xff] }
0x125b   :  { %33898 = vst [vmem:[#allocation54_spill] sm:$0xff] %v32105_v3  ;;  %33899 = vst [vmem:[#allocation53_spill] sm:$0xff] %v32107_v15  ;;  %21867 = vmatpush1.msra.mxu1 %v21866_v24  ;;  %v32114_v4 = vand.u32 4294901760, %v21588_v63  ;;  %v21884_v49 = vand.u32 4294901760, %v21883_v46  ;;  %v33360_v41 = vand.u32 4294901760, %v32105_v3  ;;  %v32119_v29 = vsub.f32 %v21589_v11, %v32107_v15  ;;  %21682 = vmatprep.subr.mxu0 %v32107_v15 }
0x125c   :  { %33900 = vst [vmem:[#allocation19_spill] sm:$0xff] %v32112_v55  ;;  %21873 = vmatprep.subr.mxu1 %v21872_v54  ;;  %v32121_v25 = vand.u32 4294901760, %v21587_v51  ;;  %v21889_v0 = vsub.f32 %v32096_v39, %v33353_v5  ;;  %v32131_v54 = vand.u32 4294901760, %v21586_v10  ;;  %v32141_v5 = vand.u32 4294901760, %v21585_v43 }
0x125d   :  { %33901 = vst [vmem:[#allocation24_spill] sm:$0xff] %v32114_v4  ;;  %33902 = vst [vmem:[#allocation31_spill] sm:$0xff] %v32119_v29  ;;  %21879 = vmatpush1.msra.mxu1 %v21878_v32  ;;  %v32129_v24 = vsub.f32 %v21588_v63, %v32114_v4  ;;  %21684 = vmatpush1.msra.mxu0 %v32114_v4  ;;  %v21895_v11 = vsub.f32 %v32105_v3, %v33360_v41  ;;  %v33367_v46 = vand.u32 4294901760, %v32119_v29 }
0x125e   :  { %33903 = vst [vmem:[#allocation32_spill] sm:$0xff] %v32121_v25  ;;  %33904 = vst [vmem:[#allocation22_spill] sm:$0xff] %v32131_v54  ;;  %21885 = vmatprep.subr.mxu1 %v21884_v49  ;;  %v32139_v32 = vsub.f32 %v21587_v51, %v32121_v25  ;;  %21686 = vmatprep.subr.mxu0 %v32121_v25  ;;  %v21890_v63 = vand.u32 4294901760, %v21889_v0  ;;  %v33905_v39 = vand.u32 4294901760, %v32112_v55 }
0x125f   :  { %v33373_v49 = vand.u32 4294901760, %v32129_v24  ;;  %v32149_v15 = vsub.f32 %v21586_v10, %v32131_v54  ;;  %21688 = vmatpush1.msra.mxu0 %v32131_v54  ;;  %v21896_v41 = vand.u32 4294901760, %v21895_v11  ;;  %v21907_v51 = vsub.f32 %v32119_v29, %v33367_v46 }
0x1260   :  { %v21901_v4 = vsub.f32 %v32112_v55, %v33905_v39  ;;  %v33370_v3 = vand.u32 4294901760, %v32139_v32  ;;  %v32157_v0 = vsub.f32 %v21585_v43, %v32141_v5  ;;  %21690 = vmatprep.subr.mxu0 %v32141_v5  ;;  %21891 = vmatpush1.msra.mxu1 %v21890_v63  ;;  %v32164_v11 = vand.u32 4294901760, %v21584_v57 }
0x1261   :  { %v21913_v10 = vsub.f32 %v32129_v24, %v33373_v49  ;;  %v33372_v55 = vand.u32 4294901760, %v32149_v15  ;;  %21897 = vmatprep.subr.mxu1 %v21896_v41  ;;  %v21908_v54 = vand.u32 4294901760, %v21907_v51 }
0x1262   :  { %v21902_v39 = vand.u32 4294901760, %v21901_v4  ;;  %v21919_v46 = vsub.f32 %v32139_v32, %v33370_v3  ;;  %v33371_v43 = vand.u32 4294901760, %v32157_v0  ;;  %v32174_v63 = vsub.f32 %v21584_v57, %v32164_v11  ;;  %21692 = vmatpush1.msra.mxu0 %v32164_v11 }
0x1263   :  { %v21914_v29 = vand.u32 4294901760, %v21913_v10  ;;  %v21925_v4 = vsub.f32 %v32149_v15, %v33372_v55  ;;  %21989 = vmatprep.subr.mxu0 %v31868_v44 }
0x1264   :  { %21903 = vmatpush1.msra.mxu1 %v21902_v39  ;;  %v21920_v41 = vand.u32 4294901760, %v21919_v46  ;;  %v21931_v51 = vsub.f32 %v32157_v0, %v33371_v43  ;;  %v33374_v10 = vand.u32 4294901760, %v32174_v63 }
0x1265   :  { %21909 = vmatprep.subr.mxu1 %v21908_v54  ;;  %v21926_v39 = vand.u32 4294901760, %v21925_v4 }
0x1266   :  { %21915 = vmatpush1.msra.mxu1 %v21914_v29  ;;  %v21932_v3 = vand.u32 4294901760, %v21931_v51  ;;  %v21937_v57 = vsub.f32 %v32174_v63, %v33374_v10  ;;  %v23560_v51 = vld [vmem:[%s32962_s9 + $0x1] ss:$0 sm:$0xff] }
0x1267   :  { %21921 = vmatprep.subr.mxu1 %v21920_v41  ;;  %v33916_v10 = vld [vmem:[#allocation48_spill] sm:$0xff] }
0x1268   :  { %21927 = vmatpush1.msra.mxu1 %v21926_v39  ;;  %v21938_v54 = vand.u32 4294901760, %v21937_v57 }
0x1269   :  { %21933 = vmatprep.subr.mxu1 %v21932_v3  ;;  %v23561_v3 = vld [vmem:[%s32963_s10 + $0x1] ss:$0 sm:$0xff] }
0x126a   :  { %21939 = vmatpush1.msra.mxu1 %v21938_v54 }
0x126b   :  { %22133 = vmatprep.subr.mxu1 %v31855_v35 }
0x12d3   :  { %v21556_v46 = vpop.xlane.xlu0 %21555 }
0x12d4   :  { %v21559_v43 = vmul.f32 0.0078125, %v21556_v46 }
0x12d6   :  { %v21561_v55 = vadd.f32 1e-05, %v21559_v43 }
0x12d7   :  { %v21558_v49 = vpop.xlane.xlu0 %21557 }
0x12d8   :  { %26728 = vrsqrt.f32 %v21561_v55  ;;  %v21560_v29 = vmul.f32 0.0078125, %v21558_v49 }
0x12da   :  { %v21562_v4 = vadd.f32 1e-05, %v21560_v29 }
0x12dc   :  { %26730 = vrsqrt.f32 %v21562_v4 }
0x12e5   :  { %v26729_v41 = vpop.eup %26728 }
0x12e6   :  { %v21565_v39 = vmul.f32 %v26729_v41, %v31925_v20 }
0x12e8   :  { %v21573_v57 = vmul.f32 %v23560_v51, %v21565_v39 }
0x12e9   :  { %v26731_v54 = vpop.eup %26730 }
0x12ea   :  { %v21566_v43 = vmul.f32 %v26731_v54, %v31928_v6  ;;  %v32194_v46 = vadd.f32 %v23561_v3, %v21573_v57 }
0x12ec   :  { %33906 = vst [vmem:[#allocation29_spill] sm:$0xff] %v32194_v46  ;;  %v32197_v55 = vand.u32 4294901760, %v32194_v46  ;;  %v21574_v49 = vmul.f32 %v23560_v51, %v21566_v43  ;;  %v33910_v43 = vld [vmem:[#allocation35_spill] sm:$0xff] }
0x12ee   :  { %33907 = vst [vmem:[#allocation26_spill] sm:$0xff] %v32197_v55  ;;  %21974 = vmatmul.mubr.f32.vlgmr.msra.gmra.mxu1 %v32197_v55  ;;  %v32200_v29 = vadd.f32 %v23561_v3, %v21574_v49  ;;  %v32204_v20 = vsub.f32 %v32194_v46, %v32197_v55  ;;  %v33911_v49 = vld [vmem:[#allocation42_spill] sm:$0xff]  ;;  %v33922_v55 = vld [vmem:[#allocation52_spill] sm:$0xff] }
0x12ef   :  { %22135 = vmatpush1.msra.mxu1 %v31857_v53  ;;  %21979 = vmatprep.mubr.f32.mxu1 %v33884_v59  ;;  %v33920_v46 = vld [vmem:[#allocation22_spill] sm:$0xff] }
0x12f0   :  { %33908 = vst [vmem:[#allocation39_spill] sm:$0xff] %v32200_v29  ;;  %22137 = vmatprep.subr.mxu1 %v31859_v60  ;;  %v32210_v6 = vand.u32 4294901760, %v32200_v29  ;;  %v33376_v4 = vand.u32 4294901760, %v32204_v20 }
0x12f1   :  { %22139 = vmatpush1.msra.mxu1 %v31861_v33 }
0x12f2   :  { %33909 = vst [vmem:[#allocation41_spill] sm:$0xff] %v32210_v6  ;;  %22141 = vmatprep.subr.mxu1 %v31863_v23  ;;  %21981 = vmatmul.mubr.f32.gmra.mxu1 %v32210_v6  ;;  %v21729_v41 = vsub.f32 %v32204_v20, %v33376_v4  ;;  %v32221_v51 = vsub.f32 %v32200_v29, %v32210_v6  ;;  %v33918_v4 = vld [vmem:[#allocation50_spill] sm:$0xff]  ;;  %v33919_v29 = vld [vmem:[#allocation51_spill] sm:$0xff]  ;;  %v33921_v6 = vld [vmem:[#allocation25_spill] sm:$0xff] }
0x12f3   :  { %22143 = vmatpush1.msra.mxu1 %v31865_v18  ;;  %22228 = vmatprep.mubr.f32.mxu1 %v33884_v59 }
0x12f4   :  { %22145 = vmatprep.subr.mxu1 %v31876_v21  ;;  %v21730_v39 = vand.u32 4294901760, %v21729_v41  ;;  %v33375_v3 = vand.u32 4294901760, %v32221_v51  ;;  %v33912_v41 = vld [vmem:[#allocation38_spill] sm:$0xff] }
0x12f5   :  { %22147 = vmatpush1.msra.mxu1 %v31934_v8 }
0x12f6   :  { %22149 = vmatprep.subr.mxu1 %v31936_v12  ;;  %21731 = vmatmul.mubr.f32.vlgmr.msra.gmra.mxu0 %v21730_v39  ;;  %v21740_v57 = vsub.f32 %v32221_v51, %v33375_v3  ;;  %v33913_v39 = vld [vmem:[#allocation44_spill] sm:$0xff] }
0x12f7   :  { %21992 = vmatpush1.msra.mxu0 %v31871_v17  ;;  %22151 = vmatpush1.msra.mxu1 %v31941_v58  ;;  %v33917_v3 = vld [vmem:[#allocation24_spill] sm:$0xff] }
0x12f8   :  { %21995 = vmatprep.subr.mxu0 %v31874_v22  ;;  %22153 = vmatprep.subr.mxu1 %v31947_v14  ;;  %v21741_v54 = vand.u32 4294901760, %v21740_v57  ;;  %v33914_v57 = vld [vmem:[#allocation46_spill] sm:$0xff] }
0x12f9   :  { %21998 = vmatpush1.msra.mxu0 %v31880_v62  ;;  %22155 = vmatpush1.msra.mxu1 %v31954_v38 }
0x12fa   :  { %21736 = vmatprep.mubr.f32.mxu0 %v33884_v59  ;;  %22001 = vmatprep.subr.mxu0 %v31883_v26 }
0x12fb   :  { %22157 = vmatprep.subr.mxu1 %v31961_v52  ;;  %21742 = vmatmul.mubr.f32.gmra.mxu0 %v21741_v54  ;;  %v33915_v54 = vld [vmem:[#allocation53_spill] sm:$0xff] }
0x12fc   :  { %22004 = vmatpush1.msra.mxu0 %v31886_v27  ;;  %22159 = vmatpush1.msra.mxu1 %v31971_v36 }
0x12fd   :  { %22007 = vmatprep.subr.mxu0 %v31893_v13  ;;  %22161 = vmatprep.subr.mxu1 %v31981_v2 }
0x12fe   :  { %22010 = vmatpush1.msra.mxu0 %v31939_v61  ;;  %22163 = vmatpush1.msra.mxu1 %v32004_v48 }
0x12ff   :  { %22013 = vmatprep.subr.mxu0 %v31945_v19  ;;  %22165 = vmatprep.subr.mxu1 %v32010_v42 }
0x1300   :  { %22016 = vmatpush1.msra.mxu0 %v31952_v16  ;;  %22167 = vmatpush1.msra.mxu1 %v32018_v47 }
0x1301   :  { %22019 = vmatprep.subr.mxu0 %v31959_v37  ;;  %22169 = vmatprep.subr.mxu1 %v32027_v9 }
0x1302   :  { %22022 = vmatpush1.msra.mxu0 %v31969_v7  ;;  %22171 = vmatpush1.msra.mxu1 %v32034_v30 }
0x1303   :  { %22025 = vmatprep.subr.mxu0 %v31979_v28  ;;  %22173 = vmatprep.subr.mxu1 %v32041_v31 }
0x1304   :  { %22028 = vmatpush1.msra.mxu0 %v31989_v40  ;;  %22175 = vmatpush1.msra.mxu1 %v32051_v56 }
0x1305   :  { %22031 = vmatprep.subr.mxu0 %v31997_v45  ;;  %22177 = vmatprep.subr.mxu1 %v32061_v1 }
0x1306   :  { %22034 = vmatpush1.msra.mxu0 %v32016_v34  ;;  %22179 = vmatpush1.msra.mxu1 %v33910_v43 }
0x1307   :  { %22037 = vmatprep.subr.mxu0 %v33911_v49  ;;  %22181 = vmatprep.subr.mxu1 %v33912_v41 }
0x1308   :  { %22040 = vmatpush1.msra.mxu0 %v33913_v39  ;;  %22183 = vmatpush1.msra.mxu1 %v32098_v50 }
0x1309   :  { %22043 = vmatprep.subr.mxu0 %v33914_v57  ;;  %22185 = vmatprep.subr.mxu1 %v33915_v54  ;;  %v33923_v54 = vld [vmem:[#allocation54_spill] sm:$0xff] }
0x130a   :  { %22046 = vmatpush1.msra.mxu0 %v33916_v10  ;;  %22187 = vmatpush1.msra.mxu1 %v33917_v3  ;;  %v33924_v3 = vand.u32 4294901760, %v32204_v20 }
0x130b   :  { %22049 = vmatprep.subr.mxu0 %v33918_v4  ;;  %22189 = vmatprep.subr.mxu1 %v32121_v25  ;;  %v33925_v25 = vld [vmem:[#allocation19_spill] sm:$0xff] }
0x130c   :  { %22052 = vmatpush1.msra.mxu0 %v33919_v29  ;;  %22191 = vmatpush1.msra.mxu1 %v33920_v46  ;;  %v33926_v46 = vld [vmem:[#allocation31_spill] sm:$0xff] }
0x130d   :  { %22055 = vmatprep.subr.mxu0 %v33921_v6  ;;  %22193 = vmatprep.subr.mxu1 %v32141_v5 }
0x130e   :  { %22058 = vmatpush1.msra.mxu0 %v33922_v55  ;;  %22195 = vmatpush1.msra.mxu1 %v32164_v11 }
0x130f   :  { %22061 = vmatprep.subr.mxu0 %v33923_v54  ;;  %22232 = vmatmul.mubr.f32.vlgmr.msra.gmra.mxu1 %v33924_v3  ;;  %v33927_v3 = vand.u32 4294901760, %v32221_v51 }
0x1310   :  { %22423 = vmatprep.subr.mxu1 %v31855_v35  ;;  %22064 = vmatpush1.msra.mxu0 %v33925_v25  ;;  %v33928_v35 = vand.u32 4294901760, %v31868_v44  ;;  %v33934_v44 = vand.u32 4294901760, %v31893_v13  ;;  %v33941_v13 = vand.u32 4294901760, %v31989_v40  ;;  %v33958_v40 = vand.u32 4294901760, %v33925_v25 }
0x1311   :  { %22425 = vmatpush1.msra.mxu1 %v31857_v53  ;;  %22067 = vmatprep.subr.mxu0 %v33926_v46  ;;  %v33929_v53 = vand.u32 4294901760, %v31871_v17  ;;  %v33935_v17 = vand.u32 4294901760, %v31939_v61  ;;  %v33944_v61 = vand.u32 4294901760, %v33911_v49  ;;  %v33965_v25 = vand.u32 4294901760, %v32174_v63 }
0x1312   :  { %22427 = vmatprep.subr.mxu1 %v31859_v60  ;;  %22070 = vmatpush1.msra.mxu0 %v32129_v24  ;;  %v33930_v60 = vand.u32 4294901760, %v31874_v22  ;;  %v33936_v22 = vand.u32 4294901760, %v31945_v19  ;;  %v33946_v19 = vand.u32 4294901760, %v33914_v57 }
0x1313   :  { %22237 = vmatprep.mubr.f32.mxu1 %v33884_v59  ;;  %22429 = vmatpush1.msra.mxu1 %v31861_v33  ;;  %v33931_v33 = vand.u32 4294901760, %v31880_v62  ;;  %v33938_v62 = vand.u32 4294901760, %v31959_v37  ;;  %v33951_v37 = vld [vmem:[#allocation32_spill] sm:$0xff] }
0x1314   :  { %22073 = vmatprep.subr.mxu0 %v32139_v32  ;;  %22241 = vmatmul.mubr.f32.gmra.mxu1 %v33927_v3 }
0x1315   :  { %22431 = vmatprep.subr.mxu1 %v31863_v23  ;;  %22076 = vmatpush1.msra.mxu0 %v32149_v15  ;;  %v33932_v23 = vand.u32 4294901760, %v31883_v26  ;;  %v33939_v26 = vand.u32 4294901760, %v31969_v7  ;;  %v33953_v7 = vld [vmem:[#allocation22_spill] sm:$0xff] }
0x1316   :  { %22433 = vmatpush1.msra.mxu1 %v31865_v18  ;;  %22079 = vmatprep.subr.mxu0 %v32157_v0  ;;  %v33933_v18 = vand.u32 4294901760, %v31886_v27  ;;  %v33940_v27 = vand.u32 4294901760, %v31979_v28  ;;  %v33956_v28 = vand.u32 4294901760, %v33923_v54 }
0x1317   :  { %22435 = vmatprep.subr.mxu1 %v31876_v21  ;;  %22082 = vmatpush1.msra.mxu0 %v32174_v63  ;;  %v33937_v21 = vand.u32 4294901760, %v31952_v16  ;;  %v33949_v16 = vld [vmem:[#allocation24_spill] sm:$0xff]  ;;  %v22567_v63 = vld [vmem:[#allocation7 + $0x1e8] sm:$0xff] }
0x1318   :  { %22115 = vmatprep.mubr.f32.mxu0 %v33884_v59  ;;  %22437 = vmatpush1.msra.mxu1 %v31934_v8  ;;  %v33942_v8 = vand.u32 4294901760, %v31997_v45  ;;  %v33959_v45 = vand.u32 4294901760, %v33926_v46 }
0x1319   :  { %22118 = vmatmul.mubr.f32.vlgmr.msra.gmra.mxu0 %v32204_v20  ;;  %22250 = vmatprep.subr.mxu0 %v33928_v35 }
0x131a   :  { %22439 = vmatprep.subr.mxu1 %v31936_v12  ;;  %22254 = vmatpush1.msra.mxu0 %v33929_v53  ;;  %v33943_v12 = vand.u32 4294901760, %v32016_v34  ;;  %v33963_v34 = vand.u32 4294901760, %v32149_v15  ;;  %v22568_v15 = vld [vmem:[#allocation7 + $0x1f0] sm:$0xff] }
0x131b   :  { %22441 = vmatpush1.msra.mxu1 %v31941_v58  ;;  %22258 = vmatprep.subr.mxu0 %v33930_v60  ;;  %v33945_v58 = vand.u32 4294901760, %v33913_v39  ;;  %v22565_v60 = vld [vmem:[#allocation7 + $0x1d8] sm:$0xff] }
0x131c   :  { %22443 = vmatprep.subr.mxu1 %v31947_v14  ;;  %22123 = vmatprep.mubr.f32.mxu0 %v33884_v59  ;;  %v33947_v14 = vld [vmem:[#allocation53_spill] sm:$0xff] }
0x131d   :  { %22262 = vmatpush1.msra.mxu0 %v33931_v33  ;;  %22445 = vmatpush1.msra.mxu1 %v31954_v38  ;;  %v33950_v38 = vand.u32 4294901760, %v33918_v4 }
0x131e   :  { %22126 = vmatmul.mubr.f32.gmra.mxu0 %v32221_v51  ;;  %22266 = vmatprep.subr.mxu0 %v33932_v23  ;;  %v22566_v51 = vld [vmem:[#allocation7 + $0x1e0] sm:$0xff] }
0x131f   :  { %22447 = vmatprep.subr.mxu1 %v31961_v52  ;;  %22270 = vmatpush1.msra.mxu0 %v33933_v18  ;;  %v33952_v52 = vand.u32 4294901760, %v33919_v29  ;;  %v22551_v29 = vld [vmem:[#allocation7 + $0x168] sm:$0xff]  ;;  %v32437_v57 = vand.u32 4294901760, %v22566_v51 }
0x1320   :  { %22449 = vmatpush1.msra.mxu1 %v31971_v36  ;;  %22274 = vmatprep.subr.mxu0 %v33934_v44  ;;  %v33954_v36 = vand.u32 4294901760, %v33921_v6  ;;  %v32427_v4 = vand.u32 4294901760, %v22551_v29 }
0x1321   :  { %22451 = vmatprep.subr.mxu1 %v31981_v2  ;;  %22278 = vmatpush1.msra.mxu0 %v33935_v17  ;;  %v33957_v2 = vld [vmem:[#allocation26_spill] sm:$0xff]  ;;  %v32455_v44 = vsub.f32 %v22566_v51, %v32437_v57  ;;  %v22549_v17 = vld [vmem:[#allocation7 + $0x158] sm:$0xff] }
0x1322   :  { %22453 = vmatpush1.msra.mxu1 %v32004_v48  ;;  %22282 = vmatprep.subr.mxu0 %v33936_v22  ;;  %v33961_v48 = vand.u32 4294901760, %v32139_v32  ;;  %v32407_v32 = vand.u32 4294901760, %v22568_v15  ;;  %v32445_v35 = vsub.f32 %v22551_v29, %v32427_v4 }
0x1323   :  { %22455 = vmatprep.subr.mxu1 %v32010_v42  ;;  %22286 = vmatpush1.msra.mxu0 %v33937_v21  ;;  %v33962_v42 = vld [vmem:[#allocation41_spill] sm:$0xff] }
0x1324   :  { %22457 = vmatpush1.msra.mxu1 %v32018_v47  ;;  %22290 = vmatprep.subr.mxu0 %v33938_v62  ;;  %v33964_v47 = vand.u32 4294901760, %v32157_v0  ;;  %v22552_v0 = vld [vmem:[#allocation7 + $0x170] sm:$0xff]  ;;  %v32418_v46 = vsub.f32 %v22568_v15, %v32407_v32  ;;  %v33395_v62 = vand.u32 4294901760, %v32445_v35 }
0x1325   :  { %22459 = vmatprep.subr.mxu1 %v32027_v9  ;;  %22294 = vmatpush1.msra.mxu0 %v33939_v26  ;;  %v22569_v9 = vld [vmem:[#allocation7 + $0x1f8] sm:$0xff] }
0x1326   :  { %22461 = vmatpush1.msra.mxu1 %v32034_v30  ;;  %22298 = vmatprep.subr.mxu0 %v33940_v27  ;;  %v32400_v30 = vand.u32 4294901760, %v22569_v9  ;;  %v22564_v27 = vld [vmem:[#allocation7 + $0x1d0] sm:$0xff] }
0x1327   :  { %22463 = vmatprep.subr.mxu1 %v32041_v31  ;;  %22302 = vmatpush1.msra.mxu0 %v33941_v13  ;;  %v33948_v31 = vand.u32 4294901760, %v33916_v10 }
0x1328   :  { %22465 = vmatpush1.msra.mxu1 %v32051_v56  ;;  %22306 = vmatprep.subr.mxu0 %v33942_v8  ;;  %33966 = vst [vmem:[#allocation12_spill] sm:$0xff] %v32400_v30  ;;  %v22553_v56 = vld [vmem:[#allocation7 + $0x178] sm:$0xff] }
0x1329   :  { %22467 = vmatprep.subr.mxu1 %v32061_v1  ;;  %22310 = vmatpush1.msra.mxu0 %v33943_v12  ;;  %v33955_v1 = vand.u32 4294901760, %v33922_v55  ;;  %v32420_v55 = vand.u32 4294901760, %v22567_v63  ;;  %v33394_v12 = vand.u32 4294901760, %v32455_v44 }
0x132a   :  { %22469 = vmatpush1.msra.mxu1 %v33910_v43  ;;  %22314 = vmatprep.subr.mxu0 %v33944_v61  ;;  %v22550_v43 = vld [vmem:[#allocation7 + $0x160] sm:$0xff]  ;;  %v32470_v61 = vand.u32 4294901760, %v22565_v60 }
0x132b   :  { %22471 = vmatprep.subr.mxu1 %v33912_v41  ;;  %22318 = vmatpush1.msra.mxu0 %v33945_v58  ;;  %v33399_v41 = vand.u32 4294901760, %v32418_v46  ;;  %v32435_v39 = vsub.f32 %v22567_v63, %v32420_v55  ;;  %v32447_v53 = vand.u32 4294901760, %v22550_v43  ;;  %v22548_v58 = vld [vmem:[#allocation7 + $0x150] sm:$0xff] }
0x132c   :  { %22473 = vmatpush1.msra.mxu1 %v32098_v50  ;;  %22322 = vmatprep.subr.mxu0 %v33946_v19  ;;  %v32402_v50 = vand.u32 4294901760, %v22553_v56 }
0x132d   :  { %22475 = vmatprep.subr.mxu1 %v33947_v14  ;;  %22326 = vmatpush1.msra.mxu0 %v33948_v31  ;;  %v22828_v23 = vsub.f32 %v32418_v46, %v33399_v41  ;;  %v33397_v18 = vand.u32 4294901760, %v32435_v39  ;;  %v32463_v26 = vsub.f32 %v22550_v43, %v32447_v53  ;;  %v22723_v14 = vsub.f32 %v32445_v35, %v33395_v62  ;;  %v22556_v41 = vld [vmem:[#allocation7 + $0x190] sm:$0xff] }
0x132e   :  { %22477 = vmatpush1.msra.mxu1 %v33949_v16  ;;  %22330 = vmatprep.subr.mxu0 %v33950_v38  ;;  %v32476_v16 = vand.u32 4294901760, %v22549_v17  ;;  %v22563_v38 = vld [vmem:[#allocation7 + $0x1c8] sm:$0xff] }
0x132f   :  { %22479 = vmatprep.subr.mxu1 %v33951_v37  ;;  %22334 = vmatpush1.msra.mxu0 %v33952_v52  ;;  %v22829_v13 = vand.u32 4294901760, %v22828_v23  ;;  %v22835_v8 = vsub.f32 %v32435_v39, %v33397_v18  ;;  %v33393_v31 = vand.u32 4294901760, %v32463_v26  ;;  %v22842_v52 = vsub.f32 %v32455_v44, %v33394_v12  ;;  %v22561_v23 = vld [vmem:[#allocation7 + $0x1b8] sm:$0xff] }
0x1330   :  { %22481 = vmatpush1.msra.mxu1 %v33953_v7  ;;  %22338 = vmatprep.subr.mxu0 %v33954_v36  ;;  %v32482_v7 = vsub.f32 %v22565_v60, %v32470_v61  ;;  %v32484_v36 = vand.u32 4294901760, %v22564_v27 }
0x1331   :  { %22483 = vmatprep.subr.mxu1 %v32141_v5  ;;  %22342 = vmatpush1.msra.mxu0 %v33955_v1  ;;  %v33960_v5 = vand.u32 4294901760, %v32129_v24  ;;  %v32405_v24 = vsub.f32 %v22569_v9, %v32400_v30  ;;  %v22836_v37 = vand.u32 4294901760, %v22835_v8  ;;  %v22547_v1 = vld [vmem:[#allocation7 + $0x148] sm:$0xff] }
0x1332   :  { %22485 = vmatpush1.msra.mxu1 %v32164_v11  ;;  %22518 = vmatprep.mubr.f32.mxu1 %v33884_v59  ;;  %v32411_v11 = vsub.f32 %v22553_v56, %v32402_v50 }
0x1333   :  { %22346 = vmatprep.subr.mxu0 %v33956_v28  ;;  %22520 = vmatmul.mubr.f32.vlgmr.msra.gmra.mxu1 %v33957_v2  ;;  %33967 = vst [vmem:[#allocation15_spill] sm:$0xff] %v32405_v24  ;;  %v33402_v10 = vand.u32 4294901760, %v32405_v24  ;;  %v22724_v28 = vand.u32 4294901760, %v22723_v14 }
0x1334   :  { %22350 = vmatpush1.msra.mxu0 %v33958_v40  ;;  %22525 = vmatprep.mubr.f32.mxu1 %v33884_v59  ;;  %v33401_v20 = vand.u32 4294901760, %v32411_v11  ;;  %v32491_v40 = vsub.f32 %v22549_v17, %v32476_v16 }
0x1335   :  { %22354 = vmatprep.subr.mxu0 %v33959_v45  ;;  %22407 = vmatprep.mubr.f32.mxu0 %v33884_v59  ;;  %v22821_v49 = vsub.f32 %v32405_v24, %v33402_v10  ;;  %v32493_v45 = vand.u32 4294901760, %v22548_v58  ;;  %v22540_v10 = vld [vmem:[#allocation7 + $0x110] sm:$0xff] }
0x1336   :  { %22358 = vmatpush1.msra.mxu0 %v33960_v5  ;;  %v22709_v54 = vsub.f32 %v32411_v11, %v33401_v20  ;;  %v22562_v5 = vld [vmem:[#allocation7 + $0x1c0] sm:$0xff]  ;;  %v33390_v56 = vand.u32 4294901760, %v32491_v40 }
0x1337   :  { %22362 = vmatprep.subr.mxu0 %v33961_v48  ;;  %22527 = vmatmul.mubr.f32.gmra.mxu1 %v33962_v42  ;;  %v22822_v33 = vand.u32 4294901760, %v22821_v49  ;;  %v22843_v48 = vand.u32 4294901760, %v22842_v52  ;;  %v32505_v15 = vsub.f32 %v22548_v58, %v32493_v45  ;;  %v32517_v43 = vand.u32 4294901760, %v22562_v5 }
0x1338   :  { %22366 = vmatpush1.msra.mxu0 %v33963_v34  ;;  %v22710_v22 = vand.u32 4294901760, %v22709_v54  ;;  %v32498_v34 = vsub.f32 %v22564_v27, %v32484_v36  ;;  %v22737_v49 = vsub.f32 %v32491_v40, %v33390_v56 }
0x1339   :  { %22370 = vmatprep.subr.mxu0 %v33964_v47  ;;  %24651 = vmatprep.subr.mxu1 %v22822_v33  ;;  %v32500_v47 = vand.u32 4294901760, %v22563_v38  ;;  %v33387_v54 = vand.u32 4294901760, %v32505_v15  ;;  %v32535_v27 = vsub.f32 %v22562_v5, %v32517_v43 }
0x133a   :  { %22374 = vmatpush1.msra.mxu0 %v33965_v25  ;;  %24652 = vmatpush3.msra.mxu1 %v22710_v22  ;;  %v22546_v25 = vld [vmem:[#allocation7 + $0x140] sm:$0xff]  ;;  %v33388_v29 = vand.u32 4294901760, %v32498_v34  ;;  %v22738_v8 = vand.u32 4294901760, %v22737_v49 }
0x133b   :  { %22409 = vmatmul.mubr.f32.vlgmr.msra.gmra.mxu0 %v33957_v2  ;;  %24613 = vmatprep.subr.mxu0 %v32400_v30  ;;  %v22730_v2 = vsub.f32 %v32463_v26, %v33393_v31  ;;  %v32515_v51 = vsub.f32 %v22563_v38, %v32500_v47  ;;  %v32527_v33 = vand.u32 4294901760, %v22546_v25  ;;  %33970 = vst [vmem:[#allocation34_spill] sm:$0xff] %v32535_v27  ;;  %v22560_v38 = vld [vmem:[#allocation7 + $0x1b0] sm:$0xff]  ;;  %v22557_v31 = vld [vmem:[#allocation7 + $0x198] sm:$0xff] }
0x133c   :  { %22414 = vmatprep.mubr.f32.mxu0 %v33884_v59  ;;  %v32413_v59 = vand.u32 4294901760, %v22552_v0  ;;  %24614 = vmatpush3.msra.mxu0 %v32402_v50  ;;  %v22856_v22 = vsub.f32 %v32498_v34, %v33388_v29  ;;  %v22744_v58 = vsub.f32 %v32505_v15, %v33387_v54  ;;  %v32630_v20 = vand.u32 4294901760, %v22557_v31 }
0x133d   :  { %24615 = vmatprep.subr.mxu0 %v32407_v32  ;;  %24653 = vmatprep.subr.mxu1 %v22829_v13  ;;  %v22731_v9 = vand.u32 4294901760, %v22730_v2  ;;  %33968 = vst [vmem:[#allocation17_spill] sm:$0xff] %v32515_v51  ;;  %v22545_v13 = vld [vmem:[#allocation7 + $0x138] sm:$0xff]  ;;  %v32543_v14 = vsub.f32 %v22546_v25, %v32527_v33  ;;  %v22544_v2 = vld [vmem:[#allocation7 + $0x130] sm:$0xff] }
0x133e   :  { %v32425_v6 = vsub.f32 %v22552_v0, %v32413_v59  ;;  %24616 = vmatpush3.msra.mxu0 %v32413_v59  ;;  %v32507_v0 = vand.u32 4294901760, %v22547_v1  ;;  %v22745_v5 = vand.u32 4294901760, %v22744_v58  ;;  %v22543_v58 = vld [vmem:[#allocation7 + $0x128] sm:$0xff]  ;;  %33985 = vst [vmem:[#allocation23_spill] sm:$0xff] %v32630_v20 }
0x133f   :  { %22416 = vmatmul.mubr.f32.gmra.mxu0 %v33962_v42  ;;  %24617 = vmatprep.subr.mxu0 %v32420_v55  ;;  %v33391_v42 = vand.u32 4294901760, %v32482_v7  ;;  %33971 = vst [vmem:[#allocation18_spill] sm:$0xff] %v32543_v14  ;;  %v33389_v25 = vand.u32 4294901760, %v32543_v14 }
0x1340   :  { %v33398_v3 = vand.u32 4294901760, %v32425_v6  ;;  %24618 = vmatpush3.msra.mxu0 %v32427_v4  ;;  %v32525_v60 = vsub.f32 %v22547_v1, %v32507_v0  ;;  %v33386_v1 = vand.u32 4294901760, %v32535_v27 }
0x1341   :  { %24619 = vmatprep.subr.mxu0 %v32437_v57  ;;  %v22849_v63 = vsub.f32 %v32482_v7, %v33391_v42  ;;  %v32587_v42 = vand.u32 4294901760, %v22543_v58 }
0x1342   :  { %v22716_v21 = vsub.f32 %v32425_v6, %v33398_v3  ;;  %24620 = vmatpush3.msra.mxu0 %v32447_v53  ;;  %33969 = vst [vmem:[#allocation33_spill] sm:$0xff] %v32525_v60 }
0x1343   :  { %24621 = vmatprep.subr.mxu0 %v32470_v61  ;;  %v22850_v17 = vand.u32 4294901760, %v22849_v63  ;;  %v22559_v63 = vld [vmem:[#allocation7 + $0x1a8] sm:$0xff]  ;;  %33978 = vst [vmem:[#allocation20_spill] sm:$0xff] %v32587_v42 }
0x1344   :  { %v22717_v19 = vand.u32 4294901760, %v22716_v21  ;;  %24622 = vmatpush3.msra.mxu0 %v32476_v16  ;;  %v33385_v21 = vand.u32 4294901760, %v32515_v51 }
0x1345   :  { %24623 = vmatprep.subr.mxu0 %v32484_v36 }
0x1346   :  { %24654 = vmatpush3.msra.mxu1 %v22717_v19  ;;  %24624 = vmatpush3.msra.mxu0 %v32493_v45  ;;  %v33384_v19 = vand.u32 4294901760, %v32525_v60  ;;  %v22863_v52 = vsub.f32 %v32515_v51, %v33385_v21  ;;  %v22758_v21 = vsub.f32 %v32543_v14, %v33389_v25 }
0x1347   :  { %24655 = vmatprep.subr.mxu1 %v22836_v37  ;;  %24625 = vmatprep.subr.mxu0 %v32500_v47  ;;  %v22857_v37 = vand.u32 4294901760, %v22856_v22 }
0x1348   :  { %24656 = vmatpush3.msra.mxu1 %v22724_v28  ;;  %24626 = vmatpush3.msra.mxu0 %v32507_v0  ;;  %v32550_v28 = vand.u32 4294901760, %v22561_v23  ;;  %v22864_v49 = vand.u32 4294901760, %v22863_v52  ;;  %v32573_v52 = vand.u32 4294901760, %v22544_v2 }
0x1349   :  { %24657 = vmatprep.subr.mxu1 %v22843_v48  ;;  %24627 = vmatprep.subr.mxu0 %v32517_v43  ;;  %v22751_v48 = vsub.f32 %v32525_v60, %v33384_v19 }
0x134a   :  { %24658 = vmatpush3.msra.mxu1 %v22731_v9  ;;  %24628 = vmatpush3.msra.mxu0 %v32527_v33  ;;  %v32556_v9 = vand.u32 4294901760, %v22545_v13  ;;  %v32562_v22 = vsub.f32 %v22561_v23, %v32550_v28  ;;  %33974 = vst [vmem:[#allocation30_spill] sm:$0xff] %v32573_v52  ;;  %v32585_v56 = vsub.f32 %v22544_v2, %v32573_v52 }
0x134b   :  { %24659 = vmatprep.subr.mxu1 %v22850_v17  ;;  %v22870_v17 = vsub.f32 %v32535_v27, %v33386_v1  ;;  %24629 = vmatprep.subr.mxu0 %v32550_v28  ;;  %v22752_v19 = vand.u32 4294901760, %v22751_v48  ;;  %v22558_v1 = vld [vmem:[#allocation7 + $0x1a0] sm:$0xff] }
0x134c   :  { %24660 = vmatpush3.msra.mxu1 %v22738_v8  ;;  %33972 = vst [vmem:[#allocation36_spill] sm:$0xff] %v32562_v22  ;;  %v32564_v8 = vand.u32 4294901760, %v22560_v38  ;;  %24630 = vmatpush3.msra.mxu0 %v32556_v9  ;;  %v33392_v54 = vand.u32 4294901760, %v32562_v22  ;;  %v22542_v48 = vld [vmem:[#allocation7 + $0x120] sm:$0xff]  ;;  %33977 = vst [vmem:[#allocation45_spill] sm:$0xff] %v32585_v56  ;;  %v33403_v2 = vand.u32 4294901760, %v32585_v56 }
0x134d   :  { %24661 = vmatprep.subr.mxu1 %v22857_v37  ;;  %v32571_v37 = vsub.f32 %v22545_v13, %v32556_v9  ;;  %v22871_v23 = vand.u32 4294901760, %v22870_v17  ;;  %v22759_v13 = vand.u32 4294901760, %v22758_v21  ;;  %v32597_v21 = vand.u32 4294901760, %v22558_v1 }
0x134e   :  { %24662 = vmatpush3.msra.mxu1 %v22745_v5  ;;  %v32578_v29 = vsub.f32 %v22560_v38, %v32564_v8  ;;  %v32580_v5 = vand.u32 4294901760, %v22559_v63  ;;  %24631 = vmatprep.subr.mxu0 %v32564_v8  ;;  %v22877_v38 = vsub.f32 %v32562_v22, %v33392_v54  ;;  %v32607_v54 = vand.u32 4294901760, %v22542_v48 }
0x134f   :  { %33973 = vst [vmem:[#allocation37_spill] sm:$0xff] %v32571_v37  ;;  %24663 = vmatprep.subr.mxu1 %v22864_v49  ;;  %v33396_v25 = vand.u32 4294901760, %v32571_v37  ;;  %24632 = vmatpush3.msra.mxu0 %v32573_v52  ;;  %33980 = vst [vmem:[#allocation28_spill] sm:$0xff] %v32597_v21  ;;  %v32615_v62 = vsub.f32 %v22558_v1, %v32597_v21  ;;  %v22772_v18 = vsub.f32 %v32585_v56, %v33403_v2 }
0x1350   :  { %33975 = vst [vmem:[#allocation27_spill] sm:$0xff] %v32578_v29  ;;  %33976 = vst [vmem:[#allocation43_spill] sm:$0xff] %v32580_v5  ;;  %24664 = vmatpush3.msra.mxu1 %v22752_v19  ;;  %v33400_v49 = vand.u32 4294901760, %v32578_v29  ;;  %v32595_v17 = vsub.f32 %v22559_v63, %v32580_v5  ;;  %24633 = vmatprep.subr.mxu0 %v32580_v5  ;;  %v22878_v63 = vand.u32 4294901760, %v22877_v38 }
0x1351   :  { %24665 = vmatprep.subr.mxu1 %v22871_v23  ;;  %v22765_v19 = vsub.f32 %v32571_v37, %v33396_v25  ;;  %v32605_v23 = vsub.f32 %v22543_v58, %v32587_v42  ;;  %33982 = vst [vmem:[#allocation21_spill] sm:$0xff] %v32607_v54  ;;  %24634 = vmatpush3.msra.mxu0 %v32587_v42  ;;  %33983 = vst [vmem:[#allocation40_spill] sm:$0xff] %v32615_v62  ;;  %v22541_v25 = vld [vmem:[#allocation7 + $0x118] sm:$0xff]  ;;  %v22773_v2 = vand.u32 4294901760, %v22772_v18  ;;  %v22539_v18 = vld [vmem:[#allocation7 + $0x108] sm:$0xff] }
0x1352   :  { %33979 = vst [vmem:[#allocation47_spill] sm:$0xff] %v32595_v17  ;;  %24666 = vmatpush3.msra.mxu1 %v22759_v13  ;;  %v22884_v12 = vsub.f32 %v32578_v29, %v33400_v49  ;;  %v33408_v13 = vand.u32 4294901760, %v32595_v17  ;;  %24635 = vmatprep.subr.mxu0 %v32597_v21  ;;  %v32623_v38 = vsub.f32 %v22542_v48, %v32607_v54  ;;  %v32636_v29 = vand.u32 4294901760, %v22541_v25 }
0x1353   :  { %33981 = vst [vmem:[#allocation49_spill] sm:$0xff] %v32605_v23  ;;  %v22766_v58 = vand.u32 4294901760, %v22765_v19  ;;  %v33411_v3 = vand.u32 4294901760, %v32605_v23  ;;  %24636 = vmatpush3.msra.mxu0 %v32607_v54  ;;  %24667 = vmatprep.subr.mxu1 %v22878_v63  ;;  %v33414_v19 = vand.u32 4294901760, %v32615_v62 }
0x1354   :  { %33984 = vst [vmem:[#allocation16_spill] sm:$0xff] %v32623_v38  ;;  %v22885_v49 = vand.u32 4294901760, %v22884_v12  ;;  %v22891_v1 = vsub.f32 %v32595_v17, %v33408_v13  ;;  %v33419_v56 = vand.u32 4294901760, %v32623_v38  ;;  %33986 = vst [vmem:[#allocation35_spill] sm:$0xff] %v32636_v29  ;;  %v22555_v12 = vld [vmem:[#allocation7 + $0x188] sm:$0xff]  ;;  %v32642_v17 = vsub.f32 %v22557_v31, %v32630_v20  ;;  %24637 = vmatprep.subr.mxu0 %v32630_v20 }
0x1355   :  { %24668 = vmatpush3.msra.mxu1 %v22766_v58  ;;  %v22779_v48 = vsub.f32 %v32605_v23, %v33411_v3  ;;  %v22898_v13 = vsub.f32 %v32615_v62, %v33414_v19  ;;  %v32644_v58 = vand.u32 4294901760, %v22556_v41  ;;  %v22554_v19 = vld [vmem:[#allocation7 + $0x180] sm:$0xff]  ;;  %24638 = vmatpush3.msra.mxu0 %v32636_v29 }
0x1356   :  { %24669 = vmatprep.subr.mxu1 %v22885_v49  ;;  %v22892_v63 = vand.u32 4294901760, %v22891_v1  ;;  %33987 = vst [vmem:[#allocation42_spill] sm:$0xff] %v32642_v17  ;;  %v22786_v23 = vsub.f32 %v32623_v38, %v33419_v56  ;;  %v32651_v49 = vsub.f32 %v22541_v25, %v32636_v29  ;;  %v32653_v1 = vand.u32 4294901760, %v22540_v10 }
0x1357   :  { %33988 = vst [vmem:[#allocation38_spill] sm:$0xff] %v32644_v58  ;;  %24670 = vmatpush3.msra.mxu1 %v22773_v2  ;;  %v22780_v3 = vand.u32 4294901760, %v22779_v48  ;;  %v22899_v31 = vand.u32 4294901760, %v22898_v13  ;;  %v33424_v62 = vand.u32 4294901760, %v32642_v17  ;;  %v32658_v37 = vsub.f32 %v22556_v41, %v32644_v58  ;;  %v22538_v48 = vld [vmem:[#allocation7 + $0x100] sm:$0xff]  ;;  %24639 = vmatprep.subr.mxu0 %v32644_v58 }
0x1358   :  { %33989 = vst [vmem:[#allocation44_spill] sm:$0xff] %v32651_v49  ;;  %33990 = vst [vmem:[#allocation46_spill] sm:$0xff] %v32653_v1  ;;  %24671 = vmatprep.subr.mxu1 %v22892_v63  ;;  %v32660_v2 = vand.u32 4294901760, %v22555_v12  ;;  %v22787_v25 = vand.u32 4294901760, %v22786_v23  ;;  %v33429_v56 = vand.u32 4294901760, %v32651_v49  ;;  %v32665_v38 = vsub.f32 %v22540_v10, %v32653_v1  ;;  %24640 = vmatpush3.msra.mxu0 %v32653_v1 }
0x1359   :  { %33991 = vst [vmem:[#allocation48_spill] sm:$0xff] %v32658_v37  ;;  %24672 = vmatpush3.msra.mxu1 %v22780_v3  ;;  %v32667_v29 = vand.u32 4294901760, %v22539_v18  ;;  %v22905_v41 = vsub.f32 %v32642_v17, %v33424_v62  ;;  %v33432_v13 = vand.u32 4294901760, %v32658_v37  ;;  %v32677_v3 = vand.u32 4294901760, %v22554_v19 }
0x135a   :  { %33992 = vst [vmem:[#allocation50_spill] sm:$0xff] %v32660_v2  ;;  %33993 = vst [vmem:[#allocation51_spill] sm:$0xff] %v32665_v38  ;;  %24673 = vmatprep.subr.mxu1 %v22899_v31  ;;  %v32675_v63 = vsub.f32 %v22555_v12, %v32660_v2  ;;  %24641 = vmatprep.subr.mxu0 %v32660_v2  ;;  %v22793_v10 = vsub.f32 %v32651_v49, %v33429_v56  ;;  %v33435_v23 = vand.u32 4294901760, %v32665_v38 }
0x135b   :  { %33994 = vst [vmem:[#allocation25_spill] sm:$0xff] %v32667_v29  ;;  %33996 = vst [vmem:[#allocation54_spill] sm:$0xff] %v32677_v3  ;;  %24674 = vmatpush3.msra.mxu1 %v22787_v25  ;;  %v32685_v31 = vsub.f32 %v22539_v18, %v32667_v29  ;;  %v32687_v62 = vand.u32 4294901760, %v22538_v48  ;;  %24642 = vmatpush3.msra.mxu0 %v32667_v29  ;;  %v22906_v12 = vand.u32 4294901760, %v22905_v41 }
0x135c   :  { %33995 = vst [vmem:[#allocation52_spill] sm:$0xff] %v32675_v63  ;;  %v22912_v17 = vsub.f32 %v32658_v37, %v33432_v13  ;;  %v33438_v25 = vand.u32 4294901760, %v32675_v63  ;;  %v32695_v2 = vsub.f32 %v22554_v19, %v32677_v3  ;;  %24643 = vmatprep.subr.mxu0 %v32677_v3  ;;  %v22794_v56 = vand.u32 4294901760, %v22793_v10 }
0x135d   :  { %33997 = vst [vmem:[#allocation19_spill] sm:$0xff] %v32685_v31  ;;  %33998 = vst [vmem:[#allocation31_spill] sm:$0xff] %v32687_v62  ;;  %v22800_v18 = vsub.f32 %v32665_v38, %v33435_v23  ;;  %v33439_v49 = vand.u32 4294901760, %v32685_v31  ;;  %v32703_v41 = vsub.f32 %v22538_v48, %v32687_v62  ;;  %24644 = vmatpush3.msra.mxu0 %v32687_v62  ;;  %24675 = vmatprep.subr.mxu1 %v22906_v12 }
0x135e   :  { %33999 = vst [vmem:[#allocation53_spill] sm:$0xff] %v32695_v2  ;;  %v22913_v13 = vand.u32 4294901760, %v22912_v17  ;;  %v22919_v19 = vsub.f32 %v32675_v63, %v33438_v25  ;;  %v33443_v37 = vand.u32 4294901760, %v32695_v2  ;;  %24689 = vmatprep.subr.mxu0 %v32405_v24  ;;  %24676 = vmatpush3.msra.mxu1 %v22794_v56 }
0x135f   :  { %34000 = vst [vmem:[#allocation24_spill] sm:$0xff] %v32703_v41  ;;  %v22801_v10 = vand.u32 4294901760, %v22800_v18  ;;  %v22807_v23 = vsub.f32 %v32685_v31, %v33439_v49  ;;  %v33444_v48 = vand.u32 4294901760, %v32703_v41 }
0x1360   :  { %24677 = vmatprep.subr.mxu1 %v22913_v13  ;;  %v22920_v38 = vand.u32 4294901760, %v22919_v19  ;;  %v22926_v17 = vsub.f32 %v32695_v2, %v33443_v37 }
0x1361   :  { %24678 = vmatpush3.msra.mxu1 %v22801_v10  ;;  %v22808_v12 = vand.u32 4294901760, %v22807_v23  ;;  %v22814_v25 = vsub.f32 %v32703_v41, %v33444_v48  ;;  %v23562_v23 = vld [vmem:[%s32959_s6 + $0x2] sm:$0x3] }
0x1362   :  { %24679 = vmatprep.subr.mxu1 %v22920_v38  ;;  %v22927_v56 = vand.u32 4294901760, %v22926_v17  ;;  %v34001_v17 = vld [vmem:[#allocation13_spill] sm:$0xff] }
0x1363   :  { %24680 = vmatpush3.msra.mxu1 %v22808_v12  ;;  %v22815_v18 = vand.u32 4294901760, %v22814_v25  ;;  %v21622_v12 = vrot.slane %v23562_v23, %v34001_v17 }
0x1364   :  { %24681 = vmatprep.subr.mxu1 %v22927_v56 }
0x1365   :  { %24682 = vmatpush3.msra.mxu1 %v22815_v18  ;;  %v34002_v18 = vld [vmem:[#allocation14_spill] sm:$0xff] }
0x1366   :  { %24727 = vmatprep.subr.mxu1 %v32400_v30  ;;  %v21626_v41 = vrot.slane %v23562_v23, %v34002_v18 }
0x13ae   :  { %v21975_v13 = vpop.f32.mrf.mxu1 }
0x13b0   :  { %v21977_v19 = vpop.f32.mrf.mxu1 }
0x13b2   :  { %v21982_v24 = vpop.f32.mrf.mxu1 }
0x13b4   :  { %v21984_v37 = vpop.f32.mrf.mxu1 }
0x13b6   :  { %v21732_v49 = vpop.f32.mrf.mxu0 }
0x13b7   :  { %v21733_v2 = vadd.f32 %v21732_v49, %v21622_v12 }
0x13b8   :  { %v21734_v31 = vpop.f32.mrf.mxu0 }
0x13b9   :  { %v21735_v62 = vadd.f32 %v21734_v31, %v21626_v41  ;;  %v21976_v29 = vadd.f32 %v21975_v13, %v21733_v2 }
0x13bb   :  { %v21743_v10 = vpop.f32.mrf.mxu0  ;;  %v21978_v54 = vadd.f32 %v21977_v19, %v21735_v62 }
0x13bc   :  { %v21744_v3 = vadd.f32 %v21743_v10, %v21622_v12 }
0x13bd   :  { %v21745_v38 = vpop.f32.mrf.mxu0 }
0x13be   :  { %v21746_v20 = vadd.f32 %v21745_v38, %v21626_v41  ;;  %v21983_v27 = vadd.f32 %v21982_v24, %v21744_v3 }
0x13c0   :  { %v21985_v60 = vadd.f32 %v21984_v37, %v21746_v20 }
0x13cf   :  { %v22233_v48 = vpop.f32.mrf.mxu1 }
0x13d1   :  { %v22235_v25 = vpop.f32.mrf.mxu1 }
0x13d4   :  { %v22242_v63 = vpop.f32.mrf.mxu1 }
0x13d6   :  { %v22244_v1 = vpop.f32.mrf.mxu1 }
0x13d9   :  { %v22119_v56 = vpop.f32.mrf.mxu0 }
0x13da   :  { %v22120_v22 = vadd.f32 %v22119_v56, %v21976_v29 }
0x13db   :  { %v22121_v30 = vpop.f32.mrf.mxu0 }
0x13dc   :  { %v22122_v21 = vadd.f32 %v22121_v30, %v21978_v54  ;;  %v22234_v5 = vadd.f32 %v22233_v48, %v22120_v22 }
0x13de   :  { %v22127_v58 = vpop.f32.mrf.mxu0  ;;  %v22236_v52 = vadd.f32 %v22235_v25, %v22122_v21 }
0x13df   :  { %v22128_v17 = vadd.f32 %v22127_v58, %v21983_v27 }
0x13e0   :  { %v22129_v42 = vpop.f32.mrf.mxu0 }
0x13e1   :  { %v22130_v49 = vadd.f32 %v22129_v42, %v21985_v60  ;;  %v22243_v13 = vadd.f32 %v22242_v63, %v22128_v17 }
0x13e3   :  { %v22245_v30 = vadd.f32 %v22244_v1, %v22130_v49 }
0x13f3   :  { %v22521_v14 = vpop.f32.mrf.mxu1 }
0x13f5   :  { %v22523_v51 = vpop.f32.mrf.mxu1 }
0x13f7   :  { %v22528_v12 = vpop.f32.mrf.mxu1 }
0x13f9   :  { %v22530_v37 = vpop.f32.mrf.mxu1 }
0x13fb   :  { %v22410_v23 = vpop.f32.mrf.mxu0 }
0x13fc   :  { %v22411_v18 = vadd.f32 %v22410_v23, %v22234_v5 }
0x13fd   :  { %v22412_v31 = vpop.f32.mrf.mxu0 }
0x13fe   :  { %v22522_v10 = vadd.f32 %v22521_v14, %v22411_v18  ;;  %v22413_v2 = vadd.f32 %v22412_v31, %v22236_v52 }
0x13ff   :  { %v22417_v41 = vpop.f32.mrf.mxu0 }
0x1400   :  { %v22533_v29 = vmax.f32 %v22522_v10, 0.0  ;;  %v22524_v62 = vadd.f32 %v22523_v51, %v22413_v2  ;;  %v22418_v19 = vadd.f32 %v22417_v41, %v22243_v13  ;;  %v34006_v13 = vld [vmem:[#allocation30_spill] sm:$0xff]  ;;  %v34008_v41 = vld [vmem:[#allocation43_spill] sm:$0xff] }
0x1401   :  { %v22419_v24 = vpop.f32.mrf.mxu0 }
0x1402   :  { %v32727_v54 = vand.u32 4294901760, %v22533_v29  ;;  %v22534_v20 = vmax.f32 %v22524_v62, 0.0  ;;  %v22529_v27 = vadd.f32 %v22528_v12, %v22418_v19  ;;  %v22420_v22 = vadd.f32 %v22419_v24, %v22245_v30  ;;  %v34007_v12 = vld [vmem:[#allocation17_spill] sm:$0xff]  ;;  %v34010_v62 = vld [vmem:[#allocation20_spill] sm:$0xff]  ;;  %v34011_v19 = vld [vmem:[#allocation34_spill] sm:$0xff] }
0x1403   :  { %v34012_v30 = vld [vmem:[#allocation28_spill] sm:$0xff]  ;;  %v34013_v24 = vld [vmem:[#allocation18_spill] sm:$0xff] }
0x1404   :  { %34003 = vst [vmem:[#allocation32_spill] sm:$0xff] %v32727_v54  ;;  %v32730_v42 = vsub.f32 %v22533_v29, %v32727_v54  ;;  %v32732_v60 = vand.u32 4294901760, %v22534_v20  ;;  %v22535_v14 = vmax.f32 %v22529_v27, 0.0  ;;  %v22531_v52 = vadd.f32 %v22530_v37, %v22420_v22  ;;  %v34009_v29 = vld [vmem:[#allocation33_spill] sm:$0xff]  ;;  %v34015_v27 = vld [vmem:[#allocation36_spill] sm:$0xff]  ;;  %v34016_v22 = vld [vmem:[#allocation23_spill] sm:$0xff] }
0x1405   :  { %v34017_v37 = vld [vmem:[#allocation37_spill] sm:$0xff] }
0x1406   :  { %v22682_v5 = vand.u32 4294901760, %v32730_v42  ;;  %v22675_v51 = vsub.f32 %v22534_v20, %v32732_v60  ;;  %v32736_v21 = vand.u32 4294901760, %v22535_v14  ;;  %v22536_v58 = vmax.f32 %v22531_v52, 0.0  ;;  %22930 = vmatprep.mubr.f32.mxu1 %v32732_v60  ;;  %v34014_v20 = vld [vmem:[#allocation21_spill] sm:$0xff]  ;;  %v34019_v52 = vld [vmem:[#allocation27_spill] sm:$0xff] }
0x1407   :  { %22932 = vmatmul.mubr.f32.vlgmr.msra.gmra.mxu1 %v32727_v54  ;;  %v34035_v54 = vld [vmem:[#allocation48_spill] sm:$0xff] }
0x1408   :  { %34004 = vst [vmem:[#allocation22_spill] sm:$0xff] %v32736_v21  ;;  %v32741_v1 = vsub.f32 %v22535_v14, %v32736_v21  ;;  %v32743_v63 = vand.u32 4294901760, %v22536_v58  ;;  %24728 = vmatpush3.msra.mxu1 %v32402_v50  ;;  %v22676_v3 = vand.u32 4294901760, %v22675_v51  ;;  %v22683_v48 = vsub.f32 %v32730_v42, %v22682_v5  ;;  %v34018_v14 = vld [vmem:[#allocation35_spill] sm:$0xff] }
0x1409   :  { %24729 = vmatprep.subr.mxu1 %v32407_v32 }
0x140a   :  { %34005 = vst [vmem:[#allocation26_spill] sm:$0xff] %v32743_v63  ;;  %v33484_v38 = vand.u32 4294901760, %v32741_v1  ;;  %v32752_v25 = vsub.f32 %v22536_v58, %v32743_v63  ;;  %24730 = vmatpush3.msra.mxu1 %v32413_v59  ;;  %22937 = vmatprep.mubr.f32.mxu1 %v32743_v63  ;;  %v22677_v56 = vsub.f32 %v22675_v51, %v22676_v3  ;;  %v22684_v49 = vand.u32 4294901760, %v22683_v48  ;;  %v34021_v58 = vld [vmem:[#allocation45_spill] sm:$0xff]  ;;  %v34023_v48 = vld [vmem:[#allocation47_spill] sm:$0xff] }
0x140b   :  { %24731 = vmatprep.subr.mxu1 %v32420_v55  ;;  %22939 = vmatmul.mubr.f32.gmra.mxu1 %v32736_v21  ;;  %v34033_v21 = vld [vmem:[#allocation44_spill] sm:$0xff] }
0x140c   :  { %24732 = vmatpush3.msra.mxu1 %v32427_v4  ;;  %23190 = vmatprep.mubr.f32.mxu1 %v22676_v3  ;;  %v22678_v17 = vand.u32 4294901760, %v22677_v56  ;;  %v33485_v23 = vand.u32 4294901760, %v32752_v25  ;;  %v22698_v31 = vsub.f32 %v32741_v1, %v33484_v38  ;;  %v34022_v3 = vld [vmem:[#allocation46_spill] sm:$0xff]  ;;  %v34034_v63 = vand.u32 4294901760, %v32752_v25 }
0x140d   :  { %24733 = vmatprep.subr.mxu1 %v32437_v57  ;;  %v34024_v56 = vld [vmem:[#allocation50_spill] sm:$0xff] }
0x140e   :  { %24734 = vmatpush3.msra.mxu1 %v32447_v53  ;;  %22679 = vmatprep.mubr.f32.mxu0 %v22678_v17  ;;  %v22692_v18 = vsub.f32 %v32752_v25, %v33485_v23  ;;  %v22699_v2 = vand.u32 4294901760, %v22698_v31  ;;  %v34025_v17 = vld [vmem:[#allocation49_spill] sm:$0xff]  ;;  %v34028_v31 = vld [vmem:[#allocation54_spill] sm:$0xff]  ;;  %v34032_v23 = vld [vmem:[#allocation12_spill] sm:$0xff] }
0x140f   :  { %24735 = vmatprep.subr.mxu1 %v32470_v61  ;;  %22685 = vmatmul.mubr.f32.vlgmr.msra.gmra.mxu0 %v22684_v49  ;;  %v34026_v49 = vld [vmem:[#allocation25_spill] sm:$0xff]  ;;  %v34031_v38 = vld [vmem:[#allocation42_spill] sm:$0xff] }
0x1410   :  { %24690 = vmatpush3.msra.mxu0 %v32411_v11  ;;  %24736 = vmatpush3.msra.mxu1 %v32476_v16  ;;  %v22693_v10 = vand.u32 4294901760, %v22692_v18  ;;  %v34027_v18 = vld [vmem:[#allocation40_spill] sm:$0xff] }
0x1411   :  { %24691 = vmatprep.subr.mxu0 %v32418_v46  ;;  %24737 = vmatprep.subr.mxu1 %v32484_v36 }
0x1412   :  { %24692 = vmatpush3.msra.mxu0 %v32425_v6  ;;  %24738 = vmatpush3.msra.mxu1 %v32493_v45 }
0x1413   :  { %22694 = vmatprep.mubr.f32.mxu0 %v22693_v10  ;;  %24693 = vmatprep.subr.mxu0 %v32435_v39  ;;  %v34029_v10 = vld [vmem:[#allocation16_spill] sm:$0xff] }
0x1414   :  { %24739 = vmatprep.subr.mxu1 %v32500_v47  ;;  %22700 = vmatmul.mubr.f32.gmra.mxu0 %v22699_v2  ;;  %v34030_v2 = vld [vmem:[#allocation31_spill] sm:$0xff] }
0x1415   :  { %24694 = vmatpush3.msra.mxu0 %v32445_v35  ;;  %24740 = vmatpush3.msra.mxu1 %v32507_v0 }
0x1416   :  { %24695 = vmatprep.subr.mxu0 %v32455_v44  ;;  %23074 = vmatprep.mubr.f32.mxu0 %v22675_v51  ;;  %v34020_v51 = vld [vmem:[#allocation38_spill] sm:$0xff] }
0x1417   :  { %24741 = vmatprep.subr.mxu1 %v32517_v43  ;;  %24696 = vmatpush3.msra.mxu0 %v32463_v26 }
0x1418   :  { %24742 = vmatpush3.msra.mxu1 %v32527_v33  ;;  %24697 = vmatprep.subr.mxu0 %v32482_v7 }
0x1419   :  { %24743 = vmatprep.subr.mxu1 %v32550_v28  ;;  %24698 = vmatpush3.msra.mxu0 %v32491_v40 }
0x141a   :  { %24744 = vmatpush3.msra.mxu1 %v32556_v9  ;;  %24699 = vmatprep.subr.mxu0 %v32498_v34 }
0x141b   :  { %24745 = vmatprep.subr.mxu1 %v32564_v8  ;;  %24700 = vmatpush3.msra.mxu0 %v32505_v15 }
0x141c   :  { %24746 = vmatpush3.msra.mxu1 %v34006_v13  ;;  %24701 = vmatprep.subr.mxu0 %v34007_v12 }
0x141d   :  { %24747 = vmatprep.subr.mxu1 %v34008_v41  ;;  %24702 = vmatpush3.msra.mxu0 %v34009_v29 }
0x141e   :  { %24748 = vmatpush3.msra.mxu1 %v34010_v62  ;;  %24703 = vmatprep.subr.mxu0 %v34011_v19 }
0x141f   :  { %24749 = vmatprep.subr.mxu1 %v34012_v30  ;;  %24704 = vmatpush3.msra.mxu0 %v34013_v24 }
0x1420   :  { %24750 = vmatpush3.msra.mxu1 %v34014_v20  ;;  %24705 = vmatprep.subr.mxu0 %v34015_v27 }
0x1421   :  { %24751 = vmatprep.subr.mxu1 %v34016_v22  ;;  %24706 = vmatpush3.msra.mxu0 %v34017_v37 }
0x1422   :  { %24752 = vmatpush3.msra.mxu1 %v34018_v14  ;;  %24707 = vmatprep.subr.mxu0 %v34019_v52 }
0x1423   :  { %24753 = vmatprep.subr.mxu1 %v34020_v51  ;;  %24708 = vmatpush3.msra.mxu0 %v34021_v58 }
0x1424   :  { %24754 = vmatpush3.msra.mxu1 %v34022_v3  ;;  %24709 = vmatprep.subr.mxu0 %v34023_v48 }
0x1425   :  { %24755 = vmatprep.subr.mxu1 %v34024_v56  ;;  %24710 = vmatpush3.msra.mxu0 %v34025_v17 }
0x1426   :  { %24756 = vmatpush3.msra.mxu1 %v34026_v49  ;;  %24711 = vmatprep.subr.mxu0 %v34027_v18 }
0x1427   :  { %24757 = vmatprep.subr.mxu1 %v34028_v31  ;;  %24712 = vmatpush3.msra.mxu0 %v34029_v10  ;;  %v34036_v10 = vld [vmem:[#allocation51_spill] sm:$0xff] }
0x1428   :  { %24758 = vmatpush3.msra.mxu1 %v34030_v2  ;;  %24713 = vmatprep.subr.mxu0 %v34031_v38  ;;  %v34037_v38 = vld [vmem:[#allocation52_spill] sm:$0xff] }
0x1429   :  { %23194 = vmatmul.mubr.f32.vlgmr.msra.gmra.mxu1 %v22682_v5  ;;  %24803 = vmatprep.subr.mxu1 %v34032_v23  ;;  %v34038_v5 = vand.u32 4294901760, %v32741_v1  ;;  %v34039_v23 = vld [vmem:[#allocation19_spill] sm:$0xff] }
0x142a   :  { %24714 = vmatpush3.msra.mxu0 %v34033_v21  ;;  %23201 = vmatprep.mubr.f32.mxu1 %v34034_v63 }
0x142b   :  { %24804 = vmatpush3.msra.mxu1 %v32402_v50  ;;  %24715 = vmatprep.subr.mxu0 %v34035_v54  ;;  %v34040_v50 = vld [vmem:[#allocation53_spill] sm:$0xff] }
0x142c   :  { %24805 = vmatprep.subr.mxu1 %v32407_v32  ;;  %24716 = vmatpush3.msra.mxu0 %v34036_v10  ;;  %v34041_v32 = vld [vmem:[#allocation24_spill] sm:$0xff] }
0x142d   :  { %24806 = vmatpush3.msra.mxu1 %v32413_v59  ;;  %24717 = vmatprep.subr.mxu0 %v34037_v38  ;;  %v34042_v59 = vld [vmem:[#allocation15_spill] sm:$0xff] }
0x142e   :  { %23205 = vmatmul.mubr.f32.gmra.mxu1 %v34038_v5  ;;  %24807 = vmatprep.subr.mxu1 %v32420_v55  ;;  %v34043_v63 = vand.u32 4294901760, %v34042_v59  ;;  %v34044_v55 = vand.u32 4294901760, %v32411_v11  ;;  %v34048_v11 = vand.u32 4294901760, %v32445_v35  ;;  %v34052_v35 = vand.u32 4294901760, %v32491_v40 }
0x142f   :  { %24718 = vmatpush3.msra.mxu0 %v34039_v23  ;;  %24808 = vmatpush3.msra.mxu1 %v32427_v4  ;;  %v34045_v4 = vand.u32 4294901760, %v32418_v46  ;;  %v34049_v46 = vand.u32 4294901760, %v32455_v44  ;;  %v34053_v44 = vand.u32 4294901760, %v32498_v34  ;;  %v34059_v40 = vand.u32 4294901760, %v34015_v27 }
0x1430   :  { %23482 = vmatprep.mubr.f32.mxu1 %v32732_v60  ;;  %24719 = vmatprep.subr.mxu0 %v34040_v50  ;;  %v34061_v34 = vand.u32 4294901760, %v34019_v52 }
0x1431   :  { %24809 = vmatprep.subr.mxu1 %v32437_v57  ;;  %24720 = vmatpush3.msra.mxu0 %v34041_v32  ;;  %v34046_v57 = vand.u32 4294901760, %v32425_v6  ;;  %v34050_v6 = vand.u32 4294901760, %v32463_v26  ;;  %v34054_v26 = vand.u32 4294901760, %v32505_v15  ;;  %v34063_v15 = vand.u32 4294901760, %v34023_v48  ;;  %v23564_v48 = vld [vmem:[%s32961_s8 + $0x1] ss:$0 sm:$0xff] }
0x1432   :  { %24810 = vmatpush3.msra.mxu1 %v32447_v53  ;;  %23077 = vmatmul.mubr.f32.vlgmr.msra.gmra.mxu0 %v32730_v42  ;;  %v34047_v53 = vand.u32 4294901760, %v32435_v39  ;;  %v34051_v39 = vand.u32 4294901760, %v32482_v7  ;;  %v34057_v7 = vand.u32 4294901760, %v34011_v19  ;;  %v34070_v42 = vld [vmem:[#allocation32_spill] sm:$0xff] }
0x1433   :  { %24765 = vmatprep.subr.mxu0 %v34043_v63  ;;  %24811 = vmatprep.subr.mxu1 %v32470_v61  ;;  %v34055_v61 = vand.u32 4294901760, %v34007_v12  ;;  %v34075_v12 = vand.u32 4294901760, %v34037_v38 }
0x1434   :  { %23083 = vmatprep.mubr.f32.mxu0 %v32752_v25  ;;  %24766 = vmatpush3.msra.mxu0 %v34044_v55  ;;  %v34073_v25 = vand.u32 4294901760, %v34035_v54 }
0x1435   :  { %24812 = vmatpush3.msra.mxu1 %v32476_v16  ;;  %24767 = vmatprep.subr.mxu0 %v34045_v4  ;;  %v34056_v16 = vand.u32 4294901760, %v34009_v29  ;;  %v34077_v29 = vand.u32 4294901760, %v34039_v23 }
0x1436   :  { %24813 = vmatprep.subr.mxu1 %v32484_v36  ;;  %24768 = vmatpush3.msra.mxu0 %v34046_v57  ;;  %v34058_v36 = vand.u32 4294901760, %v34013_v24 }
0x1437   :  { %24814 = vmatpush3.msra.mxu1 %v32493_v45  ;;  %23086 = vmatmul.mubr.f32.gmra.mxu0 %v32741_v1  ;;  %v34060_v45 = vand.u32 4294901760, %v34017_v37  ;;  %v34072_v1 = vld [vmem:[#allocation26_spill] sm:$0xff] }
0x1438   :  { %24769 = vmatprep.subr.mxu0 %v34047_v53  ;;  %24815 = vmatprep.subr.mxu1 %v32500_v47  ;;  %v34062_v47 = vand.u32 4294901760, %v34021_v58 }
0x1439   :  { %24770 = vmatpush3.msra.mxu0 %v34048_v11  ;;  %23371 = vmatprep.mubr.f32.mxu0 %v32732_v60  ;;  %v34071_v60 = vand.u32 4294901760, %v34033_v21  ;;  %v34079_v21 = vand.u32 4294901760, %v34041_v32 }
0x143a   :  { %24816 = vmatpush3.msra.mxu1 %v32507_v0  ;;  %24771 = vmatprep.subr.mxu0 %v34049_v46  ;;  %v34064_v0 = vand.u32 4294901760, %v34025_v17 }
0x143b   :  { %24817 = vmatprep.subr.mxu1 %v32517_v43  ;;  %24772 = vmatpush3.msra.mxu0 %v34050_v6  ;;  %v34065_v43 = vand.u32 4294901760, %v34027_v18 }
0x143c   :  { %24818 = vmatpush3.msra.mxu1 %v32527_v33  ;;  %24773 = vmatprep.subr.mxu0 %v34051_v39  ;;  %v34066_v33 = vld [vmem:[#allocation16_spill] sm:$0xff] }
0x143d   :  { %24819 = vmatprep.subr.mxu1 %v32550_v28  ;;  %24774 = vmatpush3.msra.mxu0 %v34052_v35  ;;  %v34067_v28 = vand.u32 4294901760, %v34066_v33 }
0x143e   :  { %24820 = vmatpush3.msra.mxu1 %v32556_v9  ;;  %24775 = vmatprep.subr.mxu0 %v34053_v44  ;;  %v34068_v9 = vld [vmem:[#allocation42_spill] sm:$0xff] }
0x143f   :  { %24821 = vmatprep.subr.mxu1 %v32564_v8  ;;  %24776 = vmatpush3.msra.mxu0 %v34054_v26  ;;  %v34069_v8 = vand.u32 4294901760, %v34068_v9 }
0x1440   :  { %24822 = vmatpush3.msra.mxu1 %v34006_v13  ;;  %24777 = vmatprep.subr.mxu0 %v34055_v61  ;;  %v34074_v13 = vand.u32 4294901760, %v34036_v10 }
0x1441   :  { %24823 = vmatprep.subr.mxu1 %v34008_v41  ;;  %24778 = vmatpush3.msra.mxu0 %v34056_v16  ;;  %v34076_v41 = vld [vmem:[#allocation22_spill] sm:$0xff] }
0x1442   :  { %24824 = vmatpush3.msra.mxu1 %v34010_v62  ;;  %24779 = vmatprep.subr.mxu0 %v34057_v7  ;;  %v34078_v62 = vand.u32 4294901760, %v34040_v50 }
0x1443   :  { %24825 = vmatprep.subr.mxu1 %v34012_v30  ;;  %24780 = vmatpush3.msra.mxu0 %v34058_v36 }
0x1444   :  { %24826 = vmatpush3.msra.mxu1 %v34014_v20  ;;  %24781 = vmatprep.subr.mxu0 %v34059_v40 }
0x1445   :  { %24827 = vmatprep.subr.mxu1 %v34016_v22  ;;  %24782 = vmatpush3.msra.mxu0 %v34060_v45 }
0x1446   :  { %24828 = vmatpush3.msra.mxu1 %v34018_v14  ;;  %24783 = vmatprep.subr.mxu0 %v34061_v34 }
0x1447   :  { %24829 = vmatprep.subr.mxu1 %v34020_v51  ;;  %24784 = vmatpush3.msra.mxu0 %v34062_v47 }
0x1448   :  { %24830 = vmatpush3.msra.mxu1 %v34022_v3  ;;  %24785 = vmatprep.subr.mxu0 %v34063_v15 }
0x1449   :  { %24831 = vmatprep.subr.mxu1 %v34024_v56  ;;  %24786 = vmatpush3.msra.mxu0 %v34064_v0  ;;  %v34080_v0 = vld [vmem:[#allocation29_spill] sm:$0xff] }
0x144a   :  { %24832 = vmatpush3.msra.mxu1 %v34026_v49  ;;  %24787 = vmatprep.subr.mxu0 %v34065_v43 }
0x144b   :  { %24833 = vmatprep.subr.mxu1 %v34028_v31  ;;  %24788 = vmatpush3.msra.mxu0 %v34067_v28  ;;  %v34081_v28 = vld [vmem:[#allocation39_spill] sm:$0xff] }
0x144c   :  { %24834 = vmatpush3.msra.mxu1 %v34030_v2  ;;  %24789 = vmatprep.subr.mxu0 %v34069_v8 }
0x144d   :  { %23484 = vmatmul.mubr.f32.vlgmr.msra.gmra.mxu1 %v34070_v42  ;;  %24790 = vmatpush3.msra.mxu0 %v34071_v60 }
0x144e   :  { %23489 = vmatprep.mubr.f32.mxu1 %v34072_v1  ;;  %24791 = vmatprep.subr.mxu0 %v34073_v25 }
0x144f   :  { %24792 = vmatpush3.msra.mxu0 %v34074_v13 }
0x1450   :  { %24793 = vmatprep.subr.mxu0 %v34075_v12 }
0x1451   :  { %23491 = vmatmul.mubr.f32.gmra.mxu1 %v34076_v41  ;;  %24794 = vmatpush3.msra.mxu0 %v34077_v29 }
0x1452   :  { %24795 = vmatprep.subr.mxu0 %v34078_v62 }
0x1453   :  { %24796 = vmatpush3.msra.mxu0 %v34079_v21 }
0x1454   :  { %23373 = vmatmul.mubr.f32.vlgmr.msra.gmra.mxu0 %v34070_v42 }
0x1455   :  { %23378 = vmatprep.mubr.f32.mxu0 %v34072_v1 }
0x1458   :  { %23380 = vmatmul.mubr.f32.gmra.mxu0 %v34076_v41 }
0x14c7   :  { %v24683_v54 = vpop.f32.mrf.mxu1 }
0x14c9   :  { %v24684_v38 = vpop.f32.mrf.mxu1 }
0x14ca   :  { %v24685_v10 = vadd.f32 %v24684_v38, %v24683_v54 }
0x14cb   :  { %v24686_v30 = vpop.f32.mrf.mxu1 }
0x14cd   :  { %v24687_v20 = vpop.f32.mrf.mxu1 }
0x14ce   :  { %v24688_v59 = vadd.f32 %v24687_v20, %v24686_v30 }
0x14cf   :  { %v24645_v19 = vpop.f32.mrf.mxu0 }
0x14d1   :  { %v24646_v24 = vpop.f32.mrf.mxu0 }
0x14d2   :  { %v24647_v3 = vadd.f32 %v24646_v24, %v24645_v19  ;;  %v23567_v24 = vld [vmem:[%s32964_s11 + $0x1] ss:$0 sm:$0xff] }
0x14d4   :  { %v24648_v27 = vpop.f32.mrf.mxu0  ;;  %v22687_v49 = vadd.f32 %v24647_v3, %v23564_v48 }
0x14d6   :  { %v24649_v37 = vpop.f32.mrf.mxu0  ;;  %v22934_v50 = vadd.f32 %v24685_v10, %v22687_v49 }
0x14d7   :  { %v24650_v18 = vadd.f32 %v24649_v37, %v24648_v27  ;;  %v23568_v27 = vld [vmem:[%s32965_s12 + $0x1] ss:$0 sm:$0xff] }
0x14d9   :  { %v22702_v23 = vadd.f32 %v24650_v18, %v23564_v48 }
0x14db   :  { %v22941_v53 = vadd.f32 %v24688_v59, %v22702_v23 }
0x14e9   :  { %v24759_v22 = vpop.f32.mrf.mxu1 }
0x14eb   :  { %v24760_v14 = vpop.f32.mrf.mxu1 }
0x14ec   :  { %v24761_v57 = vadd.f32 %v24760_v14, %v24759_v22 }
0x14ee   :  { %v24762_v51 = vpop.f32.mrf.mxu1 }
0x14f0   :  { %v24763_v56 = vpop.f32.mrf.mxu1 }
0x14f1   :  { %v24764_v26 = vadd.f32 %v24763_v56, %v24762_v51 }
0x14f2   :  { %v24721_v52 = vpop.f32.mrf.mxu0 }
0x14f4   :  { %v24722_v58 = vpop.f32.mrf.mxu0 }
0x14f5   :  { %v24723_v2 = vadd.f32 %v24722_v58, %v24721_v52 }
0x14f7   :  { %v24724_v17 = vpop.f32.mrf.mxu0  ;;  %v23079_v63 = vadd.f32 %v24723_v2, %v22934_v50 }
0x14f9   :  { %v24725_v5 = vpop.f32.mrf.mxu0  ;;  %v23196_v39 = vadd.f32 %v24761_v57, %v23079_v63 }
0x14fa   :  { %v24726_v55 = vadd.f32 %v24725_v5, %v24724_v17 }
0x14fc   :  { %v23088_v6 = vadd.f32 %v24726_v55, %v22941_v53 }
0x14fe   :  { %v23207_v40 = vadd.f32 %v24764_v26, %v23088_v6 }
0x150d   :  { %v24835_v31 = vpop.f32.mrf.mxu1 }
0x150f   :  { %v24836_v32 = vpop.f32.mrf.mxu1 }
0x1510   :  { %v24837_v61 = vadd.f32 %v24836_v32, %v24835_v31 }
0x1511   :  { %v24838_v11 = vpop.f32.mrf.mxu1 }
0x1513   :  { %v24839_v7 = vpop.f32.mrf.mxu1 }
0x1514   :  { %v24797_v4 = vpop.f32.mrf.mxu0  ;;  %v24840_v47 = vadd.f32 %v24839_v7, %v24838_v11 }
0x1516   :  { %v24798_v46 = vpop.f32.mrf.mxu0 }
0x1517   :  { %v24799_v35 = vadd.f32 %v24798_v46, %v24797_v4 }
0x1518   :  { %v24800_v44 = vpop.f32.mrf.mxu0 }
0x1519   :  { %v23375_v16 = vadd.f32 %v24799_v35, %v23196_v39 }
0x151a   :  { %v24801_v36 = vpop.f32.mrf.mxu0 }
0x151b   :  { %v24802_v45 = vadd.f32 %v24801_v36, %v24800_v44  ;;  %v23486_v34 = vadd.f32 %v24837_v61, %v23375_v16 }
0x151d   :  { %v23382_v15 = vadd.f32 %v24802_v45, %v23207_v40  ;;  %v23496_v43 = vadd.f32 %v23486_v34, %v34080_v0 }
0x151f   :  { %23502 = vadd.xlane.f32.xlu1 %v23496_v43  ;;  %v23493_v33 = vadd.f32 %v24840_v47, %v23382_v15 }
0x1521   :  { %v23497_v9 = vadd.f32 %v23493_v33, %v34081_v28 }
0x1523   :  { %23504 = vadd.xlane.f32.xlu0 %v23497_v9 }
0x15a8   :  { %v23503_v8 = vpop.xlane.xlu1 %23502 }
0x15a9   :  { %v23506_v42 = vmul.f32 0.0078125, %v23503_v8 }
0x15ab   :  { %v23508_v60 = vsub.f32 %v23496_v43, %v23506_v42 }
0x15ac   :  { %v23505_v1 = vpop.xlane.xlu0 %23504 }
0x15ad   :  { %v23507_v25 = vmul.f32 0.0078125, %v23505_v1  ;;  %v23510_v13 = vmul.f32 %v23508_v60, %v23508_v60 }
0x15af   :  { %v23509_v12 = vsub.f32 %v23497_v9, %v23507_v25  ;;  %23512 = vadd.xlane.f32.xlu1 %v23510_v13 }
0x15b1   :  { %v23511_v41 = vmul.f32 %v23509_v12, %v23509_v12 }
0x15b3   :  { %23514 = vadd.xlane.f32.xlu0 %v23511_v41 }
0x1638   :  { %v23513_v29 = vpop.xlane.xlu1 %23512 }
0x1639   :  { %v23516_v62 = vmul.f32 0.0078125, %v23513_v29 }
0x163b   :  { %v23518_v21 = vadd.f32 1e-05, %v23516_v62 }
0x163c   :  { %v23515_v54 = vpop.xlane.xlu0 %23514 }
0x163d   :  { %26732 = vrsqrt.f32 %v23518_v21  ;;  %v23517_v38 = vmul.f32 0.0078125, %v23515_v54 }
0x163f   :  { %v23519_v19 = vadd.f32 1e-05, %v23517_v38 }
0x1641   :  { %26734 = vrsqrt.f32 %v23519_v19 }
0x164a   :  { %v26733_v30 = vpop.eup %26732 }
0x164b   :  { %v23522_v20 = vmul.f32 %v26733_v30, %v23508_v60 }
0x164d   :  { %v23530_v22 = vmul.f32 %v23567_v24, %v23522_v20 }
0x164e   :  { %v26735_v37 = vpop.eup %26734 }
0x164f   :  { %v23538_v14 = vadd.f32 %v23568_v27, %v23530_v22  ;;  %v23523_v52 = vmul.f32 %v26735_v37, %v23509_v12 }
0x1651   :  { %23540 = vst [vmem:[%s32966_s13] sm:$0xff] %v23538_v14  ;;  %v23531_v51 = vmul.f32 %v23567_v24, %v23523_v52 }
0x1653   :  { %v23539_v58 = vadd.f32 %v23568_v27, %v23531_v51 }
0x1655   :  { %23541 = vst [vmem:[%s32966_s13 + $0x8] sm:$0xff] %v23539_v58 }
0x1656   :  { %23546 = vsyncpa [#allocation3], 1 }
0x1657   :  { %23547 = vsyncpa [#allocation5], 1 }
0x1658   :  { %23548 = vsyncpa [#allocation8], 1 }

</bundles_post_ra>
